<compile_context>
chip_gen: v5e
topology: v5e:2x2
jax: 0.10.0
libtpu: 0.0.40
codegen_flags: <defaults>
</compile_context>

<pallas_src>
import functools

import jax
import jax.numpy as jnp
from jax.experimental import pallas as pl
from jax.experimental.pallas import tpu as pltpu


def _round_up(x, m):
    return ((x + m - 1) // m) * m


# ----------------------------------------------------------------------------
# Pallas kernels: fused (A @ B + bias) with optional ReLU
# ----------------------------------------------------------------------------
def _mm_bias_kernel_fullk(a_ref, b_ref, bias_ref, o_ref, *, apply_relu):
    # Single K tile: no scratch accumulator, accumulate purely in vregs.
    out = jnp.dot(a_ref[...], b_ref[...], preferred_element_type=jnp.float32)
    out = out + bias_ref[...]                       # bias broadcasts over rows
    if apply_relu:
        out = jnp.maximum(out, 0.0)
    o_ref[...] = out.astype(o_ref.dtype)


def _mm_bias_kernel_acc(a_ref, b_ref, bias_ref, o_ref, acc_ref, *, apply_relu):
    k = pl.program_id(2)

    @pl.when(k == 0)
    def _():
        acc_ref[...] = jnp.zeros_like(acc_ref)

    acc_ref[...] += jnp.dot(a_ref[...], b_ref[...],
                            preferred_element_type=jnp.float32)

    @pl.when(k == pl.num_programs(2) - 1)
    def _():
        out = acc_ref[...] + bias_ref[...]
        if apply_relu:
            out = jnp.maximum(out, 0.0)
        o_ref[...] = out.astype(o_ref.dtype)


def pallas_matmul_bias(a, b_pad, bias_pad, *, apply_relu, n_cols,
                       tm=256, tn=128, tk=None, out_dtype=jnp.float32):
    """relu_opt(a @ b + bias).

    a:        (M, K) float, cast to bf16 here (f32 accumulate inside the kernel)
    b_pad:    (Kp, Np) bf16, pre-padded weights (Kp, Np multiples of 128)
    bias_pad: (1, Np)  f32,  pre-padded bias
    Returns (M, n_cols) in out_dtype.
    """
    M, K = a.shape
    Kp, Np = b_pad.shape
    if tk is None:
        tk = Kp                                      # single K tile -> 2-D grid
    assert Kp % tk == 0 and Np % tn == 0 and tk % 128 == 0
    Mp = _round_up(M, tm)
    a_p = jnp.pad(a.astype(jnp.bfloat16), ((0, Mp - M), (0, Kp - K)))
    nk = Kp // tk

    if nk == 1:
        kernel = functools.partial(_mm_bias_kernel_fullk, apply_relu=apply_relu)
        out = pl.pallas_call(
            kernel,
            out_shape=jax.ShapeDtypeStruct((Mp, Np), out_dtype),
            grid_spec=pltpu.PrefetchScalarGridSpec(
                num_scalar_prefetch=0,
                grid=(Mp // tm, Np // tn),
                in_specs=[
                    pl.BlockSpec((tm, Kp), lambda i, j: (i, 0)),
                    pl.BlockSpec((Kp, tn), lambda i, j: (0, j)),
                    pl.BlockSpec((1, tn), lambda i, j: (0, j)),
                ],
                out_specs=pl.BlockSpec((tm, tn), lambda i, j: (i, j)),
            ),
            compiler_params=pltpu.CompilerParams(
                dimension_semantics=("parallel", "parallel")),
        )(a_p, b_pad, bias_pad)
    else:
        kernel = functools.partial(_mm_bias_kernel_acc, apply_relu=apply_relu)
        out = pl.pallas_call(
            kernel,
            out_shape=jax.ShapeDtypeStruct((Mp, Np), out_dtype),
            grid_spec=pltpu.PrefetchScalarGridSpec(
                num_scalar_prefetch=0,
                grid=(Mp // tm, Np // tn, nk),
                in_specs=[
                    pl.BlockSpec((tm, tk), lambda i, j, k: (i, k)),
                    pl.BlockSpec((tk, tn), lambda i, j, k: (k, j)),
                    pl.BlockSpec((1, tn), lambda i, j, k: (0, j)),
                ],
                out_specs=pl.BlockSpec((tm, tn), lambda i, j, k: (i, j)),
                scratch_shapes=[pltpu.VMEM((tm, tn), jnp.float32)],
            ),
            compiler_params=pltpu.CompilerParams(
                dimension_semantics=("parallel", "parallel", "arbitrary")),
        )(a_p, b_pad, bias_pad)
    return out[:M, :n_cols]


# ----------------------------------------------------------------------------
# Conv2d (valid padding, stride 1) in NHWC via im2col + Pallas matmul kernel
# ----------------------------------------------------------------------------
# TODO(synk): move im2col patch extraction into the Pallas kernel (shifted-row
# loads from an NHWC VMEM tile) to avoid the kh*kw-duplicated patch HBM traffic.
def conv2d_relu_nhwc(x, w_pad, bias_pad, *, cout, kh=3, kw=3):
    n, h, w, c = x.shape
    ho, wo = h - kh + 1, w - kw + 1
    # Column order (i, j, ci) matches the prepared weight's row order.
    slabs = [x[:, i:i + ho, j:j + wo, :] for i in range(kh) for j in range(kw)]
    patches = jnp.concatenate(slabs, axis=-1)        # (N, Ho, Wo, kh*kw*C)
    patches = patches.reshape(n * ho * wo, kh * kw * c)
    y = pallas_matmul_bias(patches, w_pad, bias_pad, apply_relu=True,
                           n_cols=cout, tm=256, out_dtype=jnp.bfloat16)
    return y.reshape(n, ho, wo, cout)                # stays NHWC, no transpose


# ----------------------------------------------------------------------------
# Parameters: PyTorch-layout init + one-time prep (transpose / pad / bf16)
# ----------------------------------------------------------------------------
def init_params(key):
    ks = jax.random.split(key, 4)

    def conv_init(k, cout, cin, kh, kw):
        fan_in = cin * kh * kw
        scale = (2.0 / fan_in) ** 0.5
        return (jax.random.normal(k, (cout, cin, kh, kw), jnp.float32) * scale,
                jnp.zeros((cout,), jnp.float32))

    w1, b1 = conv_init(ks[0], 32, 1, 3, 3)
    w2, b2 = conv_init(ks[1], 64, 32, 3, 3)
    w3, b3 = conv_init(ks[2], 64, 64, 3, 3)
    in_feat = 64 * (28 - 6) * (28 - 6)               # 30976
    wl = jax.random.normal(ks[3], (10, in_feat), jnp.float32) * (1.0 / in_feat) ** 0.5
    bl = jnp.zeros((10,), jnp.float32)
    return dict(w1=w1, b1=b1, w2=w2, b2=b2, w3=w3, b3=b3, wl=wl, bl=bl)


def prepare_params(params):
    """One-time weight preprocessing (hoisted out of the forward path)."""
    def prep_conv(w, b):
        cout, cin, kh, kw = w.shape
        k = kh * kw * cin
        kp = _round_up(k, 128)
        # rows ordered (kh, kw, ci) to match the NHWC im2col column order
        w_mat = jnp.transpose(w, (2, 3, 1, 0)).reshape(k, cout)
        w_p = jnp.pad(w_mat, ((0, kp - k), (0, 128 - cout))).astype(jnp.bfloat16)
        b_p = jnp.pad(b.astype(jnp.float32).reshape(1, -1), ((0, 0), (0, 128 - cout)))
        return w_p, b_p

    w1, b1 = prep_conv(params["w1"], params["b1"])
    w2, b2 = prep_conv(params["w2"], params["b2"])
    w3, b3 = prep_conv(params["w3"], params["b3"])

    # Linear: permute columns from torch's NCHW flatten order (c, h, w) to the
    # NHWC flatten order (h, w, c) used internally, then transpose & pad.
    c, h, w = 64, 22, 22
    wl = params["wl"]                                # (10, c*h*w)
    wl_nhwc = wl.reshape(10, c, h, w).transpose(0, 2, 3, 1).reshape(10, h * w * c)
    k = h * w * c
    kp = _round_up(k, 128)                           # 30976, already aligned
    wl_p = jnp.pad(wl_nhwc.T, ((0, kp - k), (0, 128 - 10))).astype(jnp.bfloat16)
    bl_p = jnp.pad(params["bl"].astype(jnp.float32).reshape(1, -1),
                   ((0, 0), (0, 128 - 10)))
    return dict(w1=w1, b1=b1, w2=w2, b2=b2, w3=w3, b3=b3, wl=wl_p, bl=bl_p)


# ----------------------------------------------------------------------------
# Forward pass
# ----------------------------------------------------------------------------
def image_classifier_forward(x, prep):
    # x: (N, 1, 28, 28) float32, NCHW (matches PyTorch). Convert once to NHWC.
    x = jnp.transpose(x, (0, 2, 3, 1))                       # (N, 28, 28, 1)
    x = conv2d_relu_nhwc(x, prep["w1"], prep["b1"], cout=32)  # (N, 26, 26, 32)
    x = conv2d_relu_nhwc(x, prep["w2"], prep["b2"], cout=64)  # (N, 24, 24, 64)
    x = conv2d_relu_nhwc(x, prep["w3"], prep["b3"], cout=64)  # (N, 22, 22, 64)
    n = x.shape[0]
    flat = x.reshape(n, -1)                                   # NHWC flatten
    kp = prep["wl"].shape[0]                                  # 30976
    logits = pallas_matmul_bias(flat, prep["wl"], prep["bl"],
                                apply_relu=False, n_cols=10,
                                tm=8, tk=kp // 2,             # grid (1, 1, 2)
                                out_dtype=jnp.float32)
    return logits


if __name__ == "__main__":
    # Input spatial size is fixed at 28x28 by the Linear layer's in_features.
    x = jax.random.normal(jax.random.PRNGKey(0), (2, 1, 28, 28), jnp.float32)
    params = init_params(jax.random.PRNGKey(42))
    prep = prepare_params(params)

    fwd = jax.jit(image_classifier_forward)
    logits = jax.block_until_ready(fwd(x, prep))
    assert logits.shape == (2, 10), logits.shape
    assert bool(jnp.all(jnp.isfinite(logits)))
    print("KERNEL_OK")
</pallas_src>

<mosaic_0001>
module attributes {stable_mosaic.version = 11 : i64} {
  func.func @_mm_bias_kernel_fullk(%arg0: i32, %arg1: i32, %arg2: memref<256x128xbf16, #tpu.memory_space<vmem>>, %arg3: memref<128x128xbf16, #tpu.memory_space<vmem>>, %arg4: memref<1x128xf32, #tpu.memory_space<vmem>>, %arg5: memref<256x128xbf16, #tpu.memory_space<vmem>>) attributes {dimension_semantics = [#tpu.dimension_semantics<parallel>, #tpu.dimension_semantics<parallel>], iteration_bounds = array<i64: 6, 1>, scalar_prefetch = 0 : i64, scratch_operands = 0 : i64, tpu.core_type = #tpu.core_type<tc>, window_params = [{transform_indices = @transform_0, window_bounds = array<i64: 256, 128>}, {transform_indices = @transform_1, window_bounds = array<i64: 128, 128>}, {transform_indices = @transform_2, window_bounds = array<i64: 1, 128>}, {transform_indices = @transform_3, window_bounds = array<i64: 256, 128>}]} {
    %c0 = arith.constant 0 : index
    %c0_0 = arith.constant 0 : index
    %0 = vector.load %arg2[%c0, %c0_0] : memref<256x128xbf16, #tpu.memory_space<vmem>>, vector<256x128xbf16>
    %c0_1 = arith.constant 0 : index
    %c0_2 = arith.constant 0 : index
    %1 = vector.load %arg3[%c0_1, %c0_2] : memref<128x128xbf16, #tpu.memory_space<vmem>>, vector<128x128xbf16>
    %cst = arith.constant dense<0.000000e+00> : vector<256x128xf32>
    %2 = tpu.matmul %0, %1, %cst {dimension_numbers = #tpu.dot_dimension_numbers<[1], [0], [0], [1], [0, 0, 1, 1], [], []>} : vector<256x128xbf16>, vector<128x128xbf16>, vector<256x128xf32> -> vector<256x128xf32>
    %c0_3 = arith.constant 0 : index
    %c0_4 = arith.constant 0 : index
    %3 = vector.load %arg4[%c0_3, %c0_4] : memref<1x128xf32, #tpu.memory_space<vmem>>, vector<1x128xf32>
    %4 = vector.broadcast %3 : vector<1x128xf32> to vector<256x128xf32>
    %5 = arith.addf %2, %4 : vector<256x128xf32>
    %cst_5 = arith.constant 0.000000e+00 : f32
    %6 = vector.broadcast %cst_5 : f32 to vector<256x128xf32>
    %7 = arith.maximumf %5, %6 : vector<256x128xf32>
    %8 = arith.truncf %7 : vector<256x128xf32> to vector<256x128xbf16>
    %c0_6 = arith.constant 0 : index
    %c0_7 = arith.constant 0 : index
    %9 = vector.load %arg5[%c0_6, %c0_7] : memref<256x128xbf16, #tpu.memory_space<vmem>>, vector<256x128xbf16>
    tpu.vector_store %arg5[%c0_6, %c0_7], %8 {strides = array<i32>} : memref<256x128xbf16, #tpu.memory_space<vmem>>, vector<256x128xbf16>,
    return
  }
  func.func @transform_0(%arg0: i32, %arg1: i32) -> (i32, i32) {
    %c0_i32 = arith.constant 0 : i32
    %c0_i32_0 = arith.constant 0 : i32
    return %arg0, %c0_i32 : i32, i32
  }
  func.func @transform_1(%arg0: i32, %arg1: i32) -> (i32, i32) {
    %c0_i32 = arith.constant 0 : i32
    %c0_i32_0 = arith.constant 0 : i32
    return %c0_i32, %arg1 : i32, i32
  }
  func.func @transform_2(%arg0: i32, %arg1: i32) -> (i32, i32) {
    %c0_i32 = arith.constant 0 : i32
    %c0_i32_0 = arith.constant 0 : i32
    return %c0_i32, %arg1 : i32, i32
  }
  func.func @transform_3(%arg0: i32, %arg1: i32) -> (i32, i32) {
    %c0_i32 = arith.constant 0 : i32
    return %arg0, %arg1 : i32, i32
  }
}

module attributes {stable_mosaic.version = 11 : i64} {
  func.func @_mm_bias_kernel_fullk(%arg0: i32, %arg1: i32, %arg2: memref<256x384xbf16, #tpu.memory_space<vmem>>, %arg3: memref<384x128xbf16, #tpu.memory_space<vmem>>, %arg4: memref<1x128xf32, #tpu.memory_space<vmem>>, %arg5: memref<256x128xbf16, #tpu.memory_space<vmem>>) attributes {dimension_semantics = [#tpu.dimension_semantics<parallel>, #tpu.dimension_semantics<parallel>], iteration_bounds = array<i64: 5, 1>, scalar_prefetch = 0 : i64, scratch_operands = 0 : i64, tpu.core_type = #tpu.core_type<tc>, window_params = [{transform_indices = @transform_0, window_bounds = array<i64: 256, 384>}, {transform_indices = @transform_1, window_bounds = array<i64: 384, 128>}, {transform_indices = @transform_2, window_bounds = array<i64: 1, 128>}, {transform_indices = @transform_3, window_bounds = array<i64: 256, 128>}]} {
    %c0 = arith.constant 0 : index
    %c0_0 = arith.constant 0 : index
    %0 = vector.load %arg2[%c0, %c0_0] : memref<256x384xbf16, #tpu.memory_space<vmem>>, vector<256x384xbf16>
    %c0_1 = arith.constant 0 : index
    %c0_2 = arith.constant 0 : index
    %1 = vector.load %arg3[%c0_1, %c0_2] : memref<384x128xbf16, #tpu.memory_space<vmem>>, vector<384x128xbf16>
    %cst = arith.constant dense<0.000000e+00> : vector<256x128xf32>
    %2 = tpu.matmul %0, %1, %cst {dimension_numbers = #tpu.dot_dimension_numbers<[1], [0], [0], [1], [0, 0, 1, 1], [], []>} : vector<256x384xbf16>, vector<384x128xbf16>, vector<256x128xf32> -> vector<256x128xf32>
    %c0_3 = arith.constant 0 : index
    %c0_4 = arith.constant 0 : index
    %3 = vector.load %arg4[%c0_3, %c0_4] : memref<1x128xf32, #tpu.memory_space<vmem>>, vector<1x128xf32>
    %4 = vector.broadcast %3 : vector<1x128xf32> to vector<256x128xf32>
    %5 = arith.addf %2, %4 : vector<256x128xf32>
    %cst_5 = arith.constant 0.000000e+00 : f32
    %6 = vector.broadcast %cst_5 : f32 to vector<256x128xf32>
    %7 = arith.maximumf %5, %6 : vector<256x128xf32>
    %8 = arith.truncf %7 : vector<256x128xf32> to vector<256x128xbf16>
    %c0_6 = arith.constant 0 : index
    %c0_7 = arith.constant 0 : index
    %9 = vector.load %arg5[%c0_6, %c0_7] : memref<256x128xbf16, #tpu.memory_space<vmem>>, vector<256x128xbf16>
    tpu.vector_store %arg5[%c0_6, %c0_7], %8 {strides = array<i32>} : memref<256x128xbf16, #tpu.memory_space<vmem>>, vector<256x128xbf16>,
    return
  }
  func.func @transform_0(%arg0: i32, %arg1: i32) -> (i32, i32) {
    %c0_i32 = arith.constant 0 : i32
    %c0_i32_0 = arith.constant 0 : i32
    return %arg0, %c0_i32 : i32, i32
  }
  func.func @transform_1(%arg0: i32, %arg1: i32) -> (i32, i32) {
    %c0_i32 = arith.constant 0 : i32
    %c0_i32_0 = arith.constant 0 : i32
    return %c0_i32, %arg1 : i32, i32
  }
  func.func @transform_2(%arg0: i32, %arg1: i32) -> (i32, i32) {
    %c0_i32 = arith.constant 0 : i32
    %c0_i32_0 = arith.constant 0 : i32
    return %c0_i32, %arg1 : i32, i32
  }
  func.func @transform_3(%arg0: i32, %arg1: i32) -> (i32, i32) {
    %c0_i32 = arith.constant 0 : i32
    return %arg0, %arg1 : i32, i32
  }
}

module attributes {stable_mosaic.version = 11 : i64} {
  func.func @_mm_bias_kernel_fullk(%arg0: i32, %arg1: i32, %arg2: memref<256x640xbf16, #tpu.memory_space<vmem>>, %arg3: memref<640x128xbf16, #tpu.memory_space<vmem>>, %arg4: memref<1x128xf32, #tpu.memory_space<vmem>>, %arg5: memref<256x128xbf16, #tpu.memory_space<vmem>>) attributes {dimension_semantics = [#tpu.dimension_semantics<parallel>, #tpu.dimension_semantics<parallel>], iteration_bounds = array<i64: 4, 1>, scalar_prefetch = 0 : i64, scratch_operands = 0 : i64, tpu.core_type = #tpu.core_type<tc>, window_params = [{transform_indices = @transform_0, window_bounds = array<i64: 256, 640>}, {transform_indices = @transform_1, window_bounds = array<i64: 640, 128>}, {transform_indices = @transform_2, window_bounds = array<i64: 1, 128>}, {transform_indices = @transform_3, window_bounds = array<i64: 256, 128>}]} {
    %c0 = arith.constant 0 : index
    %c0_0 = arith.constant 0 : index
    %0 = vector.load %arg2[%c0, %c0_0] : memref<256x640xbf16, #tpu.memory_space<vmem>>, vector<256x640xbf16>
    %c0_1 = arith.constant 0 : index
    %c0_2 = arith.constant 0 : index
    %1 = vector.load %arg3[%c0_1, %c0_2] : memref<640x128xbf16, #tpu.memory_space<vmem>>, vector<640x128xbf16>
    %cst = arith.constant dense<0.000000e+00> : vector<256x128xf32>
    %2 = tpu.matmul %0, %1, %cst {dimension_numbers = #tpu.dot_dimension_numbers<[1], [0], [0], [1], [0, 0, 1, 1], [], []>} : vector<256x640xbf16>, vector<640x128xbf16>, vector<256x128xf32> -> vector<256x128xf32>
    %c0_3 = arith.constant 0 : index
    %c0_4 = arith.constant 0 : index
    %3 = vector.load %arg4[%c0_3, %c0_4] : memref<1x128xf32, #tpu.memory_space<vmem>>, vector<1x128xf32>
    %4 = vector.broadcast %3 : vector<1x128xf32> to vector<256x128xf32>
    %5 = arith.addf %2, %4 : vector<256x128xf32>
    %cst_5 = arith.constant 0.000000e+00 : f32
    %6 = vector.broadcast %cst_5 : f32 to vector<256x128xf32>
    %7 = arith.maximumf %5, %6 : vector<256x128xf32>
    %8 = arith.truncf %7 : vector<256x128xf32> to vector<256x128xbf16>
    %c0_6 = arith.constant 0 : index
    %c0_7 = arith.constant 0 : index
    %9 = vector.load %arg5[%c0_6, %c0_7] : memref<256x128xbf16, #tpu.memory_space<vmem>>, vector<256x128xbf16>
    tpu.vector_store %arg5[%c0_6, %c0_7], %8 {strides = array<i32>} : memref<256x128xbf16, #tpu.memory_space<vmem>>, vector<256x128xbf16>,
    return
  }
  func.func @transform_0(%arg0: i32, %arg1: i32) -> (i32, i32) {
    %c0_i32 = arith.constant 0 : i32
    %c0_i32_0 = arith.constant 0 : i32
    return %arg0, %c0_i32 : i32, i32
  }
  func.func @transform_1(%arg0: i32, %arg1: i32) -> (i32, i32) {
    %c0_i32 = arith.constant 0 : i32
    %c0_i32_0 = arith.constant 0 : i32
    return %c0_i32, %arg1 : i32, i32
  }
  func.func @transform_2(%arg0: i32, %arg1: i32) -> (i32, i32) {
    %c0_i32 = arith.constant 0 : i32
    %c0_i32_0 = arith.constant 0 : i32
    return %c0_i32, %arg1 : i32, i32
  }
  func.func @transform_3(%arg0: i32, %arg1: i32) -> (i32, i32) {
    %c0_i32 = arith.constant 0 : i32
    return %arg0, %arg1 : i32, i32
  }
}

module attributes {stable_mosaic.version = 11 : i64} {
  func.func @_mm_bias_kernel_acc(%arg0: i32, %arg1: i32, %arg2: i32, %arg3: memref<8x15488xbf16, #tpu.memory_space<vmem>>, %arg4: memref<15488x128xbf16, #tpu.memory_space<vmem>>, %arg5: memref<1x128xf32, #tpu.memory_space<vmem>>, %arg6: memref<8x128xf32, #tpu.memory_space<vmem>>, %arg7: memref<8x128xf32, #tpu.memory_space<vmem>>) attributes {dimension_semantics = [#tpu.dimension_semantics<parallel>, #tpu.dimension_semantics<parallel>, #tpu.dimension_semantics<arbitrary>], iteration_bounds = array<i64: 1, 1, 2>, scalar_prefetch = 0 : i64, scratch_operands = 1 : i64, tpu.core_type = #tpu.core_type<tc>, window_params = [{transform_indices = @transform_0, window_bounds = array<i64: 8, 15488>}, {transform_indices = @transform_1, window_bounds = array<i64: 15488, 128>}, {transform_indices = @transform_2, window_bounds = array<i64: 1, 128>}, {transform_indices = @transform_3, window_bounds = array<i64: 8, 128>}]} {
    %c0_i32 = arith.constant 0 : i32
    %0 = arith.cmpi eq, %arg2, %c0_i32 : i32
    %1 = arith.extui %0 : i1 to i32
    %c0_i32_0 = arith.constant 0 : i32
    %2 = arith.cmpi ne, %1, %c0_i32_0 : i32
    scf.if %2 {
      %cst_9 = arith.constant 0.000000e+00 : f32
      %12 = vector.broadcast %cst_9 : f32 to vector<8x128xf32>
      %c0_10 = arith.constant 0 : index
      %c0_11 = arith.constant 0 : index
      %13 = vector.load %arg7[%c0_10, %c0_11] : memref<8x128xf32, #tpu.memory_space<vmem>>, vector<8x128xf32>
      tpu.vector_store %arg7[%c0_10, %c0_11], %12 {strides = array<i32>} : memref<8x128xf32, #tpu.memory_space<vmem>>, vector<8x128xf32>,
    } else {
    }
    %c0 = arith.constant 0 : index
    %c0_1 = arith.constant 0 : index
    %3 = vector.load %arg7[%c0, %c0_1] : memref<8x128xf32, #tpu.memory_space<vmem>>, vector<8x128xf32>
    %c0_2 = arith.constant 0 : index
    %c0_3 = arith.constant 0 : index
    %4 = vector.load %arg3[%c0_2, %c0_3] : memref<8x15488xbf16, #tpu.memory_space<vmem>>, vector<8x15488xbf16>
    %c0_4 = arith.constant 0 : index
    %c0_5 = arith.constant 0 : index
    %5 = vector.load %arg4[%c0_4, %c0_5] : memref<15488x128xbf16, #tpu.memory_space<vmem>>, vector<15488x128xbf16>
    %cst = arith.constant dense<0.000000e+00> : vector<8x128xf32>
    %6 = tpu.matmul %4, %5, %cst {dimension_numbers = #tpu.dot_dimension_numbers<[1], [0], [0], [1], [0, 0, 1, 1], [], []>} : vector<8x15488xbf16>, vector<15488x128xbf16>, vector<8x128xf32> -> vector<8x128xf32>
    %7 = arith.addf %3, %6 : vector<8x128xf32>
    %c0_6 = arith.constant 0 : index
    %c0_7 = arith.constant 0 : index
    %8 = vector.load %arg7[%c0_6, %c0_7] : memref<8x128xf32, #tpu.memory_space<vmem>>, vector<8x128xf32>
    tpu.vector_store %arg7[%c0_6, %c0_7], %7 {strides = array<i32>} : memref<8x128xf32, #tpu.memory_space<vmem>>, vector<8x128xf32>,
    %c1_i32 = arith.constant 1 : i32
    %9 = arith.cmpi eq, %arg2, %c1_i32 : i32
    %10 = arith.extui %9 : i1 to i32
    %c0_i32_8 = arith.constant 0 : i32
    %11 = arith.cmpi ne, %10, %c0_i32_8 : i32
    scf.if %11 {
      %c0_9 = arith.constant 0 : index
      %c0_10 = arith.constant 0 : index
      %12 = vector.load %arg7[%c0_9, %c0_10] : memref<8x128xf32, #tpu.memory_space<vmem>>, vector<8x128xf32>
      %c0_11 = arith.constant 0 : index
      %c0_12 = arith.constant 0 : index
      %13 = vector.load %arg5[%c0_11, %c0_12] : memref<1x128xf32, #tpu.memory_space<vmem>>, vector<1x128xf32>
      %14 = vector.broadcast %13 : vector<1x128xf32> to vector<8x128xf32>
      %15 = arith.addf %12, %14 : vector<8x128xf32>
      %c0_13 = arith.constant 0 : index
      %c0_14 = arith.constant 0 : index
      %16 = vector.load %arg6[%c0_13, %c0_14] : memref<8x128xf32, #tpu.memory_space<vmem>>, vector<8x128xf32>
      tpu.vector_store %arg6[%c0_13, %c0_14], %15 {strides = array<i32>} : memref<8x128xf32, #tpu.memory_space<vmem>>, vector<8x128xf32>,
    } else {
    }
    return
  }
  func.func @transform_0(%arg0: i32, %arg1: i32, %arg2: i32) -> (i32, i32) {
    %c0_i32 = arith.constant 0 : i32
    return %arg0, %arg2 : i32, i32
  }
  func.func @transform_1(%arg0: i32, %arg1: i32, %arg2: i32) -> (i32, i32) {
    %c0_i32 = arith.constant 0 : i32
    return %arg2, %arg1 : i32, i32
  }
  func.func @transform_2(%arg0: i32, %arg1: i32, %arg2: i32) -> (i32, i32) {
    %c0_i32 = arith.constant 0 : i32
    %c0_i32_0 = arith.constant 0 : i32
    return %c0_i32, %arg1 : i32, i32
  }
  func.func @transform_3(%arg0: i32, %arg1: i32, %arg2: i32) -> (i32, i32) {
    %c0_i32 = arith.constant 0 : i32
    return %arg0, %arg1 : i32, i32
  }
}

</mosaic_0001>

<bundles_post_ra>
// kernel: image_classifier_forward.4
= control target key start
LH: loop header
LB: loop body
LE: loop exit
PB: predicated region body
PF: predicated region fallthrough
CT: control target
= control target key end

     0   :  { %s1029_s12 = smov 0   ;;  %s1031_s13 = smov 0   ;;  %s1169_s0 = inlined_call_operand.vmem [shape: bf16[1536,128], index: 0, kind: input, shape index: {}]   ;;  %s1170_s1 = inlined_call_operand.vmem [shape: bf16[128,128], index: 1, kind: input, shape index: {}]   ;;  %s1171_s2 = inlined_call_operand.vmem [shape: f32[1,128], index: 2, kind: input, shape index: {}]   ;;  %s1172_s3 = inlined_call_operand.vmem [shape: bf16[1536,128], index: 3, kind: output, shape index: {}]  }
   0x1   :  { %s1033_s14 = smov 0  }
   0x2 LB: > { %s25_s15 = sadd.s32 1, %s1003_s13  ;;  %p714_p0 = scmp.ge.s32.totalorder %s1007_s14, 1  ;;  %s1007_s14 = sphi %s1033_s14, %s13_s14   ;;  %s1003_s13 = sphi %s1031_s13, %s1174_s13   ;;  %s999_s12 = sphi %s1029_s12, %s1173_s12  }
   0x3   : > { %p27_p1 = scmp.ge.s32.totalorder %s25_s15, 6  ;;  %p169_p2 = scmp.lt.s32.totalorder %s1007_s14, 7 }
   0x5   : > { %s1176_s15 = smov (%p27_p1, %s25_s15), 0  ;;  %p170_p3 = pnand %p714_p0, %p169_p2 }
   0x6   : > { %s715_s24 = sshll.u32 (!%p170_p3), %s999_s12, 5 }
   0x7   : > { %173 = sbr.rel (%p170_p3) target bundleno = 241 (0xf1), region = 32  ;;  %p204_p4 = scmp.lt.s32.totalorder (!%p170_p3), %s715_s24, 191 }
   0xc   : > { %v840_v0 = vld [vmem:[%s1170_s1 + $0x38] sm:$0xff]  ;;  %v839_v1 = vld [vmem:[%s1170_s1 + $0x30] sm:$0xff]  ;;  %v838_v2 = vld [vmem:[%s1170_s1 + $0x28] sm:$0xff]  ;;  %s1178_s24 = smov (!%p204_p4, %s715_s24), 191 }
   0xd   : > { %421 = vmatpush.bf16.msra.mxu0 %v840_v0  ;;  %936 = vmatpush.bf16.msra.mxu1 %v840_v0  ;;  %v837_v3 = vld [vmem:[%s1170_s1 + $0x20] sm:$0xff]  ;;  %v836_v4 = vld [vmem:[%s1170_s1 + $0x18] sm:$0xff]  ;;  %v835_v5 = vld [vmem:[%s1170_s1 + $0x10] sm:$0xff]  ;;  %s716_s4 = sshll.u32 %s1178_s24, 2 }
   0xe   : > { %937 = vmatpush.bf16.msra.mxu2 %v840_v0  ;;  %938 = vmatpush.bf16.msra.mxu3 %v840_v0  ;;  %v834_v6 = vld [vmem:[%s1170_s1 + $0x8] sm:$0xff]  ;;  %v833_v7 = vld [vmem:[%s1170_s1] sm:$0xff]  ;;  %s1082_s9 = scalar_lea.vmem %s1169_s0, %s716_s4  ;;  %s1114_s17 = scalar_lea.vmem %s1172_s3, %s716_s4 }
   0xf   : > { %v817_v8 = vld [vmem:[%s1082_s9] sm:$0xff]  ;;  %v818_v12 = vld [vmem:[%s1082_s9 + $0x8] sm:$0xff]  ;;  %v819_v16 = vld [vmem:[%s1082_s9 + $0x10] sm:$0xff] }
  0x10   : > { %v821_v9 = vld [vmem:[%s1082_s9 + $0x20] sm:$0xff]  ;;  %v822_v13 = vld [vmem:[%s1082_s9 + $0x28] sm:$0xff]  ;;  %v823_v17 = vld [vmem:[%s1082_s9 + $0x30] sm:$0xff] }
  0x11   : > { %422 = vmatpush.bf16.msra.mxu0 %v839_v1  ;;  %939 = vmatpush.bf16.msra.mxu1 %v839_v1  ;;  %v825_v10 = vld [vmem:[%s1082_s9 + $0x40] sm:$0xff]  ;;  %v826_v14 = vld [vmem:[%s1082_s9 + $0x48] sm:$0xff]  ;;  %v827_v18 = vld [vmem:[%s1082_s9 + $0x50] sm:$0xff] }
  0x12   : > { %940 = vmatpush.bf16.msra.mxu2 %v839_v1  ;;  %941 = vmatpush.bf16.msra.mxu3 %v839_v1  ;;  %v829_v11 = vld [vmem:[%s1082_s9 + $0x60] sm:$0xff]  ;;  %v830_v15 = vld [vmem:[%s1082_s9 + $0x68] sm:$0xff]  ;;  %v831_v19 = vld [vmem:[%s1082_s9 + $0x70] sm:$0xff] }
  0x13   : > { %v820_v20 = vld [vmem:[%s1082_s9 + $0x18] sm:$0xff]  ;;  %v1103_v26 = vld [vmem:[%s1171_s2] ss:$0 sm:$0xff] }
  0x14   : > { %v824_v21 = vld [vmem:[%s1082_s9 + $0x38] sm:$0xff] }
  0x15   : > { %423 = vmatpush.bf16.msra.mxu0 %v838_v2  ;;  %942 = vmatpush.bf16.msra.mxu1 %v838_v2  ;;  %v828_v22 = vld [vmem:[%s1082_s9 + $0x58] sm:$0xff] }
  0x16   : > { %943 = vmatpush.bf16.msra.mxu2 %v838_v2  ;;  %944 = vmatpush.bf16.msra.mxu3 %v838_v2  ;;  %v832_v23 = vld [vmem:[%s1082_s9 + $0x78] sm:$0xff] }
  0x19   : > { %424 = vmatpush.bf16.msra.mxu0 %v837_v3  ;;  %945 = vmatpush.bf16.msra.mxu1 %v837_v3 }
  0x1a   : > { %946 = vmatpush.bf16.msra.mxu2 %v837_v3  ;;  %947 = vmatpush.bf16.msra.mxu3 %v837_v3 }
  0x1d   : > { %425 = vmatpush.bf16.msra.mxu0 %v836_v4  ;;  %948 = vmatpush.bf16.msra.mxu1 %v836_v4 }
  0x1e   : > { %949 = vmatpush.bf16.msra.mxu2 %v836_v4  ;;  %950 = vmatpush.bf16.msra.mxu3 %v836_v4 }
  0x21   : > { %426 = vmatpush.bf16.msra.mxu0 %v835_v5  ;;  %951 = vmatpush.bf16.msra.mxu1 %v835_v5 }
  0x22   : > { %952 = vmatpush.bf16.msra.mxu2 %v835_v5  ;;  %953 = vmatpush.bf16.msra.mxu3 %v835_v5 }
  0x25   : > { %427 = vmatpush.bf16.msra.mxu0 %v834_v6  ;;  %954 = vmatpush.bf16.msra.mxu1 %v834_v6 }
  0x26   : > { %955 = vmatpush.bf16.msra.mxu2 %v834_v6  ;;  %956 = vmatpush.bf16.msra.mxu3 %v834_v6 }
  0x29   : > { %428 = vmatpush.bf16.msra.mxu0 %v833_v7  ;;  %957 = vmatpush.bf16.msra.mxu1 %v833_v7 }
  0x2a   : > { %958 = vmatpush.bf16.msra.mxu2 %v833_v7  ;;  %959 = vmatpush.bf16.msra.mxu3 %v833_v7 }
  0x2c   : > { %429 = vmatmul.bf16.vlgmr.msra.gmra.mxu0 %v817_v8  ;;  %449 = vmatmul.bf16.vlgmr.msra.gmra.mxu1 %v821_v9 }
  0x2d   : > { %469 = vmatmul.bf16.vlgmr.msra.gmra.mxu2 %v825_v10  ;;  %489 = vmatmul.bf16.vlgmr.msra.gmra.mxu3 %v829_v11 }
  0x3c   : > { %434 = vmatmul.bf16.gmra.mxu0 %v818_v12  ;;  %454 = vmatmul.bf16.gmra.mxu1 %v822_v13 }
  0x3d   : > { %474 = vmatmul.bf16.gmra.mxu2 %v826_v14  ;;  %494 = vmatmul.bf16.gmra.mxu3 %v830_v15 }
  0x4c   : > { %439 = vmatmul.bf16.gmra.mxu0 %v819_v16  ;;  %459 = vmatmul.bf16.gmra.mxu1 %v823_v17 }
  0x4d   : > { %479 = vmatmul.bf16.gmra.mxu2 %v827_v18  ;;  %499 = vmatmul.bf16.gmra.mxu3 %v831_v19 }
  0x5c   : > { %444 = vmatmul.bf16.gmra.mxu0 %v820_v20  ;;  %464 = vmatmul.bf16.gmra.mxu1 %v824_v21 }
  0x5d   : > { %484 = vmatmul.bf16.gmra.mxu2 %v828_v22  ;;  %504 = vmatmul.bf16.gmra.mxu3 %v832_v23 }
  0xa9   : > { %v430_v24 = vpop.f32.mrf.mxu0  ;;  %v450_v25 = vpop.f32.mrf.mxu1 }
  0xaa   : > { %v431_v27 = vadd.f32 %v1103_v26, %v430_v24  ;;  %v451_v28 = vadd.f32 %v1103_v26, %v450_v25 }
  0xac   : > { %v510_v35 = vmax.f32 %v431_v27, 0.0  ;;  %v518_v36 = vmax.f32 %v451_v28, 0.0 }
  0xb0   : > { %v470_v29 = vpop.f32.mrf.mxu2  ;;  %v490_v30 = vpop.f32.mrf.mxu3 }
  0xb1   : > { %v432_v31 = vpop.f32.mrf.mxu0  ;;  %v452_v32 = vpop.f32.mrf.mxu1  ;;  %v471_v41 = vadd.f32 %v1103_v26, %v470_v29  ;;  %v491_v42 = vadd.f32 %v1103_v26, %v490_v30 }
  0xb2   : > { %v433_v33 = vadd.f32 %v1103_v26, %v432_v31  ;;  %v453_v34 = vadd.f32 %v1103_v26, %v452_v32 }
  0xb3   : > { %v526_v49 = vmax.f32 %v471_v41, 0.0  ;;  %v534_v50 = vmax.f32 %v491_v42, 0.0 }
  0xb4   : > { %v511_v37 = vmax.f32 %v433_v33, 0.0  ;;  %v519_v38 = vmax.f32 %v453_v34, 0.0 }
  0xb6   : > { %v844_v39 = vpack.c.bf16 %v511_v37, %v510_v35  ;;  %v864_v40 = vpack.c.bf16 %v519_v38, %v518_v36 }
  0xb8   : > { %845 = vst [vmem:[%s1114_s17] sm:$0xff] %v844_v39   ;;  %v472_v43 = vpop.f32.mrf.mxu2  ;;  %v492_v44 = vpop.f32.mrf.mxu3 }
  0xb9   : > { %924 = vst [vmem:[%s1114_s17 + $0x20] sm:$0xff] %v864_v40   ;;  %v473_v45 = vadd.f32 %v1103_v26, %v472_v43  ;;  %v493_v46 = vadd.f32 %v1103_v26, %v492_v44  ;;  %v435_v47 = vpop.f32.mrf.mxu0  ;;  %v455_v48 = vpop.f32.mrf.mxu1 }
  0xba   : > { %v436_v55 = vadd.f32 %v1103_v26, %v435_v47  ;;  %v456_v56 = vadd.f32 %v1103_v26, %v455_v48 }
  0xbb   : > { %v527_v51 = vmax.f32 %v473_v45, 0.0  ;;  %v535_v52 = vmax.f32 %v493_v46, 0.0 }
  0xbc   : > { %v512_v63 = vmax.f32 %v436_v55, 0.0  ;;  %v520_v0 = vmax.f32 %v456_v56, 0.0 }
  0xbd   : > { %v884_v53 = vpack.c.bf16 %v527_v51, %v526_v49  ;;  %v904_v54 = vpack.c.bf16 %v535_v52, %v534_v50 }
  0xbf   : > { %928 = vst [vmem:[%s1114_s17 + $0x40] sm:$0xff] %v884_v53  }
  0xc0   : > { %932 = vst [vmem:[%s1114_s17 + $0x60] sm:$0xff] %v904_v54   ;;  %v475_v57 = vpop.f32.mrf.mxu2  ;;  %v495_v58 = vpop.f32.mrf.mxu3 }
  0xc1   : > { %v437_v59 = vpop.f32.mrf.mxu0  ;;  %v457_v60 = vpop.f32.mrf.mxu1  ;;  %v476_v5 = vadd.f32 %v1103_v26, %v475_v57  ;;  %v496_v6 = vadd.f32 %v1103_v26, %v495_v58 }
  0xc2   : > { %v438_v61 = vadd.f32 %v1103_v26, %v437_v59  ;;  %v458_v62 = vadd.f32 %v1103_v26, %v457_v60 }
  0xc3   : > { %v528_v13 = vmax.f32 %v476_v5, 0.0  ;;  %v536_v14 = vmax.f32 %v496_v6, 0.0 }
  0xc4   : > { %v513_v1 = vmax.f32 %v438_v61, 0.0  ;;  %v521_v2 = vmax.f32 %v458_v62, 0.0 }
  0xc6   : > { %v849_v3 = vpack.c.bf16 %v513_v1, %v512_v63  ;;  %v869_v4 = vpack.c.bf16 %v521_v2, %v520_v0 }
  0xc8   : > { %921 = vst [vmem:[%s1114_s17 + $0x8] sm:$0xff] %v849_v3   ;;  %v477_v7 = vpop.f32.mrf.mxu2  ;;  %v497_v8 = vpop.f32.mrf.mxu3 }
  0xc9   : > { %925 = vst [vmem:[%s1114_s17 + $0x28] sm:$0xff] %v869_v4   ;;  %v478_v9 = vadd.f32 %v1103_v26, %v477_v7  ;;  %v498_v10 = vadd.f32 %v1103_v26, %v497_v8  ;;  %v440_v11 = vpop.f32.mrf.mxu0  ;;  %v460_v12 = vpop.f32.mrf.mxu1 }
  0xca   : > { %v441_v19 = vadd.f32 %v1103_v26, %v440_v11  ;;  %v461_v20 = vadd.f32 %v1103_v26, %v460_v12 }
  0xcb   : > { %v529_v15 = vmax.f32 %v478_v9, 0.0  ;;  %v537_v16 = vmax.f32 %v498_v10, 0.0 }
  0xcc   : > { %v514_v28 = vmax.f32 %v441_v19, 0.0  ;;  %v522_v29 = vmax.f32 %v461_v20, 0.0 }
  0xcd   : > { %v889_v17 = vpack.c.bf16 %v529_v15, %v528_v13  ;;  %v909_v18 = vpack.c.bf16 %v537_v16, %v536_v14 }
  0xcf   : > { %929 = vst [vmem:[%s1114_s17 + $0x48] sm:$0xff] %v889_v17  }
  0xd0   : > { %933 = vst [vmem:[%s1114_s17 + $0x68] sm:$0xff] %v909_v18   ;;  %v480_v21 = vpop.f32.mrf.mxu2  ;;  %v500_v22 = vpop.f32.mrf.mxu3 }
  0xd1   : > { %v442_v23 = vpop.f32.mrf.mxu0  ;;  %v462_v24 = vpop.f32.mrf.mxu1  ;;  %v481_v34 = vadd.f32 %v1103_v26, %v480_v21  ;;  %v501_v35 = vadd.f32 %v1103_v26, %v500_v22 }
  0xd2   : > { %v443_v25 = vadd.f32 %v1103_v26, %v442_v23  ;;  %v463_v27 = vadd.f32 %v1103_v26, %v462_v24 }
  0xd3   : > { %v530_v42 = vmax.f32 %v481_v34, 0.0  ;;  %v538_v43 = vmax.f32 %v501_v35, 0.0 }
  0xd4   : > { %v515_v30 = vmax.f32 %v443_v25, 0.0  ;;  %v523_v31 = vmax.f32 %v463_v27, 0.0 }
  0xd6   : > { %v854_v32 = vpack.c.bf16 %v515_v30, %v514_v28  ;;  %v874_v33 = vpack.c.bf16 %v523_v31, %v522_v29 }
  0xd8   : > { %922 = vst [vmem:[%s1114_s17 + $0x10] sm:$0xff] %v854_v32   ;;  %v482_v36 = vpop.f32.mrf.mxu2  ;;  %v502_v37 = vpop.f32.mrf.mxu3 }
  0xd9   : > { %926 = vst [vmem:[%s1114_s17 + $0x30] sm:$0xff] %v874_v33   ;;  %v483_v38 = vadd.f32 %v1103_v26, %v482_v36  ;;  %v503_v39 = vadd.f32 %v1103_v26, %v502_v37  ;;  %v445_v40 = vpop.f32.mrf.mxu0  ;;  %v465_v41 = vpop.f32.mrf.mxu1 }
  0xda   : > { %v446_v48 = vadd.f32 %v1103_v26, %v445_v40  ;;  %v466_v49 = vadd.f32 %v1103_v26, %v465_v41 }
  0xdb   : > { %v531_v44 = vmax.f32 %v483_v38, 0.0  ;;  %v539_v45 = vmax.f32 %v503_v39, 0.0 }
  0xdc   : > { %v516_v56 = vmax.f32 %v446_v48, 0.0  ;;  %v524_v57 = vmax.f32 %v466_v49, 0.0 }
  0xdd   : > { %v894_v46 = vpack.c.bf16 %v531_v44, %v530_v42  ;;  %v914_v47 = vpack.c.bf16 %v539_v45, %v538_v43 }
  0xdf   : > { %930 = vst [vmem:[%s1114_s17 + $0x50] sm:$0xff] %v894_v46  }
  0xe0   : > { %934 = vst [vmem:[%s1114_s17 + $0x70] sm:$0xff] %v914_v47   ;;  %v485_v50 = vpop.f32.mrf.mxu2  ;;  %v505_v51 = vpop.f32.mrf.mxu3 }
  0xe1   : > { %v447_v52 = vpop.f32.mrf.mxu0  ;;  %v467_v53 = vpop.f32.mrf.mxu1  ;;  %v486_v62 = vadd.f32 %v1103_v26, %v485_v50  ;;  %v506_v63 = vadd.f32 %v1103_v26, %v505_v51 }
  0xe2   : > { %v448_v54 = vadd.f32 %v1103_v26, %v447_v52  ;;  %v468_v55 = vadd.f32 %v1103_v26, %v467_v53 }
  0xe3   : > { %v532_v4 = vmax.f32 %v486_v62, 0.0  ;;  %v540_v5 = vmax.f32 %v506_v63, 0.0 }
  0xe4   : > { %v517_v58 = vmax.f32 %v448_v54, 0.0  ;;  %v525_v59 = vmax.f32 %v468_v55, 0.0 }
  0xe6   : > { %v859_v60 = vpack.c.bf16 %v517_v58, %v516_v56  ;;  %v879_v61 = vpack.c.bf16 %v525_v59, %v524_v57 }
  0xe8   : > { %923 = vst [vmem:[%s1114_s17 + $0x18] sm:$0xff] %v859_v60   ;;  %v487_v0 = vpop.f32.mrf.mxu2  ;;  %v507_v1 = vpop.f32.mrf.mxu3 }
  0xe9   : > { %927 = vst [vmem:[%s1114_s17 + $0x38] sm:$0xff] %v879_v61   ;;  %v488_v2 = vadd.f32 %v1103_v26, %v487_v0  ;;  %v508_v3 = vadd.f32 %v1103_v26, %v507_v1 }
  0xeb   : > { %v533_v6 = vmax.f32 %v488_v2, 0.0  ;;  %v541_v7 = vmax.f32 %v508_v3, 0.0 }
  0xed   : > { %v899_v8 = vpack.c.bf16 %v533_v6, %v532_v4  ;;  %v919_v9 = vpack.c.bf16 %v541_v7, %v540_v5 }
  0xef   : > { %931 = vst [vmem:[%s1114_s17 + $0x58] sm:$0xff] %v899_v8  }
  0xf0   : > { %935 = vst [vmem:[%s1114_s17 + $0x78] sm:$0xff] %v919_v9  }
  0xf1 PF: > { %s13_s14 = sadd.s32 1, %s1007_s14   ;;  %s1173_s12 = smov %s1003_s13 }
  0xf2   : > { %p10_p5 = scmp.ge.s32.totalorder %s13_s14, 8   ;;  %s1174_s13 = smov %s1176_s15 }
  0xf4   :  { %12 = sbr.rel (!%p10_p5) target bundleno = 2 (0x2), region = 68 }

// kernel: image_classifier_forward.5
= control target key start
LH: loop header
LB: loop body
LE: loop exit
PB: predicated region body
PF: predicated region fallthrough
CT: control target
= control target key end

     0   :  { %s1771_s12 = smov 0   ;;  %s1773_s13 = smov 0   ;;  %s2132_s0 = inlined_call_operand.vmem [shape: bf16[1280,384], index: 0, kind: input, shape index: {}]   ;;  %s2133_s1 = inlined_call_operand.vmem [shape: bf16[384,128], index: 1, kind: input, shape index: {}]   ;;  %s2134_s2 = inlined_call_operand.vmem [shape: f32[1,128], index: 2, kind: input, shape index: {}]   ;;  %s2135_s3 = inlined_call_operand.vmem [shape: bf16[1280,128], index: 3, kind: output, shape index: {}]  }
   0x1   :  { %s1775_s14 = smov 0  }
   0x2 LB: > { %s25_s15 = sadd.s32 1, %s1745_s13  ;;  %p1215_p0 = scmp.ge.s32.totalorder %s1749_s14, 1  ;;  %s1749_s14 = sphi %s1775_s14, %s13_s14   ;;  %s1745_s13 = sphi %s1773_s13, %s2137_s13   ;;  %s1741_s12 = sphi %s1771_s12, %s2136_s12  }
   0x3   : > { %p27_p1 = scmp.ge.s32.totalorder %s25_s15, 5  ;;  %p170_p2 = scmp.lt.s32.totalorder %s1749_s14, 6 }
   0x5   : > { %s2139_s15 = smov (%p27_p1, %s25_s15), 0  ;;  %p171_p3 = pnand %p1215_p0, %p170_p2 }
   0x6   : > { %s1216_s7 = sshll.u32 (!%p171_p3), %s1741_s12, 5 }
   0x7   : > { %174 = sbr.rel (%p171_p3) target bundleno = 369 (0x171), region = 32  ;;  %p206_p4 = scmp.lt.s32.totalorder (!%p171_p3), %s1216_s7, 159 }
   0xc   : > { %v1565_v0 = vld [vmem:[%s2133_s1 + $0x38] sm:$0xff]  ;;  %v1564_v3 = vld [vmem:[%s2133_s1 + $0x30] sm:$0xff]  ;;  %v1563_v6 = vld [vmem:[%s2133_s1 + $0x28] sm:$0xff]  ;;  %s2141_s7 = smov (!%p206_p4, %s1216_s7), 159 }
   0xd   : > { %v1797_v1 = vld [vmem:[%s2133_s1 + $0x78] sm:$0xff]  ;;  %744 = vmatpush.bf16.msra.mxu0 %v1565_v0  ;;  %1677 = vmatpush.bf16.msra.mxu3 %v1565_v0  ;;  %v1812_v4 = vld [vmem:[%s2133_s1 + $0x70] sm:$0xff]  ;;  %v1827_v7 = vld [vmem:[%s2133_s1 + $0x68] sm:$0xff]  ;;  %s1701_s25 = smul.u32 12, %s2141_s7  ;;  %s1219_s24 = sshll.u32 %s2141_s7, 2 }
   0xe   : > { %v1802_v2 = vld [vmem:[%s2133_s1 + $0xb8] sm:$0xff]  ;;  %833 = vmatpush.bf16.msra.mxu1 %v1797_v1  ;;  %v1817_v5 = vld [vmem:[%s2133_s1 + $0xb0] sm:$0xff]  ;;  %v1832_v8 = vld [vmem:[%s2133_s1 + $0xa8] sm:$0xff]  ;;  %s2015_s27 = scalar_lea.vmem %s2135_s3, %s1219_s24 }
   0xf   : > { %922 = vmatpush.bf16.msra.mxu2 %v1802_v2  ;;  %v1562_v9 = vld [vmem:[%s2133_s1 + $0x20] sm:$0xff]  ;;  %v1561_v12 = vld [vmem:[%s2133_s1 + $0x18] sm:$0xff]  ;;  %v1560_v15 = vld [vmem:[%s2133_s1 + $0x10] sm:$0xff]  ;;  %s1884_s8 = scalar_lea.vmem %s2132_s0, %s1701_s25 }
  0x10   : > { %v1843_v10 = vld [vmem:[%s2133_s1 + $0x60] sm:$0xff]  ;;  %v1569_v13 = vld [vmem:[%s2133_s1 + $0x58] sm:$0xff]  ;;  %v1568_v16 = vld [vmem:[%s2133_s1 + $0x50] sm:$0xff] }
  0x11   : > { %745 = vmatpush.bf16.msra.mxu0 %v1564_v3  ;;  %1678 = vmatpush.bf16.msra.mxu3 %v1564_v3  ;;  %v1848_v11 = vld [vmem:[%s2133_s1 + $0xa0] sm:$0xff]  ;;  %v1863_v14 = vld [vmem:[%s2133_s1 + $0x98] sm:$0xff]  ;;  %v1876_v17 = vld [vmem:[%s2133_s1 + $0x90] sm:$0xff] }
  0x12   : > { %834 = vmatpush.bf16.msra.mxu1 %v1812_v4  ;;  %v1559_v18 = vld [vmem:[%s2133_s1 + $0x8] sm:$0xff]  ;;  %v1558_v21 = vld [vmem:[%s2133_s1] sm:$0xff]  ;;  %v1224_v29 = vld [vmem:[%s1884_s8 + $0xc] sm:$0xf0] }
  0x13   : > { %923 = vmatpush.bf16.msra.mxu2 %v1817_v5  ;;  %v1567_v19 = vld [vmem:[%s2133_s1 + $0x48] sm:$0xff]  ;;  %v1566_v22 = vld [vmem:[%s2133_s1 + $0x40] sm:$0xff]  ;;  %v1512_v31 = vld [vmem:[%s1884_s8 + $0x10] sm:$0xf0] }
  0x14   : > { %v1893_v20 = vld [vmem:[%s2133_s1 + $0x88] sm:$0xff]  ;;  %v1904_v23 = vld [vmem:[%s2133_s1 + $0x80] sm:$0xff]  ;;  %v1234_v36 = vld [vmem:[%s1884_s8 + $0x18] sm:$0xf] }
  0x15   : > { %746 = vmatpush.bf16.msra.mxu0 %v1563_v6  ;;  %1679 = vmatpush.bf16.msra.mxu3 %v1563_v6  ;;  %v1222_v24 = vld [vmem:[%s1884_s8] sm:$0xf]  ;;  %v1511_v25 = vld [vmem:[%s1884_s8 + $0x8] sm:$0xf0]  ;;  %v1510_v28 = vld [vmem:[%s1884_s8 + $0x4] sm:$0xf] }
  0x16   : > { %835 = vmatpush.bf16.msra.mxu1 %v1827_v7  ;;  %v1366_v26 = vld [vmem:[%s1884_s8 + $0x120] sm:$0xf]  ;;  %v1547_v27 = vld [vmem:[%s1884_s8 + $0x128] sm:$0xf0]  ;;  %v1230_v30 = vld [vmem:[%s1884_s8 + $0x8] sm:$0xf]  ;;  %v1223_v32 = vor.u32 %v1511_v25, %v1222_v24  ;;  %v1227_v34 = vor.u32 %v1510_v28, %v1224_v29 }
  0x17   : > { %924 = vmatpush.bf16.msra.mxu2 %v1832_v8  ;;  %v1367_v33 = vor.u32 %v1547_v27, %v1366_v26  ;;  %v1231_v35 = vor.u32 %v1512_v31, %v1230_v30  ;;  %v1514_v37 = vld [vmem:[%s1884_s8 + $0x20] sm:$0xf0]  ;;  %v1378_v38 = vld [vmem:[%s1884_s8 + $0x138] sm:$0xf]  ;;  %v1513_v40 = vld [vmem:[%s1884_s8 + $0x1c] sm:$0xf] }
  0x18   : > { %v1550_v39 = vld [vmem:[%s1884_s8 + $0x140] sm:$0xf0]  ;;  %v1236_v41 = vld [vmem:[%s1884_s8 + $0x24] sm:$0xf0]  ;;  %v1242_v42 = vld [vmem:[%s1884_s8 + $0x20] sm:$0xf]  ;;  %v1235_v44 = vor.u32 %v1514_v37, %v1234_v36 }
  0x19   : > { %747 = vmatpush.bf16.msra.mxu0 %v1562_v9  ;;  %1680 = vmatpush.bf16.msra.mxu3 %v1562_v9  ;;  %v1515_v43 = vld [vmem:[%s1884_s8 + $0x28] sm:$0xf0]  ;;  %v1379_v45 = vor.u32 %v1550_v39, %v1378_v38  ;;  %v1239_v46 = vor.u32 %v1513_v40, %v1236_v41  ;;  %v1246_v48 = vld [vmem:[%s1884_s8 + $0x30] sm:$0xf]  ;;  %v1517_v49 = vld [vmem:[%s1884_s8 + $0x38] sm:$0xf0] }
  0x1a   : > { %836 = vmatpush.bf16.msra.mxu1 %v1843_v10  ;;  %v1243_v47 = vor.u32 %v1515_v43, %v1242_v42  ;;  %v1390_v50 = vld [vmem:[%s1884_s8 + $0x150] sm:$0xf]  ;;  %v1553_v51 = vld [vmem:[%s1884_s8 + $0x158] sm:$0xf0]  ;;  %v1516_v52 = vld [vmem:[%s1884_s8 + $0x34] sm:$0xf]  ;;  %v1247_v56 = vor.u32 %v1517_v49, %v1246_v48 }
  0x1b   : > { %925 = vmatpush.bf16.msra.mxu2 %v1848_v11  ;;  %v1248_v53 = vld [vmem:[%s1884_s8 + $0x3c] sm:$0xf0]  ;;  %v1254_v54 = vld [vmem:[%s1884_s8 + $0x38] sm:$0xf]  ;;  %v1518_v55 = vld [vmem:[%s1884_s8 + $0x40] sm:$0xf0]  ;;  %v1391_v57 = vor.u32 %v1553_v51, %v1390_v50 }
  0x1c   : > { %v1251_v58 = vor.u32 %v1516_v52, %v1248_v53  ;;  %v1255_v59 = vor.u32 %v1518_v55, %v1254_v54  ;;  %v1258_v60 = vld [vmem:[%s1884_s8 + $0x48] sm:$0xf]  ;;  %v1520_v61 = vld [vmem:[%s1884_s8 + $0x50] sm:$0xf0]  ;;  %v1519_v0 = vld [vmem:[%s1884_s8 + $0x4c] sm:$0xf] }
  0x1d   : > { %748 = vmatpush.bf16.msra.mxu0 %v1561_v12  ;;  %1681 = vmatpush.bf16.msra.mxu3 %v1561_v12  ;;  %v1402_v62 = vld [vmem:[%s1884_s8 + $0x168] sm:$0xf]  ;;  %v1556_v63 = vld [vmem:[%s1884_s8 + $0x170] sm:$0xf0]  ;;  %v1521_v3 = vld [vmem:[%s1884_s8 + $0x58] sm:$0xf0] }
  0x1e   : > { %837 = vmatpush.bf16.msra.mxu1 %v1569_v13  ;;  %v1523_v9 = vld [vmem:[%s1884_s8 + $0x68] sm:$0xf0]  ;;  %v1368_v12 = vld [vmem:[%s1884_s8 + $0x12c] sm:$0xf0]  ;;  %v1549_v24 = vld [vmem:[%s1884_s8 + $0x13c] sm:$0xf] }
  0x1f   : > { %926 = vmatpush.bf16.msra.mxu2 %v1863_v14  ;;  %v1380_v25 = vld [vmem:[%s1884_s8 + $0x144] sm:$0xf0]  ;;  %v1290_v26 = vld [vmem:[%s1884_s8 + $0x80] sm:$0xf]  ;;  %v1527_v27 = vld [vmem:[%s1884_s8 + $0x88] sm:$0xf0] }
  0x20   : > { %v1383_v29 = vor.u32 %v1549_v24, %v1380_v25  ;;  %v1291_v31 = vor.u32 %v1527_v27, %v1290_v26  ;;  %v1392_v36 = vld [vmem:[%s1884_s8 + $0x15c] sm:$0xf0]  ;;  %v1302_v38 = vld [vmem:[%s1884_s8 + $0x98] sm:$0xf]  ;;  %v1530_v39 = vld [vmem:[%s1884_s8 + $0xa0] sm:$0xf0] }
  0x21   : > { %749 = vmatpush.bf16.msra.mxu0 %v1560_v15  ;;  %1682 = vmatpush.bf16.msra.mxu3 %v1560_v15  ;;  %v1524_v15 = vld [vmem:[%s1884_s8 + $0x70] sm:$0xf0]  ;;  %v1296_v37 = vld [vmem:[%s1884_s8 + $0x9c] sm:$0xf0]  ;;  %v1303_v43 = vor.u32 %v1530_v39, %v1302_v38  ;;  %v1404_v48 = vld [vmem:[%s1884_s8 + $0x174] sm:$0xf0] }
  0x22   : > { %838 = vmatpush.bf16.msra.mxu1 %v1568_v16  ;;  %v1308_v49 = vld [vmem:[%s1884_s8 + $0xb4] sm:$0xf0]  ;;  %v1314_v50 = vld [vmem:[%s1884_s8 + $0xb0] sm:$0xf]  ;;  %v1533_v51 = vld [vmem:[%s1884_s8 + $0xb8] sm:$0xf0] }
  0x23   : > { %927 = vmatpush.bf16.msra.mxu2 %v1876_v17  ;;  %v1315_v55 = vor.u32 %v1533_v51, %v1314_v50  ;;  %v1542_v50 = vld [vmem:[%s1884_s8 + $0x100] sm:$0xf0] }
  0x25   : > { %750 = vmatpush.bf16.msra.mxu0 %v1559_v18  ;;  %1683 = vmatpush.bf16.msra.mxu3 %v1559_v18 }
  0x26   : > { %839 = vmatpush.bf16.msra.mxu1 %v1567_v19 }
  0x27   : > { %928 = vmatpush.bf16.msra.mxu2 %v1893_v20 }
  0x29   : > { %751 = vmatpush.bf16.msra.mxu0 %v1558_v21  ;;  %1684 = vmatpush.bf16.msra.mxu3 %v1558_v21  ;;  %v1526_v21 = vld [vmem:[%s1884_s8 + $0x80] sm:$0xf0] }
  0x2a   : > { %840 = vmatpush.bf16.msra.mxu1 %v1566_v22 }
  0x2b   : > { %929 = vmatpush.bf16.msra.mxu2 %v1904_v23 }
  0x2c   : > { %752 = vmatmul.bf16.vlgmr.msra.gmra.mxu0 %v1223_v32  ;;  %812 = vmatmul.bf16.vlgmr.msra.gmra.mxu3 %v1367_v33  ;;  %v1294_v32 = vld [vmem:[%s1884_s8 + $0x90] sm:$0xf]  ;;  %v1529_v33 = vld [vmem:[%s1884_s8 + $0x98] sm:$0xf0] }
  0x2d   : > { %1685 = vmatpush.bf16.msrb.mxu3 %v1797_v1  ;;  %841 = vmatmul.bf16.vlgmr.msra.gmra.mxu1 %v1227_v34  ;;  %v1260_v1 = vld [vmem:[%s1884_s8 + $0x54] sm:$0xf0]  ;;  %v1528_v34 = vld [vmem:[%s1884_s8 + $0x94] sm:$0xf]  ;;  %v1295_v40 = vor.u32 %v1529_v33, %v1294_v32 }
  0x2e   : > { %930 = vmatmul.bf16.vlgmr.msra.gmra.mxu2 %v1231_v35  ;;  %v1263_v6 = vor.u32 %v1519_v0, %v1260_v1  ;;  %v1552_v35 = vld [vmem:[%s1884_s8 + $0x154] sm:$0xf]  ;;  %v1299_v42 = vor.u32 %v1528_v34, %v1296_v37 }
  0x2f   : > { %v1395_v41 = vor.u32 %v1552_v35, %v1392_v36 }
  0x31   : > { %1686 = vmatpush.bf16.msrb.mxu3 %v1812_v4  ;;  %v1259_v4 = vor.u32 %v1520_v61, %v1258_v60  ;;  %v1548_v60 = vld [vmem:[%s1884_s8 + $0x130] sm:$0xf0]  ;;  %v1320_v61 = vld [vmem:[%s1884_s8 + $0xcc] sm:$0xf0] }
  0x35   : > { %1687 = vmatpush.bf16.msrb.mxu3 %v1827_v7 }
  0x39   : > { %1688 = vmatpush.bf16.msrb.mxu3 %v1843_v10  ;;  %v1522_v10 = vld [vmem:[%s1884_s8 + $0x64] sm:$0xf] }
  0x3c   : > { %757 = vmatmul.bf16.gmra.mxu0 %v1235_v44  ;;  %817 = vmatmul.bf16.gmra.mxu3 %v1379_v45  ;;  %v1306_v44 = vld [vmem:[%s1884_s8 + $0xa8] sm:$0xf]  ;;  %v1532_v45 = vld [vmem:[%s1884_s8 + $0xb0] sm:$0xf0] }
  0x3d   : > { %1689 = vmatpush.bf16.msrb.mxu3 %v1569_v13  ;;  %846 = vmatmul.bf16.gmra.mxu1 %v1239_v46  ;;  %v1272_v13 = vld [vmem:[%s1884_s8 + $0x6c] sm:$0xf0]  ;;  %v1531_v46 = vld [vmem:[%s1884_s8 + $0xac] sm:$0xf]  ;;  %v1307_v52 = vor.u32 %v1532_v45, %v1306_v44  ;;  %v1541_v44 = vld [vmem:[%s1884_s8 + $0xf8] sm:$0xf0] }
  0x3e   : > { %935 = vmatmul.bf16.gmra.mxu2 %v1243_v47  ;;  %v1275_v18 = vor.u32 %v1522_v10, %v1272_v13  ;;  %v1555_v47 = vld [vmem:[%s1884_s8 + $0x16c] sm:$0xf]  ;;  %v1311_v54 = vor.u32 %v1531_v46, %v1308_v49  ;;  %v1540_v45 = vld [vmem:[%s1884_s8 + $0xf4] sm:$0xf]  ;;  %v1398_v46 = vld [vmem:[%s1884_s8 + $0x158] sm:$0xf] }
  0x3f   : > { %v1407_v53 = vor.u32 %v1555_v47, %v1404_v48  ;;  %v1554_v47 = vld [vmem:[%s1884_s8 + $0x160] sm:$0xf0]  ;;  %v1344_v48 = vld [vmem:[%s1884_s8 + $0xfc] sm:$0xf0]  ;;  %v1350_v49 = vld [vmem:[%s1884_s8 + $0xf8] sm:$0xf] }
  0x41   : > { %1690 = vmatpush.bf16.msrb.mxu3 %v1568_v16 }
  0x45   : > { %1691 = vmatpush.bf16.msrb.mxu3 %v1567_v19 }
  0x49   : > { %1692 = vmatpush.bf16.msrb.mxu3 %v1566_v22  ;;  %v1525_v22 = vld [vmem:[%s1884_s8 + $0x7c] sm:$0xf] }
  0x4c   : > { %762 = vmatmul.bf16.gmra.mxu0 %v1247_v56  ;;  %822 = vmatmul.bf16.gmra.mxu3 %v1391_v57  ;;  %v1318_v56 = vld [vmem:[%s1884_s8 + $0xc0] sm:$0xf]  ;;  %v1535_v57 = vld [vmem:[%s1884_s8 + $0xc8] sm:$0xf0] }
  0x4d   : > { %1693 = vmatpush.bf16.msra.mxu3 %v1802_v2  ;;  %851 = vmatmul.bf16.gmra.mxu1 %v1251_v58  ;;  %v1266_v2 = vld [vmem:[%s1884_s8 + $0x50] sm:$0xf]  ;;  %v1534_v58 = vld [vmem:[%s1884_s8 + $0xc4] sm:$0xf]  ;;  %v1319_v0 = vor.u32 %v1535_v57, %v1318_v56  ;;  %v1399_v56 = vor.u32 %v1554_v47, %v1398_v46 }
  0x4e   : > { %940 = vmatmul.bf16.gmra.mxu2 %v1255_v59  ;;  %v1267_v7 = vor.u32 %v1521_v3, %v1266_v2  ;;  %v1374_v59 = vld [vmem:[%s1884_s8 + $0x128] sm:$0xf]  ;;  %v1323_v3 = vor.u32 %v1534_v58, %v1320_v61 }
  0x4f   : > { %v1375_v1 = vor.u32 %v1548_v60, %v1374_v59  ;;  %v1347_v59 = vor.u32 %v1540_v45, %v1344_v48  ;;  %v1351_v60 = vor.u32 %v1542_v50, %v1350_v49 }
  0x51   : > { %1694 = vmatpush.bf16.msra.mxu3 %v1817_v5  ;;  %v1403_v5 = vor.u32 %v1556_v63, %v1402_v62  ;;  %v1326_v62 = vld [vmem:[%s1884_s8 + $0xc8] sm:$0xf]  ;;  %v1536_v63 = vld [vmem:[%s1884_s8 + $0xd0] sm:$0xf0] }
  0x55   : > { %1695 = vmatpush.bf16.msra.mxu3 %v1832_v8  ;;  %v1270_v8 = vld [vmem:[%s1884_s8 + $0x60] sm:$0xf] }
  0x56   : > { %v1271_v16 = vor.u32 %v1523_v9, %v1270_v8 }
  0x59   : > { %1696 = vmatpush.bf16.msra.mxu3 %v1848_v11  ;;  %v1546_v11 = vld [vmem:[%s1884_s8 + $0x124] sm:$0xf] }
  0x5c   : > { %767 = vmatmul.bf16.gmra.mxu0 %v1259_v4  ;;  %827 = vmatmul.bf16.gmra.mxu3 %v1403_v5  ;;  %v1327_v4 = vor.u32 %v1536_v63, %v1326_v62 }
  0x5d   : > { %1697 = vmatpush.bf16.msra.mxu3 %v1863_v14  ;;  %856 = vmatmul.bf16.gmra.mxu1 %v1263_v6  ;;  %v1278_v14 = vld [vmem:[%s1884_s8 + $0x68] sm:$0xf]  ;;  %v1995_v6 = vld [vmem:[%s2134_s2] ss:$0 sm:$0xff] }
  0x5e   : > { %945 = vmatmul.bf16.gmra.mxu2 %v1267_v7  ;;  %v1279_v19 = vor.u32 %v1524_v15, %v1278_v14  ;;  %v1330_v14 = vld [vmem:[%s1884_s8 + $0xd8] sm:$0xf]  ;;  %v1538_v15 = vld [vmem:[%s1884_s8 + $0xe0] sm:$0xf0] }
  0x5f   : > { %v1331_v26 = vor.u32 %v1538_v15, %v1330_v14  ;;  %v1557_v14 = vld [vmem:[%s1884_s8 + $0x178] sm:$0xf0]  ;;  %v1356_v15 = vld [vmem:[%s1884_s8 + $0x114] sm:$0xf0] }
  0x61   : > { %1698 = vmatpush.bf16.msra.mxu3 %v1876_v17  ;;  %v1371_v17 = vor.u32 %v1546_v11, %v1368_v12 }
  0x65   : > { %1699 = vmatpush.bf16.msra.mxu3 %v1893_v20  ;;  %v1282_v20 = vld [vmem:[%s1884_s8 + $0x78] sm:$0xf] }
  0x66   : > { %v1283_v28 = vor.u32 %v1526_v21, %v1282_v20  ;;  %v1338_v20 = vld [vmem:[%s1884_s8 + $0xe0] sm:$0xf]  ;;  %v1539_v21 = vld [vmem:[%s1884_s8 + $0xe8] sm:$0xf0] }
  0x69   : > { %1700 = vmatpush.bf16.msra.mxu3 %v1904_v23  ;;  %v1284_v23 = vld [vmem:[%s1884_s8 + $0x84] sm:$0xf0] }
  0x6a   : > { %v1287_v30 = vor.u32 %v1525_v22, %v1284_v23 }
  0x6c   : > { %772 = vmatmul.bf16.gmra.mxu0 %v1271_v16  ;;  %901 = vmatmul.bf16.vlgmr.msrb.gmra.mxu3 %v1371_v17  ;;  %v1537_v16 = vld [vmem:[%s1884_s8 + $0xdc] sm:$0xf]  ;;  %v1386_v17 = vld [vmem:[%s1884_s8 + $0x140] sm:$0xf] }
  0x6d   : > { %861 = vmatmul.bf16.gmra.mxu1 %v1275_v18  ;;  %v1551_v18 = vld [vmem:[%s1884_s8 + $0x148] sm:$0xf0] }
  0x6e   : > { %950 = vmatmul.bf16.gmra.mxu2 %v1279_v19  ;;  %v1332_v19 = vld [vmem:[%s1884_s8 + $0xe4] sm:$0xf0]  ;;  %v1387_v27 = vor.u32 %v1551_v18, %v1386_v17  ;;  %v1545_v17 = vld [vmem:[%s1884_s8 + $0x118] sm:$0xf0] }
  0x7c   : > { %777 = vmatmul.bf16.gmra.mxu0 %v1283_v28  ;;  %906 = vmatmul.bf16.gmra.mxu3 %v1383_v29 }
  0x7d   : > { %866 = vmatmul.bf16.gmra.mxu1 %v1287_v30  ;;  %v1335_v30 = vor.u32 %v1537_v16, %v1332_v19  ;;  %v1362_v16 = vld [vmem:[%s1884_s8 + $0x110] sm:$0xf] }
  0x7e   : > { %955 = vmatmul.bf16.gmra.mxu2 %v1291_v31  ;;  %v1339_v31 = vor.u32 %v1539_v21, %v1338_v20 }
  0x8c   : > { %782 = vmatmul.bf16.gmra.mxu0 %v1295_v40  ;;  %911 = vmatmul.bf16.gmra.mxu3 %v1395_v41 }
  0x8d   : > { %871 = vmatmul.bf16.gmra.mxu1 %v1299_v42 }
  0x8e   : > { %960 = vmatmul.bf16.gmra.mxu2 %v1303_v43  ;;  %v1342_v43 = vld [vmem:[%s1884_s8 + $0xf0] sm:$0xf] }
  0x9c   : > { %787 = vmatmul.bf16.gmra.mxu0 %v1307_v52  ;;  %916 = vmatmul.bf16.gmra.mxu3 %v1407_v53 }
  0x9d   : > { %876 = vmatmul.bf16.gmra.mxu1 %v1311_v54 }
  0x9e   : > { %965 = vmatmul.bf16.gmra.mxu2 %v1315_v55  ;;  %v1343_v55 = vor.u32 %v1541_v44, %v1342_v43 }
  0xa9   : > { %v753_v2 = vpop.f32.mrf.mxu0 }
  0xaa   : > { %v842_v5 = vpop.f32.mrf.mxu1  ;;  %v754_v7 = vadd.f32 %v1995_v6, %v753_v2 }
  0xac   : > { %792 = vmatmul.bf16.gmra.mxu0 %v1319_v0  ;;  %990 = vmatmul.bf16.vlgmr.msra.gmra.mxu3 %v1375_v1  ;;  %v843_v12 = vadd.f32 %v842_v5, %v754_v7 }
  0xad   : > { %881 = vmatmul.bf16.gmra.mxu1 %v1323_v3 }
  0xae   : > { %970 = vmatmul.bf16.gmra.mxu2 %v1327_v4 }
  0xaf   : > { %v1998_v8 = vpop.f32.mrf.mxu3 }
  0xb1   : > { %v931_v9 = vpop.f32.mrf.mxu2  ;;  %v755_v10 = vpop.f32.mrf.mxu0 }
  0xb2   : > { %v844_v11 = vpop.f32.mrf.mxu1  ;;  %v756_v13 = vadd.f32 %v1995_v6, %v755_v10  ;;  %v932_v22 = vadd.f32 %v931_v9, %v843_v12  ;;  %v1354_v10 = vld [vmem:[%s1884_s8 + $0x108] sm:$0xf]  ;;  %v1543_v12 = vld [vmem:[%s1884_s8 + $0x10c] sm:$0xf] }
  0xb4   : > { %v845_v24 = vadd.f32 %v844_v11, %v756_v13  ;;  %v1011_v33 = vmax.f32 %v932_v22, 0.0  ;;  %v1544_v11 = vld [vmem:[%s1884_s8 + $0x110] sm:$0xf0]  ;;  %v1410_v13 = vld [vmem:[%s1884_s8 + $0x170] sm:$0xf] }
  0xb5   : > { %v1355_v22 = vor.u32 %v1544_v11, %v1354_v10 }
  0xb7   : > { %v2009_v25 = vpop.f32.mrf.mxu3 }
  0xb9   : > { %v933_v23 = vpop.f32.mrf.mxu2  ;;  %v758_v29 = vpop.f32.mrf.mxu0 }
  0xba   : > { %v934_v28 = vadd.f32 %v933_v23, %v845_v24  ;;  %v847_v32 = vpop.f32.mrf.mxu1  ;;  %v759_v36 = vadd.f32 %v1995_v6, %v758_v29  ;;  %v1411_v24 = vor.u32 %v1557_v14, %v1410_v13 }
  0xbc   : > { %v1012_v34 = vmax.f32 %v934_v28, 0.0  ;;  %797 = vmatmul.bf16.gmra.mxu0 %v1331_v26  ;;  %995 = vmatmul.bf16.gmra.mxu3 %v1387_v27  ;;  %v848_v41 = vadd.f32 %v847_v32, %v759_v36  ;;  %v1359_v27 = vor.u32 %v1543_v12, %v1356_v15  ;;  %v1363_v28 = vor.u32 %v1545_v17, %v1362_v16 }
  0xbd   : > { %886 = vmatmul.bf16.gmra.mxu1 %v1335_v30 }
  0xbe   : > { %v1585_v35 = vpack.c.bf16 %v1012_v34, %v1011_v33  ;;  %975 = vmatmul.bf16.gmra.mxu2 %v1339_v31 }
  0xbf   : > { %v2019_v37 = vpop.f32.mrf.mxu3 }
  0xc0   : > { %1586 = vst [vmem:[%s2015_s27] sm:$0xff] %v1585_v35  }
  0xc1   : > { %v936_v38 = vpop.f32.mrf.mxu2  ;;  %v760_v39 = vpop.f32.mrf.mxu0 }
  0xc2   : > { %v849_v40 = vpop.f32.mrf.mxu1  ;;  %v761_v42 = vadd.f32 %v1995_v6, %v760_v39  ;;  %v937_v51 = vadd.f32 %v936_v38, %v848_v41 }
  0xc4   : > { %v850_v52 = vadd.f32 %v849_v40, %v761_v42  ;;  %v1013_v62 = vmax.f32 %v937_v51, 0.0  ;;  %v814_v51 = vadd.f32 %v1995_v6, %v1998_v8 }
  0xc7   : > { %v2030_v53 = vpop.f32.mrf.mxu3 }
  0xc9   : > { %v938_v54 = vpop.f32.mrf.mxu2  ;;  %v763_v58 = vpop.f32.mrf.mxu0 }
  0xca   : > { %v939_v57 = vadd.f32 %v938_v54, %v850_v52  ;;  %v852_v61 = vpop.f32.mrf.mxu1  ;;  %v764_v1 = vadd.f32 %v1995_v6, %v763_v58 }
  0xcc   : > { %v1014_v63 = vmax.f32 %v939_v57, 0.0  ;;  %802 = vmatmul.bf16.gmra.mxu0 %v1343_v55  ;;  %1000 = vmatmul.bf16.gmra.mxu3 %v1399_v56  ;;  %v853_v7 = vadd.f32 %v852_v61, %v764_v1 }
  0xcd   : > { %891 = vmatmul.bf16.gmra.mxu1 %v1347_v59 }
  0xce   : > { %v1590_v0 = vpack.c.bf16 %v1014_v63, %v1013_v62  ;;  %980 = vmatmul.bf16.gmra.mxu2 %v1351_v60 }
  0xcf   : > { %v2034_v2 = vpop.f32.mrf.mxu3 }
  0xd0   : > { %1662 = vst [vmem:[%s2015_s27 + $0x8] sm:$0xff] %v1590_v0  }
  0xd1   : > { %v941_v3 = vpop.f32.mrf.mxu2  ;;  %v765_v4 = vpop.f32.mrf.mxu0 }
  0xd2   : > { %v854_v5 = vpop.f32.mrf.mxu1  ;;  %v766_v9 = vadd.f32 %v1995_v6, %v765_v4  ;;  %v942_v18 = vadd.f32 %v941_v3, %v853_v7 }
  0xd4   : > { %v855_v19 = vadd.f32 %v854_v5, %v766_v9  ;;  %v1015_v30 = vmax.f32 %v942_v18, 0.0  ;;  %v819_v9 = vadd.f32 %v1995_v6, %v2019_v37 }
  0xd7   : > { %v2045_v20 = vpop.f32.mrf.mxu3 }
  0xd9   : > { %v943_v21 = vpop.f32.mrf.mxu2  ;;  %v768_v26 = vpop.f32.mrf.mxu0 }
  0xda   : > { %v944_v23 = vadd.f32 %v943_v21, %v855_v19  ;;  %v857_v29 = vpop.f32.mrf.mxu1  ;;  %v769_v33 = vadd.f32 %v1995_v6, %v768_v26 }
  0xdc   : > { %v1016_v31 = vmax.f32 %v944_v23, 0.0  ;;  %807 = vmatmul.bf16.gmra.mxu0 %v1355_v22  ;;  %1005 = vmatmul.bf16.gmra.mxu3 %v1411_v24  ;;  %v858_v39 = vadd.f32 %v857_v29, %v769_v33  ;;  %v824_v29 = vadd.f32 %v1995_v6, %v2034_v2 }
  0xdd   : > { %896 = vmatmul.bf16.gmra.mxu1 %v1359_v27 }
  0xde   : > { %v1595_v32 = vpack.c.bf16 %v1016_v31, %v1015_v30  ;;  %985 = vmatmul.bf16.gmra.mxu2 %v1363_v28 }
  0xdf   : > { %v2049_v34 = vpop.f32.mrf.mxu3 }
  0xe0   : > { %1663 = vst [vmem:[%s2015_s27 + $0x10] sm:$0xff] %v1595_v32  }
  0xe1   : > { %v946_v35 = vpop.f32.mrf.mxu2  ;;  %v770_v36 = vpop.f32.mrf.mxu0 }
  0xe2   : > { %v859_v38 = vpop.f32.mrf.mxu1  ;;  %v771_v40 = vadd.f32 %v1995_v6, %v770_v36  ;;  %v947_v41 = vadd.f32 %v946_v35, %v858_v39 }
  0xe4   : > { %v860_v42 = vadd.f32 %v859_v38, %v771_v40  ;;  %v1017_v48 = vmax.f32 %v947_v41, 0.0 }
  0xe7   : > { %v2052_v43 = vpop.f32.mrf.mxu3 }
  0xe9   : > { %v948_v44 = vpop.f32.mrf.mxu2  ;;  %v773_v46 = vpop.f32.mrf.mxu0 }
  0xea   : > { %v949_v45 = vadd.f32 %v948_v44, %v860_v42  ;;  %v862_v47 = vpop.f32.mrf.mxu1  ;;  %v774_v52 = vadd.f32 %v1995_v6, %v773_v46 }
  0xec   : > { %v1018_v49 = vmax.f32 %v949_v45, 0.0  ;;  %v863_v59 = vadd.f32 %v862_v47, %v774_v52 }
  0xee   : > { %v1600_v50 = vpack.c.bf16 %v1018_v49, %v1017_v48 }
  0xef   : > { %v902_v54 = vpop.f32.mrf.mxu3 }
  0xf0   : > { %1664 = vst [vmem:[%s2015_s27 + $0x18] sm:$0xff] %v1600_v50   ;;  %v2058_v55 = vadd.f32 %v902_v54, %v814_v51  ;;  %v829_v50 = vadd.f32 %v1995_v6, %v2049_v34 }
  0xf1   : > { %v951_v56 = vpop.f32.mrf.mxu2  ;;  %v775_v57 = vpop.f32.mrf.mxu0 }
  0xf2   : > { %v864_v58 = vpop.f32.mrf.mxu1  ;;  %v776_v60 = vadd.f32 %v1995_v6, %v775_v57  ;;  %v952_v61 = vadd.f32 %v951_v56, %v863_v59 }
  0xf4   : > { %v865_v62 = vadd.f32 %v864_v58, %v776_v60  ;;  %v1019_v4 = vmax.f32 %v952_v61, 0.0 }
  0xf7   : > { %v2061_v63 = vpop.f32.mrf.mxu3 }
  0xf9   : > { %v953_v0 = vpop.f32.mrf.mxu2  ;;  %v778_v8 = vpop.f32.mrf.mxu0 }
  0xfa   : > { %v954_v1 = vadd.f32 %v953_v0, %v865_v62  ;;  %v867_v3 = vpop.f32.mrf.mxu1  ;;  %v779_v10 = vadd.f32 %v1995_v6, %v778_v8 }
  0xfc   : > { %v1020_v5 = vmax.f32 %v954_v1, 0.0  ;;  %v868_v16 = vadd.f32 %v867_v3, %v779_v10 }
  0xfe   : > { %v1605_v7 = vpack.c.bf16 %v1020_v5, %v1019_v4 }
  0xff   : > { %v907_v11 = vpop.f32.mrf.mxu3 }
 0x100   : > { %1665 = vst [vmem:[%s2015_s27 + $0x20] sm:$0xff] %v1605_v7   ;;  %v2067_v12 = vadd.f32 %v907_v11, %v819_v9 }
 0x101   : > { %v956_v13 = vpop.f32.mrf.mxu2  ;;  %v780_v14 = vpop.f32.mrf.mxu0 }
 0x102   : > { %v869_v15 = vpop.f32.mrf.mxu1  ;;  %v781_v17 = vadd.f32 %v1995_v6, %v780_v14  ;;  %v957_v18 = vadd.f32 %v956_v13, %v868_v16 }
 0x104   : > { %v870_v19 = vadd.f32 %v869_v15, %v781_v17  ;;  %v1021_v26 = vmax.f32 %v957_v18, 0.0  ;;  %v816_v17 = vadd.f32 %v1995_v6, %v2009_v25 }
 0x106   : > { %v905_v18 = vadd.f32 %v2061_v63, %v816_v17 }
 0x107   : > { %v2070_v21 = vpop.f32.mrf.mxu3 }
 0x109   : > { %v958_v22 = vpop.f32.mrf.mxu2  ;;  %v783_v37 = vpop.f32.mrf.mxu0 }
 0x10a   : > { %v959_v24 = vadd.f32 %v958_v22, %v870_v19  ;;  %v872_v23 = vpop.f32.mrf.mxu1  ;;  %v784_v30 = vadd.f32 %v1995_v6, %v783_v37 }
 0x10c   : > { %v1022_v27 = vmax.f32 %v959_v24, 0.0  ;;  %v873_v38 = vadd.f32 %v872_v23, %v784_v30 }
 0x10e   : > { %v1610_v28 = vpack.c.bf16 %v1022_v27, %v1021_v26 }
 0x10f   : > { %v912_v31 = vpop.f32.mrf.mxu3 }
 0x110   : > { %1666 = vst [vmem:[%s2015_s27 + $0x28] sm:$0xff] %v1610_v28   ;;  %v2076_v32 = vadd.f32 %v912_v31, %v824_v29 }
 0x111   : > { %v961_v33 = vpop.f32.mrf.mxu2  ;;  %v785_v35 = vpop.f32.mrf.mxu0 }
 0x112   : > { %v874_v36 = vpop.f32.mrf.mxu1  ;;  %v786_v39 = vadd.f32 %v1995_v6, %v785_v35  ;;  %v962_v40 = vadd.f32 %v961_v33, %v873_v38 }
 0x114   : > { %v875_v41 = vadd.f32 %v874_v36, %v786_v39  ;;  %v1023_v47 = vmax.f32 %v962_v40, 0.0 }
 0x117   : > { %v2079_v42 = vpop.f32.mrf.mxu3 }
 0x119   : > { %v963_v44 = vpop.f32.mrf.mxu2  ;;  %v788_v2 = vpop.f32.mrf.mxu0 }
 0x11a   : > { %v964_v45 = vadd.f32 %v963_v44, %v875_v41  ;;  %v877_v46 = vpop.f32.mrf.mxu1  ;;  %v789_v51 = vadd.f32 %v1995_v6, %v788_v2 }
 0x11c   : > { %v1024_v48 = vmax.f32 %v964_v45, 0.0  ;;  %v878_v59 = vadd.f32 %v877_v46, %v789_v51  ;;  %v821_v45 = vadd.f32 %v1995_v6, %v2030_v53 }
 0x11e   : > { %v1615_v49 = vpack.c.bf16 %v1024_v48, %v1023_v47  ;;  %v910_v2 = vadd.f32 %v2070_v21, %v821_v45 }
 0x11f   : > { %v917_v52 = vpop.f32.mrf.mxu3 }
 0x120   : > { %1667 = vst [vmem:[%s2015_s27 + $0x30] sm:$0xff] %v1615_v49   ;;  %v2085_v54 = vadd.f32 %v917_v52, %v829_v50 }
 0x121   : > { %v966_v56 = vpop.f32.mrf.mxu2  ;;  %v790_v57 = vpop.f32.mrf.mxu0 }
 0x122   : > { %v879_v58 = vpop.f32.mrf.mxu1  ;;  %v791_v60 = vadd.f32 %v1995_v6, %v790_v57  ;;  %v967_v61 = vadd.f32 %v966_v56, %v878_v59 }
 0x124   : > { %v880_v62 = vadd.f32 %v879_v58, %v791_v60  ;;  %v1025_v4 = vmax.f32 %v967_v61, 0.0 }
 0x127   : > { %v2088_v0 = vpop.f32.mrf.mxu3 }
 0x129   : > { %v968_v1 = vpop.f32.mrf.mxu2  ;;  %v793_v34 = vpop.f32.mrf.mxu0 }
 0x12a   : > { %v969_v8 = vadd.f32 %v968_v1, %v880_v62  ;;  %v882_v3 = vpop.f32.mrf.mxu1  ;;  %v794_v9 = vadd.f32 %v1995_v6, %v793_v34 }
 0x12c   : > { %v1026_v5 = vmax.f32 %v969_v8, 0.0  ;;  %v883_v15 = vadd.f32 %v882_v3, %v794_v9 }
 0x12e   : > { %v1620_v7 = vpack.c.bf16 %v1026_v5, %v1025_v4  ;;  %v826_v5 = vadd.f32 %v1995_v6, %v2045_v20 }
 0x12f   : > { %v991_v10 = vpop.f32.mrf.mxu3 }
 0x130   : > { %1668 = vst [vmem:[%s2015_s27 + $0x38] sm:$0xff] %v1620_v7   ;;  %v992_v19 = vadd.f32 %v991_v10, %v2058_v55  ;;  %v915_v7 = vadd.f32 %v2079_v42, %v826_v5 }
 0x131   : > { %v971_v11 = vpop.f32.mrf.mxu2  ;;  %v795_v13 = vpop.f32.mrf.mxu0 }
 0x132   : > { %v884_v14 = vpop.f32.mrf.mxu1  ;;  %v796_v16 = vadd.f32 %v1995_v6, %v795_v13  ;;  %v972_v22 = vadd.f32 %v971_v11, %v883_v15  ;;  %v1035_v29 = vmax.f32 %v992_v19, 0.0 }
 0x134   : > { %v885_v24 = vadd.f32 %v884_v14, %v796_v16  ;;  %v1027_v33 = vmax.f32 %v972_v22, 0.0 }
 0x137   : > { %v993_v37 = vpop.f32.mrf.mxu3 }
 0x138   : > { %v994_v26 = vadd.f32 %v993_v37, %v905_v18 }
 0x139   : > { %v973_v23 = vpop.f32.mrf.mxu2  ;;  %v798_v28 = vpop.f32.mrf.mxu0 }
 0x13a   : > { %v974_v27 = vadd.f32 %v973_v23, %v885_v24  ;;  %v1036_v30 = vmax.f32 %v994_v26, 0.0  ;;  %v887_v31 = vpop.f32.mrf.mxu1  ;;  %v799_v63 = vadd.f32 %v1995_v6, %v798_v28 }
 0x13c   : > { %v1028_v35 = vmax.f32 %v974_v27, 0.0  ;;  %v1645_v36 = vpack.c.bf16 %v1036_v30, %v1035_v29  ;;  %v888_v41 = vadd.f32 %v887_v31, %v799_v63  ;;  %v831_v30 = vadd.f32 %v1995_v6, %v2052_v43 }
 0x13e   : > { %v1625_v25 = vpack.c.bf16 %v1028_v35, %v1027_v33  ;;  %1673 = vst [vmem:[%s2015_s27 + $0x60] sm:$0xff] %v1645_v36   ;;  %v920_v31 = vadd.f32 %v2088_v0, %v831_v30 }
 0x13f   : > { %v996_v55 = vpop.f32.mrf.mxu3 }
 0x140   : > { %1669 = vst [vmem:[%s2015_s27 + $0x40] sm:$0xff] %v1625_v25   ;;  %v997_v46 = vadd.f32 %v996_v55, %v2067_v12 }
 0x141   : > { %v976_v38 = vpop.f32.mrf.mxu2  ;;  %v800_v39 = vpop.f32.mrf.mxu0 }
 0x142   : > { %v889_v40 = vpop.f32.mrf.mxu1  ;;  %v801_v44 = vadd.f32 %v1995_v6, %v800_v39  ;;  %v977_v47 = vadd.f32 %v976_v38, %v888_v41  ;;  %v1037_v57 = vmax.f32 %v997_v46, 0.0 }
 0x144   : > { %v890_v48 = vadd.f32 %v889_v40, %v801_v44  ;;  %v1029_v60 = vmax.f32 %v977_v47, 0.0 }
 0x147   : > { %v998_v49 = vpop.f32.mrf.mxu3 }
 0x148   : > { %v999_v51 = vadd.f32 %v998_v49, %v910_v2 }
 0x149   : > { %v978_v50 = vpop.f32.mrf.mxu2  ;;  %v803_v56 = vpop.f32.mrf.mxu0 }
 0x14a   : > { %v979_v52 = vadd.f32 %v978_v50, %v890_v48  ;;  %v1038_v58 = vmax.f32 %v999_v51, 0.0  ;;  %v892_v59 = vpop.f32.mrf.mxu1  ;;  %v804_v21 = vadd.f32 %v1995_v6, %v803_v56 }
 0x14c   : > { %v1030_v61 = vmax.f32 %v979_v52, 0.0  ;;  %v1650_v62 = vpack.c.bf16 %v1038_v58, %v1037_v57  ;;  %v893_v3 = vadd.f32 %v892_v59, %v804_v21 }
 0x14e   : > { %v1630_v53 = vpack.c.bf16 %v1030_v61, %v1029_v60  ;;  %1674 = vst [vmem:[%s2015_s27 + $0x68] sm:$0xff] %v1650_v62  }
 0x14f   : > { %v1001_v12 = vpop.f32.mrf.mxu3 }
 0x150   : > { %1670 = vst [vmem:[%s2015_s27 + $0x48] sm:$0xff] %v1630_v53   ;;  %v1002_v9 = vadd.f32 %v1001_v12, %v2076_v32 }
 0x151   : > { %v981_v1 = vpop.f32.mrf.mxu2  ;;  %v805_v8 = vpop.f32.mrf.mxu0 }
 0x152   : > { %v894_v34 = vpop.f32.mrf.mxu1  ;;  %v806_v4 = vadd.f32 %v1995_v6, %v805_v8  ;;  %v982_v10 = vadd.f32 %v981_v1, %v893_v3  ;;  %v1039_v18 = vmax.f32 %v1002_v9, 0.0 }
 0x154   : > { %v895_v11 = vadd.f32 %v894_v34, %v806_v4  ;;  %v1031_v22 = vmax.f32 %v982_v10, 0.0 }
 0x157   : > { %v1003_v13 = vpop.f32.mrf.mxu3 }
 0x158   : > { %v1004_v15 = vadd.f32 %v1003_v13, %v915_v7 }
 0x159   : > { %v983_v14 = vpop.f32.mrf.mxu2  ;;  %v808_v17 = vpop.f32.mrf.mxu0 }
 0x15a   : > { %v984_v16 = vadd.f32 %v983_v14, %v895_v11  ;;  %v1040_v19 = vmax.f32 %v1004_v15, 0.0  ;;  %v897_v23 = vpop.f32.mrf.mxu1  ;;  %v809_v42 = vadd.f32 %v1995_v6, %v808_v17 }
 0x15c   : > { %v1032_v24 = vmax.f32 %v984_v16, 0.0  ;;  %v1655_v37 = vpack.c.bf16 %v1040_v19, %v1039_v18  ;;  %v898_v28 = vadd.f32 %v897_v23, %v809_v42 }
 0x15e   : > { %v1635_v20 = vpack.c.bf16 %v1032_v24, %v1031_v22  ;;  %1675 = vst [vmem:[%s2015_s27 + $0x70] sm:$0xff] %v1655_v37  }
 0x15f   : > { %v1006_v32 = vpop.f32.mrf.mxu3 }
 0x160   : > { %1671 = vst [vmem:[%s2015_s27 + $0x50] sm:$0xff] %v1635_v20   ;;  %v1007_v33 = vadd.f32 %v1006_v32, %v2085_v54 }
 0x161   : > { %v986_v26 = vpop.f32.mrf.mxu2  ;;  %v810_v27 = vpop.f32.mrf.mxu0 }
 0x162   : > { %v811_v29 = vadd.f32 %v1995_v6, %v810_v27  ;;  %v899_v35 = vpop.f32.mrf.mxu1  ;;  %v987_v36 = vadd.f32 %v986_v26, %v898_v28  ;;  %v1041_v40 = vmax.f32 %v1007_v33, 0.0 }
 0x164   : > { %v900_v25 = vadd.f32 %v899_v35, %v811_v29  ;;  %v1033_v44 = vmax.f32 %v987_v36, 0.0 }
 0x167   : > { %v1008_v63 = vpop.f32.mrf.mxu3 }
 0x168   : > { %v1009_v38 = vadd.f32 %v1008_v63, %v920_v31 }
 0x169   : > { %v988_v55 = vpop.f32.mrf.mxu2 }
 0x16a   : > { %v989_v39 = vadd.f32 %v988_v55, %v900_v25  ;;  %v1042_v41 = vmax.f32 %v1009_v38, 0.0 }
 0x16c   : > { %v1034_v45 = vmax.f32 %v989_v39, 0.0  ;;  %v1660_v2 = vpack.c.bf16 %v1042_v41, %v1041_v40 }
 0x16e   : > { %v1640_v46 = vpack.c.bf16 %v1034_v45, %v1033_v44  ;;  %1676 = vst [vmem:[%s2015_s27 + $0x78] sm:$0xff] %v1660_v2  }
 0x170   : > { %1672 = vst [vmem:[%s2015_s27 + $0x58] sm:$0xff] %v1640_v46  }
 0x171 PF: > { %s13_s14 = sadd.s32 1, %s1749_s14   ;;  %s2136_s12 = smov %s1745_s13 }
 0x172   : > { %p10_p5 = scmp.ge.s32.totalorder %s13_s14, 7   ;;  %s2137_s13 = smov %s2139_s15 }
 0x174   :  { %12 = sbr.rel (!%p10_p5) target bundleno = 2 (0x2), region = 68 }

// kernel: image_classifier_forward.6
= control target key start
LH: loop header
LB: loop body
LE: loop exit
PB: predicated region body
PF: predicated region fallthrough
CT: control target
= control target key end

     0   :  { %s2509_s12 = smov 0   ;;  %s2511_s13 = smov 0   ;;  %s2982_s0 = inlined_call_operand.vmem [shape: bf16[1024,640], index: 0, kind: input, shape index: {}]   ;;  %s2983_s1 = inlined_call_operand.vmem [shape: bf16[640,128], index: 1, kind: input, shape index: {}]   ;;  %s2984_s2 = inlined_call_operand.vmem [shape: f32[1,128], index: 2, kind: input, shape index: {}]   ;;  %s2985_s3 = inlined_call_operand.vmem [shape: bf16[1024,128], index: 3, kind: output, shape index: {}]  }
   0x1   :  { %s2513_s14 = smov 0  }
   0x2 LB: > { %s25_s15 = sadd.s32 1, %s2483_s13  ;;  %p1713_p0 = scmp.ge.s32.totalorder %s2487_s14, 1  ;;  %s2487_s14 = sphi %s2513_s14, %s13_s14   ;;  %s2483_s13 = sphi %s2511_s13, %s2987_s13   ;;  %s2479_s12 = sphi %s2509_s12, %s2986_s12  }
   0x3   : > { %p27_p1 = scmp.ge.s32.totalorder %s25_s15, 4  ;;  %p170_p2 = scmp.lt.s32.totalorder %s2487_s14, 5 }
   0x5   : > { %s2989_s15 = smov (%p27_p1, %s25_s15), 0  ;;  %p171_p3 = pnand %p1713_p0, %p170_p2 }
   0x6   : > { %s1714_s22 = sshll.u32 (!%p171_p3), %s2479_s12, 5 }
   0x7   : > { %174 = sbr.rel (%p171_p3) target bundleno = 499 (0x1f3), region = 32  ;;  %p206_p4 = scmp.lt.s32.totalorder (!%p171_p3), %s1714_s22, 127 }
   0xc   : > { %v2287_v0 = vld [vmem:[%s2983_s1 + $0x38] sm:$0xff]  ;;  %v2286_v1 = vld [vmem:[%s2983_s1 + $0x30] sm:$0xff]  ;;  %v2285_v2 = vld [vmem:[%s2983_s1 + $0x28] sm:$0xff]  ;;  %s2991_s22 = smov (!%p206_p4, %s1714_s22), 127 }
   0xd   : > { %2415 = vmatpush.bf16.msra.mxu1 %v2287_v0  ;;  %2416 = vmatpush.bf16.msra.mxu2 %v2287_v0  ;;  %v2284_v3 = vld [vmem:[%s2983_s1 + $0x20] sm:$0xff]  ;;  %v2283_v4 = vld [vmem:[%s2983_s1 + $0x18] sm:$0xff]  ;;  %v2282_v5 = vld [vmem:[%s2983_s1 + $0x10] sm:$0xff]  ;;  %s2439_s29 = smul.u32 20, %s2991_s22  ;;  %s1717_s10 = sshll.u32 %s2991_s22, 2 }
   0xe   : > { %2417 = vmatpush.bf16.msra.mxu3 %v2287_v0  ;;  %1064 = vmatpush.bf16.msra.mxu0 %v2287_v0  ;;  %v2281_v6 = vld [vmem:[%s2983_s1 + $0x8] sm:$0xff]  ;;  %v2280_v7 = vld [vmem:[%s2983_s1] sm:$0xff]  ;;  %v2303_v16 = vld [vmem:[%s2983_s1 + $0xb8] sm:$0xff]  ;;  %s2873_s16 = scalar_lea.vmem %s2985_s3, %s1717_s10 }
   0xf   : > { %s2557_s7 = scalar_lea.vmem %s2982_s0, %s2439_s29  ;;  %v2311_v17 = vld [vmem:[%s2983_s1 + $0xf8] sm:$0xff]  ;;  %v2302_v24 = vld [vmem:[%s2983_s1 + $0xb0] sm:$0xff]  ;;  %v2301_v28 = vld [vmem:[%s2983_s1 + $0xa8] sm:$0xff] }
  0x10   : > { %v1800_v8 = vld [vmem:[%s2557_s7 + $0xa0] sm:$0xf]  ;;  %v2222_v9 = vld [vmem:[%s2557_s7 + $0xb0] sm:$0xf0]  ;;  %v2295_v22 = vld [vmem:[%s2983_s1 + $0x78] sm:$0xff] }
  0x11   : > { %2418 = vmatpush.bf16.msra.mxu1 %v2286_v1  ;;  %2419 = vmatpush.bf16.msra.mxu2 %v2286_v1  ;;  %v1880_v10 = vld [vmem:[%s2557_s7 + $0x140] sm:$0xf]  ;;  %v2242_v11 = vld [vmem:[%s2557_s7 + $0x150] sm:$0xf0]  ;;  %v1801_v18 = vor.u32 %v2222_v9, %v1800_v8  ;;  %v2319_v23 = vld [vmem:[%s2983_s1 + $0x138] sm:$0xff] }
  0x12   : > { %2420 = vmatpush.bf16.msra.mxu3 %v2286_v1  ;;  %1065 = vmatpush.bf16.msra.mxu0 %v2286_v1  ;;  %v1960_v12 = vld [vmem:[%s2557_s7 + $0x1e0] sm:$0xf]  ;;  %v2262_v13 = vld [vmem:[%s2557_s7 + $0x1f0] sm:$0xf0]  ;;  %v1881_v19 = vor.u32 %v2242_v11, %v1880_v10  ;;  %v2309_v29 = vld [vmem:[%s2983_s1 + $0xe8] sm:$0xff] }
  0x13   : > { %v1720_v14 = vld [vmem:[%s2557_s7] sm:$0xf]  ;;  %v2202_v15 = vld [vmem:[%s2557_s7 + $0x10] sm:$0xf0]  ;;  %v1961_v20 = vor.u32 %v2262_v13, %v1960_v12  ;;  %v2293_v30 = vld [vmem:[%s2983_s1 + $0x68] sm:$0xff] }
  0x14   : > { %v1721_v21 = vor.u32 %v2202_v15, %v1720_v14  ;;  %v2310_v25 = vld [vmem:[%s2983_s1 + $0xf0] sm:$0xff]  ;;  %v2317_v31 = vld [vmem:[%s2983_s1 + $0x128] sm:$0xff]  ;;  %v2300_v33 = vld [vmem:[%s2983_s1 + $0xa0] sm:$0xff] }
  0x15   : > { %2421 = vmatpush.bf16.msra.mxu1 %v2285_v2  ;;  %2422 = vmatpush.bf16.msra.mxu2 %v2285_v2  ;;  %v2294_v26 = vld [vmem:[%s2983_s1 + $0x70] sm:$0xff]  ;;  %v1820_v32 = vld [vmem:[%s2557_s7 + $0xc8] sm:$0xf]  ;;  %v2308_v34 = vld [vmem:[%s2983_s1 + $0xe0] sm:$0xff] }
  0x16   : > { %2423 = vmatpush.bf16.msra.mxu3 %v2285_v2  ;;  %1066 = vmatpush.bf16.msra.mxu0 %v2285_v2  ;;  %v2318_v27 = vld [vmem:[%s2983_s1 + $0x130] sm:$0xff]  ;;  %v2227_v35 = vld [vmem:[%s2557_s7 + $0xd8] sm:$0xf0]  ;;  %v1900_v36 = vld [vmem:[%s2557_s7 + $0x168] sm:$0xf] }
  0x17   : > { %v2247_v37 = vld [vmem:[%s2557_s7 + $0x178] sm:$0xf0]  ;;  %v1980_v38 = vld [vmem:[%s2557_s7 + $0x208] sm:$0xf]  ;;  %v2292_v42 = vld [vmem:[%s2983_s1 + $0x60] sm:$0xff]  ;;  %v1821_v46 = vor.u32 %v2227_v35, %v1820_v32 }
  0x18   : > { %v2267_v39 = vld [vmem:[%s2557_s7 + $0x218] sm:$0xf0]  ;;  %v1740_v40 = vld [vmem:[%s2557_s7 + $0x28] sm:$0xf]  ;;  %v2316_v43 = vld [vmem:[%s2983_s1 + $0x120] sm:$0xff]  ;;  %v1901_v47 = vor.u32 %v2247_v37, %v1900_v36 }
  0x19   : > { %2424 = vmatpush.bf16.msra.mxu1 %v2284_v3  ;;  %2425 = vmatpush.bf16.msra.mxu2 %v2284_v3  ;;  %v2207_v41 = vld [vmem:[%s2557_s7 + $0x38] sm:$0xf0]  ;;  %v1981_v48 = vor.u32 %v2267_v39, %v1980_v38  ;;  %v2298_v52 = vld [vmem:[%s2983_s1 + $0x90] sm:$0xff]  ;;  %v2297_v56 = vld [vmem:[%s2983_s1 + $0x88] sm:$0xff] }
  0x1a   : > { %2426 = vmatpush.bf16.msra.mxu3 %v2284_v3  ;;  %1067 = vmatpush.bf16.msra.mxu0 %v2284_v3  ;;  %v2299_v44 = vld [vmem:[%s2983_s1 + $0x98] sm:$0xff]  ;;  %v1741_v49 = vor.u32 %v2207_v41, %v1740_v40  ;;  %v2306_v53 = vld [vmem:[%s2983_s1 + $0xd0] sm:$0xff]  ;;  %v2305_v57 = vld [vmem:[%s2983_s1 + $0xc8] sm:$0xff] }
  0x1b   : > { %v2307_v45 = vld [vmem:[%s2983_s1 + $0xd8] sm:$0xff]  ;;  %v2290_v54 = vld [vmem:[%s2983_s1 + $0x50] sm:$0xff]  ;;  %v2289_v58 = vld [vmem:[%s2983_s1 + $0x48] sm:$0xff] }
  0x1c   : > { %v2291_v50 = vld [vmem:[%s2983_s1 + $0x58] sm:$0xff]  ;;  %v2314_v55 = vld [vmem:[%s2983_s1 + $0x110] sm:$0xff]  ;;  %v2313_v59 = vld [vmem:[%s2983_s1 + $0x108] sm:$0xff] }
  0x1d   : > { %2427 = vmatpush.bf16.msra.mxu1 %v2283_v4  ;;  %2428 = vmatpush.bf16.msra.mxu2 %v2283_v4  ;;  %v2315_v51 = vld [vmem:[%s2983_s1 + $0x118] sm:$0xff]  ;;  %v1840_v60 = vld [vmem:[%s2557_s7 + $0xf0] sm:$0xf]  ;;  %v2296_v61 = vld [vmem:[%s2983_s1 + $0x80] sm:$0xff] }
  0x1e   : > { %2429 = vmatpush.bf16.msra.mxu3 %v2283_v4  ;;  %1068 = vmatpush.bf16.msra.mxu0 %v2283_v4  ;;  %v2304_v62 = vld [vmem:[%s2983_s1 + $0xc0] sm:$0xff]  ;;  %v1920_v0 = vld [vmem:[%s2557_s7 + $0x190] sm:$0xf]  ;;  %v1860_v12 = vld [vmem:[%s2557_s7 + $0x118] sm:$0xf] }
  0x1f   : > { %v2232_v63 = vld [vmem:[%s2557_s7 + $0x100] sm:$0xf0]  ;;  %v2000_v2 = vld [vmem:[%s2557_s7 + $0x230] sm:$0xf]  ;;  %v2237_v13 = vld [vmem:[%s2557_s7 + $0x128] sm:$0xf0] }
  0x20   : > { %v2252_v1 = vld [vmem:[%s2557_s7 + $0x1a0] sm:$0xf0]  ;;  %v1760_v4 = vld [vmem:[%s2557_s7 + $0x50] sm:$0xf]  ;;  %v1841_v8 = vor.u32 %v2232_v63, %v1840_v60  ;;  %v1940_v14 = vld [vmem:[%s2557_s7 + $0x1b8] sm:$0xf] }
  0x21   : > { %2430 = vmatpush.bf16.msra.mxu1 %v2282_v5  ;;  %2431 = vmatpush.bf16.msra.mxu2 %v2282_v5  ;;  %v2272_v3 = vld [vmem:[%s2557_s7 + $0x240] sm:$0xf0]  ;;  %v1921_v9 = vor.u32 %v2252_v1, %v1920_v0  ;;  %v2257_v15 = vld [vmem:[%s2557_s7 + $0x1c8] sm:$0xf0]  ;;  %v1742_v37 = vld [vmem:[%s2557_s7 + $0x3c] sm:$0xf0] }
  0x22   : > { %2432 = vmatpush.bf16.msra.mxu3 %v2282_v5  ;;  %1069 = vmatpush.bf16.msra.mxu0 %v2282_v5  ;;  %v2212_v5 = vld [vmem:[%s2557_s7 + $0x60] sm:$0xf0]  ;;  %v2001_v10 = vor.u32 %v2272_v3, %v2000_v2  ;;  %v2205_v36 = vld [vmem:[%s2557_s7 + $0x2c] sm:$0xf]  ;;  %v1748_v38 = vld [vmem:[%s2557_s7 + $0x30] sm:$0xf] }
  0x23   : > { %v1761_v11 = vor.u32 %v2212_v5, %v1760_v4  ;;  %v2208_v39 = vld [vmem:[%s2557_s7 + $0x40] sm:$0xf0]  ;;  %v2206_v40 = vld [vmem:[%s2557_s7 + $0x34] sm:$0xf]  ;;  %v1750_v41 = vld [vmem:[%s2557_s7 + $0x44] sm:$0xf0] }
  0x24   : > { %v2215_v60 = vld [vmem:[%s2557_s7 + $0x7c] sm:$0xf]  ;;  %v2218_v63 = vld [vmem:[%s2557_s7 + $0x90] sm:$0xf0]  ;;  %v2216_v0 = vld [vmem:[%s2557_s7 + $0x84] sm:$0xf] }
  0x25   : > { %2433 = vmatpush.bf16.msra.mxu1 %v2281_v6  ;;  %2434 = vmatpush.bf16.msra.mxu2 %v2281_v6  ;;  %v1790_v1 = vld [vmem:[%s2557_s7 + $0x94] sm:$0xf0]  ;;  %v1796_v2 = vld [vmem:[%s2557_s7 + $0x88] sm:$0xf]  ;;  %v2219_v3 = vld [vmem:[%s2557_s7 + $0x98] sm:$0xf0] }
  0x26   : > { %2435 = vmatpush.bf16.msra.mxu3 %v2281_v6  ;;  %1070 = vmatpush.bf16.msra.mxu0 %v2281_v6  ;;  %v2288_v6 = vld [vmem:[%s2983_s1 + $0x40] sm:$0xff] }
  0x29   : > { %2436 = vmatpush.bf16.msra.mxu1 %v2280_v7  ;;  %2437 = vmatpush.bf16.msra.mxu2 %v2280_v7 }
  0x2a   : > { %2438 = vmatpush.bf16.msra.mxu3 %v2280_v7  ;;  %1071 = vmatpush.bf16.msra.mxu0 %v2280_v7  ;;  %v2312_v7 = vld [vmem:[%s2983_s1 + $0x100] sm:$0xff] }
  0x2c   : > { %1092 = vmatmul.bf16.vlgmr.msra.gmra.mxu1 %v1801_v18  ;;  %1112 = vmatmul.bf16.vlgmr.msra.gmra.mxu2 %v1881_v19  ;;  %v1780_v18 = vld [vmem:[%s2557_s7 + $0x78] sm:$0xf]  ;;  %v2217_v19 = vld [vmem:[%s2557_s7 + $0x88] sm:$0xf0] }
  0x2d   : > { %1242 = vmatpush.bf16.msrb.mxu2 %v2303_v16  ;;  %1132 = vmatmul.bf16.vlgmr.msra.gmra.mxu3 %v1961_v20  ;;  %v2020_v16 = vld [vmem:[%s2557_s7 + $0x258] sm:$0xf]  ;;  %v1861_v20 = vor.u32 %v2237_v13, %v1860_v12  ;;  %v2223_v12 = vld [vmem:[%s2557_s7 + $0xb8] sm:$0xf0]  ;;  %v2221_v13 = vld [vmem:[%s2557_s7 + $0xac] sm:$0xf] }
  0x2e   : > { %1331 = vmatpush.bf16.msrb.mxu3 %v2311_v17  ;;  %1072 = vmatmul.bf16.vlgmr.msra.gmra.mxu0 %v1721_v21  ;;  %v2277_v17 = vld [vmem:[%s2557_s7 + $0x268] sm:$0xf0]  ;;  %v1941_v21 = vor.u32 %v2257_v15, %v1940_v14  ;;  %v1810_v14 = vld [vmem:[%s2557_s7 + $0xbc] sm:$0xf0]  ;;  %v1816_v15 = vld [vmem:[%s2557_s7 + $0xb0] sm:$0xf] }
  0x2f   : > { %1153 = vmatpush.bf16.msrb.mxu1 %v2295_v22  ;;  %1420 = vmatpush.bf16.msrb.mxu0 %v2319_v23  ;;  %v2021_v22 = vor.u32 %v2277_v17, %v2020_v16  ;;  %v1781_v23 = vor.u32 %v2217_v19, %v1780_v18  ;;  %v2224_v16 = vld [vmem:[%s2557_s7 + $0xc0] sm:$0xf0] }
  0x31   : > { %1243 = vmatpush.bf16.msrb.mxu2 %v2302_v24  ;;  %v2200_v24 = vld [vmem:[%s2557_s7 + $0x4] sm:$0xf] }
  0x32   : > { %1332 = vmatpush.bf16.msrb.mxu3 %v2310_v25  ;;  %v1722_v25 = vld [vmem:[%s2557_s7 + $0x14] sm:$0xf0] }
  0x33   : > { %1154 = vmatpush.bf16.msrb.mxu1 %v2294_v26  ;;  %1421 = vmatpush.bf16.msrb.mxu0 %v2318_v27  ;;  %v1728_v26 = vld [vmem:[%s2557_s7 + $0x8] sm:$0xf]  ;;  %v2203_v27 = vld [vmem:[%s2557_s7 + $0x18] sm:$0xf0]  ;;  %v1725_v32 = vor.u32 %v2200_v24, %v1722_v25 }
  0x35   : > { %1244 = vmatpush.bf16.msrb.mxu2 %v2301_v28  ;;  %v2201_v28 = vld [vmem:[%s2557_s7 + $0xc] sm:$0xf] }
  0x36   : > { %1333 = vmatpush.bf16.msrb.mxu3 %v2309_v29  ;;  %v1730_v29 = vld [vmem:[%s2557_s7 + $0x1c] sm:$0xf0] }
  0x37   : > { %1155 = vmatpush.bf16.msrb.mxu1 %v2293_v30  ;;  %1422 = vmatpush.bf16.msrb.mxu0 %v2317_v31  ;;  %v1736_v30 = vld [vmem:[%s2557_s7 + $0x10] sm:$0xf]  ;;  %v2204_v31 = vld [vmem:[%s2557_s7 + $0x20] sm:$0xf0] }
  0x38   : > { %v1737_v35 = vor.u32 %v2204_v31, %v1736_v30  ;;  %v2225_v31 = vld [vmem:[%s2557_s7 + $0xcc] sm:$0xf] }
  0x39   : > { %1245 = vmatpush.bf16.msrb.mxu2 %v2300_v33  ;;  %v1729_v33 = vor.u32 %v2203_v27, %v1728_v26 }
  0x3a   : > { %1334 = vmatpush.bf16.msrb.mxu3 %v2308_v34  ;;  %v1733_v34 = vor.u32 %v2201_v28, %v1730_v29 }
  0x3b   : > { %1156 = vmatpush.bf16.msrb.mxu1 %v2292_v42  ;;  %1423 = vmatpush.bf16.msrb.mxu0 %v2316_v43  ;;  %v1756_v42 = vld [vmem:[%s2557_s7 + $0x38] sm:$0xf]  ;;  %v2209_v43 = vld [vmem:[%s2557_s7 + $0x48] sm:$0xf0] }
  0x3c   : > { %1097 = vmatmul.bf16.gmra.mxu1 %v1821_v46  ;;  %1117 = vmatmul.bf16.gmra.mxu2 %v1901_v47  ;;  %v1753_v46 = vor.u32 %v2206_v40, %v1750_v41  ;;  %v1757_v47 = vor.u32 %v2209_v43, %v1756_v42 }
  0x3d   : > { %1246 = vmatpush.bf16.msrb.mxu2 %v2299_v44  ;;  %1137 = vmatmul.bf16.gmra.mxu3 %v1981_v48  ;;  %v1745_v44 = vor.u32 %v2205_v36, %v1742_v37  ;;  %v2210_v48 = vld [vmem:[%s2557_s7 + $0x54] sm:$0xf]  ;;  %v1830_v36 = vld [vmem:[%s2557_s7 + $0xe4] sm:$0xf0]  ;;  %v1836_v37 = vld [vmem:[%s2557_s7 + $0xd8] sm:$0xf] }
  0x3e   : > { %1335 = vmatpush.bf16.msrb.mxu3 %v2307_v45  ;;  %1077 = vmatmul.bf16.gmra.mxu0 %v1741_v49  ;;  %v1749_v45 = vor.u32 %v2208_v39, %v1748_v38  ;;  %v1762_v49 = vld [vmem:[%s2557_s7 + $0x64] sm:$0xf0]  ;;  %v2229_v38 = vld [vmem:[%s2557_s7 + $0xe8] sm:$0xf0] }
  0x3f   : > { %1157 = vmatpush.bf16.msrb.mxu1 %v2291_v50  ;;  %1424 = vmatpush.bf16.msrb.mxu0 %v2315_v51  ;;  %v1768_v50 = vld [vmem:[%s2557_s7 + $0x58] sm:$0xf]  ;;  %v2213_v51 = vld [vmem:[%s2557_s7 + $0x68] sm:$0xf0] }
  0x41   : > { %1247 = vmatpush.bf16.msrb.mxu2 %v2298_v52  ;;  %v2211_v52 = vld [vmem:[%s2557_s7 + $0x5c] sm:$0xf] }
  0x42   : > { %1336 = vmatpush.bf16.msrb.mxu3 %v2306_v53  ;;  %v1770_v53 = vld [vmem:[%s2557_s7 + $0x6c] sm:$0xf0] }
  0x43   : > { %1158 = vmatpush.bf16.msrb.mxu1 %v2290_v54  ;;  %1425 = vmatpush.bf16.msrb.mxu0 %v2314_v55  ;;  %v1776_v54 = vld [vmem:[%s2557_s7 + $0x60] sm:$0xf]  ;;  %v2214_v55 = vld [vmem:[%s2557_s7 + $0x70] sm:$0xf0] }
  0x45   : > { %1248 = vmatpush.bf16.msrb.mxu2 %v2297_v56  ;;  %v1765_v56 = vor.u32 %v2210_v48, %v1762_v49 }
  0x46   : > { %1337 = vmatpush.bf16.msrb.mxu3 %v2305_v57  ;;  %v1769_v57 = vor.u32 %v2213_v51, %v1768_v50 }
  0x47   : > { %1159 = vmatpush.bf16.msrb.mxu1 %v2289_v58  ;;  %1426 = vmatpush.bf16.msrb.mxu0 %v2313_v59  ;;  %v1773_v58 = vor.u32 %v2211_v52, %v1770_v53  ;;  %v1777_v59 = vor.u32 %v2214_v55, %v1776_v54 }
  0x49   : > { %1249 = vmatpush.bf16.msrb.mxu2 %v2296_v61  ;;  %v1782_v61 = vld [vmem:[%s2557_s7 + $0x8c] sm:$0xf0] }
  0x4a   : > { %1338 = vmatpush.bf16.msrb.mxu3 %v2304_v62  ;;  %v1788_v62 = vld [vmem:[%s2557_s7 + $0x80] sm:$0xf]  ;;  %v1785_v4 = vor.u32 %v2215_v60, %v1782_v61  ;;  %v2233_v60 = vld [vmem:[%s2557_s7 + $0x108] sm:$0xf0]  ;;  %v2231_v61 = vld [vmem:[%s2557_s7 + $0xfc] sm:$0xf] }
  0x4b   : > { %1160 = vmatpush.bf16.msrb.mxu1 %v2288_v6  ;;  %1427 = vmatpush.bf16.msrb.mxu0 %v2312_v7  ;;  %v1789_v5 = vor.u32 %v2218_v63, %v1788_v62  ;;  %v1793_v6 = vor.u32 %v2216_v0, %v1790_v1  ;;  %v1797_v7 = vor.u32 %v2219_v3, %v1796_v2  ;;  %v1850_v62 = vld [vmem:[%s2557_s7 + $0x10c] sm:$0xf0]  ;;  %v1856_v63 = vld [vmem:[%s2557_s7 + $0x100] sm:$0xf]  ;;  %v2234_v0 = vld [vmem:[%s2557_s7 + $0x110] sm:$0xf0] }
  0x4c   : > { %1102 = vmatmul.bf16.gmra.mxu1 %v1841_v8  ;;  %1122 = vmatmul.bf16.gmra.mxu2 %v1921_v9  ;;  %v2725_v8 = vld [vmem:[%s2984_s2] ss:$0 sm:$0xff]  ;;  %v2220_v9 = vld [vmem:[%s2557_s7 + $0xa4] sm:$0xf] }
  0x4d   : > { %1142 = vmatmul.bf16.gmra.mxu3 %v2001_v10  ;;  %v1802_v10 = vld [vmem:[%s2557_s7 + $0xb4] sm:$0xf0] }
  0x4e   : > { %1082 = vmatmul.bf16.gmra.mxu0 %v1761_v11  ;;  %v1808_v11 = vld [vmem:[%s2557_s7 + $0xa8] sm:$0xf]  ;;  %v1805_v17 = vor.u32 %v2220_v9, %v1802_v10  ;;  %v1853_v9 = vor.u32 %v2231_v61, %v1850_v62  ;;  %v1857_v10 = vor.u32 %v2234_v0, %v1856_v63  ;;  %v1882_v61 = vld [vmem:[%s2557_s7 + $0x154] sm:$0xf0]  ;;  %v2243_v63 = vld [vmem:[%s2557_s7 + $0x158] sm:$0xf0] }
  0x4f   : > { %v1809_v18 = vor.u32 %v2223_v12, %v1808_v11  ;;  %v1888_v62 = vld [vmem:[%s2557_s7 + $0x148] sm:$0xf]  ;;  %v2241_v0 = vld [vmem:[%s2557_s7 + $0x14c] sm:$0xf] }
  0x5c   : > { %1107 = vmatmul.bf16.gmra.mxu1 %v1861_v20  ;;  %1127 = vmatmul.bf16.gmra.mxu2 %v1941_v21  ;;  %v1813_v20 = vor.u32 %v2221_v13, %v1810_v14  ;;  %v1817_v21 = vor.u32 %v2224_v16, %v1816_v15 }
  0x5d   : > { %1147 = vmatmul.bf16.gmra.mxu3 %v2021_v22 }
  0x5e   : > { %1087 = vmatmul.bf16.gmra.mxu0 %v1781_v23 }
  0x6c   : > { %1161 = vmatmul.bf16.vlgmr.msrb.gmra.mxu1 %v1725_v32  ;;  %1250 = vmatmul.bf16.vlgmr.msrb.gmra.mxu2 %v1729_v33  ;;  %v1822_v32 = vld [vmem:[%s2557_s7 + $0xdc] sm:$0xf0]  ;;  %v1828_v33 = vld [vmem:[%s2557_s7 + $0xd0] sm:$0xf] }
  0x6d   : > { %1339 = vmatmul.bf16.vlgmr.msrb.gmra.mxu3 %v1733_v34  ;;  %v2228_v34 = vld [vmem:[%s2557_s7 + $0xe0] sm:$0xf0]  ;;  %v1825_v42 = vor.u32 %v2225_v31, %v1822_v32  ;;  %v1870_v31 = vld [vmem:[%s2557_s7 + $0x134] sm:$0xf0]  ;;  %v1876_v32 = vld [vmem:[%s2557_s7 + $0x128] sm:$0xf] }
  0x6e   : > { %1428 = vmatmul.bf16.vlgmr.msrb.gmra.mxu0 %v1737_v35  ;;  %v2226_v35 = vld [vmem:[%s2557_s7 + $0xd4] sm:$0xf]  ;;  %v1829_v43 = vor.u32 %v2228_v34, %v1828_v33  ;;  %v2239_v33 = vld [vmem:[%s2557_s7 + $0x138] sm:$0xf0] }
  0x7c   : > { %1166 = vmatmul.bf16.gmra.mxu1 %v1745_v44  ;;  %1255 = vmatmul.bf16.gmra.mxu2 %v1749_v45 }
  0x7d   : > { %1344 = vmatmul.bf16.gmra.mxu3 %v1753_v46  ;;  %v1833_v46 = vor.u32 %v2226_v35, %v1830_v36 }
  0x7e   : > { %1433 = vmatmul.bf16.gmra.mxu0 %v1757_v47  ;;  %v1837_v47 = vor.u32 %v2229_v38, %v1836_v37 }
  0x8c   : > { %1171 = vmatmul.bf16.gmra.mxu1 %v1765_v56  ;;  %1260 = vmatmul.bf16.gmra.mxu2 %v1769_v57  ;;  %v2230_v57 = vld [vmem:[%s2557_s7 + $0xf4] sm:$0xf] }
  0x8d   : > { %1349 = vmatmul.bf16.gmra.mxu3 %v1773_v58  ;;  %v1842_v58 = vld [vmem:[%s2557_s7 + $0x104] sm:$0xf0] }
  0x8e   : > { %1438 = vmatmul.bf16.gmra.mxu0 %v1777_v59  ;;  %v1848_v59 = vld [vmem:[%s2557_s7 + $0xf8] sm:$0xf] }
  0x9c   : > { %1176 = vmatmul.bf16.gmra.mxu1 %v1785_v4  ;;  %1265 = vmatmul.bf16.gmra.mxu2 %v1789_v5  ;;  %v1845_v4 = vor.u32 %v2230_v57, %v1842_v58  ;;  %v1849_v5 = vor.u32 %v2233_v60, %v1848_v59  ;;  %v2240_v60 = vld [vmem:[%s2557_s7 + $0x144] sm:$0xf] }
  0x9d   : > { %1354 = vmatmul.bf16.gmra.mxu3 %v1793_v6 }
  0x9e   : > { %1443 = vmatmul.bf16.gmra.mxu0 %v1797_v7 }
  0xa9   : > { %v1093_v19 = vpop.f32.mrf.mxu1 }
  0xaa   : > { %v2736_v22 = vadd.f32 %v2725_v8, %v1093_v19 }
  0xab   : > { %v2738_v23 = vpop.f32.mrf.mxu0 }
  0xac   : > { %1181 = vmatmul.bf16.gmra.mxu1 %v1805_v17  ;;  %1270 = vmatmul.bf16.gmra.mxu2 %v1809_v18 }
  0xad   : > { %1359 = vmatmul.bf16.gmra.mxu3 %v1813_v20  ;;  %v2235_v20 = vld [vmem:[%s2557_s7 + $0x11c] sm:$0xf] }
  0xae   : > { %1448 = vmatmul.bf16.gmra.mxu0 %v1817_v21  ;;  %v1862_v21 = vld [vmem:[%s2557_s7 + $0x12c] sm:$0xf0] }
  0xaf   : > { %v1113_v24 = vpop.f32.mrf.mxu2  ;;  %v1865_v37 = vor.u32 %v2235_v20, %v1862_v21 }
  0xb0   : > { %v2741_v25 = vadd.f32 %v2725_v8, %v1113_v24  ;;  %v1133_v26 = vpop.f32.mrf.mxu3  ;;  %v1868_v24 = vld [vmem:[%s2557_s7 + $0x120] sm:$0xf] }
  0xb1   : > { %v2744_v27 = vadd.f32 %v2725_v8, %v1133_v26  ;;  %v1095_v28 = vpop.f32.mrf.mxu1  ;;  %v2238_v26 = vld [vmem:[%s2557_s7 + $0x130] sm:$0xf0] }
  0xb2   : > { %v2747_v29 = vadd.f32 %v2725_v8, %v1095_v28  ;;  %v2236_v28 = vld [vmem:[%s2557_s7 + $0x124] sm:$0xf]  ;;  %v1869_v38 = vor.u32 %v2238_v26, %v1868_v24  ;;  %v1074_v26 = vadd.f32 %v2725_v8, %v2738_v23  ;;  %v1910_v23 = vld [vmem:[%s2557_s7 + $0x184] sm:$0xf0] }
  0xb3   : > { %v2749_v30 = vpop.f32.mrf.mxu0 }
  0xb7   : > { %v1115_v39 = vpop.f32.mrf.mxu2 }
  0xb8   : > { %v2760_v40 = vadd.f32 %v2725_v8, %v1115_v39  ;;  %v1135_v41 = vpop.f32.mrf.mxu3 }
  0xb9   : > { %v2763_v44 = vadd.f32 %v2725_v8, %v1135_v41  ;;  %v1098_v45 = vpop.f32.mrf.mxu1 }
  0xba   : > { %v2766_v48 = vadd.f32 %v2725_v8, %v1098_v45 }
  0xbb   : > { %v2768_v49 = vpop.f32.mrf.mxu0 }
  0xbc   : > { %1186 = vmatmul.bf16.gmra.mxu1 %v1825_v42  ;;  %1275 = vmatmul.bf16.gmra.mxu2 %v1829_v43  ;;  %v1873_v42 = vor.u32 %v2236_v28, %v1870_v31  ;;  %v1877_v43 = vor.u32 %v2239_v33, %v1876_v32 }
  0xbd   : > { %1364 = vmatmul.bf16.gmra.mxu3 %v1833_v46 }
  0xbe   : > { %1453 = vmatmul.bf16.gmra.mxu0 %v1837_v47 }
  0xbf   : > { %v1118_v50 = vpop.f32.mrf.mxu2 }
  0xc0   : > { %v2771_v51 = vadd.f32 %v2725_v8, %v1118_v50  ;;  %v1138_v52 = vpop.f32.mrf.mxu3 }
  0xc1   : > { %v2774_v53 = vadd.f32 %v2725_v8, %v1138_v52  ;;  %v1100_v54 = vpop.f32.mrf.mxu1 }
  0xc2   : > { %v2777_v55 = vadd.f32 %v2725_v8, %v1100_v54 }
  0xc3   : > { %v2779_v56 = vpop.f32.mrf.mxu0 }
  0xc7   : > { %v1120_v1 = vpop.f32.mrf.mxu2 }
  0xc8   : > { %v2790_v2 = vadd.f32 %v2725_v8, %v1120_v1  ;;  %v1140_v3 = vpop.f32.mrf.mxu3  ;;  %v1890_v1 = vld [vmem:[%s2557_s7 + $0x15c] sm:$0xf0] }
  0xc9   : > { %v2793_v6 = vadd.f32 %v2725_v8, %v1140_v3  ;;  %v1103_v7 = vpop.f32.mrf.mxu1  ;;  %v1896_v3 = vld [vmem:[%s2557_s7 + $0x150] sm:$0xf]  ;;  %v1893_v20 = vor.u32 %v2241_v0, %v1890_v1 }
  0xca   : > { %v2796_v11 = vadd.f32 %v2725_v8, %v1103_v7 }
  0xcb   : > { %v2798_v12 = vpop.f32.mrf.mxu0 }
  0xcc   : > { %1191 = vmatmul.bf16.gmra.mxu1 %v1845_v4  ;;  %1280 = vmatmul.bf16.gmra.mxu2 %v1849_v5  ;;  %v2244_v4 = vld [vmem:[%s2557_s7 + $0x160] sm:$0xf0] }
  0xcd   : > { %1369 = vmatmul.bf16.gmra.mxu3 %v1853_v9  ;;  %v1897_v21 = vor.u32 %v2244_v4, %v1896_v3 }
  0xce   : > { %1458 = vmatmul.bf16.gmra.mxu0 %v1857_v10  ;;  %v1885_v10 = vor.u32 %v2240_v60, %v1882_v61  ;;  %v1916_v60 = vld [vmem:[%s2557_s7 + $0x178] sm:$0xf]  ;;  %v2249_v61 = vld [vmem:[%s2557_s7 + $0x188] sm:$0xf0] }
  0xcf   : > { %v1123_v13 = vpop.f32.mrf.mxu2 }
  0xd0   : > { %v2801_v14 = vadd.f32 %v2725_v8, %v1123_v13  ;;  %v1143_v15 = vpop.f32.mrf.mxu3  ;;  %v1889_v13 = vor.u32 %v2243_v63, %v1888_v62 }
  0xd1   : > { %v2804_v16 = vadd.f32 %v2725_v8, %v1143_v15  ;;  %v1105_v17 = vpop.f32.mrf.mxu1 }
  0xd2   : > { %v2807_v18 = vadd.f32 %v2725_v8, %v1105_v17 }
  0xd3   : > { %v2809_v19 = vpop.f32.mrf.mxu0 }
  0xd7   : > { %v1125_v34 = vpop.f32.mrf.mxu2 }
  0xd8   : > { %v2820_v35 = vadd.f32 %v2725_v8, %v1125_v34  ;;  %v1145_v36 = vpop.f32.mrf.mxu3 }
  0xd9   : > { %v2823_v39 = vadd.f32 %v2725_v8, %v1145_v36  ;;  %v1108_v41 = vpop.f32.mrf.mxu1 }
  0xda   : > { %v2826_v45 = vadd.f32 %v2725_v8, %v1108_v41  ;;  %v1902_v41 = vld [vmem:[%s2557_s7 + $0x17c] sm:$0xf0] }
  0xdb   : > { %v2828_v46 = vpop.f32.mrf.mxu0 }
  0xdc   : > { %1196 = vmatmul.bf16.gmra.mxu1 %v1865_v37  ;;  %1285 = vmatmul.bf16.gmra.mxu2 %v1869_v38  ;;  %v1076_v37 = vadd.f32 %v2725_v8, %v2749_v30  ;;  %v2245_v38 = vld [vmem:[%s2557_s7 + $0x16c] sm:$0xf] }
  0xdd   : > { %1374 = vmatmul.bf16.gmra.mxu3 %v1873_v42  ;;  %v1908_v42 = vld [vmem:[%s2557_s7 + $0x170] sm:$0xf]  ;;  %v1905_v1 = vor.u32 %v2245_v38, %v1902_v41  ;;  %v1922_v38 = vld [vmem:[%s2557_s7 + $0x1a4] sm:$0xf0]  ;;  %v1928_v41 = vld [vmem:[%s2557_s7 + $0x198] sm:$0xf] }
  0xde   : > { %1463 = vmatmul.bf16.gmra.mxu0 %v1877_v43  ;;  %v2248_v43 = vld [vmem:[%s2557_s7 + $0x180] sm:$0xf0] }
  0xdf   : > { %v1128_v47 = vpop.f32.mrf.mxu2  ;;  %v1909_v3 = vor.u32 %v2248_v43, %v1908_v42  ;;  %v2253_v42 = vld [vmem:[%s2557_s7 + $0x1a8] sm:$0xf0]  ;;  %v2251_v43 = vld [vmem:[%s2557_s7 + $0x19c] sm:$0xf] }
  0xe0   : > { %v2831_v50 = vadd.f32 %v2725_v8, %v1128_v47  ;;  %v1148_v52 = vpop.f32.mrf.mxu3  ;;  %v2246_v47 = vld [vmem:[%s2557_s7 + $0x174] sm:$0xf] }
  0xe1   : > { %v2834_v54 = vadd.f32 %v2725_v8, %v1148_v52  ;;  %v1110_v57 = vpop.f32.mrf.mxu1 }
  0xe2   : > { %v2837_v58 = vadd.f32 %v2725_v8, %v1110_v57 }
  0xe3   : > { %v2839_v59 = vpop.f32.mrf.mxu0 }
  0xe7   : > { %v1130_v5 = vpop.f32.mrf.mxu2 }
  0xe8   : > { %v2850_v7 = vadd.f32 %v2725_v8, %v1130_v5  ;;  %v1150_v9 = vpop.f32.mrf.mxu3  ;;  %v1913_v5 = vor.u32 %v2246_v47, %v1910_v23  ;;  %v1936_v23 = vld [vmem:[%s2557_s7 + $0x1a0] sm:$0xf] }
  0xe9   : > { %v2853_v15 = vadd.f32 %v2725_v8, %v1150_v9  ;;  %v1162_v17 = vpop.f32.mrf.mxu1  ;;  %v1917_v9 = vor.u32 %v2249_v61, %v1916_v60  ;;  %v2254_v60 = vld [vmem:[%s2557_s7 + $0x1b0] sm:$0xf0] }
  0xea   : > { %v1163_v31 = vadd.f32 %v1162_v17, %v1074_v26 }
  0xeb   : > { %v1429_v24 = vpop.f32.mrf.mxu0 }
  0xec   : > { %1201 = vmatmul.bf16.gmra.mxu1 %v1885_v10  ;;  %1290 = vmatmul.bf16.gmra.mxu2 %v1889_v13 }
  0xed   : > { %1379 = vmatmul.bf16.gmra.mxu3 %v1893_v20  ;;  %v1079_v20 = vadd.f32 %v2725_v8, %v2768_v49 }
  0xee   : > { %1468 = vmatmul.bf16.gmra.mxu0 %v1897_v21 }
  0xef   : > { %v1251_v28 = vpop.f32.mrf.mxu2 }
  0xf0   : > { %v1340_v32 = vpop.f32.mrf.mxu3  ;;  %v1252_v34 = vadd.f32 %v1251_v28, %v1163_v31 }
  0xf1   : > { %v1164_v33 = vpop.f32.mrf.mxu1 }
  0xf2   : > { %v1341_v52 = vadd.f32 %v1340_v32, %v1252_v34  ;;  %v1165_v57 = vadd.f32 %v1164_v33, %v1076_v37  ;;  %v2250_v37 = vld [vmem:[%s2557_s7 + $0x194] sm:$0xf] }
  0xf3   : > { %v1431_v36 = vpop.f32.mrf.mxu0 }
  0xf4   : > { %v1430_v30 = vadd.f32 %v1429_v24, %v1341_v52 }
  0xf6   : > { %v1509_v21 = vmax.f32 %v1430_v30, 0.0 }
  0xf7   : > { %v1253_v62 = vpop.f32.mrf.mxu2 }
  0xf8   : > { %v1254_v63 = vadd.f32 %v1253_v62, %v1165_v57  ;;  %v1342_v0 = vpop.f32.mrf.mxu3  ;;  %v1930_v57 = vld [vmem:[%s2557_s7 + $0x1ac] sm:$0xf0] }
  0xf9   : > { %v1167_v4 = vpop.f32.mrf.mxu1 }
  0xfa   : > { %v1343_v10 = vadd.f32 %v1342_v0, %v1254_v63  ;;  %v1168_v31 = vadd.f32 %v1167_v4, %v1079_v20  ;;  %v1925_v0 = vor.u32 %v2250_v37, %v1922_v38  ;;  %v1933_v4 = vor.u32 %v2251_v43, %v1930_v57  ;;  %v2258_v37 = vld [vmem:[%s2557_s7 + $0x1d0] sm:$0xf0]  ;;  %v2256_v38 = vld [vmem:[%s2557_s7 + $0x1c4] sm:$0xf]  ;;  %v1950_v43 = vld [vmem:[%s2557_s7 + $0x1d4] sm:$0xf0] }
  0xfb   : > { %v1434_v13 = vpop.f32.mrf.mxu0 }
  0xfc   : > { %v1432_v17 = vadd.f32 %v1431_v36, %v1343_v10  ;;  %1206 = vmatmul.bf16.gmra.mxu1 %v1905_v1  ;;  %1295 = vmatmul.bf16.gmra.mxu2 %v1909_v3  ;;  %v1081_v36 = vadd.f32 %v2725_v8, %v2779_v56  ;;  %v1929_v1 = vor.u32 %v2253_v42, %v1928_v41 }
  0xfd   : > { %1384 = vmatmul.bf16.gmra.mxu3 %v1913_v5  ;;  %v1937_v5 = vor.u32 %v2254_v60, %v1936_v23 }
  0xfe   : > { %1473 = vmatmul.bf16.gmra.mxu0 %v1917_v9  ;;  %v1510_v26 = vmax.f32 %v1432_v17, 0.0  ;;  %v1084_v17 = vadd.f32 %v2725_v8, %v2798_v12  ;;  %v1948_v12 = vld [vmem:[%s2557_s7 + $0x1c0] sm:$0xf] }
  0xff   : > { %v1256_v24 = vpop.f32.mrf.mxu2 }
 0x100   : > { %v2323_v28 = vpack.c.bf16 %v1510_v26, %v1509_v21  ;;  %v1345_v32 = vpop.f32.mrf.mxu3  ;;  %v1257_v49 = vadd.f32 %v1256_v24, %v1168_v31 }
 0x101   : > { %v1169_v33 = vpop.f32.mrf.mxu1 }
 0x102   : > { %2324 = vst [vmem:[%s2873_s16] sm:$0xff] %v2323_v28   ;;  %v1346_v47 = vadd.f32 %v1345_v32, %v1257_v49  ;;  %v1170_v52 = vadd.f32 %v1169_v33, %v1081_v36  ;;  %v1086_v49 = vadd.f32 %v2725_v8, %v2809_v19  ;;  %v1942_v36 = vld [vmem:[%s2557_s7 + $0x1cc] sm:$0xf0] }
 0x103   : > { %v1436_v34 = vpop.f32.mrf.mxu0 }
 0x104   : > { %v1435_v9 = vadd.f32 %v1434_v13, %v1346_v47  ;;  %v1956_v47 = vld [vmem:[%s2557_s7 + $0x1c8] sm:$0xf] }
 0x106   : > { %v1511_v20 = vmax.f32 %v1435_v9, 0.0  ;;  %v1089_v9 = vadd.f32 %v2725_v8, %v2828_v46  ;;  %v1968_v46 = vld [vmem:[%s2557_s7 + $0x1e8] sm:$0xf] }
 0x107   : > { %v1258_v61 = vpop.f32.mrf.mxu2 }
 0x108   : > { %v1259_v62 = vadd.f32 %v1258_v61, %v1170_v52  ;;  %v1347_v63 = vpop.f32.mrf.mxu3  ;;  %v2259_v52 = vld [vmem:[%s2557_s7 + $0x1d8] sm:$0xf0] }
 0x109   : > { %v1172_v3 = vpop.f32.mrf.mxu1 }
 0x10a   : > { %v1348_v56 = vadd.f32 %v1347_v63, %v1259_v62  ;;  %v1173_v24 = vadd.f32 %v1172_v3, %v1084_v17  ;;  %v1949_v62 = vor.u32 %v2258_v37, %v1948_v12  ;;  %v1970_v12 = vld [vmem:[%s2557_s7 + $0x1fc] sm:$0xf0]  ;;  %v1976_v37 = vld [vmem:[%s2557_s7 + $0x1f0] sm:$0xf] }
 0x10b   : > { %v1439_v30 = vpop.f32.mrf.mxu0 }
 0x10c   : > { %v1437_v10 = vadd.f32 %v1436_v34, %v1348_v56  ;;  %1211 = vmatmul.bf16.gmra.mxu1 %v1925_v0  ;;  %1300 = vmatmul.bf16.gmra.mxu2 %v1929_v1  ;;  %v2255_v34 = vld [vmem:[%s2557_s7 + $0x1bc] sm:$0xf]  ;;  %v1953_v0 = vor.u32 %v2256_v38, %v1950_v43  ;;  %v1957_v1 = vor.u32 %v2259_v52, %v1956_v47  ;;  %v2264_v38 = vld [vmem:[%s2557_s7 + $0x200] sm:$0xf0] }
 0x10d   : > { %1389 = vmatmul.bf16.gmra.mxu3 %v1933_v4  ;;  %v1945_v61 = vor.u32 %v2255_v34, %v1942_v36 }
 0x10e   : > { %1478 = vmatmul.bf16.gmra.mxu0 %v1937_v5  ;;  %v1512_v21 = vmax.f32 %v1437_v10, 0.0 }
 0x10f   : > { %v1261_v26 = vpop.f32.mrf.mxu2 }
 0x110   : > { %v2328_v13 = vpack.c.bf16 %v1512_v21, %v1511_v20  ;;  %v1350_v28 = vpop.f32.mrf.mxu3  ;;  %v1262_v32 = vadd.f32 %v1261_v26, %v1173_v24 }
 0x111   : > { %v1174_v31 = vpop.f32.mrf.mxu1 }
 0x112   : > { %2400 = vst [vmem:[%s2873_s16 + $0x8] sm:$0xff] %v2328_v13   ;;  %v1351_v41 = vadd.f32 %v1350_v28, %v1262_v32  ;;  %v1175_v42 = vadd.f32 %v1174_v31, %v1086_v49  ;;  %v1091_v28 = vadd.f32 %v2725_v8, %v2839_v59  ;;  %v2260_v31 = vld [vmem:[%s2557_s7 + $0x1e4] sm:$0xf]  ;;  %v1962_v32 = vld [vmem:[%s2557_s7 + $0x1f4] sm:$0xf0] }
 0x113   : > { %v1441_v33 = vpop.f32.mrf.mxu0  ;;  %v2261_v49 = vld [vmem:[%s2557_s7 + $0x1ec] sm:$0xf]  ;;  %v1965_v47 = vor.u32 %v2260_v31, %v1962_v32 }
 0x114   : > { %v1440_v3 = vadd.f32 %v1439_v30, %v1351_v41  ;;  %v2269_v31 = vld [vmem:[%s2557_s7 + $0x228] sm:$0xf0] }
 0x116   : > { %v1513_v56 = vmax.f32 %v1440_v3, 0.0 }
 0x117   : > { %v1263_v57 = vpop.f32.mrf.mxu2 }
 0x118   : > { %v1264_v23 = vadd.f32 %v1263_v57, %v1175_v42  ;;  %v1352_v60 = vpop.f32.mrf.mxu3 }
 0x119   : > { %v1177_v63 = vpop.f32.mrf.mxu1 }
 0x11a   : > { %v1353_v19 = vadd.f32 %v1352_v60, %v1264_v23  ;;  %v1178_v20 = vadd.f32 %v1177_v63, %v1089_v9  ;;  %v1973_v23 = vor.u32 %v2261_v49, %v1970_v12  ;;  %v1977_v60 = vor.u32 %v2264_v38, %v1976_v37 }
 0x11b   : > { %v1444_v4 = vpop.f32.mrf.mxu0 }
 0x11c   : > { %v1442_v5 = vadd.f32 %v1441_v33, %v1353_v19  ;;  %1216 = vmatmul.bf16.gmra.mxu1 %v1945_v61  ;;  %1305 = vmatmul.bf16.gmra.mxu2 %v1949_v62  ;;  %v2263_v33 = vld [vmem:[%s2557_s7 + $0x1f8] sm:$0xf0] }
 0x11d   : > { %1394 = vmatmul.bf16.gmra.mxu3 %v1953_v0  ;;  %v1969_v52 = vor.u32 %v2263_v33, %v1968_v46 }
 0x11e   : > { %1483 = vmatmul.bf16.gmra.mxu0 %v1957_v1  ;;  %v1514_v10 = vmax.f32 %v1442_v5, 0.0 }
 0x11f   : > { %v1266_v17 = vpop.f32.mrf.mxu2 }
 0x120   : > { %v2333_v30 = vpack.c.bf16 %v1514_v10, %v1513_v56  ;;  %v1355_v21 = vpop.f32.mrf.mxu3  ;;  %v1267_v13 = vadd.f32 %v1266_v17, %v1178_v20  ;;  %v2265_v10 = vld [vmem:[%s2557_s7 + $0x20c] sm:$0xf]  ;;  %v1982_v17 = vld [vmem:[%s2557_s7 + $0x21c] sm:$0xf0]  ;;  %v2268_v20 = vld [vmem:[%s2557_s7 + $0x220] sm:$0xf0] }
 0x121   : > { %v1179_v26 = vpop.f32.mrf.mxu1 }
 0x122   : > { %2401 = vst [vmem:[%s2873_s16 + $0x10] sm:$0xff] %v2333_v30   ;;  %v1356_v34 = vadd.f32 %v1355_v21, %v1267_v13  ;;  %v1180_v36 = vadd.f32 %v1179_v26, %v1091_v28  ;;  %v1988_v30 = vld [vmem:[%s2557_s7 + $0x210] sm:$0xf]  ;;  %v2266_v21 = vld [vmem:[%s2557_s7 + $0x214] sm:$0xf] }
 0x123   : > { %v1446_v24 = vpop.f32.mrf.mxu0  ;;  %v1996_v28 = vld [vmem:[%s2557_s7 + $0x218] sm:$0xf]  ;;  %v1989_v49 = vor.u32 %v2268_v20, %v1988_v30 }
 0x124   : > { %v1445_v8 = vadd.f32 %v1444_v4, %v1356_v34  ;;  %v1997_v12 = vor.u32 %v2269_v31, %v1996_v28 }
 0x126   : > { %v1515_v63 = vmax.f32 %v1445_v8, 0.0 }
 0x127   : > { %v1268_v41 = vpop.f32.mrf.mxu2 }
 0x128   : > { %v1269_v42 = vadd.f32 %v1268_v41, %v1180_v36  ;;  %v1357_v43 = vpop.f32.mrf.mxu3 }
 0x129   : > { %v1182_v57 = vpop.f32.mrf.mxu1 }
 0x12a   : > { %v1358_v59 = vadd.f32 %v1357_v43, %v1269_v42  ;;  %v1183_v19 = vadd.f32 %v1182_v57, %v2736_v22  ;;  %v1985_v22 = vor.u32 %v2265_v10, %v1982_v17 }
 0x12b   : > { %v1449_v61 = vpop.f32.mrf.mxu0 }
 0x12c   : > { %v1447_v62 = vadd.f32 %v1446_v24, %v1358_v59  ;;  %1221 = vmatmul.bf16.gmra.mxu1 %v1965_v47  ;;  %1310 = vmatmul.bf16.gmra.mxu2 %v1969_v52  ;;  %v1990_v24 = vld [vmem:[%s2557_s7 + $0x224] sm:$0xf0] }
 0x12d   : > { %1399 = vmatmul.bf16.gmra.mxu3 %v1973_v23  ;;  %v1993_v36 = vor.u32 %v2266_v21, %v1990_v24 }
 0x12e   : > { %1488 = vmatmul.bf16.gmra.mxu0 %v1977_v60  ;;  %v1516_v0 = vmax.f32 %v1447_v62, 0.0  ;;  %v2002_v62 = vld [vmem:[%s2557_s7 + $0x244] sm:$0xf0] }
 0x12f   : > { %v1271_v1 = vpop.f32.mrf.mxu2 }
 0x130   : > { %v2338_v3 = vpack.c.bf16 %v1516_v0, %v1515_v63  ;;  %v1360_v4 = vpop.f32.mrf.mxu3  ;;  %v1272_v9 = vadd.f32 %v1271_v1, %v1183_v19  ;;  %v2008_v63 = vld [vmem:[%s2557_s7 + $0x238] sm:$0xf]  ;;  %v2273_v0 = vld [vmem:[%s2557_s7 + $0x248] sm:$0xf0]  ;;  %v2271_v1 = vld [vmem:[%s2557_s7 + $0x23c] sm:$0xf] }
 0x131   : > { %v1184_v5 = vpop.f32.mrf.mxu1  ;;  %v2009_v30 = vor.u32 %v2273_v0, %v2008_v63 }
 0x132   : > { %2402 = vst [vmem:[%s2873_s16 + $0x18] sm:$0xff] %v2338_v3   ;;  %v1361_v26 = vadd.f32 %v1360_v4, %v1272_v9  ;;  %v1185_v13 = vadd.f32 %v1184_v5, %v2747_v29  ;;  %v2010_v4 = vld [vmem:[%s2557_s7 + $0x24c] sm:$0xf0]  ;;  %v2016_v5 = vld [vmem:[%s2557_s7 + $0x240] sm:$0xf] }
 0x133   : > { %v1451_v56 = vpop.f32.mrf.mxu0  ;;  %v2274_v9 = vld [vmem:[%s2557_s7 + $0x250] sm:$0xf0]  ;;  %v2013_v21 = vor.u32 %v2271_v1, %v2010_v4 }
 0x134   : > { %v1450_v37 = vadd.f32 %v1449_v61, %v1361_v26  ;;  %v2270_v61 = vld [vmem:[%s2557_s7 + $0x234] sm:$0xf]  ;;  %v2017_v26 = vor.u32 %v2274_v9, %v2016_v5 }
 0x136   : > { %v1517_v29 = vmax.f32 %v1450_v37, 0.0  ;;  %v2275_v37 = vld [vmem:[%s2557_s7 + $0x25c] sm:$0xf] }
 0x137   : > { %v1273_v32 = vpop.f32.mrf.mxu2 }
 0x138   : > { %v1274_v46 = vadd.f32 %v1273_v32, %v1185_v13  ;;  %v1362_v33 = vpop.f32.mrf.mxu3 }
 0x139   : > { %v1187_v34 = vpop.f32.mrf.mxu1 }
 0x13a   : > { %v1363_v38 = vadd.f32 %v1362_v33, %v1274_v46  ;;  %v1188_v57 = vadd.f32 %v1187_v34, %v2766_v48  ;;  %v2005_v48 = vor.u32 %v2270_v61, %v2002_v62 }
 0x13b   : > { %v1454_v41 = vpop.f32.mrf.mxu0 }
 0x13c   : > { %v1452_v42 = vadd.f32 %v1451_v56, %v1363_v38  ;;  %1226 = vmatmul.bf16.gmra.mxu1 %v1985_v22  ;;  %1315 = vmatmul.bf16.gmra.mxu2 %v1989_v49  ;;  %v2022_v38 = vld [vmem:[%s2557_s7 + $0x26c] sm:$0xf0] }
 0x13d   : > { %1404 = vmatmul.bf16.gmra.mxu3 %v1993_v36 }
 0x13e   : > { %1493 = vmatmul.bf16.gmra.mxu0 %v1997_v12  ;;  %v1518_v43 = vmax.f32 %v1452_v42, 0.0  ;;  %v2278_v42 = vld [vmem:[%s2557_s7 + $0x270] sm:$0xf0] }
 0x13f   : > { %v1276_v47 = vpop.f32.mrf.mxu2 }
 0x140   : > { %v2343_v52 = vpack.c.bf16 %v1518_v43, %v1517_v29  ;;  %v1365_v23 = vpop.f32.mrf.mxu3  ;;  %v1277_v8 = vadd.f32 %v1276_v47, %v1188_v57  ;;  %v2276_v29 = vld [vmem:[%s2557_s7 + $0x264] sm:$0xf]  ;;  %v2036_v57 = vld [vmem:[%s2557_s7 + $0x268] sm:$0xf] }
 0x141   : > { %v1189_v60 = vpop.f32.mrf.mxu1 }
 0x142   : > { %2403 = vst [vmem:[%s2873_s16 + $0x20] sm:$0xff] %v2343_v52   ;;  %v1366_v3 = vadd.f32 %v1365_v23, %v1277_v8  ;;  %v1190_v19 = vadd.f32 %v1189_v60, %v2777_v55  ;;  %v2030_v52 = vld [vmem:[%s2557_s7 + $0x274] sm:$0xf0]  ;;  %v2279_v23 = vld [vmem:[%s2557_s7 + $0x278] sm:$0xf0] }
 0x143   : > { %v1456_v59 = vpop.f32.mrf.mxu0  ;;  %v2033_v63 = vor.u32 %v2276_v29, %v2030_v52  ;;  %v2037_v0 = vor.u32 %v2279_v23, %v2036_v57 }
 0x144   : > { %v1455_v13 = vadd.f32 %v1454_v41, %v1366_v3  ;;  %v2028_v41 = vld [vmem:[%s2557_s7 + $0x260] sm:$0xf] }
 0x145   : > { %v2029_v61 = vor.u32 %v2278_v42, %v2028_v41 }
 0x146   : > { %v1519_v55 = vmax.f32 %v1455_v13, 0.0 }
 0x147   : > { %v1278_v56 = vpop.f32.mrf.mxu2 }
 0x148   : > { %v1279_v10 = vadd.f32 %v1278_v56, %v1190_v19  ;;  %v1367_v17 = vpop.f32.mrf.mxu3 }
 0x149   : > { %v1192_v20 = vpop.f32.mrf.mxu1 }
 0x14a   : > { %v1368_v24 = vadd.f32 %v1367_v17, %v1279_v10  ;;  %v1193_v22 = vadd.f32 %v1192_v20, %v2796_v11  ;;  %v2025_v11 = vor.u32 %v2275_v37, %v2022_v38 }
 0x14b   : > { %v1459_v28 = vpop.f32.mrf.mxu0 }
 0x14c   : > { %v1457_v31 = vadd.f32 %v1456_v59, %v1368_v24  ;;  %1231 = vmatmul.bf16.gmra.mxu1 %v2005_v48  ;;  %1320 = vmatmul.bf16.gmra.mxu2 %v2009_v30 }
 0x14d   : > { %1409 = vmatmul.bf16.gmra.mxu3 %v2013_v21 }
 0x14e   : > { %1498 = vmatmul.bf16.gmra.mxu0 %v2017_v26  ;;  %v1520_v32 = vmax.f32 %v1457_v31, 0.0 }
 0x14f   : > { %v1281_v46 = vpop.f32.mrf.mxu2 }
 0x150   : > { %v2348_v33 = vpack.c.bf16 %v1520_v32, %v1519_v55  ;;  %v1370_v49 = vpop.f32.mrf.mxu3  ;;  %v1282_v36 = vadd.f32 %v1281_v46, %v1193_v22 }
 0x151   : > { %v1194_v34 = vpop.f32.mrf.mxu1 }
 0x152   : > { %2404 = vst [vmem:[%s2873_s16 + $0x28] sm:$0xff] %v2348_v33   ;;  %v1371_v43 = vadd.f32 %v1370_v49, %v1282_v36  ;;  %v1195_v47 = vadd.f32 %v1194_v34, %v2807_v18 }
 0x153   : > { %v1461_v12 = vpop.f32.mrf.mxu0 }
 0x154   : > { %v1460_v1 = vadd.f32 %v1459_v28, %v1371_v43 }
 0x156   : > { %v1521_v18 = vmax.f32 %v1460_v1, 0.0 }
 0x157   : > { %v1283_v60 = vpop.f32.mrf.mxu2 }
 0x158   : > { %v1284_v8 = vadd.f32 %v1283_v60, %v1195_v47  ;;  %v1372_v59 = vpop.f32.mrf.mxu3 }
 0x159   : > { %v1197_v62 = vpop.f32.mrf.mxu1 }
 0x15a   : > { %v1373_v3 = vadd.f32 %v1372_v59, %v1284_v8  ;;  %v1198_v10 = vadd.f32 %v1197_v62, %v2826_v45 }
 0x15b   : > { %v1464_v19 = vpop.f32.mrf.mxu0 }
 0x15c   : > { %v1462_v4 = vadd.f32 %v1461_v12, %v1373_v3  ;;  %1236 = vmatmul.bf16.gmra.mxu1 %v2025_v11  ;;  %1325 = vmatmul.bf16.gmra.mxu2 %v2029_v61 }
 0x15d   : > { %1414 = vmatmul.bf16.gmra.mxu3 %v2033_v63 }
 0x15e   : > { %1503 = vmatmul.bf16.gmra.mxu0 %v2037_v0  ;;  %v1522_v5 = vmax.f32 %v1462_v4, 0.0 }
 0x15f   : > { %v1286_v9 = vpop.f32.mrf.mxu2 }
 0x160   : > { %v2353_v56 = vpack.c.bf16 %v1522_v5, %v1521_v18  ;;  %v1375_v17 = vpop.f32.mrf.mxu3  ;;  %v1287_v30 = vadd.f32 %v1286_v9, %v1198_v10 }
 0x161   : > { %v1199_v48 = vpop.f32.mrf.mxu1 }
 0x162   : > { %2405 = vst [vmem:[%s2873_s16 + $0x30] sm:$0xff] %v2353_v56   ;;  %v1376_v21 = vadd.f32 %v1375_v17, %v1287_v30  ;;  %v1200_v26 = vadd.f32 %v1199_v48, %v2837_v58 }
 0x163   : > { %v1466_v20 = vpop.f32.mrf.mxu0 }
 0x164   : > { %v1465_v55 = vadd.f32 %v1464_v19, %v1376_v21 }
 0x166   : > { %v1523_v22 = vmax.f32 %v1465_v55, 0.0 }
 0x167   : > { %v1288_v13 = vpop.f32.mrf.mxu2 }
 0x168   : > { %v1289_v24 = vadd.f32 %v1288_v13, %v1200_v26  ;;  %v1377_v28 = vpop.f32.mrf.mxu3 }
 0x169   : > { %v1202_v31 = vpop.f32.mrf.mxu1 }
 0x16a   : > { %v1378_v32 = vadd.f32 %v1377_v28, %v1289_v24  ;;  %v1203_v36 = vadd.f32 %v1202_v31, %v2741_v25 }
 0x16b   : > { %v1469_v46 = vpop.f32.mrf.mxu0 }
 0x16c   : > { %v1467_v33 = vadd.f32 %v1466_v20, %v1378_v32 }
 0x16e   : > { %v1524_v49 = vmax.f32 %v1467_v33, 0.0 }
 0x16f   : > { %v1291_v45 = vpop.f32.mrf.mxu2 }
 0x170   : > { %v2358_v34 = vpack.c.bf16 %v1524_v49, %v1523_v22  ;;  %v1380_v12 = vpop.f32.mrf.mxu3  ;;  %v1292_v38 = vadd.f32 %v1291_v45, %v1203_v36 }
 0x171   : > { %v1204_v37 = vpop.f32.mrf.mxu1 }
 0x172   : > { %2406 = vst [vmem:[%s2873_s16 + $0x38] sm:$0xff] %v2358_v34   ;;  %v1381_v41 = vadd.f32 %v1380_v12, %v1292_v38  ;;  %v1205_v42 = vadd.f32 %v1204_v37, %v2760_v40 }
 0x173   : > { %v1471_v58 = vpop.f32.mrf.mxu0 }
 0x174   : > { %v1470_v57 = vadd.f32 %v1469_v46, %v1381_v41 }
 0x176   : > { %v1525_v59 = vmax.f32 %v1470_v57, 0.0 }
 0x177   : > { %v1293_v29 = vpop.f32.mrf.mxu2 }
 0x178   : > { %v1294_v43 = vadd.f32 %v1293_v29, %v1205_v42  ;;  %v1382_v47 = vpop.f32.mrf.mxu3 }
 0x179   : > { %v1207_v52 = vpop.f32.mrf.mxu1 }
 0x17a   : > { %v1383_v23 = vadd.f32 %v1382_v47, %v1294_v43  ;;  %v1208_v62 = vadd.f32 %v1207_v52, %v2771_v51 }
 0x17b   : > { %v1474_v60 = vpop.f32.mrf.mxu0 }
 0x17c   : > { %v1472_v8 = vadd.f32 %v1471_v58, %v1383_v23 }
 0x17e   : > { %v1526_v11 = vmax.f32 %v1472_v8, 0.0 }
 0x17f   : > { %v1296_v25 = vpop.f32.mrf.mxu2 }
 0x180   : > { %v2363_v61 = vpack.c.bf16 %v1526_v11, %v1525_v59  ;;  %v1385_v63 = vpop.f32.mrf.mxu3  ;;  %v1297_v1 = vadd.f32 %v1296_v25, %v1208_v62 }
 0x181   : > { %v1209_v0 = vpop.f32.mrf.mxu1 }
 0x182   : > { %2407 = vst [vmem:[%s2873_s16 + $0x40] sm:$0xff] %v2363_v61   ;;  %v1386_v3 = vadd.f32 %v1385_v63, %v1297_v1  ;;  %v1210_v19 = vadd.f32 %v1209_v0, %v2790_v2 }
 0x183   : > { %v1476_v40 = vpop.f32.mrf.mxu0 }
 0x184   : > { %v1475_v56 = vadd.f32 %v1474_v60, %v1386_v3 }
 0x186   : > { %v1527_v30 = vmax.f32 %v1475_v56, 0.0 }
 0x187   : > { %v1298_v4 = vpop.f32.mrf.mxu2 }
 0x188   : > { %v1299_v18 = vadd.f32 %v1298_v4, %v1210_v19  ;;  %v1387_v5 = vpop.f32.mrf.mxu3 }
 0x189   : > { %v1212_v9 = vpop.f32.mrf.mxu1 }
 0x18a   : > { %v1388_v10 = vadd.f32 %v1387_v5, %v1299_v18  ;;  %v1213_v26 = vadd.f32 %v1212_v9, %v2801_v14 }
 0x18b   : > { %v1479_v17 = vpop.f32.mrf.mxu0 }
 0x18c   : > { %v1477_v48 = vadd.f32 %v1476_v40, %v1388_v10 }
 0x18e   : > { %v1528_v20 = vmax.f32 %v1477_v48, 0.0 }
 0x18f   : > { %v1301_v51 = vpop.f32.mrf.mxu2 }
 0x190   : > { %v2368_v21 = vpack.c.bf16 %v1528_v20, %v1527_v30  ;;  %v1390_v13 = vpop.f32.mrf.mxu3  ;;  %v1302_v28 = vadd.f32 %v1301_v51, %v1213_v26 }
 0x191   : > { %v1214_v24 = vpop.f32.mrf.mxu1 }
 0x192   : > { %2408 = vst [vmem:[%s2873_s16 + $0x48] sm:$0xff] %v2368_v21   ;;  %v1391_v31 = vadd.f32 %v1390_v13, %v1302_v28  ;;  %v1215_v55 = vadd.f32 %v1214_v24, %v2820_v35 }
 0x193   : > { %v1481_v2 = vpop.f32.mrf.mxu0 }
 0x194   : > { %v1480_v49 = vadd.f32 %v1479_v17, %v1391_v31 }
 0x196   : > { %v1529_v12 = vmax.f32 %v1480_v49, 0.0 }
 0x197   : > { %v1303_v32 = vpop.f32.mrf.mxu2 }
 0x198   : > { %v1304_v46 = vadd.f32 %v1303_v32, %v1215_v55  ;;  %v1392_v33 = vpop.f32.mrf.mxu3 }
 0x199   : > { %v1217_v22 = vpop.f32.mrf.mxu1 }
 0x19a   : > { %v1393_v45 = vadd.f32 %v1392_v33, %v1304_v46  ;;  %v1218_v58 = vadd.f32 %v1217_v22, %v2831_v50 }
 0x19b   : > { %v1484_v34 = vpop.f32.mrf.mxu0 }
 0x19c   : > { %v1482_v36 = vadd.f32 %v1481_v2, %v1393_v45 }
 0x19e   : > { %v1530_v37 = vmax.f32 %v1482_v36, 0.0 }
 0x19f   : > { %v1306_v14 = vpop.f32.mrf.mxu2 }
 0x1a0   : > { %v2373_v38 = vpack.c.bf16 %v1530_v37, %v1529_v12  ;;  %v1395_v41 = vpop.f32.mrf.mxu3  ;;  %v1307_v29 = vadd.f32 %v1306_v14, %v1218_v58 }
 0x1a1   : > { %v1219_v42 = vpop.f32.mrf.mxu1 }
 0x1a2   : > { %2409 = vst [vmem:[%s2873_s16 + $0x50] sm:$0xff] %v2373_v38   ;;  %v1396_v43 = vadd.f32 %v1395_v41, %v1307_v29  ;;  %v1220_v47 = vadd.f32 %v1219_v42, %v2850_v7 }
 0x1a3   : > { %v1486_v35 = vpop.f32.mrf.mxu0 }
 0x1a4   : > { %v1485_v8 = vadd.f32 %v1484_v34, %v1396_v43 }
 0x1a6   : > { %v1531_v61 = vmax.f32 %v1485_v8, 0.0 }
 0x1a7   : > { %v1308_v52 = vpop.f32.mrf.mxu2 }
 0x1a8   : > { %v1309_v57 = vadd.f32 %v1308_v52, %v1220_v47  ;;  %v1397_v23 = vpop.f32.mrf.mxu3 }
 0x1a9   : > { %v1222_v60 = vpop.f32.mrf.mxu1 }
 0x1aa   : > { %v1398_v59 = vadd.f32 %v1397_v23, %v1309_v57  ;;  %v1223_v0 = vadd.f32 %v1222_v60, %v2744_v27 }
 0x1ab   : > { %v1489_v11 = vpop.f32.mrf.mxu0 }
 0x1ac   : > { %v1487_v25 = vadd.f32 %v1486_v35, %v1398_v59 }
 0x1ae   : > { %v1532_v62 = vmax.f32 %v1487_v25, 0.0 }
 0x1af   : > { %v1311_v50 = vpop.f32.mrf.mxu2 }
 0x1b0   : > { %v2378_v63 = vpack.c.bf16 %v1532_v62, %v1531_v61  ;;  %v1400_v1 = vpop.f32.mrf.mxu3  ;;  %v1312_v3 = vadd.f32 %v1311_v50, %v1223_v0 }
 0x1b1   : > { %v1224_v40 = vpop.f32.mrf.mxu1 }
 0x1b2   : > { %2410 = vst [vmem:[%s2873_s16 + $0x58] sm:$0xff] %v2378_v63   ;;  %v1401_v19 = vadd.f32 %v1400_v1, %v1312_v3  ;;  %v1225_v4 = vadd.f32 %v1224_v40, %v2763_v44 }
 0x1b3   : > { %v1491_v7 = vpop.f32.mrf.mxu0 }
 0x1b4   : > { %v1490_v10 = vadd.f32 %v1489_v11, %v1401_v19 }
 0x1b6   : > { %v1533_v20 = vmax.f32 %v1490_v10, 0.0 }
 0x1b7   : > { %v1313_v18 = vpop.f32.mrf.mxu2 }
 0x1b8   : > { %v1314_v5 = vadd.f32 %v1313_v18, %v1225_v4  ;;  %v1402_v9 = vpop.f32.mrf.mxu3 }
 0x1b9   : > { %v1227_v56 = vpop.f32.mrf.mxu1 }
 0x1ba   : > { %v1403_v17 = vadd.f32 %v1402_v9, %v1314_v5  ;;  %v1228_v26 = vadd.f32 %v1227_v56, %v2774_v53 }
 0x1bb   : > { %v1494_v48 = vpop.f32.mrf.mxu0 }
 0x1bc   : > { %v1492_v30 = vadd.f32 %v1491_v7, %v1403_v17 }
 0x1be   : > { %v1534_v51 = vmax.f32 %v1492_v30, 0.0 }
 0x1bf   : > { %v1316_v27 = vpop.f32.mrf.mxu2 }
 0x1c0   : > { %v2383_v21 = vpack.c.bf16 %v1534_v51, %v1533_v20  ;;  %v1405_v13 = vpop.f32.mrf.mxu3  ;;  %v1317_v28 = vadd.f32 %v1316_v27, %v1228_v26 }
 0x1c1   : > { %v1229_v24 = vpop.f32.mrf.mxu1 }
 0x1c2   : > { %2411 = vst [vmem:[%s2873_s16 + $0x60] sm:$0xff] %v2383_v21   ;;  %v1406_v2 = vadd.f32 %v1405_v13, %v1317_v28  ;;  %v1230_v31 = vadd.f32 %v1229_v24, %v2793_v6 }
 0x1c3   : > { %v1496_v44 = vpop.f32.mrf.mxu0 }
 0x1c4   : > { %v1495_v22 = vadd.f32 %v1494_v48, %v1406_v2 }
 0x1c6   : > { %v1535_v36 = vmax.f32 %v1495_v22, 0.0 }
 0x1c7   : > { %v1318_v55 = vpop.f32.mrf.mxu2 }
 0x1c8   : > { %v1319_v32 = vadd.f32 %v1318_v55, %v1230_v31  ;;  %v1407_v46 = vpop.f32.mrf.mxu3 }
 0x1c9   : > { %v1232_v33 = vpop.f32.mrf.mxu1 }
 0x1ca   : > { %v1408_v49 = vadd.f32 %v1407_v46, %v1319_v32  ;;  %v1233_v14 = vadd.f32 %v1232_v33, %v2804_v16 }
 0x1cb   : > { %v1499_v34 = vpop.f32.mrf.mxu0 }
 0x1cc   : > { %v1497_v45 = vadd.f32 %v1496_v44, %v1408_v49 }
 0x1ce   : > { %v1536_v12 = vmax.f32 %v1497_v45, 0.0 }
 0x1cf   : > { %v1321_v53 = vpop.f32.mrf.mxu2 }
 0x1d0   : > { %v2388_v37 = vpack.c.bf16 %v1536_v12, %v1535_v36  ;;  %v1410_v38 = vpop.f32.mrf.mxu3  ;;  %v1322_v41 = vadd.f32 %v1321_v53, %v1233_v14 }
 0x1d1   : > { %v1234_v58 = vpop.f32.mrf.mxu1 }
 0x1d2   : > { %2412 = vst [vmem:[%s2873_s16 + $0x68] sm:$0xff] %v2388_v37   ;;  %v1411_v6 = vadd.f32 %v1410_v38, %v1322_v41  ;;  %v1235_v42 = vadd.f32 %v1234_v58, %v2823_v39 }
 0x1d3   : > { %v1501_v29 = vpop.f32.mrf.mxu0 }
 0x1d4   : > { %v1500_v57 = vadd.f32 %v1499_v34, %v1411_v6 }
 0x1d6   : > { %v1537_v8 = vmax.f32 %v1500_v57, 0.0 }
 0x1d7   : > { %v1323_v35 = vpop.f32.mrf.mxu2 }
 0x1d8   : > { %v1324_v43 = vadd.f32 %v1323_v35, %v1235_v42  ;;  %v1412_v47 = vpop.f32.mrf.mxu3 }
 0x1d9   : > { %v1237_v52 = vpop.f32.mrf.mxu1 }
 0x1da   : > { %v1413_v23 = vadd.f32 %v1412_v47, %v1324_v43  ;;  %v1238_v25 = vadd.f32 %v1237_v52, %v2834_v54 }
 0x1db   : > { %v1504_v62 = vpop.f32.mrf.mxu0 }
 0x1dc   : > { %v1502_v60 = vadd.f32 %v1501_v29, %v1413_v23 }
 0x1de   : > { %v1538_v59 = vmax.f32 %v1502_v60, 0.0 }
 0x1df   : > { %v1326_v11 = vpop.f32.mrf.mxu2 }
 0x1e0   : > { %v2393_v16 = vpack.c.bf16 %v1538_v59, %v1537_v8  ;;  %v1415_v61 = vpop.f32.mrf.mxu3  ;;  %v1327_v39 = vadd.f32 %v1326_v11, %v1238_v25 }
 0x1e1   : > { %v1239_v50 = vpop.f32.mrf.mxu1 }
 0x1e2   : > { %2413 = vst [vmem:[%s2873_s16 + $0x70] sm:$0xff] %v2393_v16   ;;  %v1416_v63 = vadd.f32 %v1415_v61, %v1327_v39  ;;  %v1240_v0 = vadd.f32 %v1239_v50, %v2853_v15 }
 0x1e3   : > { %v1506_v4 = vpop.f32.mrf.mxu0 }
 0x1e4   : > { %v1505_v7 = vadd.f32 %v1504_v62, %v1416_v63 }
 0x1e6   : > { %v1539_v5 = vmax.f32 %v1505_v7, 0.0 }
 0x1e7   : > { %v1328_v1 = vpop.f32.mrf.mxu2 }
 0x1e8   : > { %v1329_v40 = vadd.f32 %v1328_v1, %v1240_v0  ;;  %v1417_v3 = vpop.f32.mrf.mxu3 }
 0x1ea   : > { %v1418_v19 = vadd.f32 %v1417_v3, %v1329_v40 }
 0x1ec   : > { %v1507_v18 = vadd.f32 %v1506_v4, %v1418_v19 }
 0x1ee   : > { %v1540_v9 = vmax.f32 %v1507_v18, 0.0 }
 0x1f0   : > { %v2398_v56 = vpack.c.bf16 %v1540_v9, %v1539_v5 }
 0x1f2   : > { %2414 = vst [vmem:[%s2873_s16 + $0x78] sm:$0xff] %v2398_v56  }
 0x1f3 PF: > { %s13_s14 = sadd.s32 1, %s2487_s14   ;;  %s2986_s12 = smov %s2483_s13 }
 0x1f4   : > { %p10_p5 = scmp.ge.s32.totalorder %s13_s14, 6   ;;  %s2987_s13 = smov %s2989_s15 }
 0x1f6   :  { %12 = sbr.rel (!%p10_p5) target bundleno = 2 (0x2), region = 68 }

// kernel: image_classifier_forward.7
= control target key start
LH: loop header
LB: loop body
LE: loop exit
PB: predicated region body
PF: predicated region fallthrough
CT: control target
= control target key end

     0   :  { %s15108_s12 = smov 0   ;;  %s15110_s13 = smov 0   ;;  %s16258_s0 = inlined_call_operand.vmem [shape: bf16[8,30976], index: 0, kind: input, shape index: {}]   ;;  %s16259_s1 = inlined_call_operand.vmem [shape: bf16[30976,128], index: 1, kind: input, shape index: {}]   ;;  %s16260_s2 = inlined_call_operand.vmem [shape: f32[1,128], index: 2, kind: input, shape index: {}]   ;;  %s16261_s3 = inlined_call_operand.vmem [shape: f32[8,128], index: 3, kind: output, shape index: {}]  }
   0x1   :  { %s15112_s14 = smov 0  }
   0x2 LB: > { %s25_s15 = sadd.s32 1, %s15081_s13  ;;  %p10189_p0 = scmp.ge.s32.totalorder %s15085_s14, 1  ;;  %s15085_s14 = sphi %s15112_s14, %s13_s14   ;;  %s15081_s13 = sphi %s15110_s13, %s16263_s13   ;;  %s15077_s12 = sphi %s15108_s12, %s16262_s12  }
   0x3   : > { %p26_p1 = scmp.ge.s32.totalorder %s25_s15, 2  ;;  %p189_p2 = scmp.lt.s32.totalorder %s15085_s14, 3 }
   0x5   : > { %s16265_s15 = smov (%p26_p1, %s25_s15), 0  ;;  %p190_p3 = pnand %p10189_p0, %p189_p2 }
   0x6   : > { %s230_s16 = smul.u32 (!%p190_p3), 121, %s15077_s12  ;;  %p10192_p6 = scmp.ne.s32.totalorder (!%p190_p3), %s15077_s12, 0 }
   0x7   : > { %193 = sbr.rel (%p190_p3) target bundleno = 1155 (0x483), region = 32 }
   0x8   : > { %s240_s17 = smul.u32 (!%p190_p3), 1936, %s15077_s12  ;;  %p233_p4 = scmp.lt.s32.totalorder (!%p190_p3), %s230_s16, 241 }
   0xa   : > { %p241_p5 = scmp.lt.s32.totalorder (!%p190_p3), %s240_s17, 3871 }
   0xc   : > { %s16267_s16 = smov (!%p233_p4, %s230_s16), 241  ;;  %s16269_s17 = smov (!%p241_p5, %s240_s17), 3871 }
   0xd   : > { %s10190_s18 = sshll.u32 %s16267_s16, 2  ;;  %s10191_s22 = sshll.u32 %s16269_s17, 2 }
   0xe   : > { %s15133_s21 = scalar_lea.vmem %s16258_s0, %s10190_s18  ;;  %s15138_s25 = scalar_lea.vmem %s16259_s1, %s10191_s22 }
   0xf   : > { %262 = sbr.rel (%p10192_p6) target bundleno = 22 (0x16), region = 36 }
  0x14   : > { %v15087_v0 = vmov 0.0  }
  0x15   : > { %263 = vst [vmem:[#allocation2] sm:$0xff] %v15087_v0 }
  0x16 PF: > { %v14076_v1 = vld [vmem:[%s15138_s25 + $0x38] sm:$0xff]  ;;  %v14075_v5 = vld [vmem:[%s15138_s25 + $0x30] sm:$0xff]  ;;  %v14074_v9 = vld [vmem:[%s15138_s25 + $0x28] sm:$0xff]  ;;  %p14065_p7 = scmp.ne.s32.totalorder %s15077_s12, 1 }
  0x17   : > { %v14092_v2 = vld [vmem:[%s15138_s25 + $0xb8] sm:$0xff]  ;;  %8494 = vmatpush.bf16.msra.mxu0 %v14076_v1  ;;  %v14091_v6 = vld [vmem:[%s15138_s25 + $0xb0] sm:$0xff]  ;;  %v14090_v10 = vld [vmem:[%s15138_s25 + $0xa8] sm:$0xff] }
  0x18   : > { %v14084_v3 = vld [vmem:[%s15138_s25 + $0x78] sm:$0xff]  ;;  %8520 = vmatpush.bf16.msra.mxu2 %v14092_v2  ;;  %v14083_v7 = vld [vmem:[%s15138_s25 + $0x70] sm:$0xff]  ;;  %v14082_v11 = vld [vmem:[%s15138_s25 + $0x68] sm:$0xff] }
  0x19   : > { %v14100_v4 = vld [vmem:[%s15138_s25 + $0xf8] sm:$0xff]  ;;  %8507 = vmatpush.bf16.msra.mxu1 %v14084_v3  ;;  %v14099_v8 = vld [vmem:[%s15138_s25 + $0xf0] sm:$0xff]  ;;  %v14098_v12 = vld [vmem:[%s15138_s25 + $0xe8] sm:$0xff] }
  0x1a   : > { %8533 = vmatpush.bf16.msra.mxu3 %v14100_v4  ;;  %v14073_v13 = vld [vmem:[%s15138_s25 + $0x20] sm:$0xff]  ;;  %v14072_v17 = vld [vmem:[%s15138_s25 + $0x18] sm:$0xff]  ;;  %v14071_v21 = vld [vmem:[%s15138_s25 + $0x10] sm:$0xff] }
  0x1b   : > { %8495 = vmatpush.bf16.msra.mxu0 %v14075_v5  ;;  %v14089_v14 = vld [vmem:[%s15138_s25 + $0xa0] sm:$0xff]  ;;  %v14088_v18 = vld [vmem:[%s15138_s25 + $0x98] sm:$0xff]  ;;  %v14087_v22 = vld [vmem:[%s15138_s25 + $0x90] sm:$0xff] }
  0x1c   : > { %8521 = vmatpush.bf16.msra.mxu2 %v14091_v6  ;;  %v14081_v15 = vld [vmem:[%s15138_s25 + $0x60] sm:$0xff]  ;;  %v14080_v19 = vld [vmem:[%s15138_s25 + $0x58] sm:$0xff]  ;;  %v14079_v23 = vld [vmem:[%s15138_s25 + $0x50] sm:$0xff] }
  0x1d   : > { %8508 = vmatpush.bf16.msra.mxu1 %v14083_v7  ;;  %v14097_v16 = vld [vmem:[%s15138_s25 + $0xe0] sm:$0xff]  ;;  %v14096_v20 = vld [vmem:[%s15138_s25 + $0xd8] sm:$0xff]  ;;  %v14095_v24 = vld [vmem:[%s15138_s25 + $0xd0] sm:$0xff] }
  0x1e   : > { %8534 = vmatpush.bf16.msra.mxu3 %v14099_v8  ;;  %v14070_v25 = vld [vmem:[%s15138_s25 + $0x8] sm:$0xff]  ;;  %v265_v30 = vld [vmem:[%s15133_s21] sm:$0xff]  ;;  %v14108_v35 = vld [vmem:[%s15138_s25 + $0x138] sm:$0xff] }
  0x1f   : > { %8496 = vmatpush.bf16.msra.mxu0 %v14074_v9  ;;  %v14086_v26 = vld [vmem:[%s15138_s25 + $0x88] sm:$0xff]  ;;  %v14069_v31 = vld [vmem:[%s15138_s25] sm:$0xff]  ;;  %v2323_v34 = vunpack.c.l.b16 %v265_v30  ;;  %v14124_v36 = vld [vmem:[%s15138_s25 + $0x1b8] sm:$0xff]  ;;  %v2324_v40 = vunpack.c.h.b16 %v265_v30 }
  0x20   : > { %8522 = vmatpush.bf16.msra.mxu2 %v14090_v10  ;;  %v14078_v27 = vld [vmem:[%s15138_s25 + $0x48] sm:$0xff]  ;;  %v14085_v32 = vld [vmem:[%s15138_s25 + $0x80] sm:$0xff]  ;;  %v14116_v41 = vld [vmem:[%s15138_s25 + $0x178] sm:$0xff] }
  0x21   : > { %8509 = vmatpush.bf16.msra.mxu1 %v14082_v11  ;;  %v14094_v28 = vld [vmem:[%s15138_s25 + $0xc8] sm:$0xff]  ;;  %v14077_v37 = vld [vmem:[%s15138_s25 + $0x40] sm:$0xff]  ;;  %v14132_v42 = vld [vmem:[%s15138_s25 + $0x1f8] sm:$0xff]  ;;  %v2444_v44 = vpack.c.b16 %v2323_v34, %v2323_v34  ;;  %v2445_v48 = vpack.c.b16 %v2324_v40, %v2324_v40 }
  0x22   : > { %8535 = vmatpush.bf16.msra.mxu3 %v14098_v12  ;;  %v266_v29 = vld [vmem:[%s15133_s21 + $0x8] sm:$0xff]  ;;  %v14093_v38 = vld [vmem:[%s15138_s25 + $0xc0] sm:$0xff]  ;;  %v14107_v45 = vld [vmem:[%s15138_s25 + $0x130] sm:$0xff] }
  0x23   : > { %8497 = vmatpush.bf16.msra.mxu0 %v14073_v13  ;;  %v2325_v33 = vunpack.c.l.b16 %v266_v29  ;;  %v2326_v39 = vunpack.c.h.b16 %v266_v29  ;;  %v14123_v46 = vld [vmem:[%s15138_s25 + $0x1b0] sm:$0xff]  ;;  %v14106_v51 = vld [vmem:[%s15138_s25 + $0x128] sm:$0xff]  ;;  %v14105_v55 = vld [vmem:[%s15138_s25 + $0x120] sm:$0xff] }
  0x24   : > { %8523 = vmatpush.bf16.msra.mxu2 %v14089_v14  ;;  %v14115_v49 = vld [vmem:[%s15138_s25 + $0x170] sm:$0xff]  ;;  %v14122_v52 = vld [vmem:[%s15138_s25 + $0x1a8] sm:$0xff]  ;;  %v14121_v56 = vld [vmem:[%s15138_s25 + $0x1a0] sm:$0xff] }
  0x25   : > { %8510 = vmatpush.bf16.msra.mxu1 %v14081_v15  ;;  %v2446_v43 = vpack.c.b16 %v2325_v33, %v2325_v33  ;;  %v2447_v47 = vpack.c.b16 %v2326_v39, %v2326_v39  ;;  %v14131_v50 = vld [vmem:[%s15138_s25 + $0x1f0] sm:$0xff]  ;;  %v14114_v53 = vld [vmem:[%s15138_s25 + $0x168] sm:$0xff]  ;;  %v14113_v57 = vld [vmem:[%s15138_s25 + $0x160] sm:$0xff] }
  0x26   : > { %8536 = vmatpush.bf16.msra.mxu3 %v14097_v16  ;;  %v14130_v54 = vld [vmem:[%s15138_s25 + $0x1e8] sm:$0xff]  ;;  %v14129_v58 = vld [vmem:[%s15138_s25 + $0x1e0] sm:$0xff]  ;;  %v14104_v59 = vld [vmem:[%s15138_s25 + $0x118] sm:$0xff] }
  0x27   : > { %8498 = vmatpush.bf16.msra.mxu0 %v14072_v17  ;;  %v14120_v60 = vld [vmem:[%s15138_s25 + $0x198] sm:$0xff]  ;;  %v14103_v63 = vld [vmem:[%s15138_s25 + $0x110] sm:$0xff]  ;;  %v14102_v3 = vld [vmem:[%s15138_s25 + $0x108] sm:$0xff] }
  0x28   : > { %8524 = vmatpush.bf16.msra.mxu2 %v14088_v18  ;;  %v14112_v61 = vld [vmem:[%s15138_s25 + $0x158] sm:$0xff]  ;;  %v14119_v0 = vld [vmem:[%s15138_s25 + $0x190] sm:$0xff]  ;;  %v14118_v4 = vld [vmem:[%s15138_s25 + $0x188] sm:$0xff] }
  0x29   : > { %8511 = vmatpush.bf16.msra.mxu1 %v14080_v19  ;;  %v14128_v62 = vld [vmem:[%s15138_s25 + $0x1d8] sm:$0xff]  ;;  %v14111_v1 = vld [vmem:[%s15138_s25 + $0x150] sm:$0xff]  ;;  %v14110_v7 = vld [vmem:[%s15138_s25 + $0x148] sm:$0xff] }
  0x2a   : > { %8537 = vmatpush.bf16.msra.mxu3 %v14096_v20  ;;  %v14127_v2 = vld [vmem:[%s15138_s25 + $0x1d0] sm:$0xff]  ;;  %v268_v5 = vld [vmem:[%s15133_s21 + $0x18] sm:$0xff]  ;;  %v14126_v8 = vld [vmem:[%s15138_s25 + $0x1c8] sm:$0xff] }
  0x2b   : > { %8499 = vmatpush.bf16.msra.mxu0 %v14071_v21  ;;  %v267_v6 = vld [vmem:[%s15133_s21 + $0x10] sm:$0xff]  ;;  %v14101_v9 = vld [vmem:[%s15138_s25 + $0x100] sm:$0xff]  ;;  %v2329_v11 = vunpack.c.l.b16 %v268_v5  ;;  %v14140_v13 = vld [vmem:[%s15138_s25 + $0x238] sm:$0xff]  ;;  %v2330_v17 = vunpack.c.h.b16 %v268_v5 }
  0x2c   : > { %8525 = vmatpush.bf16.msra.mxu2 %v14087_v22  ;;  %v14117_v10 = vld [vmem:[%s15138_s25 + $0x180] sm:$0xff]  ;;  %v2327_v12 = vunpack.c.l.b16 %v267_v6  ;;  %v14156_v14 = vld [vmem:[%s15138_s25 + $0x2b8] sm:$0xff]  ;;  %v2328_v18 = vunpack.c.h.b16 %v267_v6  ;;  %v14138_v29 = vld [vmem:[%s15138_s25 + $0x228] sm:$0xff] }
  0x2d   : > { %8512 = vmatpush.bf16.msra.mxu1 %v14079_v23  ;;  %v14109_v15 = vld [vmem:[%s15138_s25 + $0x140] sm:$0xff]  ;;  %v14148_v19 = vld [vmem:[%s15138_s25 + $0x278] sm:$0xff]  ;;  %v2450_v21 = vpack.c.b16 %v2329_v11, %v2329_v11  ;;  %v14139_v23 = vld [vmem:[%s15138_s25 + $0x230] sm:$0xff] }
  0x2e   : > { %8538 = vmatpush.bf16.msra.mxu3 %v14095_v24  ;;  %v14125_v16 = vld [vmem:[%s15138_s25 + $0x1c0] sm:$0xff]  ;;  %v14164_v20 = vld [vmem:[%s15138_s25 + $0x2f8] sm:$0xff]  ;;  %v2448_v22 = vpack.c.b16 %v2327_v12, %v2327_v12  ;;  %v14155_v24 = vld [vmem:[%s15138_s25 + $0x2b0] sm:$0xff] }
  0x2f   : > { %8500 = vmatpush.bf16.msra.mxu0 %v14070_v25  ;;  %v2451_v25 = vpack.c.b16 %v2330_v17, %v2330_v17  ;;  %v14154_v30 = vld [vmem:[%s15138_s25 + $0x2a8] sm:$0xff]  ;;  %v14137_v33 = vld [vmem:[%s15138_s25 + $0x220] sm:$0xff]  ;;  %v14144_v39 = vld [vmem:[%s15138_s25 + $0x258] sm:$0xff] }
  0x30   : > { %8526 = vmatpush.bf16.msra.mxu2 %v14086_v26  ;;  %v2449_v26 = vpack.c.b16 %v2328_v18, %v2328_v18  ;;  %v14153_v34 = vld [vmem:[%s15138_s25 + $0x2a0] sm:$0xff]  ;;  %v14160_v40 = vld [vmem:[%s15138_s25 + $0x2d8] sm:$0xff]  ;;  %v14179_v5 = vld [vmem:[%s15138_s25 + $0x370] sm:$0xff] }
  0x31   : > { %8513 = vmatpush.bf16.msra.mxu1 %v14078_v27  ;;  %v14147_v27 = vld [vmem:[%s15138_s25 + $0x270] sm:$0xff]  ;;  %v14169_v11 = vld [vmem:[%s15138_s25 + $0x320] sm:$0xff]  ;;  %v14176_v17 = vld [vmem:[%s15138_s25 + $0x358] sm:$0xff] }
  0x32   : > { %8539 = vmatpush.bf16.msra.mxu3 %v14094_v28  ;;  %v14163_v28 = vld [vmem:[%s15138_s25 + $0x2f0] sm:$0xff]  ;;  %v14185_v12 = vld [vmem:[%s15138_s25 + $0x3a0] sm:$0xff]  ;;  %v14192_v18 = vld [vmem:[%s15138_s25 + $0x3d8] sm:$0xff] }
  0x33   : > { %8501 = vmatpush.bf16.msra.mxu0 %v14069_v31  ;;  %v14146_v31 = vld [vmem:[%s15138_s25 + $0x268] sm:$0xff]  ;;  %v14195_v6 = vld [vmem:[%s15138_s25 + $0x3f0] sm:$0xff] }
  0x34   : > { %8527 = vmatpush.bf16.msra.mxu2 %v14085_v32  ;;  %v14162_v32 = vld [vmem:[%s15138_s25 + $0x2e8] sm:$0xff] }
  0x35   : > { %8514 = vmatpush.bf16.msra.mxu1 %v14077_v37  ;;  %v14136_v37 = vld [vmem:[%s15138_s25 + $0x218] sm:$0xff] }
  0x36   : > { %8540 = vmatpush.bf16.msra.mxu3 %v14093_v38  ;;  %8502 = vmatmul.bf16.vlgmr.msra.gmra.mxu0 %v2444_v44  ;;  %v14152_v38 = vld [vmem:[%s15138_s25 + $0x298] sm:$0xff]  ;;  %v14159_v44 = vld [vmem:[%s15138_s25 + $0x2d0] sm:$0xff] }
  0x37   : > { %8546 = vmatpush.bf16.msrb.mxu0 %v14108_v35  ;;  %8528 = vmatmul.bf16.vlgmr.msra.gmra.mxu2 %v2446_v43  ;;  %v14145_v35 = vld [vmem:[%s15138_s25 + $0x260] sm:$0xff]  ;;  %v14143_v43 = vld [vmem:[%s15138_s25 + $0x250] sm:$0xff] }
  0x38   : > { %8572 = vmatpush.bf16.msrb.mxu2 %v14124_v36  ;;  %8515 = vmatmul.bf16.vlgmr.msra.gmra.mxu1 %v2445_v48  ;;  %v14161_v36 = vld [vmem:[%s15138_s25 + $0x2e0] sm:$0xff]  ;;  %v270_v48 = vld [vmem:[%s15133_s21 + $0x28] sm:$0xff] }
  0x39   : > { %8559 = vmatpush.bf16.msrb.mxu1 %v14116_v41  ;;  %8541 = vmatmul.bf16.vlgmr.msra.gmra.mxu3 %v2447_v47  ;;  %v14135_v41 = vld [vmem:[%s15138_s25 + $0x210] sm:$0xff]  ;;  %v269_v47 = vld [vmem:[%s15133_s21 + $0x20] sm:$0xff] }
  0x3a   : > { %8585 = vmatpush.bf16.msrb.mxu3 %v14132_v42  ;;  %v14151_v42 = vld [vmem:[%s15138_s25 + $0x290] sm:$0xff] }
  0x3b   : > { %8547 = vmatpush.bf16.msrb.mxu0 %v14107_v45  ;;  %v14134_v45 = vld [vmem:[%s15138_s25 + $0x208] sm:$0xff] }
  0x3c   : > { %8573 = vmatpush.bf16.msrb.mxu2 %v14123_v46  ;;  %v14150_v46 = vld [vmem:[%s15138_s25 + $0x288] sm:$0xff] }
  0x3d   : > { %8560 = vmatpush.bf16.msrb.mxu1 %v14115_v49  ;;  %v14142_v49 = vld [vmem:[%s15138_s25 + $0x248] sm:$0xff] }
  0x3e   : > { %8586 = vmatpush.bf16.msrb.mxu3 %v14131_v50  ;;  %v14158_v50 = vld [vmem:[%s15138_s25 + $0x2c8] sm:$0xff] }
  0x3f   : > { %8548 = vmatpush.bf16.msrb.mxu0 %v14106_v51  ;;  %v2331_v51 = vunpack.c.l.b16 %v269_v47 }
  0x40   : > { %8574 = vmatpush.bf16.msrb.mxu2 %v14122_v52  ;;  %v2333_v52 = vunpack.c.l.b16 %v270_v48 }
  0x41   : > { %8561 = vmatpush.bf16.msrb.mxu1 %v14114_v53  ;;  %v14133_v53 = vld [vmem:[%s15138_s25 + $0x200] sm:$0xff] }
  0x42   : > { %8587 = vmatpush.bf16.msrb.mxu3 %v14130_v54  ;;  %v14149_v54 = vld [vmem:[%s15138_s25 + $0x280] sm:$0xff] }
  0x43   : > { %8549 = vmatpush.bf16.msrb.mxu0 %v14105_v55  ;;  %v14172_v55 = vld [vmem:[%s15138_s25 + $0x338] sm:$0xff] }
  0x44   : > { %8575 = vmatpush.bf16.msrb.mxu2 %v14121_v56  ;;  %v14188_v56 = vld [vmem:[%s15138_s25 + $0x3b8] sm:$0xff] }
  0x45   : > { %8562 = vmatpush.bf16.msrb.mxu1 %v14113_v57  ;;  %v2332_v57 = vunpack.c.h.b16 %v269_v47  ;;  %v14211_v47 = vld [vmem:[%s15138_s25 + $0x470] sm:$0xff] }
  0x46   : > { %8588 = vmatpush.bf16.msrb.mxu3 %v14129_v58  ;;  %v2334_v58 = vunpack.c.h.b16 %v270_v48  ;;  %v14227_v48 = vld [vmem:[%s15138_s25 + $0x4f0] sm:$0xff] }
  0x47   : > { %8550 = vmatpush.bf16.msrb.mxu0 %v14104_v59  ;;  %v14141_v59 = vld [vmem:[%s15138_s25 + $0x240] sm:$0xff] }
  0x48   : > { %8576 = vmatpush.bf16.msrb.mxu2 %v14120_v60  ;;  %v14157_v60 = vld [vmem:[%s15138_s25 + $0x2c0] sm:$0xff] }
  0x49   : > { %8563 = vmatpush.bf16.msrb.mxu1 %v14112_v61  ;;  %v2452_v61 = vpack.c.b16 %v2331_v51, %v2331_v51  ;;  %v14210_v51 = vld [vmem:[%s15138_s25 + $0x468] sm:$0xff] }
  0x4a   : > { %8589 = vmatpush.bf16.msrb.mxu3 %v14128_v62  ;;  %v2454_v62 = vpack.c.b16 %v2333_v52, %v2333_v52  ;;  %v14226_v52 = vld [vmem:[%s15138_s25 + $0x4e8] sm:$0xff] }
  0x4b   : > { %8551 = vmatpush.bf16.msrb.mxu0 %v14103_v63  ;;  %v14180_v63 = vld [vmem:[%s15138_s25 + $0x378] sm:$0xff] }
  0x4c   : > { %8577 = vmatpush.bf16.msrb.mxu2 %v14119_v0  ;;  %v14196_v0 = vld [vmem:[%s15138_s25 + $0x3f8] sm:$0xff] }
  0x4d   : > { %8564 = vmatpush.bf16.msrb.mxu1 %v14111_v1  ;;  %v2453_v1 = vpack.c.b16 %v2332_v57, %v2332_v57  ;;  %v14200_v57 = vld [vmem:[%s15138_s25 + $0x418] sm:$0xff] }
  0x4e   : > { %8590 = vmatpush.bf16.msrb.mxu3 %v14127_v2  ;;  %v2455_v2 = vpack.c.b16 %v2334_v58, %v2334_v58  ;;  %v14216_v58 = vld [vmem:[%s15138_s25 + $0x498] sm:$0xff] }
  0x4f   : > { %8552 = vmatpush.bf16.msrb.mxu0 %v14102_v3  ;;  %v14171_v3 = vld [vmem:[%s15138_s25 + $0x330] sm:$0xff] }
  0x50   : > { %8578 = vmatpush.bf16.msrb.mxu2 %v14118_v4  ;;  %v14187_v4 = vld [vmem:[%s15138_s25 + $0x3b0] sm:$0xff] }
  0x51   : > { %8565 = vmatpush.bf16.msrb.mxu1 %v14110_v7  ;;  %v14170_v7 = vld [vmem:[%s15138_s25 + $0x328] sm:$0xff] }
  0x52   : > { %8591 = vmatpush.bf16.msrb.mxu3 %v14126_v8  ;;  %v14186_v8 = vld [vmem:[%s15138_s25 + $0x3a8] sm:$0xff] }
  0x53   : > { %8553 = vmatpush.bf16.msrb.mxu0 %v14101_v9  ;;  %v14178_v9 = vld [vmem:[%s15138_s25 + $0x368] sm:$0xff] }
  0x54   : > { %8579 = vmatpush.bf16.msrb.mxu2 %v14117_v10  ;;  %v14194_v10 = vld [vmem:[%s15138_s25 + $0x3e8] sm:$0xff] }
  0x55   : > { %8566 = vmatpush.bf16.msrb.mxu1 %v14109_v15  ;;  %v14168_v15 = vld [vmem:[%s15138_s25 + $0x318] sm:$0xff] }
  0x56   : > { %8592 = vmatpush.bf16.msrb.mxu3 %v14125_v16  ;;  %8554 = vmatmul.bf16.vlgmr.msrb.gmra.mxu0 %v2448_v22  ;;  %v14184_v16 = vld [vmem:[%s15138_s25 + $0x398] sm:$0xff]  ;;  %v14191_v22 = vld [vmem:[%s15138_s25 + $0x3d0] sm:$0xff] }
  0x57   : > { %8598 = vmatpush.bf16.msra.mxu0 %v14140_v13  ;;  %8580 = vmatmul.bf16.vlgmr.msrb.gmra.mxu2 %v2450_v21  ;;  %v14177_v13 = vld [vmem:[%s15138_s25 + $0x360] sm:$0xff]  ;;  %v14175_v21 = vld [vmem:[%s15138_s25 + $0x350] sm:$0xff] }
  0x58   : > { %8624 = vmatpush.bf16.msra.mxu2 %v14156_v14  ;;  %8567 = vmatmul.bf16.vlgmr.msrb.gmra.mxu1 %v2449_v26  ;;  %v14193_v14 = vld [vmem:[%s15138_s25 + $0x3e0] sm:$0xff]  ;;  %v272_v26 = vld [vmem:[%s15133_s21 + $0x38] sm:$0xff] }
  0x59   : > { %8611 = vmatpush.bf16.msra.mxu1 %v14148_v19  ;;  %8593 = vmatmul.bf16.vlgmr.msrb.gmra.mxu3 %v2451_v25  ;;  %v14167_v19 = vld [vmem:[%s15138_s25 + $0x310] sm:$0xff] }
  0x5a   : > { %8637 = vmatpush.bf16.msra.mxu3 %v14164_v20  ;;  %v14183_v20 = vld [vmem:[%s15138_s25 + $0x390] sm:$0xff] }
  0x5b   : > { %8599 = vmatpush.bf16.msra.mxu0 %v14139_v23  ;;  %v14166_v23 = vld [vmem:[%s15138_s25 + $0x308] sm:$0xff]  ;;  %v271_v25 = vld [vmem:[%s15133_s21 + $0x30] sm:$0xff] }
  0x5c   : > { %8625 = vmatpush.bf16.msra.mxu2 %v14155_v24  ;;  %v14182_v24 = vld [vmem:[%s15138_s25 + $0x388] sm:$0xff] }
  0x5d   : > { %8612 = vmatpush.bf16.msra.mxu1 %v14147_v27  ;;  %v14174_v27 = vld [vmem:[%s15138_s25 + $0x348] sm:$0xff] }
  0x5e   : > { %8638 = vmatpush.bf16.msra.mxu3 %v14163_v28  ;;  %v14190_v28 = vld [vmem:[%s15138_s25 + $0x3c8] sm:$0xff] }
  0x5f   : > { %8600 = vmatpush.bf16.msra.mxu0 %v14138_v29  ;;  %v2335_v29 = vunpack.c.l.b16 %v271_v25 }
  0x60   : > { %8626 = vmatpush.bf16.msra.mxu2 %v14154_v30  ;;  %v2337_v30 = vunpack.c.l.b16 %v272_v26 }
  0x61   : > { %8613 = vmatpush.bf16.msra.mxu1 %v14146_v31  ;;  %v14165_v31 = vld [vmem:[%s15138_s25 + $0x300] sm:$0xff] }
  0x62   : > { %8639 = vmatpush.bf16.msra.mxu3 %v14162_v32  ;;  %v14181_v32 = vld [vmem:[%s15138_s25 + $0x380] sm:$0xff] }
  0x63   : > { %8601 = vmatpush.bf16.msra.mxu0 %v14137_v33  ;;  %v14204_v33 = vld [vmem:[%s15138_s25 + $0x438] sm:$0xff] }
  0x64   : > { %8627 = vmatpush.bf16.msra.mxu2 %v14153_v34  ;;  %v14220_v34 = vld [vmem:[%s15138_s25 + $0x4b8] sm:$0xff] }
  0x65   : > { %8614 = vmatpush.bf16.msra.mxu1 %v14145_v35  ;;  %v2336_v35 = vunpack.c.h.b16 %v271_v25  ;;  %v14243_v25 = vld [vmem:[%s15138_s25 + $0x570] sm:$0xff] }
  0x66   : > { %8640 = vmatpush.bf16.msra.mxu3 %v14161_v36  ;;  %v2338_v36 = vunpack.c.h.b16 %v272_v26  ;;  %v14259_v26 = vld [vmem:[%s15138_s25 + $0x5f0] sm:$0xff] }
  0x67   : > { %8602 = vmatpush.bf16.msra.mxu0 %v14136_v37  ;;  %v14173_v37 = vld [vmem:[%s15138_s25 + $0x340] sm:$0xff] }
  0x68   : > { %8628 = vmatpush.bf16.msra.mxu2 %v14152_v38  ;;  %v14189_v38 = vld [vmem:[%s15138_s25 + $0x3c0] sm:$0xff] }
  0x69   : > { %8615 = vmatpush.bf16.msra.mxu1 %v14144_v39  ;;  %v2456_v39 = vpack.c.b16 %v2335_v29, %v2335_v29  ;;  %v14242_v29 = vld [vmem:[%s15138_s25 + $0x568] sm:$0xff] }
  0x6a   : > { %8641 = vmatpush.bf16.msra.mxu3 %v14160_v40  ;;  %v2458_v40 = vpack.c.b16 %v2337_v30, %v2337_v30  ;;  %v14258_v30 = vld [vmem:[%s15138_s25 + $0x5e8] sm:$0xff] }
  0x6b   : > { %8603 = vmatpush.bf16.msra.mxu0 %v14135_v41  ;;  %v14212_v41 = vld [vmem:[%s15138_s25 + $0x478] sm:$0xff] }
  0x6c   : > { %8629 = vmatpush.bf16.msra.mxu2 %v14151_v42  ;;  %v14228_v42 = vld [vmem:[%s15138_s25 + $0x4f8] sm:$0xff] }
  0x6d   : > { %8616 = vmatpush.bf16.msra.mxu1 %v14143_v43  ;;  %v2457_v43 = vpack.c.b16 %v2336_v35, %v2336_v35  ;;  %v14257_v35 = vld [vmem:[%s15138_s25 + $0x5e0] sm:$0xff] }
  0x6e   : > { %8642 = vmatpush.bf16.msra.mxu3 %v14159_v44  ;;  %v2459_v44 = vpack.c.b16 %v2338_v36, %v2338_v36 }
  0x6f   : > { %8604 = vmatpush.bf16.msra.mxu0 %v14134_v45  ;;  %v14203_v45 = vld [vmem:[%s15138_s25 + $0x430] sm:$0xff] }
  0x70   : > { %8630 = vmatpush.bf16.msra.mxu2 %v14150_v46  ;;  %v14219_v46 = vld [vmem:[%s15138_s25 + $0x4b0] sm:$0xff] }
  0x71   : > { %8617 = vmatpush.bf16.msra.mxu1 %v14142_v49  ;;  %v14202_v49 = vld [vmem:[%s15138_s25 + $0x428] sm:$0xff] }
  0x72   : > { %8643 = vmatpush.bf16.msra.mxu3 %v14158_v50  ;;  %v14218_v50 = vld [vmem:[%s15138_s25 + $0x4a8] sm:$0xff] }
  0x73   : > { %8605 = vmatpush.bf16.msra.mxu0 %v14133_v53  ;;  %v14201_v53 = vld [vmem:[%s15138_s25 + $0x420] sm:$0xff] }
  0x74   : > { %8631 = vmatpush.bf16.msra.mxu2 %v14149_v54  ;;  %v14217_v54 = vld [vmem:[%s15138_s25 + $0x4a0] sm:$0xff] }
  0x75   : > { %8618 = vmatpush.bf16.msra.mxu1 %v14141_v59  ;;  %v14208_v59 = vld [vmem:[%s15138_s25 + $0x458] sm:$0xff] }
  0x76   : > { %8644 = vmatpush.bf16.msra.mxu3 %v14157_v60  ;;  %8606 = vmatmul.bf16.vlgmr.msra.gmra.mxu0 %v2452_v61  ;;  %v14224_v60 = vld [vmem:[%s15138_s25 + $0x4d8] sm:$0xff]  ;;  %v14199_v61 = vld [vmem:[%s15138_s25 + $0x410] sm:$0xff] }
  0x77   : > { %8650 = vmatpush.bf16.msrb.mxu0 %v14172_v55  ;;  %8632 = vmatmul.bf16.vlgmr.msra.gmra.mxu2 %v2454_v62  ;;  %v14209_v55 = vld [vmem:[%s15138_s25 + $0x460] sm:$0xff]  ;;  %v14215_v62 = vld [vmem:[%s15138_s25 + $0x490] sm:$0xff] }
  0x78   : > { %8676 = vmatpush.bf16.msrb.mxu2 %v14188_v56  ;;  %8619 = vmatmul.bf16.vlgmr.msra.gmra.mxu1 %v2453_v1  ;;  %v14225_v56 = vld [vmem:[%s15138_s25 + $0x4e0] sm:$0xff]  ;;  %v14198_v1 = vld [vmem:[%s15138_s25 + $0x408] sm:$0xff] }
  0x79   : > { %8663 = vmatpush.bf16.msrb.mxu1 %v14180_v63  ;;  %8645 = vmatmul.bf16.vlgmr.msra.gmra.mxu3 %v2455_v2  ;;  %v14207_v63 = vld [vmem:[%s15138_s25 + $0x450] sm:$0xff]  ;;  %v14214_v2 = vld [vmem:[%s15138_s25 + $0x488] sm:$0xff] }
  0x7a   : > { %8689 = vmatpush.bf16.msrb.mxu3 %v14196_v0  ;;  %v14223_v0 = vld [vmem:[%s15138_s25 + $0x4d0] sm:$0xff] }
  0x7b   : > { %8651 = vmatpush.bf16.msrb.mxu0 %v14171_v3  ;;  %v273_v3 = vld [vmem:[%s15133_s21 + $0x40] sm:$0xff] }
  0x7c   : > { %8677 = vmatpush.bf16.msrb.mxu2 %v14187_v4  ;;  %v274_v4 = vld [vmem:[%s15133_s21 + $0x48] sm:$0xff] }
  0x7d   : > { %8664 = vmatpush.bf16.msrb.mxu1 %v14179_v5  ;;  %v14206_v5 = vld [vmem:[%s15138_s25 + $0x448] sm:$0xff] }
  0x7e   : > { %8690 = vmatpush.bf16.msrb.mxu3 %v14195_v6  ;;  %v14222_v6 = vld [vmem:[%s15138_s25 + $0x4c8] sm:$0xff] }
  0x7f   : > { %8652 = vmatpush.bf16.msrb.mxu0 %v14170_v7  ;;  %v2339_v7 = vunpack.c.l.b16 %v273_v3 }
  0x80   : > { %8678 = vmatpush.bf16.msrb.mxu2 %v14186_v8  ;;  %v2341_v8 = vunpack.c.l.b16 %v274_v4 }
  0x81   : > { %8665 = vmatpush.bf16.msrb.mxu1 %v14178_v9  ;;  %v14197_v9 = vld [vmem:[%s15138_s25 + $0x400] sm:$0xff] }
  0x82   : > { %8691 = vmatpush.bf16.msrb.mxu3 %v14194_v10  ;;  %v14213_v10 = vld [vmem:[%s15138_s25 + $0x480] sm:$0xff] }
  0x83   : > { %8653 = vmatpush.bf16.msrb.mxu0 %v14169_v11  ;;  %v14236_v11 = vld [vmem:[%s15138_s25 + $0x538] sm:$0xff] }
  0x84   : > { %8679 = vmatpush.bf16.msrb.mxu2 %v14185_v12  ;;  %v14252_v12 = vld [vmem:[%s15138_s25 + $0x5b8] sm:$0xff] }
  0x85   : > { %8666 = vmatpush.bf16.msrb.mxu1 %v14177_v13  ;;  %v2340_v13 = vunpack.c.h.b16 %v273_v3 }
  0x86   : > { %8692 = vmatpush.bf16.msrb.mxu3 %v14193_v14  ;;  %v2342_v14 = vunpack.c.h.b16 %v274_v4  ;;  %v14237_v4 = vld [vmem:[%s15138_s25 + $0x540] sm:$0xff] }
  0x87   : > { %8654 = vmatpush.bf16.msrb.mxu0 %v14168_v15  ;;  %v14205_v15 = vld [vmem:[%s15138_s25 + $0x440] sm:$0xff] }
  0x88   : > { %8680 = vmatpush.bf16.msrb.mxu2 %v14184_v16  ;;  %v14221_v16 = vld [vmem:[%s15138_s25 + $0x4c0] sm:$0xff] }
  0x89   : > { %8667 = vmatpush.bf16.msrb.mxu1 %v14176_v17  ;;  %v2460_v17 = vpack.c.b16 %v2339_v7, %v2339_v7 }
  0x8a   : > { %8693 = vmatpush.bf16.msrb.mxu3 %v14192_v18  ;;  %v2462_v18 = vpack.c.b16 %v2341_v8, %v2341_v8  ;;  %v14276_v8 = vld [vmem:[%s15138_s25 + $0x678] sm:$0xff] }
  0x8b   : > { %8655 = vmatpush.bf16.msrb.mxu0 %v14167_v19  ;;  %v14244_v19 = vld [vmem:[%s15138_s25 + $0x578] sm:$0xff] }
  0x8c   : > { %8681 = vmatpush.bf16.msrb.mxu2 %v14183_v20  ;;  %v14260_v20 = vld [vmem:[%s15138_s25 + $0x5f8] sm:$0xff] }
  0x8d   : > { %8668 = vmatpush.bf16.msrb.mxu1 %v14175_v21  ;;  %v2461_v21 = vpack.c.b16 %v2340_v13, %v2340_v13  ;;  %v14283_v13 = vld [vmem:[%s15138_s25 + $0x6b0] sm:$0xff] }
  0x8e   : > { %8694 = vmatpush.bf16.msrb.mxu3 %v14191_v22  ;;  %v2463_v22 = vpack.c.b16 %v2342_v14, %v2342_v14  ;;  %v14275_v14 = vld [vmem:[%s15138_s25 + $0x670] sm:$0xff] }
  0x8f   : > { %8656 = vmatpush.bf16.msrb.mxu0 %v14166_v23  ;;  %v14235_v23 = vld [vmem:[%s15138_s25 + $0x530] sm:$0xff] }
  0x90   : > { %8682 = vmatpush.bf16.msrb.mxu2 %v14182_v24  ;;  %v14251_v24 = vld [vmem:[%s15138_s25 + $0x5b0] sm:$0xff] }
  0x91   : > { %8669 = vmatpush.bf16.msrb.mxu1 %v14174_v27  ;;  %v14234_v27 = vld [vmem:[%s15138_s25 + $0x528] sm:$0xff] }
  0x92   : > { %8695 = vmatpush.bf16.msrb.mxu3 %v14190_v28  ;;  %v14250_v28 = vld [vmem:[%s15138_s25 + $0x5a8] sm:$0xff] }
  0x93   : > { %8657 = vmatpush.bf16.msrb.mxu0 %v14165_v31  ;;  %v14233_v31 = vld [vmem:[%s15138_s25 + $0x520] sm:$0xff] }
  0x94   : > { %8683 = vmatpush.bf16.msrb.mxu2 %v14181_v32  ;;  %v14249_v32 = vld [vmem:[%s15138_s25 + $0x5a0] sm:$0xff] }
  0x95   : > { %8670 = vmatpush.bf16.msrb.mxu1 %v14173_v37  ;;  %v14232_v37 = vld [vmem:[%s15138_s25 + $0x518] sm:$0xff] }
  0x96   : > { %8696 = vmatpush.bf16.msrb.mxu3 %v14189_v38  ;;  %8658 = vmatmul.bf16.vlgmr.msrb.gmra.mxu0 %v2456_v39  ;;  %v14248_v38 = vld [vmem:[%s15138_s25 + $0x598] sm:$0xff] }
  0x97   : > { %8702 = vmatpush.bf16.msra.mxu0 %v14204_v33  ;;  %8684 = vmatmul.bf16.vlgmr.msrb.gmra.mxu2 %v2458_v40  ;;  %v14240_v40 = vld [vmem:[%s15138_s25 + $0x558] sm:$0xff] }
  0x98   : > { %8728 = vmatpush.bf16.msra.mxu2 %v14220_v34  ;;  %8671 = vmatmul.bf16.vlgmr.msrb.gmra.mxu1 %v2457_v43  ;;  %v14241_v34 = vld [vmem:[%s15138_s25 + $0x560] sm:$0xff]  ;;  %v14231_v43 = vld [vmem:[%s15138_s25 + $0x510] sm:$0xff] }
  0x99   : > { %8715 = vmatpush.bf16.msra.mxu1 %v14212_v41  ;;  %8697 = vmatmul.bf16.vlgmr.msrb.gmra.mxu3 %v2459_v44  ;;  %v14256_v41 = vld [vmem:[%s15138_s25 + $0x5d8] sm:$0xff]  ;;  %v14247_v44 = vld [vmem:[%s15138_s25 + $0x590] sm:$0xff] }
  0x9a   : > { %8741 = vmatpush.bf16.msra.mxu3 %v14228_v42 }
  0x9b   : > { %8703 = vmatpush.bf16.msra.mxu0 %v14203_v45 }
  0x9c   : > { %8729 = vmatpush.bf16.msra.mxu2 %v14219_v46 }
  0x9d   : > { %8716 = vmatpush.bf16.msra.mxu1 %v14211_v47 }
  0x9e   : > { %8742 = vmatpush.bf16.msra.mxu3 %v14227_v48  ;;  %v14239_v48 = vld [vmem:[%s15138_s25 + $0x550] sm:$0xff] }
  0x9f   : > { %8704 = vmatpush.bf16.msra.mxu0 %v14202_v49  ;;  %v14255_v49 = vld [vmem:[%s15138_s25 + $0x5d0] sm:$0xff] }
  0xa0   : > { %8730 = vmatpush.bf16.msra.mxu2 %v14218_v50 }
  0xa1   : > { %8717 = vmatpush.bf16.msra.mxu1 %v14210_v51  ;;  %v14230_v51 = vld [vmem:[%s15138_s25 + $0x508] sm:$0xff] }
  0xa2   : > { %8743 = vmatpush.bf16.msra.mxu3 %v14226_v52 }
  0xa3   : > { %8705 = vmatpush.bf16.msra.mxu0 %v14201_v53  ;;  %v14246_v53 = vld [vmem:[%s15138_s25 + $0x588] sm:$0xff] }
  0xa4   : > { %8731 = vmatpush.bf16.msra.mxu2 %v14217_v54  ;;  %v275_v54 = vld [vmem:[%s15133_s21 + $0x50] sm:$0xff] }
  0xa5   : > { %8718 = vmatpush.bf16.msra.mxu1 %v14209_v55  ;;  %v276_v55 = vld [vmem:[%s15133_s21 + $0x58] sm:$0xff] }
  0xa6   : > { %8744 = vmatpush.bf16.msra.mxu3 %v14225_v56  ;;  %v14238_v56 = vld [vmem:[%s15138_s25 + $0x548] sm:$0xff] }
  0xa7   : > { %8706 = vmatpush.bf16.msra.mxu0 %v14200_v57  ;;  %v14254_v57 = vld [vmem:[%s15138_s25 + $0x5c8] sm:$0xff] }
  0xa8   : > { %8732 = vmatpush.bf16.msra.mxu2 %v14216_v58  ;;  %v2343_v58 = vunpack.c.l.b16 %v275_v54 }
  0xa9   : > { %8719 = vmatpush.bf16.msra.mxu1 %v14208_v59  ;;  %v2345_v59 = vunpack.c.l.b16 %v276_v55 }
  0xaa   : > { %8745 = vmatpush.bf16.msra.mxu3 %v14224_v60 }
  0xab   : > { %8707 = vmatpush.bf16.msra.mxu0 %v14199_v61  ;;  %v14229_v61 = vld [vmem:[%s15138_s25 + $0x500] sm:$0xff]  ;;  %v2466_v7 = vpack.c.b16 %v2345_v59, %v2345_v59 }
  0xac   : > { %8733 = vmatpush.bf16.msra.mxu2 %v14215_v62  ;;  %v14245_v62 = vld [vmem:[%s15138_s25 + $0x580] sm:$0xff] }
  0xad   : > { %8720 = vmatpush.bf16.msra.mxu1 %v14207_v63  ;;  %v14268_v63 = vld [vmem:[%s15138_s25 + $0x638] sm:$0xff]  ;;  %v14285_v59 = vld [vmem:[%s15138_s25 + $0x6c0] sm:$0xff] }
  0xae   : > { %8746 = vmatpush.bf16.msra.mxu3 %v14223_v0  ;;  %v14284_v0 = vld [vmem:[%s15138_s25 + $0x6b8] sm:$0xff] }
  0xaf   : > { %8708 = vmatpush.bf16.msra.mxu0 %v14198_v1  ;;  %v2344_v1 = vunpack.c.h.b16 %v275_v54  ;;  %v14300_v54 = vld [vmem:[%s15138_s25 + $0x738] sm:$0xff] }
  0xb0   : > { %8734 = vmatpush.bf16.msra.mxu2 %v14214_v2  ;;  %v2346_v2 = vunpack.c.h.b16 %v276_v55  ;;  %v14316_v55 = vld [vmem:[%s15138_s25 + $0x7b8] sm:$0xff] }
  0xb1   : > { %8721 = vmatpush.bf16.msra.mxu1 %v14206_v5  ;;  %v14253_v5 = vld [vmem:[%s15138_s25 + $0x5c0] sm:$0xff] }
  0xb2   : > { %8747 = vmatpush.bf16.msra.mxu3 %v14222_v6  ;;  %v2464_v6 = vpack.c.b16 %v2343_v58, %v2343_v58  ;;  %v14269_v58 = vld [vmem:[%s15138_s25 + $0x640] sm:$0xff] }
  0xb3   : > { %8709 = vmatpush.bf16.msra.mxu0 %v14197_v9  ;;  %v8503_v33 = vpop.f32.mrf.mxu0  ;;  %v14292_v9 = vld [vmem:[%s15138_s25 + $0x6f8] sm:$0xff] }
  0xb4   : > { %8735 = vmatpush.bf16.msra.mxu2 %v14213_v10  ;;  %v2465_v10 = vpack.c.b16 %v2344_v1, %v2344_v1 }
  0xb5   : > { %8722 = vmatpush.bf16.msra.mxu1 %v14205_v15  ;;  %v8516_v36 = vpop.f32.mrf.mxu1  ;;  %v14291_v15 = vld [vmem:[%s15138_s25 + $0x6f0] sm:$0xff] }
  0xb6   : > { %8748 = vmatpush.bf16.msra.mxu3 %v14221_v16  ;;  %8710 = vmatmul.bf16.vlgmr.msra.gmra.mxu0 %v2460_v17  ;;  %v8517_v39 = vadd.f32 %v8516_v36, %v8503_v33  ;;  %v14266_v16 = vld [vmem:[%s15138_s25 + $0x628] sm:$0xff] }
  0xb7   : > { %8754 = vmatpush.bf16.msrb.mxu0 %v14236_v11  ;;  %8736 = vmatmul.bf16.vlgmr.msra.gmra.mxu2 %v2462_v18  ;;  %v2467_v11 = vpack.c.b16 %v2346_v2, %v2346_v2  ;;  %v14282_v17 = vld [vmem:[%s15138_s25 + $0x6a8] sm:$0xff]  ;;  %v14299_v2 = vld [vmem:[%s15138_s25 + $0x730] sm:$0xff] }
  0xb8   : > { %8780 = vmatpush.bf16.msrb.mxu2 %v14252_v12  ;;  %8723 = vmatmul.bf16.vlgmr.msra.gmra.mxu1 %v2461_v21  ;;  %v14267_v12 = vld [vmem:[%s15138_s25 + $0x630] sm:$0xff]  ;;  %v14274_v18 = vld [vmem:[%s15138_s25 + $0x668] sm:$0xff]  ;;  %v14281_v21 = vld [vmem:[%s15138_s25 + $0x6a0] sm:$0xff] }
  0xb9   : > { %8767 = vmatpush.bf16.msrb.mxu1 %v14244_v19  ;;  %8749 = vmatmul.bf16.vlgmr.msra.gmra.mxu3 %v2463_v22  ;;  %v14290_v19 = vld [vmem:[%s15138_s25 + $0x6e8] sm:$0xff] }
  0xba   : > { %8793 = vmatpush.bf16.msrb.mxu3 %v14260_v20  ;;  %v8529_v42 = vpop.f32.mrf.mxu2  ;;  %v14265_v20 = vld [vmem:[%s15138_s25 + $0x620] sm:$0xff] }
  0xbb   : > { %8755 = vmatpush.bf16.msrb.mxu0 %v14235_v23  ;;  %v8530_v45 = vadd.f32 %v8529_v42, %v8517_v39  ;;  %v8505_v47 = vpop.f32.mrf.mxu0  ;;  %v14271_v39 = vld [vmem:[%s15138_s25 + $0x650] sm:$0xff]  ;;  %v14262_v42 = vld [vmem:[%s15138_s25 + $0x608] sm:$0xff] }
  0xbc   : > { %8781 = vmatpush.bf16.msrb.mxu2 %v14251_v24  ;;  %v8542_v46 = vpop.f32.mrf.mxu3  ;;  %v14273_v24 = vld [vmem:[%s15138_s25 + $0x660] sm:$0xff]  ;;  %v14286_v47 = vld [vmem:[%s15138_s25 + $0x6c8] sm:$0xff] }
  0xbd   : > { %8768 = vmatpush.bf16.msrb.mxu1 %v14243_v25  ;;  %v15335_v50 = vadd.f32 %v8542_v46, %v8530_v45  ;;  %v8518_v52 = vpop.f32.mrf.mxu1  ;;  %v14289_v25 = vld [vmem:[%s15138_s25 + $0x6e0] sm:$0xff]  ;;  %v278_v45 = vld [vmem:[%s15133_s21 + $0x68] sm:$0xff] }
  0xbe   : > { %8794 = vmatpush.bf16.msrb.mxu3 %v14259_v26  ;;  %v14270_v46 = vld [vmem:[%s15138_s25 + $0x648] sm:$0xff]  ;;  %v14277_v52 = vld [vmem:[%s15138_s25 + $0x680] sm:$0xff] }
  0xbf   : > { %8756 = vmatpush.bf16.msrb.mxu0 %v14234_v27 }
  0xc0   : > { %8782 = vmatpush.bf16.msrb.mxu2 %v14250_v28  ;;  %v14264_v28 = vld [vmem:[%s15138_s25 + $0x618] sm:$0xff] }
  0xc1   : > { %8769 = vmatpush.bf16.msrb.mxu1 %v14242_v29  ;;  %v14280_v29 = vld [vmem:[%s15138_s25 + $0x698] sm:$0xff] }
  0xc2   : > { %8795 = vmatpush.bf16.msrb.mxu3 %v14258_v30  ;;  %v8531_v60 = vpop.f32.mrf.mxu2  ;;  %v14272_v30 = vld [vmem:[%s15138_s25 + $0x658] sm:$0xff] }
  0xc3   : > { %8757 = vmatpush.bf16.msrb.mxu0 %v14233_v31  ;;  %v14288_v31 = vld [vmem:[%s15138_s25 + $0x6d8] sm:$0xff] }
  0xc4   : > { %8783 = vmatpush.bf16.msrb.mxu2 %v14249_v32  ;;  %v8544_v3 = vpop.f32.mrf.mxu3 }
  0xc5   : > { %8770 = vmatpush.bf16.msrb.mxu1 %v14241_v34  ;;  %v14263_v34 = vld [vmem:[%s15138_s25 + $0x610] sm:$0xff] }
  0xc6   : > { %8796 = vmatpush.bf16.msrb.mxu3 %v14257_v35  ;;  %v14279_v35 = vld [vmem:[%s15138_s25 + $0x690] sm:$0xff] }
  0xc7   : > { %8758 = vmatpush.bf16.msrb.mxu0 %v14232_v37  ;;  %v14315_v3 = vld [vmem:[%s15138_s25 + $0x7b0] sm:$0xff] }
  0xc8   : > { %8784 = vmatpush.bf16.msrb.mxu2 %v14248_v38 }
  0xc9   : > { %8771 = vmatpush.bf16.msrb.mxu1 %v14240_v40  ;;  %v14287_v40 = vld [vmem:[%s15138_s25 + $0x6d0] sm:$0xff] }
  0xca   : > { %8797 = vmatpush.bf16.msrb.mxu3 %v14256_v41 }
  0xcb   : > { %8759 = vmatpush.bf16.msrb.mxu0 %v14231_v43  ;;  %v14278_v43 = vld [vmem:[%s15138_s25 + $0x688] sm:$0xff] }
  0xcc   : > { %8785 = vmatpush.bf16.msrb.mxu2 %v14247_v44  ;;  %v277_v44 = vld [vmem:[%s15133_s21 + $0x60] sm:$0xff] }
  0xcd   : > { %8772 = vmatpush.bf16.msrb.mxu1 %v14239_v48 }
  0xce   : > { %8798 = vmatpush.bf16.msrb.mxu3 %v14255_v49  ;;  %v2347_v49 = vunpack.c.l.b16 %v277_v44 }
  0xcf   : > { %8760 = vmatpush.bf16.msrb.mxu0 %v14230_v51  ;;  %v14261_v51 = vld [vmem:[%s15138_s25 + $0x600] sm:$0xff] }
  0xd0   : > { %8786 = vmatpush.bf16.msrb.mxu2 %v14246_v53  ;;  %v2468_v60 = vpack.c.b16 %v2347_v49, %v2347_v49  ;;  %v14317_v49 = vld [vmem:[%s15138_s25 + $0x7c0] sm:$0xff] }
  0xd1   : > { %8773 = vmatpush.bf16.msrb.mxu1 %v14238_v56  ;;  %v2348_v56 = vunpack.c.h.b16 %v277_v44  ;;  %v14332_v44 = vld [vmem:[%s15138_s25 + $0x838] sm:$0xff] }
  0xd2   : > { %8799 = vmatpush.bf16.msrb.mxu3 %v14254_v57  ;;  %v2350_v57 = vunpack.c.h.b16 %v278_v45 }
  0xd3   : > { %8761 = vmatpush.bf16.msrb.mxu0 %v14229_v61  ;;  %v8555_v22 = vpop.f32.mrf.mxu0 }
  0xd4   : > { %8787 = vmatpush.bf16.msrb.mxu2 %v14245_v62  ;;  %v8556_v23 = vadd.f32 %v8555_v22, %v15335_v50  ;;  %v2349_v50 = vunpack.c.l.b16 %v278_v45  ;;  %v14308_v62 = vld [vmem:[%s15138_s25 + $0x778] sm:$0xff]  ;;  %v2471_v1 = vpack.c.b16 %v2350_v57, %v2350_v57  ;;  %v14347_v57 = vld [vmem:[%s15138_s25 + $0x8b0] sm:$0xff] }
  0xd5   : > { %8774 = vmatpush.bf16.msrb.mxu1 %v14237_v4  ;;  %v8568_v26 = vpop.f32.mrf.mxu1  ;;  %v14307_v4 = vld [vmem:[%s15138_s25 + $0x770] sm:$0xff]  ;;  %v14304_v22 = vld [vmem:[%s15138_s25 + $0x758] sm:$0xff] }
  0xd6   : > { %8800 = vmatpush.bf16.msrb.mxu3 %v14253_v5  ;;  %8762 = vmatmul.bf16.vlgmr.msrb.gmra.mxu0 %v2464_v6  ;;  %v8569_v27 = vadd.f32 %v8568_v26, %v8556_v23  ;;  %v2470_v61 = vpack.c.b16 %v2349_v50, %v2349_v50  ;;  %v14323_v5 = vld [vmem:[%s15138_s25 + $0x7f0] sm:$0xff]  ;;  %v14298_v6 = vld [vmem:[%s15138_s25 + $0x728] sm:$0xff]  ;;  %v14320_v23 = vld [vmem:[%s15138_s25 + $0x7d8] sm:$0xff] }
  0xd7   : > { %8806 = vmatpush.bf16.msra.mxu0 %v14268_v63  ;;  %8788 = vmatmul.bf16.vlgmr.msrb.gmra.mxu2 %v2466_v7  ;;  %v14324_v63 = vld [vmem:[%s15138_s25 + $0x7f8] sm:$0xff]  ;;  %v14314_v7 = vld [vmem:[%s15138_s25 + $0x7a8] sm:$0xff] }
  0xd8   : > { %8832 = vmatpush.bf16.msra.mxu2 %v14284_v0  ;;  %8775 = vmatmul.bf16.vlgmr.msrb.gmra.mxu1 %v2465_v10  ;;  %v2469_v0 = vpack.c.b16 %v2348_v56, %v2348_v56  ;;  %v14348_v45 = vld [vmem:[%s15138_s25 + $0x8b8] sm:$0xff]  ;;  %v14331_v56 = vld [vmem:[%s15138_s25 + $0x830] sm:$0xff] }
  0xd9   : > { %8819 = vmatpush.bf16.msra.mxu1 %v14276_v8  ;;  %8801 = vmatmul.bf16.vlgmr.msrb.gmra.mxu3 %v2467_v11  ;;  %v14306_v8 = vld [vmem:[%s15138_s25 + $0x768] sm:$0xff] }
  0xda   : > { %8845 = vmatpush.bf16.msra.mxu3 %v14292_v9  ;;  %v8581_v32 = vpop.f32.mrf.mxu2  ;;  %v14322_v9 = vld [vmem:[%s15138_s25 + $0x7e8] sm:$0xff] }
  0xdb   : > { %8807 = vmatpush.bf16.msra.mxu0 %v14267_v12  ;;  %v8582_v33 = vadd.f32 %v8581_v32, %v8569_v27  ;;  %v8557_v37 = vpop.f32.mrf.mxu0  ;;  %v14297_v12 = vld [vmem:[%s15138_s25 + $0x720] sm:$0xff]  ;;  %v14295_v27 = vld [vmem:[%s15138_s25 + $0x710] sm:$0xff]  ;;  %v14294_v32 = vld [vmem:[%s15138_s25 + $0x708] sm:$0xff] }
  0xdc   : > { %8833 = vmatpush.bf16.msra.mxu2 %v14283_v13  ;;  %v8594_v36 = vpop.f32.mrf.mxu3  ;;  %v14313_v13 = vld [vmem:[%s15138_s25 + $0x7a0] sm:$0xff]  ;;  %v14302_v37 = vld [vmem:[%s15138_s25 + $0x748] sm:$0xff] }
  0xdd   : > { %8820 = vmatpush.bf16.msra.mxu1 %v14275_v14  ;;  %v15370_v38 = vadd.f32 %v8594_v36, %v8582_v33  ;;  %v8570_v41 = vpop.f32.mrf.mxu1  ;;  %v14310_v33 = vld [vmem:[%s15138_s25 + $0x788] sm:$0xff] }
  0xde   : > { %8846 = vmatpush.bf16.msra.mxu3 %v14291_v15 }
  0xdf   : > { %8808 = vmatpush.bf16.msra.mxu0 %v14266_v16  ;;  %v14305_v16 = vld [vmem:[%s15138_s25 + $0x760] sm:$0xff] }
  0xe0   : > { %8834 = vmatpush.bf16.msra.mxu2 %v14282_v17  ;;  %v14321_v17 = vld [vmem:[%s15138_s25 + $0x7e0] sm:$0xff] }
  0xe1   : > { %8821 = vmatpush.bf16.msra.mxu1 %v14274_v18  ;;  %v14296_v18 = vld [vmem:[%s15138_s25 + $0x718] sm:$0xff] }
  0xe2   : > { %8847 = vmatpush.bf16.msra.mxu3 %v14290_v19  ;;  %v8583_v48 = vpop.f32.mrf.mxu2  ;;  %v14312_v19 = vld [vmem:[%s15138_s25 + $0x798] sm:$0xff] }
  0xe3   : > { %8809 = vmatpush.bf16.msra.mxu0 %v14265_v20  ;;  %v14301_v48 = vld [vmem:[%s15138_s25 + $0x740] sm:$0xff] }
  0xe4   : > { %8835 = vmatpush.bf16.msra.mxu2 %v14281_v21  ;;  %v8596_v53 = vpop.f32.mrf.mxu3 }
  0xe5   : > { %8822 = vmatpush.bf16.msra.mxu1 %v14273_v24  ;;  %v14356_v53 = vld [vmem:[%s15138_s25 + $0x8f8] sm:$0xff] }
  0xe6   : > { %8848 = vmatpush.bf16.msra.mxu3 %v14289_v25 }
  0xe7   : > { %8810 = vmatpush.bf16.msra.mxu0 %v14264_v28  ;;  %v14311_v28 = vld [vmem:[%s15138_s25 + $0x790] sm:$0xff] }
  0xe8   : > { %8836 = vmatpush.bf16.msra.mxu2 %v14280_v29 }
  0xe9   : > { %8823 = vmatpush.bf16.msra.mxu1 %v14272_v30  ;;  %v14303_v30 = vld [vmem:[%s15138_s25 + $0x750] sm:$0xff] }
  0xea   : > { %8849 = vmatpush.bf16.msra.mxu3 %v14288_v31  ;;  %v14319_v31 = vld [vmem:[%s15138_s25 + $0x7d0] sm:$0xff] }
  0xeb   : > { %8811 = vmatpush.bf16.msra.mxu0 %v14263_v34  ;;  %v279_v34 = vld [vmem:[%s15133_s21 + $0x70] sm:$0xff] }
  0xec   : > { %8837 = vmatpush.bf16.msra.mxu2 %v14279_v35  ;;  %v280_v35 = vld [vmem:[%s15133_s21 + $0x78] sm:$0xff] }
  0xed   : > { %8824 = vmatpush.bf16.msra.mxu1 %v14271_v39  ;;  %v2353_v41 = vunpack.c.l.b16 %v280_v35 }
  0xee   : > { %8850 = vmatpush.bf16.msra.mxu3 %v14287_v40  ;;  %v2351_v40 = vunpack.c.l.b16 %v279_v34 }
  0xef   : > { %8812 = vmatpush.bf16.msra.mxu0 %v14262_v42  ;;  %v14293_v42 = vld [vmem:[%s15138_s25 + $0x700] sm:$0xff] }
  0xf0   : > { %8838 = vmatpush.bf16.msra.mxu2 %v14278_v43  ;;  %v14309_v43 = vld [vmem:[%s15138_s25 + $0x780] sm:$0xff]  ;;  %v2472_v50 = vpack.c.b16 %v2351_v40, %v2351_v40 }
  0xf1   : > { %8825 = vmatpush.bf16.msra.mxu1 %v14270_v46  ;;  %v2352_v46 = vunpack.c.h.b16 %v279_v34  ;;  %v14364_v34 = vld [vmem:[%s15138_s25 + $0x938] sm:$0xff] }
  0xf2   : > { %8851 = vmatpush.bf16.msra.mxu3 %v14286_v47  ;;  %v2354_v47 = vunpack.c.h.b16 %v280_v35  ;;  %v14380_v35 = vld [vmem:[%s15138_s25 + $0x9b8] sm:$0xff] }
  0xf3   : > { %8813 = vmatpush.bf16.msra.mxu0 %v14261_v51  ;;  %v8607_v10 = vpop.f32.mrf.mxu0  ;;  %v2474_v51 = vpack.c.b16 %v2353_v41, %v2353_v41 }
  0xf4   : > { %8839 = vmatpush.bf16.msra.mxu2 %v14277_v52  ;;  %v8608_v11 = vadd.f32 %v8607_v10, %v15370_v38  ;;  %v14318_v38 = vld [vmem:[%s15138_s25 + $0x7c8] sm:$0xff]  ;;  %v14340_v52 = vld [vmem:[%s15138_s25 + $0x878] sm:$0xff] }
  0xf5   : > { %8826 = vmatpush.bf16.msra.mxu1 %v14269_v58  ;;  %v8620_v14 = vpop.f32.mrf.mxu1  ;;  %v14339_v58 = vld [vmem:[%s15138_s25 + $0x870] sm:$0xff] }
  0xf6   : > { %8852 = vmatpush.bf16.msra.mxu3 %v14285_v59  ;;  %8814 = vmatmul.bf16.vlgmr.msra.gmra.mxu0 %v2468_v60  ;;  %v8621_v15 = vadd.f32 %v8620_v14, %v8608_v11  ;;  %v14355_v59 = vld [vmem:[%s15138_s25 + $0x8f0] sm:$0xff]  ;;  %v14330_v60 = vld [vmem:[%s15138_s25 + $0x828] sm:$0xff] }
  0xf7   : > { %8858 = vmatpush.bf16.msrb.mxu0 %v14300_v54  ;;  %8840 = vmatmul.bf16.vlgmr.msra.gmra.mxu2 %v2470_v61  ;;  %v2473_v54 = vpack.c.b16 %v2352_v46, %v2352_v46  ;;  %v14346_v61 = vld [vmem:[%s15138_s25 + $0x8a8] sm:$0xff]  ;;  %v14363_v46 = vld [vmem:[%s15138_s25 + $0x930] sm:$0xff] }
  0xf8   : > { %8884 = vmatpush.bf16.msrb.mxu2 %v14316_v55  ;;  %8827 = vmatmul.bf16.vlgmr.msra.gmra.mxu1 %v2469_v0  ;;  %v2475_v55 = vpack.c.b16 %v2354_v47, %v2354_v47  ;;  %v14379_v47 = vld [vmem:[%s15138_s25 + $0x9b0] sm:$0xff] }
  0xf9   : > { %8871 = vmatpush.bf16.msrb.mxu1 %v14308_v62  ;;  %8853 = vmatmul.bf16.vlgmr.msra.gmra.mxu3 %v2471_v1  ;;  %v14338_v62 = vld [vmem:[%s15138_s25 + $0x868] sm:$0xff] }
  0xfa   : > { %8897 = vmatpush.bf16.msrb.mxu3 %v14324_v63  ;;  %v8633_v20 = vpop.f32.mrf.mxu2  ;;  %v14354_v63 = vld [vmem:[%s15138_s25 + $0x8e8] sm:$0xff] }
  0xfb   : > { %8859 = vmatpush.bf16.msrb.mxu0 %v14299_v2  ;;  %v8634_v21 = vadd.f32 %v8633_v20, %v8621_v15  ;;  %v8609_v25 = vpop.f32.mrf.mxu0  ;;  %v14329_v2 = vld [vmem:[%s15138_s25 + $0x820] sm:$0xff]  ;;  %v14335_v20 = vld [vmem:[%s15138_s25 + $0x850] sm:$0xff] }
  0xfc   : > { %8885 = vmatpush.bf16.msrb.mxu2 %v14315_v3  ;;  %v8646_v24 = vpop.f32.mrf.mxu3  ;;  %v14345_v3 = vld [vmem:[%s15138_s25 + $0x8a0] sm:$0xff]  ;;  %v282_v25 = vld [vmem:[%s15133_s21 + $0x88] sm:$0xff] }
  0xfd   : > { %8872 = vmatpush.bf16.msrb.mxu1 %v14307_v4  ;;  %v15405_v26 = vadd.f32 %v8646_v24, %v8634_v21  ;;  %v8622_v29 = vpop.f32.mrf.mxu1  ;;  %v14351_v21 = vld [vmem:[%s15138_s25 + $0x8d0] sm:$0xff]  ;;  %v281_v24 = vld [vmem:[%s15133_s21 + $0x80] sm:$0xff] }
  0xfe   : > { %8898 = vmatpush.bf16.msrb.mxu3 %v14323_v5 }
  0xff   : > { %8860 = vmatpush.bf16.msrb.mxu0 %v14298_v6  ;;  %v14337_v6 = vld [vmem:[%s15138_s25 + $0x860] sm:$0xff] }
 0x100   : > { %8886 = vmatpush.bf16.msrb.mxu2 %v14314_v7  ;;  %v14353_v7 = vld [vmem:[%s15138_s25 + $0x8e0] sm:$0xff] }
 0x101   : > { %8873 = vmatpush.bf16.msrb.mxu1 %v14306_v8  ;;  %v14328_v8 = vld [vmem:[%s15138_s25 + $0x818] sm:$0xff] }
 0x102   : > { %8899 = vmatpush.bf16.msrb.mxu3 %v14322_v9  ;;  %v8635_v36 = vpop.f32.mrf.mxu2  ;;  %v14344_v9 = vld [vmem:[%s15138_s25 + $0x898] sm:$0xff] }
 0x103   : > { %8861 = vmatpush.bf16.msrb.mxu0 %v14297_v12  ;;  %v14336_v12 = vld [vmem:[%s15138_s25 + $0x858] sm:$0xff]  ;;  %v2356_v36 = vunpack.c.h.b16 %v281_v24 }
 0x104   : > { %8887 = vmatpush.bf16.msrb.mxu2 %v14313_v13  ;;  %v8648_v39 = vpop.f32.mrf.mxu3  ;;  %v14352_v13 = vld [vmem:[%s15138_s25 + $0x8d8] sm:$0xff] }
 0x105   : > { %8874 = vmatpush.bf16.msrb.mxu1 %v14305_v16  ;;  %v14349_v39 = vld [vmem:[%s15138_s25 + $0x8c0] sm:$0xff] }
 0x106   : > { %8900 = vmatpush.bf16.msrb.mxu3 %v14321_v17  ;;  %v14327_v17 = vld [vmem:[%s15138_s25 + $0x810] sm:$0xff] }
 0x107   : > { %8862 = vmatpush.bf16.msrb.mxu0 %v14296_v18  ;;  %v14343_v18 = vld [vmem:[%s15138_s25 + $0x890] sm:$0xff] }
 0x108   : > { %8888 = vmatpush.bf16.msrb.mxu2 %v14312_v19 }
 0x109   : > { %8875 = vmatpush.bf16.msrb.mxu1 %v14304_v22  ;;  %v14326_v22 = vld [vmem:[%s15138_s25 + $0x808] sm:$0xff] }
 0x10a   : > { %8901 = vmatpush.bf16.msrb.mxu3 %v14320_v23  ;;  %v14342_v23 = vld [vmem:[%s15138_s25 + $0x888] sm:$0xff] }
 0x10b   : > { %8863 = vmatpush.bf16.msrb.mxu0 %v14295_v27  ;;  %v14334_v27 = vld [vmem:[%s15138_s25 + $0x848] sm:$0xff] }
 0x10c   : > { %8889 = vmatpush.bf16.msrb.mxu2 %v14311_v28  ;;  %v14350_v28 = vld [vmem:[%s15138_s25 + $0x8c8] sm:$0xff] }
 0x10d   : > { %8876 = vmatpush.bf16.msrb.mxu1 %v14303_v30  ;;  %v2355_v30 = vunpack.c.l.b16 %v281_v24  ;;  %v14396_v24 = vld [vmem:[%s15138_s25 + $0xa38] sm:$0xff] }
 0x10e   : > { %8902 = vmatpush.bf16.msrb.mxu3 %v14319_v31  ;;  %v2357_v31 = vunpack.c.l.b16 %v282_v25 }
 0x10f   : > { %8864 = vmatpush.bf16.msrb.mxu0 %v14294_v32  ;;  %v14325_v32 = vld [vmem:[%s15138_s25 + $0x800] sm:$0xff]  ;;  %v2476_v40 = vpack.c.b16 %v2355_v30, %v2355_v30 }
 0x110   : > { %8890 = vmatpush.bf16.msrb.mxu2 %v14310_v33  ;;  %v14341_v33 = vld [vmem:[%s15138_s25 + $0x880] sm:$0xff]  ;;  %v2478_v41 = vpack.c.b16 %v2357_v31, %v2357_v31 }
 0x111   : > { %8877 = vmatpush.bf16.msrb.mxu1 %v14302_v37  ;;  %v2358_v37 = vunpack.c.h.b16 %v282_v25  ;;  %v14412_v25 = vld [vmem:[%s15138_s25 + $0xab8] sm:$0xff] }
 0x112   : > { %8903 = vmatpush.bf16.msrb.mxu3 %v14318_v38  ;;  %v14333_v38 = vld [vmem:[%s15138_s25 + $0x840] sm:$0xff] }
 0x113   : > { %8865 = vmatpush.bf16.msrb.mxu0 %v14293_v42  ;;  %v8659_v0 = vpop.f32.mrf.mxu0  ;;  %v14372_v42 = vld [vmem:[%s15138_s25 + $0x978] sm:$0xff] }
 0x114   : > { %8891 = vmatpush.bf16.msrb.mxu2 %v14309_v43  ;;  %v8660_v1 = vadd.f32 %v8659_v0, %v15405_v26  ;;  %v14388_v43 = vld [vmem:[%s15138_s25 + $0x9f8] sm:$0xff] }
 0x115   : > { %8878 = vmatpush.bf16.msrb.mxu1 %v14301_v48  ;;  %v8672_v4 = vpop.f32.mrf.mxu1  ;;  %v14371_v48 = vld [vmem:[%s15138_s25 + $0x970] sm:$0xff] }
 0x116   : > { %8904 = vmatpush.bf16.msrb.mxu3 %v14317_v49  ;;  %8866 = vmatmul.bf16.vlgmr.msrb.gmra.mxu0 %v2472_v50  ;;  %v8673_v5 = vadd.f32 %v8672_v4, %v8660_v1  ;;  %v14387_v49 = vld [vmem:[%s15138_s25 + $0x9f0] sm:$0xff]  ;;  %v14362_v50 = vld [vmem:[%s15138_s25 + $0x928] sm:$0xff] }
 0x117   : > { %8910 = vmatpush.bf16.msra.mxu0 %v14332_v44  ;;  %8892 = vmatmul.bf16.vlgmr.msrb.gmra.mxu2 %v2474_v51  ;;  %v2477_v44 = vpack.c.b16 %v2356_v36, %v2356_v36  ;;  %v14378_v51 = vld [vmem:[%s15138_s25 + $0x9a8] sm:$0xff]  ;;  %v14395_v36 = vld [vmem:[%s15138_s25 + $0xa30] sm:$0xff] }
 0x118   : > { %8936 = vmatpush.bf16.msra.mxu2 %v14348_v45  ;;  %8879 = vmatmul.bf16.vlgmr.msrb.gmra.mxu1 %v2473_v54  ;;  %v2479_v45 = vpack.c.b16 %v2358_v37, %v2358_v37  ;;  %v14411_v37 = vld [vmem:[%s15138_s25 + $0xab0] sm:$0xff] }
 0x119   : > { %8923 = vmatpush.bf16.msra.mxu1 %v14340_v52  ;;  %8905 = vmatmul.bf16.vlgmr.msrb.gmra.mxu3 %v2475_v55  ;;  %v14370_v52 = vld [vmem:[%s15138_s25 + $0x968] sm:$0xff] }
 0x11a   : > { %8949 = vmatpush.bf16.msra.mxu3 %v14356_v53  ;;  %v8685_v10 = vpop.f32.mrf.mxu2  ;;  %v14386_v53 = vld [vmem:[%s15138_s25 + $0x9e8] sm:$0xff] }
 0x11b   : > { %8911 = vmatpush.bf16.msra.mxu0 %v14331_v56  ;;  %v8686_v11 = vadd.f32 %v8685_v10, %v8673_v5  ;;  %v8661_v15 = vpop.f32.mrf.mxu0  ;;  %v14361_v56 = vld [vmem:[%s15138_s25 + $0x920] sm:$0xff]  ;;  %v14367_v10 = vld [vmem:[%s15138_s25 + $0x950] sm:$0xff] }
 0x11c   : > { %8937 = vmatpush.bf16.msra.mxu2 %v14347_v57  ;;  %v8698_v14 = vpop.f32.mrf.mxu3  ;;  %v14377_v57 = vld [vmem:[%s15138_s25 + $0x9a0] sm:$0xff]  ;;  %v284_v15 = vld [vmem:[%s15133_s21 + $0x98] sm:$0xff] }
 0x11d   : > { %8924 = vmatpush.bf16.msra.mxu1 %v14339_v58  ;;  %v15442_v16 = vadd.f32 %v8698_v14, %v8686_v11  ;;  %v8674_v19 = vpop.f32.mrf.mxu1  ;;  %v14383_v11 = vld [vmem:[%s15138_s25 + $0x9d0] sm:$0xff] }
 0x11e   : > { %8950 = vmatpush.bf16.msra.mxu3 %v14355_v59  ;;  %v283_v14 = vld [vmem:[%s15133_s21 + $0x90] sm:$0xff] }
 0x11f   : > { %8912 = vmatpush.bf16.msra.mxu0 %v14330_v60  ;;  %v14369_v60 = vld [vmem:[%s15138_s25 + $0x960] sm:$0xff] }
 0x120   : > { %8938 = vmatpush.bf16.msra.mxu2 %v14346_v61  ;;  %v14385_v61 = vld [vmem:[%s15138_s25 + $0x9e0] sm:$0xff] }
 0x121   : > { %8925 = vmatpush.bf16.msra.mxu1 %v14338_v62  ;;  %v14360_v62 = vld [vmem:[%s15138_s25 + $0x918] sm:$0xff] }
 0x122   : > { %8951 = vmatpush.bf16.msra.mxu3 %v14354_v63  ;;  %v8687_v26 = vpop.f32.mrf.mxu2  ;;  %v14376_v63 = vld [vmem:[%s15138_s25 + $0x998] sm:$0xff] }
 0x123   : > { %8913 = vmatpush.bf16.msra.mxu0 %v14329_v2  ;;  %v14368_v2 = vld [vmem:[%s15138_s25 + $0x958] sm:$0xff]  ;;  %v2360_v26 = vunpack.c.h.b16 %v283_v14 }
 0x124   : > { %8939 = vmatpush.bf16.msra.mxu2 %v14345_v3  ;;  %v8700_v29 = vpop.f32.mrf.mxu3  ;;  %v14384_v3 = vld [vmem:[%s15138_s25 + $0x9d8] sm:$0xff] }
 0x125   : > { %8926 = vmatpush.bf16.msra.mxu1 %v14337_v6  ;;  %v14381_v29 = vld [vmem:[%s15138_s25 + $0x9c0] sm:$0xff] }
 0x126   : > { %8952 = vmatpush.bf16.msra.mxu3 %v14353_v7  ;;  %v14359_v7 = vld [vmem:[%s15138_s25 + $0x910] sm:$0xff] }
 0x127   : > { %8914 = vmatpush.bf16.msra.mxu0 %v14328_v8  ;;  %v14375_v8 = vld [vmem:[%s15138_s25 + $0x990] sm:$0xff] }
 0x128   : > { %8940 = vmatpush.bf16.msra.mxu2 %v14344_v9 }
 0x129   : > { %8927 = vmatpush.bf16.msra.mxu1 %v14336_v12  ;;  %v14358_v12 = vld [vmem:[%s15138_s25 + $0x908] sm:$0xff] }
 0x12a   : > { %8953 = vmatpush.bf16.msra.mxu3 %v14352_v13  ;;  %v14374_v13 = vld [vmem:[%s15138_s25 + $0x988] sm:$0xff] }
 0x12b   : > { %8915 = vmatpush.bf16.msra.mxu0 %v14327_v17  ;;  %v14366_v17 = vld [vmem:[%s15138_s25 + $0x948] sm:$0xff] }
 0x12c   : > { %8941 = vmatpush.bf16.msra.mxu2 %v14343_v18  ;;  %v14382_v18 = vld [vmem:[%s15138_s25 + $0x9c8] sm:$0xff] }
 0x12d   : > { %8928 = vmatpush.bf16.msra.mxu1 %v14335_v20  ;;  %v2359_v20 = vunpack.c.l.b16 %v283_v14  ;;  %v14428_v14 = vld [vmem:[%s15138_s25 + $0xb38] sm:$0xff] }
 0x12e   : > { %8954 = vmatpush.bf16.msra.mxu3 %v14351_v21  ;;  %v2361_v21 = vunpack.c.l.b16 %v284_v15 }
 0x12f   : > { %8916 = vmatpush.bf16.msra.mxu0 %v14326_v22  ;;  %v14357_v22 = vld [vmem:[%s15138_s25 + $0x900] sm:$0xff]  ;;  %v2480_v30 = vpack.c.b16 %v2359_v20, %v2359_v20 }
 0x130   : > { %8942 = vmatpush.bf16.msra.mxu2 %v14342_v23  ;;  %v14373_v23 = vld [vmem:[%s15138_s25 + $0x980] sm:$0xff]  ;;  %v2482_v31 = vpack.c.b16 %v2361_v21, %v2361_v21 }
 0x131   : > { %8929 = vmatpush.bf16.msra.mxu1 %v14334_v27  ;;  %v2362_v27 = vunpack.c.h.b16 %v284_v15  ;;  %v14444_v15 = vld [vmem:[%s15138_s25 + $0xbb8] sm:$0xff] }
 0x132   : > { %8955 = vmatpush.bf16.msra.mxu3 %v14350_v28  ;;  %v14365_v28 = vld [vmem:[%s15138_s25 + $0x940] sm:$0xff] }
 0x133   : > { %8917 = vmatpush.bf16.msra.mxu0 %v14325_v32  ;;  %v8711_v54 = vpop.f32.mrf.mxu0  ;;  %v14404_v32 = vld [vmem:[%s15138_s25 + $0xa78] sm:$0xff] }
 0x134   : > { %8943 = vmatpush.bf16.msra.mxu2 %v14341_v33  ;;  %v8712_v55 = vadd.f32 %v8711_v54, %v15442_v16  ;;  %v14420_v33 = vld [vmem:[%s15138_s25 + $0xaf8] sm:$0xff] }
 0x135   : > { %8930 = vmatpush.bf16.msra.mxu1 %v14333_v38  ;;  %v8724_v58 = vpop.f32.mrf.mxu1  ;;  %v14403_v38 = vld [vmem:[%s15138_s25 + $0xa70] sm:$0xff] }
 0x136   : > { %8956 = vmatpush.bf16.msra.mxu3 %v14349_v39  ;;  %8918 = vmatmul.bf16.vlgmr.msra.gmra.mxu0 %v2476_v40  ;;  %v8725_v59 = vadd.f32 %v8724_v58, %v8712_v55  ;;  %v14419_v39 = vld [vmem:[%s15138_s25 + $0xaf0] sm:$0xff]  ;;  %v14394_v40 = vld [vmem:[%s15138_s25 + $0xa28] sm:$0xff] }
 0x137   : > { %8962 = vmatpush.bf16.msrb.mxu0 %v14364_v34  ;;  %8944 = vmatmul.bf16.vlgmr.msra.gmra.mxu2 %v2478_v41  ;;  %v2481_v34 = vpack.c.b16 %v2360_v26, %v2360_v26  ;;  %v14410_v41 = vld [vmem:[%s15138_s25 + $0xaa8] sm:$0xff]  ;;  %v14427_v26 = vld [vmem:[%s15138_s25 + $0xb30] sm:$0xff] }
 0x138   : > { %8988 = vmatpush.bf16.msrb.mxu2 %v14380_v35  ;;  %8931 = vmatmul.bf16.vlgmr.msra.gmra.mxu1 %v2477_v44  ;;  %v2483_v35 = vpack.c.b16 %v2362_v27, %v2362_v27  ;;  %v14443_v27 = vld [vmem:[%s15138_s25 + $0xbb0] sm:$0xff] }
 0x139   : > { %8975 = vmatpush.bf16.msrb.mxu1 %v14372_v42  ;;  %8957 = vmatmul.bf16.vlgmr.msra.gmra.mxu3 %v2479_v45  ;;  %v14402_v42 = vld [vmem:[%s15138_s25 + $0xa68] sm:$0xff] }
 0x13a   : > { %9001 = vmatpush.bf16.msrb.mxu3 %v14388_v43  ;;  %v8737_v0 = vpop.f32.mrf.mxu2  ;;  %v14418_v43 = vld [vmem:[%s15138_s25 + $0xae8] sm:$0xff] }
 0x13b   : > { %8963 = vmatpush.bf16.msrb.mxu0 %v14363_v46  ;;  %v8738_v1 = vadd.f32 %v8737_v0, %v8725_v59  ;;  %v8713_v5 = vpop.f32.mrf.mxu0  ;;  %v14393_v46 = vld [vmem:[%s15138_s25 + $0xa20] sm:$0xff]  ;;  %v14399_v0 = vld [vmem:[%s15138_s25 + $0xa50] sm:$0xff] }
 0x13c   : > { %8989 = vmatpush.bf16.msrb.mxu2 %v14379_v47  ;;  %v8750_v4 = vpop.f32.mrf.mxu3  ;;  %v14409_v47 = vld [vmem:[%s15138_s25 + $0xaa0] sm:$0xff]  ;;  %v286_v5 = vld [vmem:[%s15133_s21 + $0xa8] sm:$0xff] }
 0x13d   : > { %8976 = vmatpush.bf16.msrb.mxu1 %v14371_v48  ;;  %v15479_v6 = vadd.f32 %v8750_v4, %v8738_v1  ;;  %v8726_v9 = vpop.f32.mrf.mxu1  ;;  %v14415_v1 = vld [vmem:[%s15138_s25 + $0xad0] sm:$0xff]  ;;  %v285_v4 = vld [vmem:[%s15133_s21 + $0xa0] sm:$0xff] }
 0x13e   : > { %9002 = vmatpush.bf16.msrb.mxu3 %v14387_v49 }
 0x13f   : > { %8964 = vmatpush.bf16.msrb.mxu0 %v14362_v50  ;;  %v14401_v50 = vld [vmem:[%s15138_s25 + $0xa60] sm:$0xff] }
 0x140   : > { %8990 = vmatpush.bf16.msrb.mxu2 %v14378_v51  ;;  %v14417_v51 = vld [vmem:[%s15138_s25 + $0xae0] sm:$0xff] }
 0x141   : > { %8977 = vmatpush.bf16.msrb.mxu1 %v14370_v52  ;;  %v14392_v52 = vld [vmem:[%s15138_s25 + $0xa18] sm:$0xff] }
 0x142   : > { %9003 = vmatpush.bf16.msrb.mxu3 %v14386_v53  ;;  %v8739_v16 = vpop.f32.mrf.mxu2  ;;  %v14408_v53 = vld [vmem:[%s15138_s25 + $0xa98] sm:$0xff] }
 0x143   : > { %8965 = vmatpush.bf16.msrb.mxu0 %v14361_v56  ;;  %v14400_v56 = vld [vmem:[%s15138_s25 + $0xa58] sm:$0xff]  ;;  %v2364_v16 = vunpack.c.h.b16 %v285_v4 }
 0x144   : > { %8991 = vmatpush.bf16.msrb.mxu2 %v14377_v57  ;;  %v8752_v19 = vpop.f32.mrf.mxu3  ;;  %v14416_v57 = vld [vmem:[%s15138_s25 + $0xad8] sm:$0xff] }
 0x145   : > { %8978 = vmatpush.bf16.msrb.mxu1 %v14369_v60  ;;  %v14413_v19 = vld [vmem:[%s15138_s25 + $0xac0] sm:$0xff] }
 0x146   : > { %9004 = vmatpush.bf16.msrb.mxu3 %v14385_v61  ;;  %v14391_v61 = vld [vmem:[%s15138_s25 + $0xa10] sm:$0xff] }
 0x147   : > { %8966 = vmatpush.bf16.msrb.mxu0 %v14360_v62  ;;  %v14407_v62 = vld [vmem:[%s15138_s25 + $0xa90] sm:$0xff] }
 0x148   : > { %8992 = vmatpush.bf16.msrb.mxu2 %v14376_v63 }
 0x149   : > { %8979 = vmatpush.bf16.msrb.mxu1 %v14368_v2  ;;  %v14390_v2 = vld [vmem:[%s15138_s25 + $0xa08] sm:$0xff] }
 0x14a   : > { %9005 = vmatpush.bf16.msrb.mxu3 %v14384_v3  ;;  %v14406_v3 = vld [vmem:[%s15138_s25 + $0xa88] sm:$0xff] }
 0x14b   : > { %8967 = vmatpush.bf16.msrb.mxu0 %v14359_v7  ;;  %v14398_v7 = vld [vmem:[%s15138_s25 + $0xa48] sm:$0xff] }
 0x14c   : > { %8993 = vmatpush.bf16.msrb.mxu2 %v14375_v8  ;;  %v14414_v8 = vld [vmem:[%s15138_s25 + $0xac8] sm:$0xff] }
 0x14d   : > { %8980 = vmatpush.bf16.msrb.mxu1 %v14367_v10  ;;  %v2363_v10 = vunpack.c.l.b16 %v285_v4  ;;  %v14460_v4 = vld [vmem:[%s15138_s25 + $0xc38] sm:$0xff] }
 0x14e   : > { %9006 = vmatpush.bf16.msrb.mxu3 %v14383_v11  ;;  %v2365_v11 = vunpack.c.l.b16 %v286_v5 }
 0x14f   : > { %8968 = vmatpush.bf16.msrb.mxu0 %v14358_v12  ;;  %v14389_v12 = vld [vmem:[%s15138_s25 + $0xa00] sm:$0xff]  ;;  %v2484_v20 = vpack.c.b16 %v2363_v10, %v2363_v10 }
 0x150   : > { %8994 = vmatpush.bf16.msrb.mxu2 %v14374_v13  ;;  %v14405_v13 = vld [vmem:[%s15138_s25 + $0xa80] sm:$0xff]  ;;  %v2486_v21 = vpack.c.b16 %v2365_v11, %v2365_v11 }
 0x151   : > { %8981 = vmatpush.bf16.msrb.mxu1 %v14366_v17  ;;  %v2366_v17 = vunpack.c.h.b16 %v286_v5  ;;  %v14476_v5 = vld [vmem:[%s15138_s25 + $0xcb8] sm:$0xff] }
 0x152   : > { %9007 = vmatpush.bf16.msrb.mxu3 %v14382_v18  ;;  %v14397_v18 = vld [vmem:[%s15138_s25 + $0xa40] sm:$0xff] }
 0x153   : > { %8969 = vmatpush.bf16.msrb.mxu0 %v14357_v22  ;;  %v8763_v44 = vpop.f32.mrf.mxu0  ;;  %v14436_v22 = vld [vmem:[%s15138_s25 + $0xb78] sm:$0xff] }
 0x154   : > { %8995 = vmatpush.bf16.msrb.mxu2 %v14373_v23  ;;  %v8764_v45 = vadd.f32 %v8763_v44, %v15479_v6  ;;  %v14452_v23 = vld [vmem:[%s15138_s25 + $0xbf8] sm:$0xff] }
 0x155   : > { %8982 = vmatpush.bf16.msrb.mxu1 %v14365_v28  ;;  %v8776_v48 = vpop.f32.mrf.mxu1  ;;  %v14435_v28 = vld [vmem:[%s15138_s25 + $0xb70] sm:$0xff] }
 0x156   : > { %9008 = vmatpush.bf16.msrb.mxu3 %v14381_v29  ;;  %8970 = vmatmul.bf16.vlgmr.msrb.gmra.mxu0 %v2480_v30  ;;  %v8777_v49 = vadd.f32 %v8776_v48, %v8764_v45  ;;  %v14451_v29 = vld [vmem:[%s15138_s25 + $0xbf0] sm:$0xff]  ;;  %v14426_v30 = vld [vmem:[%s15138_s25 + $0xb28] sm:$0xff] }
 0x157   : > { %9014 = vmatpush.bf16.msra.mxu0 %v14396_v24  ;;  %8996 = vmatmul.bf16.vlgmr.msrb.gmra.mxu2 %v2482_v31  ;;  %v2485_v24 = vpack.c.b16 %v2364_v16, %v2364_v16  ;;  %v14442_v31 = vld [vmem:[%s15138_s25 + $0xba8] sm:$0xff]  ;;  %v14459_v16 = vld [vmem:[%s15138_s25 + $0xc30] sm:$0xff] }
 0x158   : > { %9040 = vmatpush.bf16.msra.mxu2 %v14412_v25  ;;  %8983 = vmatmul.bf16.vlgmr.msrb.gmra.mxu1 %v2481_v34  ;;  %v2487_v25 = vpack.c.b16 %v2366_v17, %v2366_v17  ;;  %v14475_v17 = vld [vmem:[%s15138_s25 + $0xcb0] sm:$0xff] }
 0x159   : > { %9027 = vmatpush.bf16.msra.mxu1 %v14404_v32  ;;  %9009 = vmatmul.bf16.vlgmr.msrb.gmra.mxu3 %v2483_v35  ;;  %v14434_v32 = vld [vmem:[%s15138_s25 + $0xb68] sm:$0xff] }
 0x15a   : > { %9053 = vmatpush.bf16.msra.mxu3 %v14420_v33  ;;  %v8789_v54 = vpop.f32.mrf.mxu2  ;;  %v14450_v33 = vld [vmem:[%s15138_s25 + $0xbe8] sm:$0xff] }
 0x15b   : > { %9015 = vmatpush.bf16.msra.mxu0 %v14395_v36  ;;  %v8790_v55 = vadd.f32 %v8789_v54, %v8777_v49  ;;  %v8765_v59 = vpop.f32.mrf.mxu0  ;;  %v14425_v36 = vld [vmem:[%s15138_s25 + $0xb20] sm:$0xff]  ;;  %v14431_v54 = vld [vmem:[%s15138_s25 + $0xb50] sm:$0xff] }
 0x15c   : > { %9041 = vmatpush.bf16.msra.mxu2 %v14411_v37  ;;  %v8802_v58 = vpop.f32.mrf.mxu3  ;;  %v14441_v37 = vld [vmem:[%s15138_s25 + $0xba0] sm:$0xff]  ;;  %v288_v59 = vld [vmem:[%s15133_s21 + $0xb8] sm:$0xff] }
 0x15d   : > { %9028 = vmatpush.bf16.msra.mxu1 %v14403_v38  ;;  %v15516_v60 = vadd.f32 %v8802_v58, %v8790_v55  ;;  %v8778_v63 = vpop.f32.mrf.mxu1  ;;  %v14447_v55 = vld [vmem:[%s15138_s25 + $0xbd0] sm:$0xff] }
 0x15e   : > { %9054 = vmatpush.bf16.msra.mxu3 %v14419_v39  ;;  %v287_v58 = vld [vmem:[%s15133_s21 + $0xb0] sm:$0xff] }
 0x15f   : > { %9016 = vmatpush.bf16.msra.mxu0 %v14394_v40  ;;  %v14433_v40 = vld [vmem:[%s15138_s25 + $0xb60] sm:$0xff] }
 0x160   : > { %9042 = vmatpush.bf16.msra.mxu2 %v14410_v41  ;;  %v14449_v41 = vld [vmem:[%s15138_s25 + $0xbe0] sm:$0xff] }
 0x161   : > { %9029 = vmatpush.bf16.msra.mxu1 %v14402_v42  ;;  %v14424_v42 = vld [vmem:[%s15138_s25 + $0xb18] sm:$0xff] }
 0x162   : > { %9055 = vmatpush.bf16.msra.mxu3 %v14418_v43  ;;  %v8791_v6 = vpop.f32.mrf.mxu2  ;;  %v14440_v43 = vld [vmem:[%s15138_s25 + $0xb98] sm:$0xff] }
 0x163   : > { %9017 = vmatpush.bf16.msra.mxu0 %v14393_v46  ;;  %v14432_v46 = vld [vmem:[%s15138_s25 + $0xb58] sm:$0xff]  ;;  %v2368_v6 = vunpack.c.h.b16 %v287_v58 }
 0x164   : > { %9043 = vmatpush.bf16.msra.mxu2 %v14409_v47  ;;  %v8804_v9 = vpop.f32.mrf.mxu3  ;;  %v14448_v47 = vld [vmem:[%s15138_s25 + $0xbd8] sm:$0xff] }
 0x165   : > { %9030 = vmatpush.bf16.msra.mxu1 %v14401_v50  ;;  %v14445_v9 = vld [vmem:[%s15138_s25 + $0xbc0] sm:$0xff] }
 0x166   : > { %9056 = vmatpush.bf16.msra.mxu3 %v14417_v51  ;;  %v14423_v51 = vld [vmem:[%s15138_s25 + $0xb10] sm:$0xff] }
 0x167   : > { %9018 = vmatpush.bf16.msra.mxu0 %v14392_v52  ;;  %v14439_v52 = vld [vmem:[%s15138_s25 + $0xb90] sm:$0xff] }
 0x168   : > { %9044 = vmatpush.bf16.msra.mxu2 %v14408_v53 }
 0x169   : > { %9031 = vmatpush.bf16.msra.mxu1 %v14400_v56  ;;  %v14422_v56 = vld [vmem:[%s15138_s25 + $0xb08] sm:$0xff] }
 0x16a   : > { %9057 = vmatpush.bf16.msra.mxu3 %v14416_v57  ;;  %v14438_v57 = vld [vmem:[%s15138_s25 + $0xb88] sm:$0xff] }
 0x16b   : > { %9019 = vmatpush.bf16.msra.mxu0 %v14391_v61  ;;  %v14430_v61 = vld [vmem:[%s15138_s25 + $0xb48] sm:$0xff] }
 0x16c   : > { %9045 = vmatpush.bf16.msra.mxu2 %v14407_v62  ;;  %v14446_v62 = vld [vmem:[%s15138_s25 + $0xbc8] sm:$0xff] }
 0x16d   : > { %9032 = vmatpush.bf16.msra.mxu1 %v14399_v0  ;;  %v2367_v0 = vunpack.c.l.b16 %v287_v58  ;;  %v14492_v58 = vld [vmem:[%s15138_s25 + $0xd38] sm:$0xff] }
 0x16e   : > { %9058 = vmatpush.bf16.msra.mxu3 %v14415_v1  ;;  %v2369_v1 = vunpack.c.l.b16 %v288_v59 }
 0x16f   : > { %9020 = vmatpush.bf16.msra.mxu0 %v14390_v2  ;;  %v14421_v2 = vld [vmem:[%s15138_s25 + $0xb00] sm:$0xff]  ;;  %v2488_v10 = vpack.c.b16 %v2367_v0, %v2367_v0 }
 0x170   : > { %9046 = vmatpush.bf16.msra.mxu2 %v14406_v3  ;;  %v14437_v3 = vld [vmem:[%s15138_s25 + $0xb80] sm:$0xff]  ;;  %v2490_v11 = vpack.c.b16 %v2369_v1, %v2369_v1 }
 0x171   : > { %9033 = vmatpush.bf16.msra.mxu1 %v14398_v7  ;;  %v2370_v7 = vunpack.c.h.b16 %v288_v59  ;;  %v14508_v59 = vld [vmem:[%s15138_s25 + $0xdb8] sm:$0xff] }
 0x172   : > { %9059 = vmatpush.bf16.msra.mxu3 %v14414_v8  ;;  %v14429_v8 = vld [vmem:[%s15138_s25 + $0xb40] sm:$0xff] }
 0x173   : > { %9021 = vmatpush.bf16.msra.mxu0 %v14389_v12  ;;  %v8815_v34 = vpop.f32.mrf.mxu0  ;;  %v14468_v12 = vld [vmem:[%s15138_s25 + $0xc78] sm:$0xff] }
 0x174   : > { %9047 = vmatpush.bf16.msra.mxu2 %v14405_v13  ;;  %v8816_v35 = vadd.f32 %v8815_v34, %v15516_v60  ;;  %v14484_v13 = vld [vmem:[%s15138_s25 + $0xcf8] sm:$0xff] }
 0x175   : > { %9034 = vmatpush.bf16.msra.mxu1 %v14397_v18  ;;  %v8828_v38 = vpop.f32.mrf.mxu1  ;;  %v14467_v18 = vld [vmem:[%s15138_s25 + $0xc70] sm:$0xff] }
 0x176   : > { %9060 = vmatpush.bf16.msra.mxu3 %v14413_v19  ;;  %9022 = vmatmul.bf16.vlgmr.msra.gmra.mxu0 %v2484_v20  ;;  %v8829_v39 = vadd.f32 %v8828_v38, %v8816_v35  ;;  %v14483_v19 = vld [vmem:[%s15138_s25 + $0xcf0] sm:$0xff]  ;;  %v14458_v20 = vld [vmem:[%s15138_s25 + $0xc28] sm:$0xff] }
 0x177   : > { %9066 = vmatpush.bf16.msrb.mxu0 %v14428_v14  ;;  %9048 = vmatmul.bf16.vlgmr.msra.gmra.mxu2 %v2486_v21  ;;  %v2489_v14 = vpack.c.b16 %v2368_v6, %v2368_v6  ;;  %v14474_v21 = vld [vmem:[%s15138_s25 + $0xca8] sm:$0xff]  ;;  %v14491_v6 = vld [vmem:[%s15138_s25 + $0xd30] sm:$0xff] }
 0x178   : > { %9092 = vmatpush.bf16.msrb.mxu2 %v14444_v15  ;;  %9035 = vmatmul.bf16.vlgmr.msra.gmra.mxu1 %v2485_v24  ;;  %v2491_v15 = vpack.c.b16 %v2370_v7, %v2370_v7  ;;  %v14507_v7 = vld [vmem:[%s15138_s25 + $0xdb0] sm:$0xff] }
 0x179   : > { %9079 = vmatpush.bf16.msrb.mxu1 %v14436_v22  ;;  %9061 = vmatmul.bf16.vlgmr.msra.gmra.mxu3 %v2487_v25  ;;  %v14466_v22 = vld [vmem:[%s15138_s25 + $0xc68] sm:$0xff] }
 0x17a   : > { %9105 = vmatpush.bf16.msrb.mxu3 %v14452_v23  ;;  %v8841_v44 = vpop.f32.mrf.mxu2  ;;  %v14482_v23 = vld [vmem:[%s15138_s25 + $0xce8] sm:$0xff] }
 0x17b   : > { %9067 = vmatpush.bf16.msrb.mxu0 %v14427_v26  ;;  %v8842_v45 = vadd.f32 %v8841_v44, %v8829_v39  ;;  %v8817_v49 = vpop.f32.mrf.mxu0  ;;  %v14457_v26 = vld [vmem:[%s15138_s25 + $0xc20] sm:$0xff]  ;;  %v14463_v44 = vld [vmem:[%s15138_s25 + $0xc50] sm:$0xff] }
 0x17c   : > { %9093 = vmatpush.bf16.msrb.mxu2 %v14443_v27  ;;  %v8854_v48 = vpop.f32.mrf.mxu3  ;;  %v14473_v27 = vld [vmem:[%s15138_s25 + $0xca0] sm:$0xff]  ;;  %v290_v49 = vld [vmem:[%s15133_s21 + $0xc8] sm:$0xff] }
 0x17d   : > { %9080 = vmatpush.bf16.msrb.mxu1 %v14435_v28  ;;  %v15553_v50 = vadd.f32 %v8854_v48, %v8842_v45  ;;  %v8830_v53 = vpop.f32.mrf.mxu1  ;;  %v14479_v45 = vld [vmem:[%s15138_s25 + $0xcd0] sm:$0xff]  ;;  %v289_v48 = vld [vmem:[%s15133_s21 + $0xc0] sm:$0xff] }
 0x17e   : > { %9106 = vmatpush.bf16.msrb.mxu3 %v14451_v29 }
 0x17f   : > { %9068 = vmatpush.bf16.msrb.mxu0 %v14426_v30  ;;  %v14465_v30 = vld [vmem:[%s15138_s25 + $0xc60] sm:$0xff] }
 0x180   : > { %9094 = vmatpush.bf16.msrb.mxu2 %v14442_v31  ;;  %v14481_v31 = vld [vmem:[%s15138_s25 + $0xce0] sm:$0xff] }
 0x181   : > { %9081 = vmatpush.bf16.msrb.mxu1 %v14434_v32  ;;  %v14456_v32 = vld [vmem:[%s15138_s25 + $0xc18] sm:$0xff] }
 0x182   : > { %9107 = vmatpush.bf16.msrb.mxu3 %v14450_v33  ;;  %v8843_v60 = vpop.f32.mrf.mxu2  ;;  %v14472_v33 = vld [vmem:[%s15138_s25 + $0xc98] sm:$0xff] }
 0x183   : > { %9069 = vmatpush.bf16.msrb.mxu0 %v14425_v36  ;;  %v14464_v36 = vld [vmem:[%s15138_s25 + $0xc58] sm:$0xff]  ;;  %v2372_v60 = vunpack.c.h.b16 %v289_v48 }
 0x184   : > { %9095 = vmatpush.bf16.msrb.mxu2 %v14441_v37  ;;  %v8856_v63 = vpop.f32.mrf.mxu3  ;;  %v14480_v37 = vld [vmem:[%s15138_s25 + $0xcd8] sm:$0xff] }
 0x185   : > { %9082 = vmatpush.bf16.msrb.mxu1 %v14433_v40  ;;  %v14477_v63 = vld [vmem:[%s15138_s25 + $0xcc0] sm:$0xff] }
 0x186   : > { %9108 = vmatpush.bf16.msrb.mxu3 %v14449_v41  ;;  %v14455_v41 = vld [vmem:[%s15138_s25 + $0xc10] sm:$0xff] }
 0x187   : > { %9070 = vmatpush.bf16.msrb.mxu0 %v14424_v42  ;;  %v14471_v42 = vld [vmem:[%s15138_s25 + $0xc90] sm:$0xff] }
 0x188   : > { %9096 = vmatpush.bf16.msrb.mxu2 %v14440_v43 }
 0x189   : > { %9083 = vmatpush.bf16.msrb.mxu1 %v14432_v46  ;;  %v14454_v46 = vld [vmem:[%s15138_s25 + $0xc08] sm:$0xff] }
 0x18a   : > { %9109 = vmatpush.bf16.msrb.mxu3 %v14448_v47  ;;  %v14470_v47 = vld [vmem:[%s15138_s25 + $0xc88] sm:$0xff] }
 0x18b   : > { %9071 = vmatpush.bf16.msrb.mxu0 %v14423_v51  ;;  %v14462_v51 = vld [vmem:[%s15138_s25 + $0xc48] sm:$0xff] }
 0x18c   : > { %9097 = vmatpush.bf16.msrb.mxu2 %v14439_v52  ;;  %v14478_v52 = vld [vmem:[%s15138_s25 + $0xcc8] sm:$0xff] }
 0x18d   : > { %9084 = vmatpush.bf16.msrb.mxu1 %v14431_v54  ;;  %v2371_v54 = vunpack.c.l.b16 %v289_v48  ;;  %v14524_v48 = vld [vmem:[%s15138_s25 + $0xe38] sm:$0xff] }
 0x18e   : > { %9110 = vmatpush.bf16.msrb.mxu3 %v14447_v55  ;;  %v2373_v55 = vunpack.c.l.b16 %v290_v49 }
 0x18f   : > { %9072 = vmatpush.bf16.msrb.mxu0 %v14422_v56  ;;  %v14453_v56 = vld [vmem:[%s15138_s25 + $0xc00] sm:$0xff]  ;;  %v2492_v0 = vpack.c.b16 %v2371_v54, %v2371_v54 }
 0x190   : > { %9098 = vmatpush.bf16.msrb.mxu2 %v14438_v57  ;;  %v14469_v57 = vld [vmem:[%s15138_s25 + $0xc80] sm:$0xff]  ;;  %v2494_v1 = vpack.c.b16 %v2373_v55, %v2373_v55 }
 0x191   : > { %9085 = vmatpush.bf16.msrb.mxu1 %v14430_v61  ;;  %v2374_v61 = vunpack.c.h.b16 %v290_v49  ;;  %v14540_v49 = vld [vmem:[%s15138_s25 + $0xeb8] sm:$0xff] }
 0x192   : > { %9111 = vmatpush.bf16.msrb.mxu3 %v14446_v62  ;;  %v14461_v62 = vld [vmem:[%s15138_s25 + $0xc40] sm:$0xff] }
 0x193   : > { %9073 = vmatpush.bf16.msrb.mxu0 %v14421_v2  ;;  %v8867_v24 = vpop.f32.mrf.mxu0  ;;  %v14500_v2 = vld [vmem:[%s15138_s25 + $0xd78] sm:$0xff] }
 0x194   : > { %9099 = vmatpush.bf16.msrb.mxu2 %v14437_v3  ;;  %v8868_v25 = vadd.f32 %v8867_v24, %v15553_v50  ;;  %v14516_v3 = vld [vmem:[%s15138_s25 + $0xdf8] sm:$0xff] }
 0x195   : > { %9086 = vmatpush.bf16.msrb.mxu1 %v14429_v8  ;;  %v8880_v28 = vpop.f32.mrf.mxu1  ;;  %v14499_v8 = vld [vmem:[%s15138_s25 + $0xd70] sm:$0xff] }
 0x196   : > { %9112 = vmatpush.bf16.msrb.mxu3 %v14445_v9  ;;  %9074 = vmatmul.bf16.vlgmr.msrb.gmra.mxu0 %v2488_v10  ;;  %v8881_v29 = vadd.f32 %v8880_v28, %v8868_v25  ;;  %v14515_v9 = vld [vmem:[%s15138_s25 + $0xdf0] sm:$0xff]  ;;  %v14490_v10 = vld [vmem:[%s15138_s25 + $0xd28] sm:$0xff] }
 0x197   : > { %9118 = vmatpush.bf16.msra.mxu0 %v14460_v4  ;;  %9100 = vmatmul.bf16.vlgmr.msrb.gmra.mxu2 %v2490_v11  ;;  %v2493_v4 = vpack.c.b16 %v2372_v60, %v2372_v60  ;;  %v14506_v11 = vld [vmem:[%s15138_s25 + $0xda8] sm:$0xff]  ;;  %v14523_v60 = vld [vmem:[%s15138_s25 + $0xe30] sm:$0xff] }
 0x198   : > { %9144 = vmatpush.bf16.msra.mxu2 %v14476_v5  ;;  %9087 = vmatmul.bf16.vlgmr.msrb.gmra.mxu1 %v2489_v14  ;;  %v2495_v5 = vpack.c.b16 %v2374_v61, %v2374_v61  ;;  %v14539_v61 = vld [vmem:[%s15138_s25 + $0xeb0] sm:$0xff] }
 0x199   : > { %9131 = vmatpush.bf16.msra.mxu1 %v14468_v12  ;;  %9113 = vmatmul.bf16.vlgmr.msrb.gmra.mxu3 %v2491_v15  ;;  %v14498_v12 = vld [vmem:[%s15138_s25 + $0xd68] sm:$0xff] }
 0x19a   : > { %9157 = vmatpush.bf16.msra.mxu3 %v14484_v13  ;;  %v8893_v34 = vpop.f32.mrf.mxu2  ;;  %v14514_v13 = vld [vmem:[%s15138_s25 + $0xde8] sm:$0xff] }
 0x19b   : > { %9119 = vmatpush.bf16.msra.mxu0 %v14459_v16  ;;  %v8894_v35 = vadd.f32 %v8893_v34, %v8881_v29  ;;  %v8869_v39 = vpop.f32.mrf.mxu0  ;;  %v14489_v16 = vld [vmem:[%s15138_s25 + $0xd20] sm:$0xff]  ;;  %v14495_v34 = vld [vmem:[%s15138_s25 + $0xd50] sm:$0xff] }
 0x19c   : > { %9145 = vmatpush.bf16.msra.mxu2 %v14475_v17  ;;  %v8906_v38 = vpop.f32.mrf.mxu3  ;;  %v14505_v17 = vld [vmem:[%s15138_s25 + $0xda0] sm:$0xff]  ;;  %v292_v39 = vld [vmem:[%s15133_s21 + $0xd8] sm:$0xff] }
 0x19d   : > { %9132 = vmatpush.bf16.msra.mxu1 %v14467_v18  ;;  %v15590_v40 = vadd.f32 %v8906_v38, %v8894_v35  ;;  %v8882_v43 = vpop.f32.mrf.mxu1  ;;  %v14511_v35 = vld [vmem:[%s15138_s25 + $0xdd0] sm:$0xff] }
 0x19e   : > { %9158 = vmatpush.bf16.msra.mxu3 %v14483_v19  ;;  %v291_v38 = vld [vmem:[%s15133_s21 + $0xd0] sm:$0xff] }
 0x19f   : > { %9120 = vmatpush.bf16.msra.mxu0 %v14458_v20  ;;  %v14497_v20 = vld [vmem:[%s15138_s25 + $0xd60] sm:$0xff] }
 0x1a0   : > { %9146 = vmatpush.bf16.msra.mxu2 %v14474_v21  ;;  %v14513_v21 = vld [vmem:[%s15138_s25 + $0xde0] sm:$0xff] }
 0x1a1   : > { %9133 = vmatpush.bf16.msra.mxu1 %v14466_v22  ;;  %v14488_v22 = vld [vmem:[%s15138_s25 + $0xd18] sm:$0xff] }
 0x1a2   : > { %9159 = vmatpush.bf16.msra.mxu3 %v14482_v23  ;;  %v8895_v50 = vpop.f32.mrf.mxu2  ;;  %v14504_v23 = vld [vmem:[%s15138_s25 + $0xd98] sm:$0xff] }
 0x1a3   : > { %9121 = vmatpush.bf16.msra.mxu0 %v14457_v26  ;;  %v14496_v26 = vld [vmem:[%s15138_s25 + $0xd58] sm:$0xff]  ;;  %v2376_v50 = vunpack.c.h.b16 %v291_v38 }
 0x1a4   : > { %9147 = vmatpush.bf16.msra.mxu2 %v14473_v27  ;;  %v8908_v53 = vpop.f32.mrf.mxu3  ;;  %v14512_v27 = vld [vmem:[%s15138_s25 + $0xdd8] sm:$0xff] }
 0x1a5   : > { %9134 = vmatpush.bf16.msra.mxu1 %v14465_v30  ;;  %v14509_v53 = vld [vmem:[%s15138_s25 + $0xdc0] sm:$0xff] }
 0x1a6   : > { %9160 = vmatpush.bf16.msra.mxu3 %v14481_v31  ;;  %v14487_v31 = vld [vmem:[%s15138_s25 + $0xd10] sm:$0xff] }
 0x1a7   : > { %9122 = vmatpush.bf16.msra.mxu0 %v14456_v32  ;;  %v14503_v32 = vld [vmem:[%s15138_s25 + $0xd90] sm:$0xff] }
 0x1a8   : > { %9148 = vmatpush.bf16.msra.mxu2 %v14472_v33 }
 0x1a9   : > { %9135 = vmatpush.bf16.msra.mxu1 %v14464_v36  ;;  %v14486_v36 = vld [vmem:[%s15138_s25 + $0xd08] sm:$0xff] }
 0x1aa   : > { %9161 = vmatpush.bf16.msra.mxu3 %v14480_v37  ;;  %v14502_v37 = vld [vmem:[%s15138_s25 + $0xd88] sm:$0xff] }
 0x1ab   : > { %9123 = vmatpush.bf16.msra.mxu0 %v14455_v41  ;;  %v14494_v41 = vld [vmem:[%s15138_s25 + $0xd48] sm:$0xff] }
 0x1ac   : > { %9149 = vmatpush.bf16.msra.mxu2 %v14471_v42  ;;  %v14510_v42 = vld [vmem:[%s15138_s25 + $0xdc8] sm:$0xff] }
 0x1ad   : > { %9136 = vmatpush.bf16.msra.mxu1 %v14463_v44  ;;  %v2375_v44 = vunpack.c.l.b16 %v291_v38  ;;  %v14556_v38 = vld [vmem:[%s15138_s25 + $0xf38] sm:$0xff] }
 0x1ae   : > { %9162 = vmatpush.bf16.msra.mxu3 %v14479_v45  ;;  %v2377_v45 = vunpack.c.l.b16 %v292_v39 }
 0x1af   : > { %9124 = vmatpush.bf16.msra.mxu0 %v14454_v46  ;;  %v14485_v46 = vld [vmem:[%s15138_s25 + $0xd00] sm:$0xff]  ;;  %v2496_v54 = vpack.c.b16 %v2375_v44, %v2375_v44 }
 0x1b0   : > { %9150 = vmatpush.bf16.msra.mxu2 %v14470_v47  ;;  %v14501_v47 = vld [vmem:[%s15138_s25 + $0xd80] sm:$0xff]  ;;  %v2498_v55 = vpack.c.b16 %v2377_v45, %v2377_v45 }
 0x1b1   : > { %9137 = vmatpush.bf16.msra.mxu1 %v14462_v51  ;;  %v2378_v51 = vunpack.c.h.b16 %v292_v39  ;;  %v14572_v39 = vld [vmem:[%s15138_s25 + $0xfb8] sm:$0xff] }
 0x1b2   : > { %9163 = vmatpush.bf16.msra.mxu3 %v14478_v52  ;;  %v14493_v52 = vld [vmem:[%s15138_s25 + $0xd40] sm:$0xff] }
 0x1b3   : > { %9125 = vmatpush.bf16.msra.mxu0 %v14453_v56  ;;  %v8919_v14 = vpop.f32.mrf.mxu0  ;;  %v14532_v56 = vld [vmem:[%s15138_s25 + $0xe78] sm:$0xff] }
 0x1b4   : > { %9151 = vmatpush.bf16.msra.mxu2 %v14469_v57  ;;  %v8920_v15 = vadd.f32 %v8919_v14, %v15590_v40  ;;  %v14548_v57 = vld [vmem:[%s15138_s25 + $0xef8] sm:$0xff] }
 0x1b5   : > { %9138 = vmatpush.bf16.msra.mxu1 %v14461_v62  ;;  %v8932_v18 = vpop.f32.mrf.mxu1  ;;  %v14531_v62 = vld [vmem:[%s15138_s25 + $0xe70] sm:$0xff] }
 0x1b6   : > { %9164 = vmatpush.bf16.msra.mxu3 %v14477_v63  ;;  %9126 = vmatmul.bf16.vlgmr.msra.gmra.mxu0 %v2492_v0  ;;  %v8933_v19 = vadd.f32 %v8932_v18, %v8920_v15  ;;  %v14547_v63 = vld [vmem:[%s15138_s25 + $0xef0] sm:$0xff]  ;;  %v14522_v0 = vld [vmem:[%s15138_s25 + $0xe28] sm:$0xff] }
 0x1b7   : > { %9170 = vmatpush.bf16.msrb.mxu0 %v14492_v58  ;;  %9152 = vmatmul.bf16.vlgmr.msra.gmra.mxu2 %v2494_v1  ;;  %v2497_v58 = vpack.c.b16 %v2376_v50, %v2376_v50  ;;  %v14538_v1 = vld [vmem:[%s15138_s25 + $0xea8] sm:$0xff]  ;;  %v14555_v50 = vld [vmem:[%s15138_s25 + $0xf30] sm:$0xff] }
 0x1b8   : > { %9196 = vmatpush.bf16.msrb.mxu2 %v14508_v59  ;;  %9139 = vmatmul.bf16.vlgmr.msra.gmra.mxu1 %v2493_v4  ;;  %v2499_v59 = vpack.c.b16 %v2378_v51, %v2378_v51  ;;  %v14571_v51 = vld [vmem:[%s15138_s25 + $0xfb0] sm:$0xff] }
 0x1b9   : > { %9183 = vmatpush.bf16.msrb.mxu1 %v14500_v2  ;;  %9165 = vmatmul.bf16.vlgmr.msra.gmra.mxu3 %v2495_v5  ;;  %v14530_v2 = vld [vmem:[%s15138_s25 + $0xe68] sm:$0xff] }
 0x1ba   : > { %9209 = vmatpush.bf16.msrb.mxu3 %v14516_v3  ;;  %v8945_v24 = vpop.f32.mrf.mxu2  ;;  %v14546_v3 = vld [vmem:[%s15138_s25 + $0xee8] sm:$0xff] }
 0x1bb   : > { %9171 = vmatpush.bf16.msrb.mxu0 %v14491_v6  ;;  %v8946_v25 = vadd.f32 %v8945_v24, %v8933_v19  ;;  %v8921_v29 = vpop.f32.mrf.mxu0  ;;  %v14521_v6 = vld [vmem:[%s15138_s25 + $0xe20] sm:$0xff]  ;;  %v14527_v24 = vld [vmem:[%s15138_s25 + $0xe50] sm:$0xff] }
 0x1bc   : > { %9197 = vmatpush.bf16.msrb.mxu2 %v14507_v7  ;;  %v8958_v28 = vpop.f32.mrf.mxu3  ;;  %v14537_v7 = vld [vmem:[%s15138_s25 + $0xea0] sm:$0xff]  ;;  %v294_v29 = vld [vmem:[%s15133_s21 + $0xe8] sm:$0xff] }
 0x1bd   : > { %9184 = vmatpush.bf16.msrb.mxu1 %v14499_v8  ;;  %v15627_v30 = vadd.f32 %v8958_v28, %v8946_v25  ;;  %v8934_v33 = vpop.f32.mrf.mxu1  ;;  %v14543_v25 = vld [vmem:[%s15138_s25 + $0xed0] sm:$0xff]  ;;  %v293_v28 = vld [vmem:[%s15133_s21 + $0xe0] sm:$0xff] }
 0x1be   : > { %9210 = vmatpush.bf16.msrb.mxu3 %v14515_v9 }
 0x1bf   : > { %9172 = vmatpush.bf16.msrb.mxu0 %v14490_v10  ;;  %v14529_v10 = vld [vmem:[%s15138_s25 + $0xe60] sm:$0xff] }
 0x1c0   : > { %9198 = vmatpush.bf16.msrb.mxu2 %v14506_v11  ;;  %v14545_v11 = vld [vmem:[%s15138_s25 + $0xee0] sm:$0xff] }
 0x1c1   : > { %9185 = vmatpush.bf16.msrb.mxu1 %v14498_v12  ;;  %v14520_v12 = vld [vmem:[%s15138_s25 + $0xe18] sm:$0xff] }
 0x1c2   : > { %9211 = vmatpush.bf16.msrb.mxu3 %v14514_v13  ;;  %v8947_v40 = vpop.f32.mrf.mxu2  ;;  %v14536_v13 = vld [vmem:[%s15138_s25 + $0xe98] sm:$0xff] }
 0x1c3   : > { %9173 = vmatpush.bf16.msrb.mxu0 %v14489_v16  ;;  %v14528_v16 = vld [vmem:[%s15138_s25 + $0xe58] sm:$0xff]  ;;  %v2380_v40 = vunpack.c.h.b16 %v293_v28 }
 0x1c4   : > { %9199 = vmatpush.bf16.msrb.mxu2 %v14505_v17  ;;  %v8960_v43 = vpop.f32.mrf.mxu3  ;;  %v14544_v17 = vld [vmem:[%s15138_s25 + $0xed8] sm:$0xff] }
 0x1c5   : > { %9186 = vmatpush.bf16.msrb.mxu1 %v14497_v20  ;;  %v14541_v43 = vld [vmem:[%s15138_s25 + $0xec0] sm:$0xff] }
 0x1c6   : > { %9212 = vmatpush.bf16.msrb.mxu3 %v14513_v21  ;;  %v14519_v21 = vld [vmem:[%s15138_s25 + $0xe10] sm:$0xff] }
 0x1c7   : > { %9174 = vmatpush.bf16.msrb.mxu0 %v14488_v22  ;;  %v14535_v22 = vld [vmem:[%s15138_s25 + $0xe90] sm:$0xff] }
 0x1c8   : > { %9200 = vmatpush.bf16.msrb.mxu2 %v14504_v23 }
 0x1c9   : > { %9187 = vmatpush.bf16.msrb.mxu1 %v14496_v26  ;;  %v14518_v26 = vld [vmem:[%s15138_s25 + $0xe08] sm:$0xff] }
 0x1ca   : > { %9213 = vmatpush.bf16.msrb.mxu3 %v14512_v27  ;;  %v14534_v27 = vld [vmem:[%s15138_s25 + $0xe88] sm:$0xff] }
 0x1cb   : > { %9175 = vmatpush.bf16.msrb.mxu0 %v14487_v31  ;;  %v14526_v31 = vld [vmem:[%s15138_s25 + $0xe48] sm:$0xff] }
 0x1cc   : > { %9201 = vmatpush.bf16.msrb.mxu2 %v14503_v32  ;;  %v14542_v32 = vld [vmem:[%s15138_s25 + $0xec8] sm:$0xff] }
 0x1cd   : > { %9188 = vmatpush.bf16.msrb.mxu1 %v14495_v34  ;;  %v2379_v34 = vunpack.c.l.b16 %v293_v28  ;;  %v14588_v28 = vld [vmem:[%s15138_s25 + $0x1038] sm:$0xff] }
 0x1ce   : > { %9214 = vmatpush.bf16.msrb.mxu3 %v14511_v35  ;;  %v2381_v35 = vunpack.c.l.b16 %v294_v29 }
 0x1cf   : > { %9176 = vmatpush.bf16.msrb.mxu0 %v14486_v36  ;;  %v14517_v36 = vld [vmem:[%s15138_s25 + $0xe00] sm:$0xff]  ;;  %v2500_v44 = vpack.c.b16 %v2379_v34, %v2379_v34 }
 0x1d0   : > { %9202 = vmatpush.bf16.msrb.mxu2 %v14502_v37  ;;  %v14533_v37 = vld [vmem:[%s15138_s25 + $0xe80] sm:$0xff]  ;;  %v2502_v45 = vpack.c.b16 %v2381_v35, %v2381_v35 }
 0x1d1   : > { %9189 = vmatpush.bf16.msrb.mxu1 %v14494_v41  ;;  %v2382_v41 = vunpack.c.h.b16 %v294_v29  ;;  %v14604_v29 = vld [vmem:[%s15138_s25 + $0x10b8] sm:$0xff] }
 0x1d2   : > { %9215 = vmatpush.bf16.msrb.mxu3 %v14510_v42  ;;  %v14525_v42 = vld [vmem:[%s15138_s25 + $0xe40] sm:$0xff] }
 0x1d3   : > { %9177 = vmatpush.bf16.msrb.mxu0 %v14485_v46  ;;  %v8971_v4 = vpop.f32.mrf.mxu0  ;;  %v14564_v46 = vld [vmem:[%s15138_s25 + $0xf78] sm:$0xff] }
 0x1d4   : > { %9203 = vmatpush.bf16.msrb.mxu2 %v14501_v47  ;;  %v8972_v5 = vadd.f32 %v8971_v4, %v15627_v30  ;;  %v14580_v47 = vld [vmem:[%s15138_s25 + $0xff8] sm:$0xff] }
 0x1d5   : > { %9190 = vmatpush.bf16.msrb.mxu1 %v14493_v52  ;;  %v8984_v8 = vpop.f32.mrf.mxu1  ;;  %v14563_v52 = vld [vmem:[%s15138_s25 + $0xf70] sm:$0xff] }
 0x1d6   : > { %9216 = vmatpush.bf16.msrb.mxu3 %v14509_v53  ;;  %9178 = vmatmul.bf16.vlgmr.msrb.gmra.mxu0 %v2496_v54  ;;  %v8985_v9 = vadd.f32 %v8984_v8, %v8972_v5  ;;  %v14579_v53 = vld [vmem:[%s15138_s25 + $0xff0] sm:$0xff]  ;;  %v14554_v54 = vld [vmem:[%s15138_s25 + $0xf28] sm:$0xff] }
 0x1d7   : > { %9222 = vmatpush.bf16.msra.mxu0 %v14524_v48  ;;  %9204 = vmatmul.bf16.vlgmr.msrb.gmra.mxu2 %v2498_v55  ;;  %v2501_v48 = vpack.c.b16 %v2380_v40, %v2380_v40  ;;  %v14570_v55 = vld [vmem:[%s15138_s25 + $0xfa8] sm:$0xff]  ;;  %v14587_v40 = vld [vmem:[%s15138_s25 + $0x1030] sm:$0xff] }
 0x1d8   : > { %9248 = vmatpush.bf16.msra.mxu2 %v14540_v49  ;;  %9191 = vmatmul.bf16.vlgmr.msrb.gmra.mxu1 %v2497_v58  ;;  %v2503_v49 = vpack.c.b16 %v2382_v41, %v2382_v41  ;;  %v14603_v41 = vld [vmem:[%s15138_s25 + $0x10b0] sm:$0xff] }
 0x1d9   : > { %9235 = vmatpush.bf16.msra.mxu1 %v14532_v56  ;;  %9217 = vmatmul.bf16.vlgmr.msrb.gmra.mxu3 %v2499_v59  ;;  %v14562_v56 = vld [vmem:[%s15138_s25 + $0xf68] sm:$0xff] }
 0x1da   : > { %9261 = vmatpush.bf16.msra.mxu3 %v14548_v57  ;;  %v8997_v14 = vpop.f32.mrf.mxu2  ;;  %v14578_v57 = vld [vmem:[%s15138_s25 + $0xfe8] sm:$0xff] }
 0x1db   : > { %9223 = vmatpush.bf16.msra.mxu0 %v14523_v60  ;;  %v8998_v15 = vadd.f32 %v8997_v14, %v8985_v9  ;;  %v8973_v19 = vpop.f32.mrf.mxu0  ;;  %v14553_v60 = vld [vmem:[%s15138_s25 + $0xf20] sm:$0xff]  ;;  %v14559_v14 = vld [vmem:[%s15138_s25 + $0xf50] sm:$0xff] }
 0x1dc   : > { %9249 = vmatpush.bf16.msra.mxu2 %v14539_v61  ;;  %v9010_v18 = vpop.f32.mrf.mxu3  ;;  %v14569_v61 = vld [vmem:[%s15138_s25 + $0xfa0] sm:$0xff]  ;;  %v296_v19 = vld [vmem:[%s15133_s21 + $0xf8] sm:$0xff] }
 0x1dd   : > { %9236 = vmatpush.bf16.msra.mxu1 %v14531_v62  ;;  %v15664_v20 = vadd.f32 %v9010_v18, %v8998_v15  ;;  %v8986_v23 = vpop.f32.mrf.mxu1  ;;  %v14575_v15 = vld [vmem:[%s15138_s25 + $0xfd0] sm:$0xff] }
 0x1de   : > { %9262 = vmatpush.bf16.msra.mxu3 %v14547_v63  ;;  %v295_v18 = vld [vmem:[%s15133_s21 + $0xf0] sm:$0xff] }
 0x1df   : > { %9224 = vmatpush.bf16.msra.mxu0 %v14522_v0  ;;  %v14561_v0 = vld [vmem:[%s15138_s25 + $0xf60] sm:$0xff] }
 0x1e0   : > { %9250 = vmatpush.bf16.msra.mxu2 %v14538_v1  ;;  %v14577_v1 = vld [vmem:[%s15138_s25 + $0xfe0] sm:$0xff] }
 0x1e1   : > { %9237 = vmatpush.bf16.msra.mxu1 %v14530_v2  ;;  %v14552_v2 = vld [vmem:[%s15138_s25 + $0xf18] sm:$0xff] }
 0x1e2   : > { %9263 = vmatpush.bf16.msra.mxu3 %v14546_v3  ;;  %v8999_v30 = vpop.f32.mrf.mxu2  ;;  %v14568_v3 = vld [vmem:[%s15138_s25 + $0xf98] sm:$0xff] }
 0x1e3   : > { %9225 = vmatpush.bf16.msra.mxu0 %v14521_v6  ;;  %v14560_v6 = vld [vmem:[%s15138_s25 + $0xf58] sm:$0xff]  ;;  %v2384_v30 = vunpack.c.h.b16 %v295_v18 }
 0x1e4   : > { %9251 = vmatpush.bf16.msra.mxu2 %v14537_v7  ;;  %v9012_v33 = vpop.f32.mrf.mxu3  ;;  %v14576_v7 = vld [vmem:[%s15138_s25 + $0xfd8] sm:$0xff] }
 0x1e5   : > { %9238 = vmatpush.bf16.msra.mxu1 %v14529_v10  ;;  %v14573_v33 = vld [vmem:[%s15138_s25 + $0xfc0] sm:$0xff] }
 0x1e6   : > { %9264 = vmatpush.bf16.msra.mxu3 %v14545_v11  ;;  %v14551_v11 = vld [vmem:[%s15138_s25 + $0xf10] sm:$0xff] }
 0x1e7   : > { %9226 = vmatpush.bf16.msra.mxu0 %v14520_v12  ;;  %v14567_v12 = vld [vmem:[%s15138_s25 + $0xf90] sm:$0xff] }
 0x1e8   : > { %9252 = vmatpush.bf16.msra.mxu2 %v14536_v13 }
 0x1e9   : > { %9239 = vmatpush.bf16.msra.mxu1 %v14528_v16  ;;  %v14550_v16 = vld [vmem:[%s15138_s25 + $0xf08] sm:$0xff] }
 0x1ea   : > { %9265 = vmatpush.bf16.msra.mxu3 %v14544_v17  ;;  %v14566_v17 = vld [vmem:[%s15138_s25 + $0xf88] sm:$0xff] }
 0x1eb   : > { %9227 = vmatpush.bf16.msra.mxu0 %v14519_v21  ;;  %v14558_v21 = vld [vmem:[%s15138_s25 + $0xf48] sm:$0xff] }
 0x1ec   : > { %9253 = vmatpush.bf16.msra.mxu2 %v14535_v22  ;;  %v14574_v22 = vld [vmem:[%s15138_s25 + $0xfc8] sm:$0xff] }
 0x1ed   : > { %9240 = vmatpush.bf16.msra.mxu1 %v14527_v24  ;;  %v2383_v24 = vunpack.c.l.b16 %v295_v18  ;;  %v14620_v18 = vld [vmem:[%s15138_s25 + $0x1138] sm:$0xff] }
 0x1ee   : > { %9266 = vmatpush.bf16.msra.mxu3 %v14543_v25  ;;  %v2385_v25 = vunpack.c.l.b16 %v296_v19 }
 0x1ef   : > { %9228 = vmatpush.bf16.msra.mxu0 %v14518_v26  ;;  %v14549_v26 = vld [vmem:[%s15138_s25 + $0xf00] sm:$0xff]  ;;  %v2504_v34 = vpack.c.b16 %v2383_v24, %v2383_v24 }
 0x1f0   : > { %9254 = vmatpush.bf16.msra.mxu2 %v14534_v27  ;;  %v14565_v27 = vld [vmem:[%s15138_s25 + $0xf80] sm:$0xff]  ;;  %v2506_v35 = vpack.c.b16 %v2385_v25, %v2385_v25 }
 0x1f1   : > { %9241 = vmatpush.bf16.msra.mxu1 %v14526_v31  ;;  %v2386_v31 = vunpack.c.h.b16 %v296_v19  ;;  %v14636_v19 = vld [vmem:[%s15138_s25 + $0x11b8] sm:$0xff] }
 0x1f2   : > { %9267 = vmatpush.bf16.msra.mxu3 %v14542_v32  ;;  %v14557_v32 = vld [vmem:[%s15138_s25 + $0xf40] sm:$0xff] }
 0x1f3   : > { %9229 = vmatpush.bf16.msra.mxu0 %v14517_v36  ;;  %v9023_v58 = vpop.f32.mrf.mxu0  ;;  %v14596_v36 = vld [vmem:[%s15138_s25 + $0x1078] sm:$0xff] }
 0x1f4   : > { %9255 = vmatpush.bf16.msra.mxu2 %v14533_v37  ;;  %v9024_v59 = vadd.f32 %v9023_v58, %v15664_v20  ;;  %v14612_v37 = vld [vmem:[%s15138_s25 + $0x10f8] sm:$0xff] }
 0x1f5   : > { %9242 = vmatpush.bf16.msra.mxu1 %v14525_v42  ;;  %v9036_v62 = vpop.f32.mrf.mxu1  ;;  %v14595_v42 = vld [vmem:[%s15138_s25 + $0x1070] sm:$0xff] }
 0x1f6   : > { %9268 = vmatpush.bf16.msra.mxu3 %v14541_v43  ;;  %9230 = vmatmul.bf16.vlgmr.msra.gmra.mxu0 %v2500_v44  ;;  %v9037_v63 = vadd.f32 %v9036_v62, %v9024_v59  ;;  %v14611_v43 = vld [vmem:[%s15138_s25 + $0x10f0] sm:$0xff]  ;;  %v14586_v44 = vld [vmem:[%s15138_s25 + $0x1028] sm:$0xff] }
 0x1f7   : > { %9274 = vmatpush.bf16.msrb.mxu0 %v14556_v38  ;;  %9256 = vmatmul.bf16.vlgmr.msra.gmra.mxu2 %v2502_v45  ;;  %v2505_v38 = vpack.c.b16 %v2384_v30, %v2384_v30  ;;  %v14602_v45 = vld [vmem:[%s15138_s25 + $0x10a8] sm:$0xff]  ;;  %v14619_v30 = vld [vmem:[%s15138_s25 + $0x1130] sm:$0xff] }
 0x1f8   : > { %9300 = vmatpush.bf16.msrb.mxu2 %v14572_v39  ;;  %9243 = vmatmul.bf16.vlgmr.msra.gmra.mxu1 %v2501_v48  ;;  %v2507_v39 = vpack.c.b16 %v2386_v31, %v2386_v31  ;;  %v14635_v31 = vld [vmem:[%s15138_s25 + $0x11b0] sm:$0xff] }
 0x1f9   : > { %9287 = vmatpush.bf16.msrb.mxu1 %v14564_v46  ;;  %9269 = vmatmul.bf16.vlgmr.msra.gmra.mxu3 %v2503_v49  ;;  %v14594_v46 = vld [vmem:[%s15138_s25 + $0x1068] sm:$0xff] }
 0x1fa   : > { %9313 = vmatpush.bf16.msrb.mxu3 %v14580_v47  ;;  %v9049_v4 = vpop.f32.mrf.mxu2  ;;  %v14610_v47 = vld [vmem:[%s15138_s25 + $0x10e8] sm:$0xff] }
 0x1fb   : > { %9275 = vmatpush.bf16.msrb.mxu0 %v14555_v50  ;;  %v9050_v5 = vadd.f32 %v9049_v4, %v9037_v63  ;;  %v9025_v9 = vpop.f32.mrf.mxu0  ;;  %v14585_v50 = vld [vmem:[%s15138_s25 + $0x1020] sm:$0xff]  ;;  %v14591_v4 = vld [vmem:[%s15138_s25 + $0x1050] sm:$0xff] }
 0x1fc   : > { %9301 = vmatpush.bf16.msrb.mxu2 %v14571_v51  ;;  %v9062_v8 = vpop.f32.mrf.mxu3  ;;  %v14601_v51 = vld [vmem:[%s15138_s25 + $0x10a0] sm:$0xff]  ;;  %v298_v9 = vld [vmem:[%s15133_s21 + $0x108] sm:$0xff] }
 0x1fd   : > { %9288 = vmatpush.bf16.msrb.mxu1 %v14563_v52  ;;  %v15701_v10 = vadd.f32 %v9062_v8, %v9050_v5  ;;  %v9038_v13 = vpop.f32.mrf.mxu1  ;;  %v14607_v5 = vld [vmem:[%s15138_s25 + $0x10d0] sm:$0xff]  ;;  %v297_v8 = vld [vmem:[%s15133_s21 + $0x100] sm:$0xff] }
 0x1fe   : > { %9314 = vmatpush.bf16.msrb.mxu3 %v14579_v53 }
 0x1ff   : > { %9276 = vmatpush.bf16.msrb.mxu0 %v14554_v54  ;;  %v14593_v54 = vld [vmem:[%s15138_s25 + $0x1060] sm:$0xff] }
 0x200   : > { %9302 = vmatpush.bf16.msrb.mxu2 %v14570_v55  ;;  %v14609_v55 = vld [vmem:[%s15138_s25 + $0x10e0] sm:$0xff] }
 0x201   : > { %9289 = vmatpush.bf16.msrb.mxu1 %v14562_v56  ;;  %v14584_v56 = vld [vmem:[%s15138_s25 + $0x1018] sm:$0xff] }
 0x202   : > { %9315 = vmatpush.bf16.msrb.mxu3 %v14578_v57  ;;  %v9051_v20 = vpop.f32.mrf.mxu2  ;;  %v14600_v57 = vld [vmem:[%s15138_s25 + $0x1098] sm:$0xff] }
 0x203   : > { %9277 = vmatpush.bf16.msrb.mxu0 %v14553_v60  ;;  %v14592_v60 = vld [vmem:[%s15138_s25 + $0x1058] sm:$0xff]  ;;  %v2388_v20 = vunpack.c.h.b16 %v297_v8 }
 0x204   : > { %9303 = vmatpush.bf16.msrb.mxu2 %v14569_v61  ;;  %v9064_v23 = vpop.f32.mrf.mxu3  ;;  %v14608_v61 = vld [vmem:[%s15138_s25 + $0x10d8] sm:$0xff] }
 0x205   : > { %9290 = vmatpush.bf16.msrb.mxu1 %v14561_v0  ;;  %v14605_v23 = vld [vmem:[%s15138_s25 + $0x10c0] sm:$0xff] }
 0x206   : > { %9316 = vmatpush.bf16.msrb.mxu3 %v14577_v1  ;;  %v14583_v1 = vld [vmem:[%s15138_s25 + $0x1010] sm:$0xff] }
 0x207   : > { %9278 = vmatpush.bf16.msrb.mxu0 %v14552_v2  ;;  %v14599_v2 = vld [vmem:[%s15138_s25 + $0x1090] sm:$0xff] }
 0x208   : > { %9304 = vmatpush.bf16.msrb.mxu2 %v14568_v3 }
 0x209   : > { %9291 = vmatpush.bf16.msrb.mxu1 %v14560_v6  ;;  %v14582_v6 = vld [vmem:[%s15138_s25 + $0x1008] sm:$0xff] }
 0x20a   : > { %9317 = vmatpush.bf16.msrb.mxu3 %v14576_v7  ;;  %v14598_v7 = vld [vmem:[%s15138_s25 + $0x1088] sm:$0xff] }
 0x20b   : > { %9279 = vmatpush.bf16.msrb.mxu0 %v14551_v11  ;;  %v14590_v11 = vld [vmem:[%s15138_s25 + $0x1048] sm:$0xff] }
 0x20c   : > { %9305 = vmatpush.bf16.msrb.mxu2 %v14567_v12  ;;  %v14606_v12 = vld [vmem:[%s15138_s25 + $0x10c8] sm:$0xff] }
 0x20d   : > { %9292 = vmatpush.bf16.msrb.mxu1 %v14559_v14  ;;  %v2387_v14 = vunpack.c.l.b16 %v297_v8  ;;  %v14652_v8 = vld [vmem:[%s15138_s25 + $0x1238] sm:$0xff] }
 0x20e   : > { %9318 = vmatpush.bf16.msrb.mxu3 %v14575_v15  ;;  %v2389_v15 = vunpack.c.l.b16 %v298_v9 }
 0x20f   : > { %9280 = vmatpush.bf16.msrb.mxu0 %v14550_v16  ;;  %v14581_v16 = vld [vmem:[%s15138_s25 + $0x1000] sm:$0xff]  ;;  %v2508_v24 = vpack.c.b16 %v2387_v14, %v2387_v14 }
 0x210   : > { %9306 = vmatpush.bf16.msrb.mxu2 %v14566_v17  ;;  %v14597_v17 = vld [vmem:[%s15138_s25 + $0x1080] sm:$0xff]  ;;  %v2510_v25 = vpack.c.b16 %v2389_v15, %v2389_v15 }
 0x211   : > { %9293 = vmatpush.bf16.msrb.mxu1 %v14558_v21  ;;  %v2390_v21 = vunpack.c.h.b16 %v298_v9  ;;  %v14668_v9 = vld [vmem:[%s15138_s25 + $0x12b8] sm:$0xff] }
 0x212   : > { %9319 = vmatpush.bf16.msrb.mxu3 %v14574_v22  ;;  %v14589_v22 = vld [vmem:[%s15138_s25 + $0x1040] sm:$0xff] }
 0x213   : > { %9281 = vmatpush.bf16.msrb.mxu0 %v14549_v26  ;;  %v9075_v48 = vpop.f32.mrf.mxu0  ;;  %v14628_v26 = vld [vmem:[%s15138_s25 + $0x1178] sm:$0xff] }
 0x214   : > { %9307 = vmatpush.bf16.msrb.mxu2 %v14565_v27  ;;  %v9076_v49 = vadd.f32 %v9075_v48, %v15701_v10  ;;  %v14644_v27 = vld [vmem:[%s15138_s25 + $0x11f8] sm:$0xff] }
 0x215   : > { %9294 = vmatpush.bf16.msrb.mxu1 %v14557_v32  ;;  %v9088_v52 = vpop.f32.mrf.mxu1  ;;  %v14627_v32 = vld [vmem:[%s15138_s25 + $0x1170] sm:$0xff] }
 0x216   : > { %9320 = vmatpush.bf16.msrb.mxu3 %v14573_v33  ;;  %9282 = vmatmul.bf16.vlgmr.msrb.gmra.mxu0 %v2504_v34  ;;  %v9089_v53 = vadd.f32 %v9088_v52, %v9076_v49  ;;  %v14643_v33 = vld [vmem:[%s15138_s25 + $0x11f0] sm:$0xff]  ;;  %v14618_v34 = vld [vmem:[%s15138_s25 + $0x1128] sm:$0xff] }
 0x217   : > { %9326 = vmatpush.bf16.msra.mxu0 %v14588_v28  ;;  %9308 = vmatmul.bf16.vlgmr.msrb.gmra.mxu2 %v2506_v35  ;;  %v2509_v28 = vpack.c.b16 %v2388_v20, %v2388_v20  ;;  %v14634_v35 = vld [vmem:[%s15138_s25 + $0x11a8] sm:$0xff]  ;;  %v14651_v20 = vld [vmem:[%s15138_s25 + $0x1230] sm:$0xff] }
 0x218   : > { %9352 = vmatpush.bf16.msra.mxu2 %v14604_v29  ;;  %9295 = vmatmul.bf16.vlgmr.msrb.gmra.mxu1 %v2505_v38  ;;  %v2511_v29 = vpack.c.b16 %v2390_v21, %v2390_v21  ;;  %v14667_v21 = vld [vmem:[%s15138_s25 + $0x12b0] sm:$0xff] }
 0x219   : > { %9339 = vmatpush.bf16.msra.mxu1 %v14596_v36  ;;  %9321 = vmatmul.bf16.vlgmr.msrb.gmra.mxu3 %v2507_v39  ;;  %v14626_v36 = vld [vmem:[%s15138_s25 + $0x1168] sm:$0xff] }
 0x21a   : > { %9365 = vmatpush.bf16.msra.mxu3 %v14612_v37  ;;  %v9101_v58 = vpop.f32.mrf.mxu2  ;;  %v14642_v37 = vld [vmem:[%s15138_s25 + $0x11e8] sm:$0xff] }
 0x21b   : > { %9327 = vmatpush.bf16.msra.mxu0 %v14587_v40  ;;  %v9102_v59 = vadd.f32 %v9101_v58, %v9089_v53  ;;  %v9077_v63 = vpop.f32.mrf.mxu0  ;;  %v14617_v40 = vld [vmem:[%s15138_s25 + $0x1120] sm:$0xff]  ;;  %v14623_v58 = vld [vmem:[%s15138_s25 + $0x1150] sm:$0xff] }
 0x21c   : > { %9353 = vmatpush.bf16.msra.mxu2 %v14603_v41  ;;  %v9114_v62 = vpop.f32.mrf.mxu3  ;;  %v14633_v41 = vld [vmem:[%s15138_s25 + $0x11a0] sm:$0xff]  ;;  %v300_v63 = vld [vmem:[%s15133_s21 + $0x118] sm:$0xff] }
 0x21d   : > { %9340 = vmatpush.bf16.msra.mxu1 %v14595_v42  ;;  %v15738_v0 = vadd.f32 %v9114_v62, %v9102_v59  ;;  %v9090_v3 = vpop.f32.mrf.mxu1  ;;  %v14639_v59 = vld [vmem:[%s15138_s25 + $0x11d0] sm:$0xff] }
 0x21e   : > { %9366 = vmatpush.bf16.msra.mxu3 %v14611_v43  ;;  %v299_v62 = vld [vmem:[%s15133_s21 + $0x110] sm:$0xff] }
 0x21f   : > { %9328 = vmatpush.bf16.msra.mxu0 %v14586_v44  ;;  %v14625_v44 = vld [vmem:[%s15138_s25 + $0x1160] sm:$0xff] }
 0x220   : > { %9354 = vmatpush.bf16.msra.mxu2 %v14602_v45  ;;  %v14641_v45 = vld [vmem:[%s15138_s25 + $0x11e0] sm:$0xff] }
 0x221   : > { %9341 = vmatpush.bf16.msra.mxu1 %v14594_v46  ;;  %v14616_v46 = vld [vmem:[%s15138_s25 + $0x1118] sm:$0xff] }
 0x222   : > { %9367 = vmatpush.bf16.msra.mxu3 %v14610_v47  ;;  %v9103_v10 = vpop.f32.mrf.mxu2  ;;  %v14632_v47 = vld [vmem:[%s15138_s25 + $0x1198] sm:$0xff] }
 0x223   : > { %9329 = vmatpush.bf16.msra.mxu0 %v14585_v50  ;;  %v14624_v50 = vld [vmem:[%s15138_s25 + $0x1158] sm:$0xff]  ;;  %v2392_v10 = vunpack.c.h.b16 %v299_v62 }
 0x224   : > { %9355 = vmatpush.bf16.msra.mxu2 %v14601_v51  ;;  %v9116_v13 = vpop.f32.mrf.mxu3  ;;  %v14640_v51 = vld [vmem:[%s15138_s25 + $0x11d8] sm:$0xff] }
 0x225   : > { %9342 = vmatpush.bf16.msra.mxu1 %v14593_v54  ;;  %v14637_v13 = vld [vmem:[%s15138_s25 + $0x11c0] sm:$0xff] }
 0x226   : > { %9368 = vmatpush.bf16.msra.mxu3 %v14609_v55  ;;  %v14615_v55 = vld [vmem:[%s15138_s25 + $0x1110] sm:$0xff] }
 0x227   : > { %9330 = vmatpush.bf16.msra.mxu0 %v14584_v56  ;;  %v14631_v56 = vld [vmem:[%s15138_s25 + $0x1190] sm:$0xff] }
 0x228   : > { %9356 = vmatpush.bf16.msra.mxu2 %v14600_v57 }
 0x229   : > { %9343 = vmatpush.bf16.msra.mxu1 %v14592_v60  ;;  %v14614_v60 = vld [vmem:[%s15138_s25 + $0x1108] sm:$0xff] }
 0x22a   : > { %9369 = vmatpush.bf16.msra.mxu3 %v14608_v61  ;;  %v14630_v61 = vld [vmem:[%s15138_s25 + $0x1188] sm:$0xff] }
 0x22b   : > { %9331 = vmatpush.bf16.msra.mxu0 %v14583_v1  ;;  %v14622_v1 = vld [vmem:[%s15138_s25 + $0x1148] sm:$0xff] }
 0x22c   : > { %9357 = vmatpush.bf16.msra.mxu2 %v14599_v2  ;;  %v14638_v2 = vld [vmem:[%s15138_s25 + $0x11c8] sm:$0xff] }
 0x22d   : > { %9344 = vmatpush.bf16.msra.mxu1 %v14591_v4  ;;  %v2391_v4 = vunpack.c.l.b16 %v299_v62  ;;  %v14684_v62 = vld [vmem:[%s15138_s25 + $0x1338] sm:$0xff] }
 0x22e   : > { %9370 = vmatpush.bf16.msra.mxu3 %v14607_v5  ;;  %v2393_v5 = vunpack.c.l.b16 %v300_v63 }
 0x22f   : > { %9332 = vmatpush.bf16.msra.mxu0 %v14582_v6  ;;  %v14613_v6 = vld [vmem:[%s15138_s25 + $0x1100] sm:$0xff]  ;;  %v2512_v14 = vpack.c.b16 %v2391_v4, %v2391_v4 }
 0x230   : > { %9358 = vmatpush.bf16.msra.mxu2 %v14598_v7  ;;  %v14629_v7 = vld [vmem:[%s15138_s25 + $0x1180] sm:$0xff]  ;;  %v2514_v15 = vpack.c.b16 %v2393_v5, %v2393_v5 }
 0x231   : > { %9345 = vmatpush.bf16.msra.mxu1 %v14590_v11  ;;  %v2394_v11 = vunpack.c.h.b16 %v300_v63  ;;  %v14700_v63 = vld [vmem:[%s15138_s25 + $0x13b8] sm:$0xff] }
 0x232   : > { %9371 = vmatpush.bf16.msra.mxu3 %v14606_v12  ;;  %v14621_v12 = vld [vmem:[%s15138_s25 + $0x1140] sm:$0xff] }
 0x233   : > { %9333 = vmatpush.bf16.msra.mxu0 %v14581_v16  ;;  %v9127_v38 = vpop.f32.mrf.mxu0  ;;  %v14660_v16 = vld [vmem:[%s15138_s25 + $0x1278] sm:$0xff] }
 0x234   : > { %9359 = vmatpush.bf16.msra.mxu2 %v14597_v17  ;;  %v9128_v39 = vadd.f32 %v9127_v38, %v15738_v0  ;;  %v14676_v17 = vld [vmem:[%s15138_s25 + $0x12f8] sm:$0xff] }
 0x235   : > { %9346 = vmatpush.bf16.msra.mxu1 %v14589_v22  ;;  %v9140_v42 = vpop.f32.mrf.mxu1  ;;  %v14659_v22 = vld [vmem:[%s15138_s25 + $0x1270] sm:$0xff] }
 0x236   : > { %9372 = vmatpush.bf16.msra.mxu3 %v14605_v23  ;;  %9334 = vmatmul.bf16.vlgmr.msra.gmra.mxu0 %v2508_v24  ;;  %v9141_v43 = vadd.f32 %v9140_v42, %v9128_v39  ;;  %v14675_v23 = vld [vmem:[%s15138_s25 + $0x12f0] sm:$0xff]  ;;  %v14650_v24 = vld [vmem:[%s15138_s25 + $0x1228] sm:$0xff] }
 0x237   : > { %9378 = vmatpush.bf16.msrb.mxu0 %v14620_v18  ;;  %9360 = vmatmul.bf16.vlgmr.msra.gmra.mxu2 %v2510_v25  ;;  %v2513_v18 = vpack.c.b16 %v2392_v10, %v2392_v10  ;;  %v14666_v25 = vld [vmem:[%s15138_s25 + $0x12a8] sm:$0xff]  ;;  %v14683_v10 = vld [vmem:[%s15138_s25 + $0x1330] sm:$0xff] }
 0x238   : > { %9404 = vmatpush.bf16.msrb.mxu2 %v14636_v19  ;;  %9347 = vmatmul.bf16.vlgmr.msra.gmra.mxu1 %v2509_v28  ;;  %v2515_v19 = vpack.c.b16 %v2394_v11, %v2394_v11  ;;  %v14699_v11 = vld [vmem:[%s15138_s25 + $0x13b0] sm:$0xff] }
 0x239   : > { %9391 = vmatpush.bf16.msrb.mxu1 %v14628_v26  ;;  %9373 = vmatmul.bf16.vlgmr.msra.gmra.mxu3 %v2511_v29  ;;  %v14658_v26 = vld [vmem:[%s15138_s25 + $0x1268] sm:$0xff] }
 0x23a   : > { %9417 = vmatpush.bf16.msrb.mxu3 %v14644_v27  ;;  %v9153_v48 = vpop.f32.mrf.mxu2  ;;  %v14674_v27 = vld [vmem:[%s15138_s25 + $0x12e8] sm:$0xff] }
 0x23b   : > { %9379 = vmatpush.bf16.msrb.mxu0 %v14619_v30  ;;  %v9154_v49 = vadd.f32 %v9153_v48, %v9141_v43  ;;  %v9129_v53 = vpop.f32.mrf.mxu0  ;;  %v14649_v30 = vld [vmem:[%s15138_s25 + $0x1220] sm:$0xff]  ;;  %v14655_v48 = vld [vmem:[%s15138_s25 + $0x1250] sm:$0xff] }
 0x23c   : > { %9405 = vmatpush.bf16.msrb.mxu2 %v14635_v31  ;;  %v9166_v52 = vpop.f32.mrf.mxu3  ;;  %v14665_v31 = vld [vmem:[%s15138_s25 + $0x12a0] sm:$0xff]  ;;  %v302_v53 = vld [vmem:[%s15133_s21 + $0x128] sm:$0xff] }
 0x23d   : > { %9392 = vmatpush.bf16.msrb.mxu1 %v14627_v32  ;;  %v15775_v54 = vadd.f32 %v9166_v52, %v9154_v49  ;;  %v9142_v57 = vpop.f32.mrf.mxu1  ;;  %v14671_v49 = vld [vmem:[%s15138_s25 + $0x12d0] sm:$0xff]  ;;  %v301_v52 = vld [vmem:[%s15133_s21 + $0x120] sm:$0xff] }
 0x23e   : > { %9418 = vmatpush.bf16.msrb.mxu3 %v14643_v33 }
 0x23f   : > { %9380 = vmatpush.bf16.msrb.mxu0 %v14618_v34  ;;  %v14657_v34 = vld [vmem:[%s15138_s25 + $0x1260] sm:$0xff] }
 0x240   : > { %9406 = vmatpush.bf16.msrb.mxu2 %v14634_v35  ;;  %v14673_v35 = vld [vmem:[%s15138_s25 + $0x12e0] sm:$0xff] }
 0x241   : > { %9393 = vmatpush.bf16.msrb.mxu1 %v14626_v36  ;;  %v14648_v36 = vld [vmem:[%s15138_s25 + $0x1218] sm:$0xff] }
 0x242   : > { %9419 = vmatpush.bf16.msrb.mxu3 %v14642_v37  ;;  %v9155_v0 = vpop.f32.mrf.mxu2  ;;  %v14664_v37 = vld [vmem:[%s15138_s25 + $0x1298] sm:$0xff] }
 0x243   : > { %9381 = vmatpush.bf16.msrb.mxu0 %v14617_v40  ;;  %v14656_v40 = vld [vmem:[%s15138_s25 + $0x1258] sm:$0xff]  ;;  %v2396_v0 = vunpack.c.h.b16 %v301_v52 }
 0x244   : > { %9407 = vmatpush.bf16.msrb.mxu2 %v14633_v41  ;;  %v9168_v3 = vpop.f32.mrf.mxu3  ;;  %v14672_v41 = vld [vmem:[%s15138_s25 + $0x12d8] sm:$0xff] }
 0x245   : > { %9394 = vmatpush.bf16.msrb.mxu1 %v14625_v44  ;;  %v14669_v3 = vld [vmem:[%s15138_s25 + $0x12c0] sm:$0xff] }
 0x246   : > { %9420 = vmatpush.bf16.msrb.mxu3 %v14641_v45  ;;  %v14647_v45 = vld [vmem:[%s15138_s25 + $0x1210] sm:$0xff] }
 0x247   : > { %9382 = vmatpush.bf16.msrb.mxu0 %v14616_v46  ;;  %v14663_v46 = vld [vmem:[%s15138_s25 + $0x1290] sm:$0xff] }
 0x248   : > { %9408 = vmatpush.bf16.msrb.mxu2 %v14632_v47 }
 0x249   : > { %9395 = vmatpush.bf16.msrb.mxu1 %v14624_v50  ;;  %v14646_v50 = vld [vmem:[%s15138_s25 + $0x1208] sm:$0xff] }
 0x24a   : > { %9421 = vmatpush.bf16.msrb.mxu3 %v14640_v51  ;;  %v14662_v51 = vld [vmem:[%s15138_s25 + $0x1288] sm:$0xff] }
 0x24b   : > { %9383 = vmatpush.bf16.msrb.mxu0 %v14615_v55  ;;  %v14654_v55 = vld [vmem:[%s15138_s25 + $0x1248] sm:$0xff] }
 0x24c   : > { %9409 = vmatpush.bf16.msrb.mxu2 %v14631_v56  ;;  %v14670_v56 = vld [vmem:[%s15138_s25 + $0x12c8] sm:$0xff] }
 0x24d   : > { %9396 = vmatpush.bf16.msrb.mxu1 %v14623_v58  ;;  %v2395_v58 = vunpack.c.l.b16 %v301_v52  ;;  %v14716_v52 = vld [vmem:[%s15138_s25 + $0x1438] sm:$0xff] }
 0x24e   : > { %9422 = vmatpush.bf16.msrb.mxu3 %v14639_v59  ;;  %v2397_v59 = vunpack.c.l.b16 %v302_v53 }
 0x24f   : > { %9384 = vmatpush.bf16.msrb.mxu0 %v14614_v60  ;;  %v14645_v60 = vld [vmem:[%s15138_s25 + $0x1200] sm:$0xff]  ;;  %v2516_v4 = vpack.c.b16 %v2395_v58, %v2395_v58 }
 0x250   : > { %9410 = vmatpush.bf16.msrb.mxu2 %v14630_v61  ;;  %v14661_v61 = vld [vmem:[%s15138_s25 + $0x1280] sm:$0xff]  ;;  %v2518_v5 = vpack.c.b16 %v2397_v59, %v2397_v59 }
 0x251   : > { %9397 = vmatpush.bf16.msrb.mxu1 %v14622_v1  ;;  %v2398_v1 = vunpack.c.h.b16 %v302_v53  ;;  %v14732_v53 = vld [vmem:[%s15138_s25 + $0x14b8] sm:$0xff] }
 0x252   : > { %9423 = vmatpush.bf16.msrb.mxu3 %v14638_v2  ;;  %v14653_v2 = vld [vmem:[%s15138_s25 + $0x1240] sm:$0xff] }
 0x253   : > { %9385 = vmatpush.bf16.msrb.mxu0 %v14613_v6  ;;  %v9179_v28 = vpop.f32.mrf.mxu0  ;;  %v14692_v6 = vld [vmem:[%s15138_s25 + $0x1378] sm:$0xff] }
 0x254   : > { %9411 = vmatpush.bf16.msrb.mxu2 %v14629_v7  ;;  %v9180_v29 = vadd.f32 %v9179_v28, %v15775_v54  ;;  %v14708_v7 = vld [vmem:[%s15138_s25 + $0x13f8] sm:$0xff] }
 0x255   : > { %9398 = vmatpush.bf16.msrb.mxu1 %v14621_v12  ;;  %v9192_v32 = vpop.f32.mrf.mxu1  ;;  %v14691_v12 = vld [vmem:[%s15138_s25 + $0x1370] sm:$0xff] }
 0x256   : > { %9424 = vmatpush.bf16.msrb.mxu3 %v14637_v13  ;;  %9386 = vmatmul.bf16.vlgmr.msrb.gmra.mxu0 %v2512_v14  ;;  %v9193_v33 = vadd.f32 %v9192_v32, %v9180_v29  ;;  %v14707_v13 = vld [vmem:[%s15138_s25 + $0x13f0] sm:$0xff]  ;;  %v14682_v14 = vld [vmem:[%s15138_s25 + $0x1328] sm:$0xff] }
 0x257   : > { %9430 = vmatpush.bf16.msra.mxu0 %v14652_v8  ;;  %9412 = vmatmul.bf16.vlgmr.msrb.gmra.mxu2 %v2514_v15  ;;  %v2517_v8 = vpack.c.b16 %v2396_v0, %v2396_v0  ;;  %v14698_v15 = vld [vmem:[%s15138_s25 + $0x13a8] sm:$0xff]  ;;  %v14715_v0 = vld [vmem:[%s15138_s25 + $0x1430] sm:$0xff] }
 0x258   : > { %9456 = vmatpush.bf16.msra.mxu2 %v14668_v9  ;;  %9399 = vmatmul.bf16.vlgmr.msrb.gmra.mxu1 %v2513_v18  ;;  %v2519_v9 = vpack.c.b16 %v2398_v1, %v2398_v1  ;;  %v14731_v1 = vld [vmem:[%s15138_s25 + $0x14b0] sm:$0xff] }
 0x259   : > { %9443 = vmatpush.bf16.msra.mxu1 %v14660_v16  ;;  %9425 = vmatmul.bf16.vlgmr.msrb.gmra.mxu3 %v2515_v19  ;;  %v14690_v16 = vld [vmem:[%s15138_s25 + $0x1368] sm:$0xff] }
 0x25a   : > { %9469 = vmatpush.bf16.msra.mxu3 %v14676_v17  ;;  %v9205_v38 = vpop.f32.mrf.mxu2  ;;  %v14706_v17 = vld [vmem:[%s15138_s25 + $0x13e8] sm:$0xff] }
 0x25b   : > { %9431 = vmatpush.bf16.msra.mxu0 %v14651_v20  ;;  %v9206_v39 = vadd.f32 %v9205_v38, %v9193_v33  ;;  %v9181_v43 = vpop.f32.mrf.mxu0  ;;  %v14681_v20 = vld [vmem:[%s15138_s25 + $0x1320] sm:$0xff]  ;;  %v14687_v38 = vld [vmem:[%s15138_s25 + $0x1350] sm:$0xff] }
 0x25c   : > { %9457 = vmatpush.bf16.msra.mxu2 %v14667_v21  ;;  %v9218_v42 = vpop.f32.mrf.mxu3  ;;  %v14697_v21 = vld [vmem:[%s15138_s25 + $0x13a0] sm:$0xff]  ;;  %v304_v43 = vld [vmem:[%s15133_s21 + $0x138] sm:$0xff] }
 0x25d   : > { %9444 = vmatpush.bf16.msra.mxu1 %v14659_v22  ;;  %v15812_v44 = vadd.f32 %v9218_v42, %v9206_v39  ;;  %v9194_v47 = vpop.f32.mrf.mxu1  ;;  %v14703_v39 = vld [vmem:[%s15138_s25 + $0x13d0] sm:$0xff] }
 0x25e   : > { %9470 = vmatpush.bf16.msra.mxu3 %v14675_v23  ;;  %v303_v42 = vld [vmem:[%s15133_s21 + $0x130] sm:$0xff] }
 0x25f   : > { %9432 = vmatpush.bf16.msra.mxu0 %v14650_v24  ;;  %v14689_v24 = vld [vmem:[%s15138_s25 + $0x1360] sm:$0xff] }
 0x260   : > { %9458 = vmatpush.bf16.msra.mxu2 %v14666_v25  ;;  %v14705_v25 = vld [vmem:[%s15138_s25 + $0x13e0] sm:$0xff] }
 0x261   : > { %9445 = vmatpush.bf16.msra.mxu1 %v14658_v26  ;;  %v14680_v26 = vld [vmem:[%s15138_s25 + $0x1318] sm:$0xff] }
 0x262   : > { %9471 = vmatpush.bf16.msra.mxu3 %v14674_v27  ;;  %v9207_v54 = vpop.f32.mrf.mxu2  ;;  %v14696_v27 = vld [vmem:[%s15138_s25 + $0x1398] sm:$0xff] }
 0x263   : > { %9433 = vmatpush.bf16.msra.mxu0 %v14649_v30  ;;  %v14688_v30 = vld [vmem:[%s15138_s25 + $0x1358] sm:$0xff]  ;;  %v2400_v54 = vunpack.c.h.b16 %v303_v42 }
 0x264   : > { %9459 = vmatpush.bf16.msra.mxu2 %v14665_v31  ;;  %v9220_v57 = vpop.f32.mrf.mxu3  ;;  %v14704_v31 = vld [vmem:[%s15138_s25 + $0x13d8] sm:$0xff] }
 0x265   : > { %9446 = vmatpush.bf16.msra.mxu1 %v14657_v34  ;;  %v14701_v57 = vld [vmem:[%s15138_s25 + $0x13c0] sm:$0xff] }
 0x266   : > { %9472 = vmatpush.bf16.msra.mxu3 %v14673_v35  ;;  %v14679_v35 = vld [vmem:[%s15138_s25 + $0x1310] sm:$0xff] }
 0x267   : > { %9434 = vmatpush.bf16.msra.mxu0 %v14648_v36  ;;  %v14695_v36 = vld [vmem:[%s15138_s25 + $0x1390] sm:$0xff] }
 0x268   : > { %9460 = vmatpush.bf16.msra.mxu2 %v14664_v37 }
 0x269   : > { %9447 = vmatpush.bf16.msra.mxu1 %v14656_v40  ;;  %v14678_v40 = vld [vmem:[%s15138_s25 + $0x1308] sm:$0xff] }
 0x26a   : > { %9473 = vmatpush.bf16.msra.mxu3 %v14672_v41  ;;  %v14694_v41 = vld [vmem:[%s15138_s25 + $0x1388] sm:$0xff] }
 0x26b   : > { %9435 = vmatpush.bf16.msra.mxu0 %v14647_v45  ;;  %v14686_v45 = vld [vmem:[%s15138_s25 + $0x1348] sm:$0xff] }
 0x26c   : > { %9461 = vmatpush.bf16.msra.mxu2 %v14663_v46  ;;  %v14702_v46 = vld [vmem:[%s15138_s25 + $0x13c8] sm:$0xff] }
 0x26d   : > { %9448 = vmatpush.bf16.msra.mxu1 %v14655_v48  ;;  %v2399_v48 = vunpack.c.l.b16 %v303_v42  ;;  %v14748_v42 = vld [vmem:[%s15138_s25 + $0x1538] sm:$0xff] }
 0x26e   : > { %9474 = vmatpush.bf16.msra.mxu3 %v14671_v49  ;;  %v2401_v49 = vunpack.c.l.b16 %v304_v43 }
 0x26f   : > { %9436 = vmatpush.bf16.msra.mxu0 %v14646_v50  ;;  %v14677_v50 = vld [vmem:[%s15138_s25 + $0x1300] sm:$0xff]  ;;  %v2520_v58 = vpack.c.b16 %v2399_v48, %v2399_v48 }
 0x270   : > { %9462 = vmatpush.bf16.msra.mxu2 %v14662_v51  ;;  %v14693_v51 = vld [vmem:[%s15138_s25 + $0x1380] sm:$0xff]  ;;  %v2522_v59 = vpack.c.b16 %v2401_v49, %v2401_v49 }
 0x271   : > { %9449 = vmatpush.bf16.msra.mxu1 %v14654_v55  ;;  %v2402_v55 = vunpack.c.h.b16 %v304_v43  ;;  %v14764_v43 = vld [vmem:[%s15138_s25 + $0x15b8] sm:$0xff] }
 0x272   : > { %9475 = vmatpush.bf16.msra.mxu3 %v14670_v56  ;;  %v14685_v56 = vld [vmem:[%s15138_s25 + $0x1340] sm:$0xff] }
 0x273   : > { %9437 = vmatpush.bf16.msra.mxu0 %v14645_v60  ;;  %v9231_v18 = vpop.f32.mrf.mxu0  ;;  %v14724_v60 = vld [vmem:[%s15138_s25 + $0x1478] sm:$0xff] }
 0x274   : > { %9463 = vmatpush.bf16.msra.mxu2 %v14661_v61  ;;  %v9232_v19 = vadd.f32 %v9231_v18, %v15812_v44  ;;  %v14740_v61 = vld [vmem:[%s15138_s25 + $0x14f8] sm:$0xff] }
 0x275   : > { %9450 = vmatpush.bf16.msra.mxu1 %v14653_v2  ;;  %v9244_v22 = vpop.f32.mrf.mxu1  ;;  %v14723_v2 = vld [vmem:[%s15138_s25 + $0x1470] sm:$0xff] }
 0x276   : > { %9476 = vmatpush.bf16.msra.mxu3 %v14669_v3  ;;  %9438 = vmatmul.bf16.vlgmr.msra.gmra.mxu0 %v2516_v4  ;;  %v9245_v23 = vadd.f32 %v9244_v22, %v9232_v19  ;;  %v14739_v3 = vld [vmem:[%s15138_s25 + $0x14f0] sm:$0xff]  ;;  %v14714_v4 = vld [vmem:[%s15138_s25 + $0x1428] sm:$0xff] }
 0x277   : > { %9482 = vmatpush.bf16.msrb.mxu0 %v14684_v62  ;;  %9464 = vmatmul.bf16.vlgmr.msra.gmra.mxu2 %v2518_v5  ;;  %v2521_v62 = vpack.c.b16 %v2400_v54, %v2400_v54  ;;  %v14730_v5 = vld [vmem:[%s15138_s25 + $0x14a8] sm:$0xff]  ;;  %v14747_v54 = vld [vmem:[%s15138_s25 + $0x1530] sm:$0xff] }
 0x278   : > { %9508 = vmatpush.bf16.msrb.mxu2 %v14700_v63  ;;  %9451 = vmatmul.bf16.vlgmr.msra.gmra.mxu1 %v2517_v8  ;;  %v2523_v63 = vpack.c.b16 %v2402_v55, %v2402_v55  ;;  %v14763_v55 = vld [vmem:[%s15138_s25 + $0x15b0] sm:$0xff] }
 0x279   : > { %9495 = vmatpush.bf16.msrb.mxu1 %v14692_v6  ;;  %9477 = vmatmul.bf16.vlgmr.msra.gmra.mxu3 %v2519_v9  ;;  %v14722_v6 = vld [vmem:[%s15138_s25 + $0x1468] sm:$0xff] }
 0x27a   : > { %9521 = vmatpush.bf16.msrb.mxu3 %v14708_v7  ;;  %v9257_v28 = vpop.f32.mrf.mxu2  ;;  %v14738_v7 = vld [vmem:[%s15138_s25 + $0x14e8] sm:$0xff] }
 0x27b   : > { %9483 = vmatpush.bf16.msrb.mxu0 %v14683_v10  ;;  %v9258_v29 = vadd.f32 %v9257_v28, %v9245_v23  ;;  %v9233_v33 = vpop.f32.mrf.mxu0  ;;  %v14713_v10 = vld [vmem:[%s15138_s25 + $0x1420] sm:$0xff]  ;;  %v14719_v28 = vld [vmem:[%s15138_s25 + $0x1450] sm:$0xff] }
 0x27c   : > { %9509 = vmatpush.bf16.msrb.mxu2 %v14699_v11  ;;  %v9270_v32 = vpop.f32.mrf.mxu3  ;;  %v14729_v11 = vld [vmem:[%s15138_s25 + $0x14a0] sm:$0xff]  ;;  %v306_v33 = vld [vmem:[%s15133_s21 + $0x148] sm:$0xff] }
 0x27d   : > { %9496 = vmatpush.bf16.msrb.mxu1 %v14691_v12  ;;  %v15849_v34 = vadd.f32 %v9270_v32, %v9258_v29  ;;  %v9246_v37 = vpop.f32.mrf.mxu1  ;;  %v14735_v29 = vld [vmem:[%s15138_s25 + $0x14d0] sm:$0xff]  ;;  %v305_v32 = vld [vmem:[%s15133_s21 + $0x140] sm:$0xff] }
 0x27e   : > { %9522 = vmatpush.bf16.msrb.mxu3 %v14707_v13 }
 0x27f   : > { %9484 = vmatpush.bf16.msrb.mxu0 %v14682_v14  ;;  %v14721_v14 = vld [vmem:[%s15138_s25 + $0x1460] sm:$0xff] }
 0x280   : > { %9510 = vmatpush.bf16.msrb.mxu2 %v14698_v15  ;;  %v14737_v15 = vld [vmem:[%s15138_s25 + $0x14e0] sm:$0xff] }
 0x281   : > { %9497 = vmatpush.bf16.msrb.mxu1 %v14690_v16  ;;  %v14712_v16 = vld [vmem:[%s15138_s25 + $0x1418] sm:$0xff] }
 0x282   : > { %9523 = vmatpush.bf16.msrb.mxu3 %v14706_v17  ;;  %v9259_v44 = vpop.f32.mrf.mxu2  ;;  %v14728_v17 = vld [vmem:[%s15138_s25 + $0x1498] sm:$0xff] }
 0x283   : > { %9485 = vmatpush.bf16.msrb.mxu0 %v14681_v20  ;;  %v14720_v20 = vld [vmem:[%s15138_s25 + $0x1458] sm:$0xff]  ;;  %v2404_v44 = vunpack.c.h.b16 %v305_v32 }
 0x284   : > { %9511 = vmatpush.bf16.msrb.mxu2 %v14697_v21  ;;  %v9272_v47 = vpop.f32.mrf.mxu3  ;;  %v14736_v21 = vld [vmem:[%s15138_s25 + $0x14d8] sm:$0xff] }
 0x285   : > { %9498 = vmatpush.bf16.msrb.mxu1 %v14689_v24  ;;  %v14733_v47 = vld [vmem:[%s15138_s25 + $0x14c0] sm:$0xff] }
 0x286   : > { %9524 = vmatpush.bf16.msrb.mxu3 %v14705_v25  ;;  %v14711_v25 = vld [vmem:[%s15138_s25 + $0x1410] sm:$0xff] }
 0x287   : > { %9486 = vmatpush.bf16.msrb.mxu0 %v14680_v26  ;;  %v14727_v26 = vld [vmem:[%s15138_s25 + $0x1490] sm:$0xff] }
 0x288   : > { %9512 = vmatpush.bf16.msrb.mxu2 %v14696_v27 }
 0x289   : > { %9499 = vmatpush.bf16.msrb.mxu1 %v14688_v30  ;;  %v14710_v30 = vld [vmem:[%s15138_s25 + $0x1408] sm:$0xff] }
 0x28a   : > { %9525 = vmatpush.bf16.msrb.mxu3 %v14704_v31  ;;  %v14726_v31 = vld [vmem:[%s15138_s25 + $0x1488] sm:$0xff] }
 0x28b   : > { %9487 = vmatpush.bf16.msrb.mxu0 %v14679_v35  ;;  %v14718_v35 = vld [vmem:[%s15138_s25 + $0x1448] sm:$0xff] }
 0x28c   : > { %9513 = vmatpush.bf16.msrb.mxu2 %v14695_v36  ;;  %v14734_v36 = vld [vmem:[%s15138_s25 + $0x14c8] sm:$0xff] }
 0x28d   : > { %9500 = vmatpush.bf16.msrb.mxu1 %v14687_v38  ;;  %v2403_v38 = vunpack.c.l.b16 %v305_v32  ;;  %v14780_v32 = vld [vmem:[%s15138_s25 + $0x1638] sm:$0xff] }
 0x28e   : > { %9526 = vmatpush.bf16.msrb.mxu3 %v14703_v39  ;;  %v2405_v39 = vunpack.c.l.b16 %v306_v33 }
 0x28f   : > { %9488 = vmatpush.bf16.msrb.mxu0 %v14678_v40  ;;  %v14709_v40 = vld [vmem:[%s15138_s25 + $0x1400] sm:$0xff]  ;;  %v2524_v48 = vpack.c.b16 %v2403_v38, %v2403_v38 }
 0x290   : > { %9514 = vmatpush.bf16.msrb.mxu2 %v14694_v41  ;;  %v14725_v41 = vld [vmem:[%s15138_s25 + $0x1480] sm:$0xff]  ;;  %v2526_v49 = vpack.c.b16 %v2405_v39, %v2405_v39 }
 0x291   : > { %9501 = vmatpush.bf16.msrb.mxu1 %v14686_v45  ;;  %v2406_v45 = vunpack.c.h.b16 %v306_v33  ;;  %v14796_v33 = vld [vmem:[%s15138_s25 + $0x16b8] sm:$0xff] }
 0x292   : > { %9527 = vmatpush.bf16.msrb.mxu3 %v14702_v46  ;;  %v14717_v46 = vld [vmem:[%s15138_s25 + $0x1440] sm:$0xff] }
 0x293   : > { %9489 = vmatpush.bf16.msrb.mxu0 %v14677_v50  ;;  %v9283_v8 = vpop.f32.mrf.mxu0  ;;  %v14756_v50 = vld [vmem:[%s15138_s25 + $0x1578] sm:$0xff] }
 0x294   : > { %9515 = vmatpush.bf16.msrb.mxu2 %v14693_v51  ;;  %v9284_v9 = vadd.f32 %v9283_v8, %v15849_v34  ;;  %v14772_v51 = vld [vmem:[%s15138_s25 + $0x15f8] sm:$0xff] }
 0x295   : > { %9502 = vmatpush.bf16.msrb.mxu1 %v14685_v56  ;;  %v9296_v12 = vpop.f32.mrf.mxu1  ;;  %v14755_v56 = vld [vmem:[%s15138_s25 + $0x1570] sm:$0xff] }
 0x296   : > { %9528 = vmatpush.bf16.msrb.mxu3 %v14701_v57  ;;  %9490 = vmatmul.bf16.vlgmr.msrb.gmra.mxu0 %v2520_v58  ;;  %v9297_v13 = vadd.f32 %v9296_v12, %v9284_v9  ;;  %v14771_v57 = vld [vmem:[%s15138_s25 + $0x15f0] sm:$0xff]  ;;  %v14746_v58 = vld [vmem:[%s15138_s25 + $0x1528] sm:$0xff] }
 0x297   : > { %9534 = vmatpush.bf16.msra.mxu0 %v14716_v52  ;;  %9516 = vmatmul.bf16.vlgmr.msrb.gmra.mxu2 %v2522_v59  ;;  %v2525_v52 = vpack.c.b16 %v2404_v44, %v2404_v44  ;;  %v14762_v59 = vld [vmem:[%s15138_s25 + $0x15a8] sm:$0xff]  ;;  %v14779_v44 = vld [vmem:[%s15138_s25 + $0x1630] sm:$0xff] }
 0x298   : > { %9560 = vmatpush.bf16.msra.mxu2 %v14732_v53  ;;  %9503 = vmatmul.bf16.vlgmr.msrb.gmra.mxu1 %v2521_v62  ;;  %v2527_v53 = vpack.c.b16 %v2406_v45, %v2406_v45  ;;  %v14795_v45 = vld [vmem:[%s15138_s25 + $0x16b0] sm:$0xff] }
 0x299   : > { %9547 = vmatpush.bf16.msra.mxu1 %v14724_v60  ;;  %9529 = vmatmul.bf16.vlgmr.msrb.gmra.mxu3 %v2523_v63  ;;  %v14754_v60 = vld [vmem:[%s15138_s25 + $0x1568] sm:$0xff] }
 0x29a   : > { %9573 = vmatpush.bf16.msra.mxu3 %v14740_v61  ;;  %v9309_v18 = vpop.f32.mrf.mxu2  ;;  %v14770_v61 = vld [vmem:[%s15138_s25 + $0x15e8] sm:$0xff] }
 0x29b   : > { %9535 = vmatpush.bf16.msra.mxu0 %v14715_v0  ;;  %v9310_v19 = vadd.f32 %v9309_v18, %v9297_v13  ;;  %v9285_v23 = vpop.f32.mrf.mxu0  ;;  %v14745_v0 = vld [vmem:[%s15138_s25 + $0x1520] sm:$0xff]  ;;  %v14751_v18 = vld [vmem:[%s15138_s25 + $0x1550] sm:$0xff] }
 0x29c   : > { %9561 = vmatpush.bf16.msra.mxu2 %v14731_v1  ;;  %v9322_v22 = vpop.f32.mrf.mxu3  ;;  %v14761_v1 = vld [vmem:[%s15138_s25 + $0x15a0] sm:$0xff]  ;;  %v308_v23 = vld [vmem:[%s15133_s21 + $0x158] sm:$0xff] }
 0x29d   : > { %9548 = vmatpush.bf16.msra.mxu1 %v14723_v2  ;;  %v15886_v24 = vadd.f32 %v9322_v22, %v9310_v19  ;;  %v9298_v27 = vpop.f32.mrf.mxu1  ;;  %v14767_v19 = vld [vmem:[%s15138_s25 + $0x15d0] sm:$0xff] }
 0x29e   : > { %9574 = vmatpush.bf16.msra.mxu3 %v14739_v3  ;;  %v307_v22 = vld [vmem:[%s15133_s21 + $0x150] sm:$0xff] }
 0x29f   : > { %9536 = vmatpush.bf16.msra.mxu0 %v14714_v4  ;;  %v14753_v4 = vld [vmem:[%s15138_s25 + $0x1560] sm:$0xff] }
 0x2a0   : > { %9562 = vmatpush.bf16.msra.mxu2 %v14730_v5  ;;  %v14769_v5 = vld [vmem:[%s15138_s25 + $0x15e0] sm:$0xff] }
 0x2a1   : > { %9549 = vmatpush.bf16.msra.mxu1 %v14722_v6  ;;  %v14744_v6 = vld [vmem:[%s15138_s25 + $0x1518] sm:$0xff] }
 0x2a2   : > { %9575 = vmatpush.bf16.msra.mxu3 %v14738_v7  ;;  %v9311_v34 = vpop.f32.mrf.mxu2  ;;  %v14760_v7 = vld [vmem:[%s15138_s25 + $0x1598] sm:$0xff] }
 0x2a3   : > { %9537 = vmatpush.bf16.msra.mxu0 %v14713_v10  ;;  %v14752_v10 = vld [vmem:[%s15138_s25 + $0x1558] sm:$0xff]  ;;  %v2408_v34 = vunpack.c.h.b16 %v307_v22 }
 0x2a4   : > { %9563 = vmatpush.bf16.msra.mxu2 %v14729_v11  ;;  %v9324_v37 = vpop.f32.mrf.mxu3  ;;  %v14768_v11 = vld [vmem:[%s15138_s25 + $0x15d8] sm:$0xff] }
 0x2a5   : > { %9550 = vmatpush.bf16.msra.mxu1 %v14721_v14  ;;  %v14765_v37 = vld [vmem:[%s15138_s25 + $0x15c0] sm:$0xff] }
 0x2a6   : > { %9576 = vmatpush.bf16.msra.mxu3 %v14737_v15  ;;  %v14743_v15 = vld [vmem:[%s15138_s25 + $0x1510] sm:$0xff] }
 0x2a7   : > { %9538 = vmatpush.bf16.msra.mxu0 %v14712_v16  ;;  %v14759_v16 = vld [vmem:[%s15138_s25 + $0x1590] sm:$0xff] }
 0x2a8   : > { %9564 = vmatpush.bf16.msra.mxu2 %v14728_v17 }
 0x2a9   : > { %9551 = vmatpush.bf16.msra.mxu1 %v14720_v20  ;;  %v14742_v20 = vld [vmem:[%s15138_s25 + $0x1508] sm:$0xff] }
 0x2aa   : > { %9577 = vmatpush.bf16.msra.mxu3 %v14736_v21  ;;  %v14758_v21 = vld [vmem:[%s15138_s25 + $0x1588] sm:$0xff] }
 0x2ab   : > { %9539 = vmatpush.bf16.msra.mxu0 %v14711_v25  ;;  %v14750_v25 = vld [vmem:[%s15138_s25 + $0x1548] sm:$0xff] }
 0x2ac   : > { %9565 = vmatpush.bf16.msra.mxu2 %v14727_v26  ;;  %v14766_v26 = vld [vmem:[%s15138_s25 + $0x15c8] sm:$0xff] }
 0x2ad   : > { %9552 = vmatpush.bf16.msra.mxu1 %v14719_v28  ;;  %v2407_v28 = vunpack.c.l.b16 %v307_v22  ;;  %v14812_v22 = vld [vmem:[%s15138_s25 + $0x1738] sm:$0xff] }
 0x2ae   : > { %9578 = vmatpush.bf16.msra.mxu3 %v14735_v29  ;;  %v2409_v29 = vunpack.c.l.b16 %v308_v23 }
 0x2af   : > { %9540 = vmatpush.bf16.msra.mxu0 %v14710_v30  ;;  %v14741_v30 = vld [vmem:[%s15138_s25 + $0x1500] sm:$0xff]  ;;  %v2528_v38 = vpack.c.b16 %v2407_v28, %v2407_v28 }
 0x2b0   : > { %9566 = vmatpush.bf16.msra.mxu2 %v14726_v31  ;;  %v14757_v31 = vld [vmem:[%s15138_s25 + $0x1580] sm:$0xff]  ;;  %v2530_v39 = vpack.c.b16 %v2409_v29, %v2409_v29 }
 0x2b1   : > { %9553 = vmatpush.bf16.msra.mxu1 %v14718_v35  ;;  %v2410_v35 = vunpack.c.h.b16 %v308_v23  ;;  %v14828_v23 = vld [vmem:[%s15138_s25 + $0x17b8] sm:$0xff] }
 0x2b2   : > { %9579 = vmatpush.bf16.msra.mxu3 %v14734_v36  ;;  %v14749_v36 = vld [vmem:[%s15138_s25 + $0x1540] sm:$0xff] }
 0x2b3   : > { %9541 = vmatpush.bf16.msra.mxu0 %v14709_v40  ;;  %v9335_v62 = vpop.f32.mrf.mxu0  ;;  %v14788_v40 = vld [vmem:[%s15138_s25 + $0x1678] sm:$0xff] }
 0x2b4   : > { %9567 = vmatpush.bf16.msra.mxu2 %v14725_v41  ;;  %v9336_v63 = vadd.f32 %v9335_v62, %v15886_v24  ;;  %v14804_v41 = vld [vmem:[%s15138_s25 + $0x16f8] sm:$0xff] }
 0x2b5   : > { %9554 = vmatpush.bf16.msra.mxu1 %v14717_v46  ;;  %v9348_v2 = vpop.f32.mrf.mxu1  ;;  %v14787_v46 = vld [vmem:[%s15138_s25 + $0x1670] sm:$0xff] }
 0x2b6   : > { %9580 = vmatpush.bf16.msra.mxu3 %v14733_v47  ;;  %9542 = vmatmul.bf16.vlgmr.msra.gmra.mxu0 %v2524_v48  ;;  %v9349_v3 = vadd.f32 %v9348_v2, %v9336_v63  ;;  %v14803_v47 = vld [vmem:[%s15138_s25 + $0x16f0] sm:$0xff]  ;;  %v14778_v48 = vld [vmem:[%s15138_s25 + $0x1628] sm:$0xff] }
 0x2b7   : > { %9586 = vmatpush.bf16.msrb.mxu0 %v14748_v42  ;;  %9568 = vmatmul.bf16.vlgmr.msra.gmra.mxu2 %v2526_v49  ;;  %v2529_v42 = vpack.c.b16 %v2408_v34, %v2408_v34  ;;  %v14794_v49 = vld [vmem:[%s15138_s25 + $0x16a8] sm:$0xff]  ;;  %v14811_v34 = vld [vmem:[%s15138_s25 + $0x1730] sm:$0xff] }
 0x2b8   : > { %9612 = vmatpush.bf16.msrb.mxu2 %v14764_v43  ;;  %9555 = vmatmul.bf16.vlgmr.msra.gmra.mxu1 %v2525_v52  ;;  %v2531_v43 = vpack.c.b16 %v2410_v35, %v2410_v35  ;;  %v14827_v35 = vld [vmem:[%s15138_s25 + $0x17b0] sm:$0xff] }
 0x2b9   : > { %9599 = vmatpush.bf16.msrb.mxu1 %v14756_v50  ;;  %9581 = vmatmul.bf16.vlgmr.msra.gmra.mxu3 %v2527_v53  ;;  %v14786_v50 = vld [vmem:[%s15138_s25 + $0x1668] sm:$0xff] }
 0x2ba   : > { %9625 = vmatpush.bf16.msrb.mxu3 %v14772_v51  ;;  %v9361_v8 = vpop.f32.mrf.mxu2  ;;  %v14802_v51 = vld [vmem:[%s15138_s25 + $0x16e8] sm:$0xff] }
 0x2bb   : > { %9587 = vmatpush.bf16.msrb.mxu0 %v14747_v54  ;;  %v9362_v9 = vadd.f32 %v9361_v8, %v9349_v3  ;;  %v9337_v13 = vpop.f32.mrf.mxu0  ;;  %v14777_v54 = vld [vmem:[%s15138_s25 + $0x1620] sm:$0xff]  ;;  %v14783_v8 = vld [vmem:[%s15138_s25 + $0x1650] sm:$0xff] }
 0x2bc   : > { %9613 = vmatpush.bf16.msrb.mxu2 %v14763_v55  ;;  %v9374_v12 = vpop.f32.mrf.mxu3  ;;  %v14793_v55 = vld [vmem:[%s15138_s25 + $0x16a0] sm:$0xff]  ;;  %v310_v13 = vld [vmem:[%s15133_s21 + $0x168] sm:$0xff] }
 0x2bd   : > { %9600 = vmatpush.bf16.msrb.mxu1 %v14755_v56  ;;  %v15923_v14 = vadd.f32 %v9374_v12, %v9362_v9  ;;  %v9350_v17 = vpop.f32.mrf.mxu1  ;;  %v14799_v9 = vld [vmem:[%s15138_s25 + $0x16d0] sm:$0xff]  ;;  %v309_v12 = vld [vmem:[%s15133_s21 + $0x160] sm:$0xff] }
 0x2be   : > { %9626 = vmatpush.bf16.msrb.mxu3 %v14771_v57 }
 0x2bf   : > { %9588 = vmatpush.bf16.msrb.mxu0 %v14746_v58  ;;  %v14785_v58 = vld [vmem:[%s15138_s25 + $0x1660] sm:$0xff] }
 0x2c0   : > { %9614 = vmatpush.bf16.msrb.mxu2 %v14762_v59  ;;  %v14801_v59 = vld [vmem:[%s15138_s25 + $0x16e0] sm:$0xff] }
 0x2c1   : > { %9601 = vmatpush.bf16.msrb.mxu1 %v14754_v60  ;;  %v14776_v60 = vld [vmem:[%s15138_s25 + $0x1618] sm:$0xff] }
 0x2c2   : > { %9627 = vmatpush.bf16.msrb.mxu3 %v14770_v61  ;;  %v9363_v24 = vpop.f32.mrf.mxu2  ;;  %v14792_v61 = vld [vmem:[%s15138_s25 + $0x1698] sm:$0xff] }
 0x2c3   : > { %9589 = vmatpush.bf16.msrb.mxu0 %v14745_v0  ;;  %v14784_v0 = vld [vmem:[%s15138_s25 + $0x1658] sm:$0xff]  ;;  %v2412_v24 = vunpack.c.h.b16 %v309_v12 }
 0x2c4   : > { %9615 = vmatpush.bf16.msrb.mxu2 %v14761_v1  ;;  %v9376_v27 = vpop.f32.mrf.mxu3  ;;  %v14800_v1 = vld [vmem:[%s15138_s25 + $0x16d8] sm:$0xff] }
 0x2c5   : > { %9602 = vmatpush.bf16.msrb.mxu1 %v14753_v4  ;;  %v14797_v27 = vld [vmem:[%s15138_s25 + $0x16c0] sm:$0xff] }
 0x2c6   : > { %9628 = vmatpush.bf16.msrb.mxu3 %v14769_v5  ;;  %v14775_v5 = vld [vmem:[%s15138_s25 + $0x1610] sm:$0xff] }
 0x2c7   : > { %9590 = vmatpush.bf16.msrb.mxu0 %v14744_v6  ;;  %v14791_v6 = vld [vmem:[%s15138_s25 + $0x1690] sm:$0xff] }
 0x2c8   : > { %9616 = vmatpush.bf16.msrb.mxu2 %v14760_v7 }
 0x2c9   : > { %9603 = vmatpush.bf16.msrb.mxu1 %v14752_v10  ;;  %v14774_v10 = vld [vmem:[%s15138_s25 + $0x1608] sm:$0xff] }
 0x2ca   : > { %9629 = vmatpush.bf16.msrb.mxu3 %v14768_v11  ;;  %v14790_v11 = vld [vmem:[%s15138_s25 + $0x1688] sm:$0xff] }
 0x2cb   : > { %9591 = vmatpush.bf16.msrb.mxu0 %v14743_v15  ;;  %v14782_v15 = vld [vmem:[%s15138_s25 + $0x1648] sm:$0xff] }
 0x2cc   : > { %9617 = vmatpush.bf16.msrb.mxu2 %v14759_v16  ;;  %v14798_v16 = vld [vmem:[%s15138_s25 + $0x16c8] sm:$0xff] }
 0x2cd   : > { %9604 = vmatpush.bf16.msrb.mxu1 %v14751_v18  ;;  %v2411_v18 = vunpack.c.l.b16 %v309_v12  ;;  %v14844_v12 = vld [vmem:[%s15138_s25 + $0x1838] sm:$0xff] }
 0x2ce   : > { %9630 = vmatpush.bf16.msrb.mxu3 %v14767_v19  ;;  %v2413_v19 = vunpack.c.l.b16 %v310_v13 }
 0x2cf   : > { %9592 = vmatpush.bf16.msrb.mxu0 %v14742_v20  ;;  %v14773_v20 = vld [vmem:[%s15138_s25 + $0x1600] sm:$0xff]  ;;  %v2532_v28 = vpack.c.b16 %v2411_v18, %v2411_v18 }
 0x2d0   : > { %9618 = vmatpush.bf16.msrb.mxu2 %v14758_v21  ;;  %v14789_v21 = vld [vmem:[%s15138_s25 + $0x1680] sm:$0xff]  ;;  %v2534_v29 = vpack.c.b16 %v2413_v19, %v2413_v19 }
 0x2d1   : > { %9605 = vmatpush.bf16.msrb.mxu1 %v14750_v25  ;;  %v2414_v25 = vunpack.c.h.b16 %v310_v13  ;;  %v14860_v13 = vld [vmem:[%s15138_s25 + $0x18b8] sm:$0xff] }
 0x2d2   : > { %9631 = vmatpush.bf16.msrb.mxu3 %v14766_v26  ;;  %v14781_v26 = vld [vmem:[%s15138_s25 + $0x1640] sm:$0xff] }
 0x2d3   : > { %9593 = vmatpush.bf16.msrb.mxu0 %v14741_v30  ;;  %v9387_v52 = vpop.f32.mrf.mxu0  ;;  %v14820_v30 = vld [vmem:[%s15138_s25 + $0x1778] sm:$0xff] }
 0x2d4   : > { %9619 = vmatpush.bf16.msrb.mxu2 %v14757_v31  ;;  %v9388_v53 = vadd.f32 %v9387_v52, %v15923_v14  ;;  %v14836_v31 = vld [vmem:[%s15138_s25 + $0x17f8] sm:$0xff] }
 0x2d5   : > { %9606 = vmatpush.bf16.msrb.mxu1 %v14749_v36  ;;  %v9400_v56 = vpop.f32.mrf.mxu1  ;;  %v14819_v36 = vld [vmem:[%s15138_s25 + $0x1770] sm:$0xff] }
 0x2d6   : > { %9632 = vmatpush.bf16.msrb.mxu3 %v14765_v37  ;;  %9594 = vmatmul.bf16.vlgmr.msrb.gmra.mxu0 %v2528_v38  ;;  %v9401_v57 = vadd.f32 %v9400_v56, %v9388_v53  ;;  %v14835_v37 = vld [vmem:[%s15138_s25 + $0x17f0] sm:$0xff]  ;;  %v14810_v38 = vld [vmem:[%s15138_s25 + $0x1728] sm:$0xff] }
 0x2d7   : > { %9638 = vmatpush.bf16.msra.mxu0 %v14780_v32  ;;  %9620 = vmatmul.bf16.vlgmr.msrb.gmra.mxu2 %v2530_v39  ;;  %v2533_v32 = vpack.c.b16 %v2412_v24, %v2412_v24  ;;  %v14826_v39 = vld [vmem:[%s15138_s25 + $0x17a8] sm:$0xff]  ;;  %v14843_v24 = vld [vmem:[%s15138_s25 + $0x1830] sm:$0xff] }
 0x2d8   : > { %9664 = vmatpush.bf16.msra.mxu2 %v14796_v33  ;;  %9607 = vmatmul.bf16.vlgmr.msrb.gmra.mxu1 %v2529_v42  ;;  %v2535_v33 = vpack.c.b16 %v2414_v25, %v2414_v25  ;;  %v14859_v25 = vld [vmem:[%s15138_s25 + $0x18b0] sm:$0xff] }
 0x2d9   : > { %9651 = vmatpush.bf16.msra.mxu1 %v14788_v40  ;;  %9633 = vmatmul.bf16.vlgmr.msrb.gmra.mxu3 %v2531_v43  ;;  %v14818_v40 = vld [vmem:[%s15138_s25 + $0x1768] sm:$0xff] }
 0x2da   : > { %9677 = vmatpush.bf16.msra.mxu3 %v14804_v41  ;;  %v9413_v62 = vpop.f32.mrf.mxu2  ;;  %v14834_v41 = vld [vmem:[%s15138_s25 + $0x17e8] sm:$0xff] }
 0x2db   : > { %9639 = vmatpush.bf16.msra.mxu0 %v14779_v44  ;;  %v9414_v63 = vadd.f32 %v9413_v62, %v9401_v57  ;;  %v9389_v3 = vpop.f32.mrf.mxu0  ;;  %v14809_v44 = vld [vmem:[%s15138_s25 + $0x1720] sm:$0xff]  ;;  %v14815_v62 = vld [vmem:[%s15138_s25 + $0x1750] sm:$0xff] }
 0x2dc   : > { %9665 = vmatpush.bf16.msra.mxu2 %v14795_v45  ;;  %v9426_v2 = vpop.f32.mrf.mxu3  ;;  %v14825_v45 = vld [vmem:[%s15138_s25 + $0x17a0] sm:$0xff]  ;;  %v312_v3 = vld [vmem:[%s15133_s21 + $0x178] sm:$0xff] }
 0x2dd   : > { %9652 = vmatpush.bf16.msra.mxu1 %v14787_v46  ;;  %v15960_v4 = vadd.f32 %v9426_v2, %v9414_v63  ;;  %v9402_v7 = vpop.f32.mrf.mxu1  ;;  %v14831_v63 = vld [vmem:[%s15138_s25 + $0x17d0] sm:$0xff] }
 0x2de   : > { %9678 = vmatpush.bf16.msra.mxu3 %v14803_v47  ;;  %v311_v2 = vld [vmem:[%s15133_s21 + $0x170] sm:$0xff] }
 0x2df   : > { %9640 = vmatpush.bf16.msra.mxu0 %v14778_v48  ;;  %v14817_v48 = vld [vmem:[%s15138_s25 + $0x1760] sm:$0xff] }
 0x2e0   : > { %9666 = vmatpush.bf16.msra.mxu2 %v14794_v49  ;;  %v14833_v49 = vld [vmem:[%s15138_s25 + $0x17e0] sm:$0xff] }
 0x2e1   : > { %9653 = vmatpush.bf16.msra.mxu1 %v14786_v50  ;;  %v14808_v50 = vld [vmem:[%s15138_s25 + $0x1718] sm:$0xff] }
 0x2e2   : > { %9679 = vmatpush.bf16.msra.mxu3 %v14802_v51  ;;  %v9415_v14 = vpop.f32.mrf.mxu2  ;;  %v14824_v51 = vld [vmem:[%s15138_s25 + $0x1798] sm:$0xff] }
 0x2e3   : > { %9641 = vmatpush.bf16.msra.mxu0 %v14777_v54  ;;  %v14816_v54 = vld [vmem:[%s15138_s25 + $0x1758] sm:$0xff]  ;;  %v2416_v14 = vunpack.c.h.b16 %v311_v2 }
 0x2e4   : > { %9667 = vmatpush.bf16.msra.mxu2 %v14793_v55  ;;  %v9428_v17 = vpop.f32.mrf.mxu3  ;;  %v14832_v55 = vld [vmem:[%s15138_s25 + $0x17d8] sm:$0xff] }
 0x2e5   : > { %9654 = vmatpush.bf16.msra.mxu1 %v14785_v58  ;;  %v14829_v17 = vld [vmem:[%s15138_s25 + $0x17c0] sm:$0xff] }
 0x2e6   : > { %9680 = vmatpush.bf16.msra.mxu3 %v14801_v59  ;;  %v14807_v59 = vld [vmem:[%s15138_s25 + $0x1710] sm:$0xff] }
 0x2e7   : > { %9642 = vmatpush.bf16.msra.mxu0 %v14776_v60  ;;  %v14823_v60 = vld [vmem:[%s15138_s25 + $0x1790] sm:$0xff] }
 0x2e8   : > { %9668 = vmatpush.bf16.msra.mxu2 %v14792_v61 }
 0x2e9   : > { %9655 = vmatpush.bf16.msra.mxu1 %v14784_v0  ;;  %v14806_v0 = vld [vmem:[%s15138_s25 + $0x1708] sm:$0xff] }
 0x2ea   : > { %9681 = vmatpush.bf16.msra.mxu3 %v14800_v1  ;;  %v14822_v1 = vld [vmem:[%s15138_s25 + $0x1788] sm:$0xff] }
 0x2eb   : > { %9643 = vmatpush.bf16.msra.mxu0 %v14775_v5  ;;  %v14814_v5 = vld [vmem:[%s15138_s25 + $0x1748] sm:$0xff] }
 0x2ec   : > { %9669 = vmatpush.bf16.msra.mxu2 %v14791_v6  ;;  %v14830_v6 = vld [vmem:[%s15138_s25 + $0x17c8] sm:$0xff] }
 0x2ed   : > { %9656 = vmatpush.bf16.msra.mxu1 %v14783_v8  ;;  %v2415_v8 = vunpack.c.l.b16 %v311_v2  ;;  %v14876_v2 = vld [vmem:[%s15138_s25 + $0x1938] sm:$0xff] }
 0x2ee   : > { %9682 = vmatpush.bf16.msra.mxu3 %v14799_v9  ;;  %v2417_v9 = vunpack.c.l.b16 %v312_v3 }
 0x2ef   : > { %9644 = vmatpush.bf16.msra.mxu0 %v14774_v10  ;;  %v14805_v10 = vld [vmem:[%s15138_s25 + $0x1700] sm:$0xff]  ;;  %v2536_v18 = vpack.c.b16 %v2415_v8, %v2415_v8 }
 0x2f0   : > { %9670 = vmatpush.bf16.msra.mxu2 %v14790_v11  ;;  %v14821_v11 = vld [vmem:[%s15138_s25 + $0x1780] sm:$0xff]  ;;  %v2538_v19 = vpack.c.b16 %v2417_v9, %v2417_v9 }
 0x2f1   : > { %9657 = vmatpush.bf16.msra.mxu1 %v14782_v15  ;;  %v2418_v15 = vunpack.c.h.b16 %v312_v3  ;;  %v14892_v3 = vld [vmem:[%s15138_s25 + $0x19b8] sm:$0xff] }
 0x2f2   : > { %9683 = vmatpush.bf16.msra.mxu3 %v14798_v16  ;;  %v14813_v16 = vld [vmem:[%s15138_s25 + $0x1740] sm:$0xff] }
 0x2f3   : > { %9645 = vmatpush.bf16.msra.mxu0 %v14773_v20  ;;  %v9439_v42 = vpop.f32.mrf.mxu0  ;;  %v14852_v20 = vld [vmem:[%s15138_s25 + $0x1878] sm:$0xff] }
 0x2f4   : > { %9671 = vmatpush.bf16.msra.mxu2 %v14789_v21  ;;  %v9440_v43 = vadd.f32 %v9439_v42, %v15960_v4  ;;  %v14868_v21 = vld [vmem:[%s15138_s25 + $0x18f8] sm:$0xff] }
 0x2f5   : > { %9658 = vmatpush.bf16.msra.mxu1 %v14781_v26  ;;  %v9452_v46 = vpop.f32.mrf.mxu1  ;;  %v14851_v26 = vld [vmem:[%s15138_s25 + $0x1870] sm:$0xff] }
 0x2f6   : > { %9684 = vmatpush.bf16.msra.mxu3 %v14797_v27  ;;  %9646 = vmatmul.bf16.vlgmr.msra.gmra.mxu0 %v2532_v28  ;;  %v9453_v47 = vadd.f32 %v9452_v46, %v9440_v43  ;;  %v14867_v27 = vld [vmem:[%s15138_s25 + $0x18f0] sm:$0xff]  ;;  %v14842_v28 = vld [vmem:[%s15138_s25 + $0x1828] sm:$0xff] }
 0x2f7   : > { %9690 = vmatpush.bf16.msrb.mxu0 %v14812_v22  ;;  %9672 = vmatmul.bf16.vlgmr.msra.gmra.mxu2 %v2534_v29  ;;  %v2537_v22 = vpack.c.b16 %v2416_v14, %v2416_v14  ;;  %v14858_v29 = vld [vmem:[%s15138_s25 + $0x18a8] sm:$0xff]  ;;  %v14875_v14 = vld [vmem:[%s15138_s25 + $0x1930] sm:$0xff] }
 0x2f8   : > { %9716 = vmatpush.bf16.msrb.mxu2 %v14828_v23  ;;  %9659 = vmatmul.bf16.vlgmr.msra.gmra.mxu1 %v2533_v32  ;;  %v2539_v23 = vpack.c.b16 %v2418_v15, %v2418_v15  ;;  %v14891_v15 = vld [vmem:[%s15138_s25 + $0x19b0] sm:$0xff] }
 0x2f9   : > { %9703 = vmatpush.bf16.msrb.mxu1 %v14820_v30  ;;  %9685 = vmatmul.bf16.vlgmr.msra.gmra.mxu3 %v2535_v33  ;;  %v14850_v30 = vld [vmem:[%s15138_s25 + $0x1868] sm:$0xff] }
 0x2fa   : > { %9729 = vmatpush.bf16.msrb.mxu3 %v14836_v31  ;;  %v9465_v52 = vpop.f32.mrf.mxu2  ;;  %v14866_v31 = vld [vmem:[%s15138_s25 + $0x18e8] sm:$0xff] }
 0x2fb   : > { %9691 = vmatpush.bf16.msrb.mxu0 %v14811_v34  ;;  %v9466_v53 = vadd.f32 %v9465_v52, %v9453_v47  ;;  %v9441_v57 = vpop.f32.mrf.mxu0  ;;  %v14841_v34 = vld [vmem:[%s15138_s25 + $0x1820] sm:$0xff]  ;;  %v14847_v52 = vld [vmem:[%s15138_s25 + $0x1850] sm:$0xff] }
 0x2fc   : > { %9717 = vmatpush.bf16.msrb.mxu2 %v14827_v35  ;;  %v9478_v56 = vpop.f32.mrf.mxu3  ;;  %v14857_v35 = vld [vmem:[%s15138_s25 + $0x18a0] sm:$0xff]  ;;  %v314_v57 = vld [vmem:[%s15133_s21 + $0x188] sm:$0xff] }
 0x2fd   : > { %9704 = vmatpush.bf16.msrb.mxu1 %v14819_v36  ;;  %v15997_v58 = vadd.f32 %v9478_v56, %v9466_v53  ;;  %v9454_v61 = vpop.f32.mrf.mxu1  ;;  %v14863_v53 = vld [vmem:[%s15138_s25 + $0x18d0] sm:$0xff]  ;;  %v313_v56 = vld [vmem:[%s15133_s21 + $0x180] sm:$0xff] }
 0x2fe   : > { %9730 = vmatpush.bf16.msrb.mxu3 %v14835_v37 }
 0x2ff   : > { %9692 = vmatpush.bf16.msrb.mxu0 %v14810_v38  ;;  %v14849_v38 = vld [vmem:[%s15138_s25 + $0x1860] sm:$0xff] }
 0x300   : > { %9718 = vmatpush.bf16.msrb.mxu2 %v14826_v39  ;;  %v14865_v39 = vld [vmem:[%s15138_s25 + $0x18e0] sm:$0xff] }
 0x301   : > { %9705 = vmatpush.bf16.msrb.mxu1 %v14818_v40  ;;  %v14840_v40 = vld [vmem:[%s15138_s25 + $0x1818] sm:$0xff] }
 0x302   : > { %9731 = vmatpush.bf16.msrb.mxu3 %v14834_v41  ;;  %v9467_v4 = vpop.f32.mrf.mxu2  ;;  %v14856_v41 = vld [vmem:[%s15138_s25 + $0x1898] sm:$0xff] }
 0x303   : > { %9693 = vmatpush.bf16.msrb.mxu0 %v14809_v44  ;;  %v14848_v44 = vld [vmem:[%s15138_s25 + $0x1858] sm:$0xff]  ;;  %v2420_v4 = vunpack.c.h.b16 %v313_v56 }
 0x304   : > { %9719 = vmatpush.bf16.msrb.mxu2 %v14825_v45  ;;  %v9480_v7 = vpop.f32.mrf.mxu3  ;;  %v14864_v45 = vld [vmem:[%s15138_s25 + $0x18d8] sm:$0xff] }
 0x305   : > { %9706 = vmatpush.bf16.msrb.mxu1 %v14817_v48  ;;  %v14861_v7 = vld [vmem:[%s15138_s25 + $0x18c0] sm:$0xff] }
 0x306   : > { %9732 = vmatpush.bf16.msrb.mxu3 %v14833_v49  ;;  %v14839_v49 = vld [vmem:[%s15138_s25 + $0x1810] sm:$0xff] }
 0x307   : > { %9694 = vmatpush.bf16.msrb.mxu0 %v14808_v50  ;;  %v14855_v50 = vld [vmem:[%s15138_s25 + $0x1890] sm:$0xff] }
 0x308   : > { %9720 = vmatpush.bf16.msrb.mxu2 %v14824_v51 }
 0x309   : > { %9707 = vmatpush.bf16.msrb.mxu1 %v14816_v54  ;;  %v14838_v54 = vld [vmem:[%s15138_s25 + $0x1808] sm:$0xff] }
 0x30a   : > { %9733 = vmatpush.bf16.msrb.mxu3 %v14832_v55  ;;  %v14854_v55 = vld [vmem:[%s15138_s25 + $0x1888] sm:$0xff] }
 0x30b   : > { %9695 = vmatpush.bf16.msrb.mxu0 %v14807_v59  ;;  %v14846_v59 = vld [vmem:[%s15138_s25 + $0x1848] sm:$0xff] }
 0x30c   : > { %9721 = vmatpush.bf16.msrb.mxu2 %v14823_v60  ;;  %v14862_v60 = vld [vmem:[%s15138_s25 + $0x18c8] sm:$0xff] }
 0x30d   : > { %9708 = vmatpush.bf16.msrb.mxu1 %v14815_v62  ;;  %v2419_v62 = vunpack.c.l.b16 %v313_v56  ;;  %v14908_v56 = vld [vmem:[%s15138_s25 + $0x1a38] sm:$0xff] }
 0x30e   : > { %9734 = vmatpush.bf16.msrb.mxu3 %v14831_v63  ;;  %v2421_v63 = vunpack.c.l.b16 %v314_v57 }
 0x30f   : > { %9696 = vmatpush.bf16.msrb.mxu0 %v14806_v0  ;;  %v14837_v0 = vld [vmem:[%s15138_s25 + $0x1800] sm:$0xff]  ;;  %v2540_v8 = vpack.c.b16 %v2419_v62, %v2419_v62 }
 0x310   : > { %9722 = vmatpush.bf16.msrb.mxu2 %v14822_v1  ;;  %v14853_v1 = vld [vmem:[%s15138_s25 + $0x1880] sm:$0xff]  ;;  %v2542_v9 = vpack.c.b16 %v2421_v63, %v2421_v63 }
 0x311   : > { %9709 = vmatpush.bf16.msrb.mxu1 %v14814_v5  ;;  %v2422_v5 = vunpack.c.h.b16 %v314_v57  ;;  %v14924_v57 = vld [vmem:[%s15138_s25 + $0x1ab8] sm:$0xff] }
 0x312   : > { %9735 = vmatpush.bf16.msrb.mxu3 %v14830_v6  ;;  %v14845_v6 = vld [vmem:[%s15138_s25 + $0x1840] sm:$0xff] }
 0x313   : > { %9697 = vmatpush.bf16.msrb.mxu0 %v14805_v10  ;;  %v9491_v32 = vpop.f32.mrf.mxu0  ;;  %v14884_v10 = vld [vmem:[%s15138_s25 + $0x1978] sm:$0xff] }
 0x314   : > { %9723 = vmatpush.bf16.msrb.mxu2 %v14821_v11  ;;  %v9492_v33 = vadd.f32 %v9491_v32, %v15997_v58  ;;  %v14900_v11 = vld [vmem:[%s15138_s25 + $0x19f8] sm:$0xff] }
 0x315   : > { %9710 = vmatpush.bf16.msrb.mxu1 %v14813_v16  ;;  %v9504_v36 = vpop.f32.mrf.mxu1  ;;  %v14883_v16 = vld [vmem:[%s15138_s25 + $0x1970] sm:$0xff] }
 0x316   : > { %9736 = vmatpush.bf16.msrb.mxu3 %v14829_v17  ;;  %9698 = vmatmul.bf16.vlgmr.msrb.gmra.mxu0 %v2536_v18  ;;  %v9505_v37 = vadd.f32 %v9504_v36, %v9492_v33  ;;  %v14899_v17 = vld [vmem:[%s15138_s25 + $0x19f0] sm:$0xff]  ;;  %v14874_v18 = vld [vmem:[%s15138_s25 + $0x1928] sm:$0xff] }
 0x317   : > { %9742 = vmatpush.bf16.msra.mxu0 %v14844_v12  ;;  %9724 = vmatmul.bf16.vlgmr.msrb.gmra.mxu2 %v2538_v19  ;;  %v2541_v12 = vpack.c.b16 %v2420_v4, %v2420_v4  ;;  %v14890_v19 = vld [vmem:[%s15138_s25 + $0x19a8] sm:$0xff]  ;;  %v14907_v4 = vld [vmem:[%s15138_s25 + $0x1a30] sm:$0xff] }
 0x318   : > { %9768 = vmatpush.bf16.msra.mxu2 %v14860_v13  ;;  %9711 = vmatmul.bf16.vlgmr.msrb.gmra.mxu1 %v2537_v22  ;;  %v2543_v13 = vpack.c.b16 %v2422_v5, %v2422_v5  ;;  %v14923_v5 = vld [vmem:[%s15138_s25 + $0x1ab0] sm:$0xff] }
 0x319   : > { %9755 = vmatpush.bf16.msra.mxu1 %v14852_v20  ;;  %9737 = vmatmul.bf16.vlgmr.msrb.gmra.mxu3 %v2539_v23  ;;  %v14882_v20 = vld [vmem:[%s15138_s25 + $0x1968] sm:$0xff] }
 0x31a   : > { %9781 = vmatpush.bf16.msra.mxu3 %v14868_v21  ;;  %v9517_v42 = vpop.f32.mrf.mxu2  ;;  %v14898_v21 = vld [vmem:[%s15138_s25 + $0x19e8] sm:$0xff] }
 0x31b   : > { %9743 = vmatpush.bf16.msra.mxu0 %v14843_v24  ;;  %v9518_v43 = vadd.f32 %v9517_v42, %v9505_v37  ;;  %v9493_v47 = vpop.f32.mrf.mxu0  ;;  %v14873_v24 = vld [vmem:[%s15138_s25 + $0x1920] sm:$0xff]  ;;  %v14879_v42 = vld [vmem:[%s15138_s25 + $0x1950] sm:$0xff] }
 0x31c   : > { %9769 = vmatpush.bf16.msra.mxu2 %v14859_v25  ;;  %v9530_v46 = vpop.f32.mrf.mxu3  ;;  %v14889_v25 = vld [vmem:[%s15138_s25 + $0x19a0] sm:$0xff]  ;;  %v316_v47 = vld [vmem:[%s15133_s21 + $0x198] sm:$0xff] }
 0x31d   : > { %9756 = vmatpush.bf16.msra.mxu1 %v14851_v26  ;;  %v16034_v48 = vadd.f32 %v9530_v46, %v9518_v43  ;;  %v9506_v51 = vpop.f32.mrf.mxu1  ;;  %v14895_v43 = vld [vmem:[%s15138_s25 + $0x19d0] sm:$0xff] }
 0x31e   : > { %9782 = vmatpush.bf16.msra.mxu3 %v14867_v27  ;;  %v315_v46 = vld [vmem:[%s15133_s21 + $0x190] sm:$0xff] }
 0x31f   : > { %9744 = vmatpush.bf16.msra.mxu0 %v14842_v28  ;;  %v14881_v28 = vld [vmem:[%s15138_s25 + $0x1960] sm:$0xff] }
 0x320   : > { %9770 = vmatpush.bf16.msra.mxu2 %v14858_v29  ;;  %v14897_v29 = vld [vmem:[%s15138_s25 + $0x19e0] sm:$0xff] }
 0x321   : > { %9757 = vmatpush.bf16.msra.mxu1 %v14850_v30  ;;  %v14872_v30 = vld [vmem:[%s15138_s25 + $0x1918] sm:$0xff] }
 0x322   : > { %9783 = vmatpush.bf16.msra.mxu3 %v14866_v31  ;;  %v9519_v58 = vpop.f32.mrf.mxu2  ;;  %v14888_v31 = vld [vmem:[%s15138_s25 + $0x1998] sm:$0xff] }
 0x323   : > { %9745 = vmatpush.bf16.msra.mxu0 %v14841_v34  ;;  %v14880_v34 = vld [vmem:[%s15138_s25 + $0x1958] sm:$0xff]  ;;  %v2424_v58 = vunpack.c.h.b16 %v315_v46 }
 0x324   : > { %9771 = vmatpush.bf16.msra.mxu2 %v14857_v35  ;;  %v9532_v61 = vpop.f32.mrf.mxu3  ;;  %v14896_v35 = vld [vmem:[%s15138_s25 + $0x19d8] sm:$0xff] }
 0x325   : > { %9758 = vmatpush.bf16.msra.mxu1 %v14849_v38  ;;  %v14893_v61 = vld [vmem:[%s15138_s25 + $0x19c0] sm:$0xff] }
 0x326   : > { %9784 = vmatpush.bf16.msra.mxu3 %v14865_v39  ;;  %v14871_v39 = vld [vmem:[%s15138_s25 + $0x1910] sm:$0xff] }
 0x327   : > { %9746 = vmatpush.bf16.msra.mxu0 %v14840_v40  ;;  %v14887_v40 = vld [vmem:[%s15138_s25 + $0x1990] sm:$0xff] }
 0x328   : > { %9772 = vmatpush.bf16.msra.mxu2 %v14856_v41 }
 0x329   : > { %9759 = vmatpush.bf16.msra.mxu1 %v14848_v44  ;;  %v14870_v44 = vld [vmem:[%s15138_s25 + $0x1908] sm:$0xff] }
 0x32a   : > { %9785 = vmatpush.bf16.msra.mxu3 %v14864_v45  ;;  %v14886_v45 = vld [vmem:[%s15138_s25 + $0x1988] sm:$0xff] }
 0x32b   : > { %9747 = vmatpush.bf16.msra.mxu0 %v14839_v49  ;;  %v14878_v49 = vld [vmem:[%s15138_s25 + $0x1948] sm:$0xff] }
 0x32c   : > { %9773 = vmatpush.bf16.msra.mxu2 %v14855_v50  ;;  %v14894_v50 = vld [vmem:[%s15138_s25 + $0x19c8] sm:$0xff] }
 0x32d   : > { %9760 = vmatpush.bf16.msra.mxu1 %v14847_v52  ;;  %v2423_v52 = vunpack.c.l.b16 %v315_v46  ;;  %v14940_v46 = vld [vmem:[%s15138_s25 + $0x1b38] sm:$0xff] }
 0x32e   : > { %9786 = vmatpush.bf16.msra.mxu3 %v14863_v53  ;;  %v2425_v53 = vunpack.c.l.b16 %v316_v47 }
 0x32f   : > { %9748 = vmatpush.bf16.msra.mxu0 %v14838_v54  ;;  %v14869_v54 = vld [vmem:[%s15138_s25 + $0x1900] sm:$0xff]  ;;  %v2544_v62 = vpack.c.b16 %v2423_v52, %v2423_v52 }
 0x330   : > { %9774 = vmatpush.bf16.msra.mxu2 %v14854_v55  ;;  %v14885_v55 = vld [vmem:[%s15138_s25 + $0x1980] sm:$0xff]  ;;  %v2546_v63 = vpack.c.b16 %v2425_v53, %v2425_v53 }
 0x331   : > { %9761 = vmatpush.bf16.msra.mxu1 %v14846_v59  ;;  %v2426_v59 = vunpack.c.h.b16 %v316_v47  ;;  %v14956_v47 = vld [vmem:[%s15138_s25 + $0x1bb8] sm:$0xff] }
 0x332   : > { %9787 = vmatpush.bf16.msra.mxu3 %v14862_v60  ;;  %v14877_v60 = vld [vmem:[%s15138_s25 + $0x1940] sm:$0xff] }
 0x333   : > { %9749 = vmatpush.bf16.msra.mxu0 %v14837_v0  ;;  %v9543_v22 = vpop.f32.mrf.mxu0  ;;  %v14916_v0 = vld [vmem:[%s15138_s25 + $0x1a78] sm:$0xff] }
 0x334   : > { %9775 = vmatpush.bf16.msra.mxu2 %v14853_v1  ;;  %v9544_v23 = vadd.f32 %v9543_v22, %v16034_v48  ;;  %v14932_v1 = vld [vmem:[%s15138_s25 + $0x1af8] sm:$0xff] }
 0x335   : > { %9762 = vmatpush.bf16.msra.mxu1 %v14845_v6  ;;  %v9556_v26 = vpop.f32.mrf.mxu1  ;;  %v14915_v6 = vld [vmem:[%s15138_s25 + $0x1a70] sm:$0xff] }
 0x336   : > { %9788 = vmatpush.bf16.msra.mxu3 %v14861_v7  ;;  %9750 = vmatmul.bf16.vlgmr.msra.gmra.mxu0 %v2540_v8  ;;  %v9557_v27 = vadd.f32 %v9556_v26, %v9544_v23  ;;  %v14931_v7 = vld [vmem:[%s15138_s25 + $0x1af0] sm:$0xff]  ;;  %v14906_v8 = vld [vmem:[%s15138_s25 + $0x1a28] sm:$0xff] }
 0x337   : > { %9794 = vmatpush.bf16.msrb.mxu0 %v14876_v2  ;;  %9776 = vmatmul.bf16.vlgmr.msra.gmra.mxu2 %v2542_v9  ;;  %v2545_v2 = vpack.c.b16 %v2424_v58, %v2424_v58  ;;  %v14922_v9 = vld [vmem:[%s15138_s25 + $0x1aa8] sm:$0xff]  ;;  %v14939_v58 = vld [vmem:[%s15138_s25 + $0x1b30] sm:$0xff] }
 0x338   : > { %9820 = vmatpush.bf16.msrb.mxu2 %v14892_v3  ;;  %9763 = vmatmul.bf16.vlgmr.msra.gmra.mxu1 %v2541_v12  ;;  %v2547_v3 = vpack.c.b16 %v2426_v59, %v2426_v59  ;;  %v14955_v59 = vld [vmem:[%s15138_s25 + $0x1bb0] sm:$0xff] }
 0x339   : > { %9807 = vmatpush.bf16.msrb.mxu1 %v14884_v10  ;;  %9789 = vmatmul.bf16.vlgmr.msra.gmra.mxu3 %v2543_v13  ;;  %v14914_v10 = vld [vmem:[%s15138_s25 + $0x1a68] sm:$0xff] }
 0x33a   : > { %9833 = vmatpush.bf16.msrb.mxu3 %v14900_v11  ;;  %v9569_v32 = vpop.f32.mrf.mxu2  ;;  %v14930_v11 = vld [vmem:[%s15138_s25 + $0x1ae8] sm:$0xff] }
 0x33b   : > { %9795 = vmatpush.bf16.msrb.mxu0 %v14875_v14  ;;  %v9570_v33 = vadd.f32 %v9569_v32, %v9557_v27  ;;  %v9545_v37 = vpop.f32.mrf.mxu0  ;;  %v14905_v14 = vld [vmem:[%s15138_s25 + $0x1a20] sm:$0xff]  ;;  %v14911_v32 = vld [vmem:[%s15138_s25 + $0x1a50] sm:$0xff] }
 0x33c   : > { %9821 = vmatpush.bf16.msrb.mxu2 %v14891_v15  ;;  %v9582_v36 = vpop.f32.mrf.mxu3  ;;  %v14921_v15 = vld [vmem:[%s15138_s25 + $0x1aa0] sm:$0xff]  ;;  %v318_v37 = vld [vmem:[%s15133_s21 + $0x1a8] sm:$0xff] }
 0x33d   : > { %9808 = vmatpush.bf16.msrb.mxu1 %v14883_v16  ;;  %v16071_v38 = vadd.f32 %v9582_v36, %v9570_v33  ;;  %v9558_v41 = vpop.f32.mrf.mxu1  ;;  %v14927_v33 = vld [vmem:[%s15138_s25 + $0x1ad0] sm:$0xff]  ;;  %v317_v36 = vld [vmem:[%s15133_s21 + $0x1a0] sm:$0xff] }
 0x33e   : > { %9834 = vmatpush.bf16.msrb.mxu3 %v14899_v17 }
 0x33f   : > { %9796 = vmatpush.bf16.msrb.mxu0 %v14874_v18  ;;  %v14913_v18 = vld [vmem:[%s15138_s25 + $0x1a60] sm:$0xff] }
 0x340   : > { %9822 = vmatpush.bf16.msrb.mxu2 %v14890_v19  ;;  %v14929_v19 = vld [vmem:[%s15138_s25 + $0x1ae0] sm:$0xff] }
 0x341   : > { %9809 = vmatpush.bf16.msrb.mxu1 %v14882_v20  ;;  %v14904_v20 = vld [vmem:[%s15138_s25 + $0x1a18] sm:$0xff] }
 0x342   : > { %9835 = vmatpush.bf16.msrb.mxu3 %v14898_v21  ;;  %v9571_v48 = vpop.f32.mrf.mxu2  ;;  %v14920_v21 = vld [vmem:[%s15138_s25 + $0x1a98] sm:$0xff] }
 0x343   : > { %9797 = vmatpush.bf16.msrb.mxu0 %v14873_v24  ;;  %v14912_v24 = vld [vmem:[%s15138_s25 + $0x1a58] sm:$0xff]  ;;  %v2428_v48 = vunpack.c.h.b16 %v317_v36 }
 0x344   : > { %9823 = vmatpush.bf16.msrb.mxu2 %v14889_v25  ;;  %v9584_v51 = vpop.f32.mrf.mxu3  ;;  %v14928_v25 = vld [vmem:[%s15138_s25 + $0x1ad8] sm:$0xff] }
 0x345   : > { %9810 = vmatpush.bf16.msrb.mxu1 %v14881_v28  ;;  %v14925_v51 = vld [vmem:[%s15138_s25 + $0x1ac0] sm:$0xff] }
 0x346   : > { %9836 = vmatpush.bf16.msrb.mxu3 %v14897_v29  ;;  %v14903_v29 = vld [vmem:[%s15138_s25 + $0x1a10] sm:$0xff] }
 0x347   : > { %9798 = vmatpush.bf16.msrb.mxu0 %v14872_v30  ;;  %v14919_v30 = vld [vmem:[%s15138_s25 + $0x1a90] sm:$0xff] }
 0x348   : > { %9824 = vmatpush.bf16.msrb.mxu2 %v14888_v31 }
 0x349   : > { %9811 = vmatpush.bf16.msrb.mxu1 %v14880_v34  ;;  %v14902_v34 = vld [vmem:[%s15138_s25 + $0x1a08] sm:$0xff] }
 0x34a   : > { %9837 = vmatpush.bf16.msrb.mxu3 %v14896_v35  ;;  %v14918_v35 = vld [vmem:[%s15138_s25 + $0x1a88] sm:$0xff] }
 0x34b   : > { %9799 = vmatpush.bf16.msrb.mxu0 %v14871_v39  ;;  %v14910_v39 = vld [vmem:[%s15138_s25 + $0x1a48] sm:$0xff] }
 0x34c   : > { %9825 = vmatpush.bf16.msrb.mxu2 %v14887_v40  ;;  %v14926_v40 = vld [vmem:[%s15138_s25 + $0x1ac8] sm:$0xff] }
 0x34d   : > { %9812 = vmatpush.bf16.msrb.mxu1 %v14879_v42  ;;  %v2427_v42 = vunpack.c.l.b16 %v317_v36  ;;  %v14972_v36 = vld [vmem:[%s15138_s25 + $0x1c38] sm:$0xff] }
 0x34e   : > { %9838 = vmatpush.bf16.msrb.mxu3 %v14895_v43  ;;  %v2429_v43 = vunpack.c.l.b16 %v318_v37 }
 0x34f   : > { %9800 = vmatpush.bf16.msrb.mxu0 %v14870_v44  ;;  %v14901_v44 = vld [vmem:[%s15138_s25 + $0x1a00] sm:$0xff]  ;;  %v2548_v52 = vpack.c.b16 %v2427_v42, %v2427_v42 }
 0x350   : > { %9826 = vmatpush.bf16.msrb.mxu2 %v14886_v45  ;;  %v14917_v45 = vld [vmem:[%s15138_s25 + $0x1a80] sm:$0xff]  ;;  %v2550_v53 = vpack.c.b16 %v2429_v43, %v2429_v43 }
 0x351   : > { %9813 = vmatpush.bf16.msrb.mxu1 %v14878_v49  ;;  %v2430_v49 = vunpack.c.h.b16 %v318_v37  ;;  %v14988_v37 = vld [vmem:[%s15138_s25 + $0x1cb8] sm:$0xff] }
 0x352   : > { %9839 = vmatpush.bf16.msrb.mxu3 %v14894_v50  ;;  %v14909_v50 = vld [vmem:[%s15138_s25 + $0x1a40] sm:$0xff] }
 0x353   : > { %9801 = vmatpush.bf16.msrb.mxu0 %v14869_v54  ;;  %v9595_v12 = vpop.f32.mrf.mxu0  ;;  %v14948_v54 = vld [vmem:[%s15138_s25 + $0x1b78] sm:$0xff] }
 0x354   : > { %9827 = vmatpush.bf16.msrb.mxu2 %v14885_v55  ;;  %v9596_v13 = vadd.f32 %v9595_v12, %v16071_v38  ;;  %v14964_v55 = vld [vmem:[%s15138_s25 + $0x1bf8] sm:$0xff] }
 0x355   : > { %9814 = vmatpush.bf16.msrb.mxu1 %v14877_v60  ;;  %v9608_v16 = vpop.f32.mrf.mxu1  ;;  %v14947_v60 = vld [vmem:[%s15138_s25 + $0x1b70] sm:$0xff] }
 0x356   : > { %9840 = vmatpush.bf16.msrb.mxu3 %v14893_v61  ;;  %9802 = vmatmul.bf16.vlgmr.msrb.gmra.mxu0 %v2544_v62  ;;  %v9609_v17 = vadd.f32 %v9608_v16, %v9596_v13  ;;  %v14963_v61 = vld [vmem:[%s15138_s25 + $0x1bf0] sm:$0xff]  ;;  %v14938_v62 = vld [vmem:[%s15138_s25 + $0x1b28] sm:$0xff] }
 0x357   : > { %9846 = vmatpush.bf16.msra.mxu0 %v14908_v56  ;;  %9828 = vmatmul.bf16.vlgmr.msrb.gmra.mxu2 %v2546_v63  ;;  %v2549_v56 = vpack.c.b16 %v2428_v48, %v2428_v48  ;;  %v14954_v63 = vld [vmem:[%s15138_s25 + $0x1ba8] sm:$0xff]  ;;  %v14971_v48 = vld [vmem:[%s15138_s25 + $0x1c30] sm:$0xff] }
 0x358   : > { %9872 = vmatpush.bf16.msra.mxu2 %v14924_v57  ;;  %9815 = vmatmul.bf16.vlgmr.msrb.gmra.mxu1 %v2545_v2  ;;  %v2551_v57 = vpack.c.b16 %v2430_v49, %v2430_v49  ;;  %v14987_v49 = vld [vmem:[%s15138_s25 + $0x1cb0] sm:$0xff] }
 0x359   : > { %9859 = vmatpush.bf16.msra.mxu1 %v14916_v0  ;;  %9841 = vmatmul.bf16.vlgmr.msrb.gmra.mxu3 %v2547_v3  ;;  %v14946_v0 = vld [vmem:[%s15138_s25 + $0x1b68] sm:$0xff] }
 0x35a   : > { %9885 = vmatpush.bf16.msra.mxu3 %v14932_v1  ;;  %v9621_v22 = vpop.f32.mrf.mxu2  ;;  %v14962_v1 = vld [vmem:[%s15138_s25 + $0x1be8] sm:$0xff] }
 0x35b   : > { %9847 = vmatpush.bf16.msra.mxu0 %v14907_v4  ;;  %v9622_v23 = vadd.f32 %v9621_v22, %v9609_v17  ;;  %v9597_v27 = vpop.f32.mrf.mxu0  ;;  %v14937_v4 = vld [vmem:[%s15138_s25 + $0x1b20] sm:$0xff]  ;;  %v14943_v22 = vld [vmem:[%s15138_s25 + $0x1b50] sm:$0xff] }
 0x35c   : > { %9873 = vmatpush.bf16.msra.mxu2 %v14923_v5  ;;  %v9634_v26 = vpop.f32.mrf.mxu3  ;;  %v14953_v5 = vld [vmem:[%s15138_s25 + $0x1ba0] sm:$0xff]  ;;  %v320_v27 = vld [vmem:[%s15133_s21 + $0x1b8] sm:$0xff] }
 0x35d   : > { %9860 = vmatpush.bf16.msra.mxu1 %v14915_v6  ;;  %v16108_v28 = vadd.f32 %v9634_v26, %v9622_v23  ;;  %v9610_v31 = vpop.f32.mrf.mxu1  ;;  %v14959_v23 = vld [vmem:[%s15138_s25 + $0x1bd0] sm:$0xff] }
 0x35e   : > { %9886 = vmatpush.bf16.msra.mxu3 %v14931_v7  ;;  %v319_v26 = vld [vmem:[%s15133_s21 + $0x1b0] sm:$0xff] }
 0x35f   : > { %9848 = vmatpush.bf16.msra.mxu0 %v14906_v8  ;;  %v14945_v8 = vld [vmem:[%s15138_s25 + $0x1b60] sm:$0xff] }
 0x360   : > { %9874 = vmatpush.bf16.msra.mxu2 %v14922_v9  ;;  %v14961_v9 = vld [vmem:[%s15138_s25 + $0x1be0] sm:$0xff] }
 0x361   : > { %9861 = vmatpush.bf16.msra.mxu1 %v14914_v10  ;;  %v14936_v10 = vld [vmem:[%s15138_s25 + $0x1b18] sm:$0xff] }
 0x362   : > { %9887 = vmatpush.bf16.msra.mxu3 %v14930_v11  ;;  %v9623_v38 = vpop.f32.mrf.mxu2  ;;  %v14952_v11 = vld [vmem:[%s15138_s25 + $0x1b98] sm:$0xff] }
 0x363   : > { %9849 = vmatpush.bf16.msra.mxu0 %v14905_v14  ;;  %v14944_v14 = vld [vmem:[%s15138_s25 + $0x1b58] sm:$0xff]  ;;  %v2432_v38 = vunpack.c.h.b16 %v319_v26 }
 0x364   : > { %9875 = vmatpush.bf16.msra.mxu2 %v14921_v15  ;;  %v9636_v41 = vpop.f32.mrf.mxu3  ;;  %v14960_v15 = vld [vmem:[%s15138_s25 + $0x1bd8] sm:$0xff] }
 0x365   : > { %9862 = vmatpush.bf16.msra.mxu1 %v14913_v18  ;;  %v14957_v41 = vld [vmem:[%s15138_s25 + $0x1bc0] sm:$0xff] }
 0x366   : > { %9888 = vmatpush.bf16.msra.mxu3 %v14929_v19  ;;  %v14935_v19 = vld [vmem:[%s15138_s25 + $0x1b10] sm:$0xff] }
 0x367   : > { %9850 = vmatpush.bf16.msra.mxu0 %v14904_v20  ;;  %v14951_v20 = vld [vmem:[%s15138_s25 + $0x1b90] sm:$0xff] }
 0x368   : > { %9876 = vmatpush.bf16.msra.mxu2 %v14920_v21 }
 0x369   : > { %9863 = vmatpush.bf16.msra.mxu1 %v14912_v24  ;;  %v14934_v24 = vld [vmem:[%s15138_s25 + $0x1b08] sm:$0xff] }
 0x36a   : > { %9889 = vmatpush.bf16.msra.mxu3 %v14928_v25  ;;  %v14950_v25 = vld [vmem:[%s15138_s25 + $0x1b88] sm:$0xff] }
 0x36b   : > { %9851 = vmatpush.bf16.msra.mxu0 %v14903_v29  ;;  %v14942_v29 = vld [vmem:[%s15138_s25 + $0x1b48] sm:$0xff] }
 0x36c   : > { %9877 = vmatpush.bf16.msra.mxu2 %v14919_v30  ;;  %v14958_v30 = vld [vmem:[%s15138_s25 + $0x1bc8] sm:$0xff] }
 0x36d   : > { %9864 = vmatpush.bf16.msra.mxu1 %v14911_v32  ;;  %v2431_v32 = vunpack.c.l.b16 %v319_v26  ;;  %v15004_v26 = vld [vmem:[%s15138_s25 + $0x1d38] sm:$0xff] }
 0x36e   : > { %9890 = vmatpush.bf16.msra.mxu3 %v14927_v33  ;;  %v2433_v33 = vunpack.c.l.b16 %v320_v27 }
 0x36f   : > { %9852 = vmatpush.bf16.msra.mxu0 %v14902_v34  ;;  %v14933_v34 = vld [vmem:[%s15138_s25 + $0x1b00] sm:$0xff]  ;;  %v2552_v42 = vpack.c.b16 %v2431_v32, %v2431_v32 }
 0x370   : > { %9878 = vmatpush.bf16.msra.mxu2 %v14918_v35  ;;  %v14949_v35 = vld [vmem:[%s15138_s25 + $0x1b80] sm:$0xff]  ;;  %v2554_v43 = vpack.c.b16 %v2433_v33, %v2433_v33 }
 0x371   : > { %9865 = vmatpush.bf16.msra.mxu1 %v14910_v39  ;;  %v2434_v39 = vunpack.c.h.b16 %v320_v27  ;;  %v15020_v27 = vld [vmem:[%s15138_s25 + $0x1db8] sm:$0xff] }
 0x372   : > { %9891 = vmatpush.bf16.msra.mxu3 %v14926_v40  ;;  %v14941_v40 = vld [vmem:[%s15138_s25 + $0x1b40] sm:$0xff] }
 0x373   : > { %9853 = vmatpush.bf16.msra.mxu0 %v14901_v44  ;;  %v9647_v2 = vpop.f32.mrf.mxu0  ;;  %v14980_v44 = vld [vmem:[%s15138_s25 + $0x1c78] sm:$0xff] }
 0x374   : > { %9879 = vmatpush.bf16.msra.mxu2 %v14917_v45  ;;  %v9648_v3 = vadd.f32 %v9647_v2, %v16108_v28  ;;  %v14996_v45 = vld [vmem:[%s15138_s25 + $0x1cf8] sm:$0xff] }
 0x375   : > { %9866 = vmatpush.bf16.msra.mxu1 %v14909_v50  ;;  %v9660_v6 = vpop.f32.mrf.mxu1  ;;  %v14979_v50 = vld [vmem:[%s15138_s25 + $0x1c70] sm:$0xff] }
 0x376   : > { %9892 = vmatpush.bf16.msra.mxu3 %v14925_v51  ;;  %9854 = vmatmul.bf16.vlgmr.msra.gmra.mxu0 %v2548_v52  ;;  %v9661_v7 = vadd.f32 %v9660_v6, %v9648_v3  ;;  %v14995_v51 = vld [vmem:[%s15138_s25 + $0x1cf0] sm:$0xff]  ;;  %v14970_v52 = vld [vmem:[%s15138_s25 + $0x1c28] sm:$0xff] }
 0x377   : > { %9898 = vmatpush.bf16.msrb.mxu0 %v14940_v46  ;;  %9880 = vmatmul.bf16.vlgmr.msra.gmra.mxu2 %v2550_v53  ;;  %v2553_v46 = vpack.c.b16 %v2432_v38, %v2432_v38  ;;  %v14986_v53 = vld [vmem:[%s15138_s25 + $0x1ca8] sm:$0xff]  ;;  %v15003_v38 = vld [vmem:[%s15138_s25 + $0x1d30] sm:$0xff] }
 0x378   : > { %9924 = vmatpush.bf16.msrb.mxu2 %v14956_v47  ;;  %9867 = vmatmul.bf16.vlgmr.msra.gmra.mxu1 %v2549_v56  ;;  %v2555_v47 = vpack.c.b16 %v2434_v39, %v2434_v39  ;;  %v15019_v39 = vld [vmem:[%s15138_s25 + $0x1db0] sm:$0xff] }
 0x379   : > { %9911 = vmatpush.bf16.msrb.mxu1 %v14948_v54  ;;  %9893 = vmatmul.bf16.vlgmr.msra.gmra.mxu3 %v2551_v57  ;;  %v14978_v54 = vld [vmem:[%s15138_s25 + $0x1c68] sm:$0xff] }
 0x37a   : > { %9937 = vmatpush.bf16.msrb.mxu3 %v14964_v55  ;;  %v9673_v12 = vpop.f32.mrf.mxu2  ;;  %v14994_v55 = vld [vmem:[%s15138_s25 + $0x1ce8] sm:$0xff] }
 0x37b   : > { %9899 = vmatpush.bf16.msrb.mxu0 %v14939_v58  ;;  %v9674_v13 = vadd.f32 %v9673_v12, %v9661_v7  ;;  %v9649_v17 = vpop.f32.mrf.mxu0  ;;  %v14969_v58 = vld [vmem:[%s15138_s25 + $0x1c20] sm:$0xff]  ;;  %v14975_v12 = vld [vmem:[%s15138_s25 + $0x1c50] sm:$0xff] }
 0x37c   : > { %9925 = vmatpush.bf16.msrb.mxu2 %v14955_v59  ;;  %v9686_v16 = vpop.f32.mrf.mxu3  ;;  %v14985_v59 = vld [vmem:[%s15138_s25 + $0x1ca0] sm:$0xff]  ;;  %v322_v17 = vld [vmem:[%s15133_s21 + $0x1c8] sm:$0xff] }
 0x37d   : > { %9912 = vmatpush.bf16.msrb.mxu1 %v14947_v60  ;;  %v16145_v18 = vadd.f32 %v9686_v16, %v9674_v13  ;;  %v9662_v21 = vpop.f32.mrf.mxu1  ;;  %v14991_v13 = vld [vmem:[%s15138_s25 + $0x1cd0] sm:$0xff]  ;;  %v321_v16 = vld [vmem:[%s15133_s21 + $0x1c0] sm:$0xff] }
 0x37e   : > { %9938 = vmatpush.bf16.msrb.mxu3 %v14963_v61 }
 0x37f   : > { %9900 = vmatpush.bf16.msrb.mxu0 %v14938_v62  ;;  %v14977_v62 = vld [vmem:[%s15138_s25 + $0x1c60] sm:$0xff] }
 0x380   : > { %9926 = vmatpush.bf16.msrb.mxu2 %v14954_v63  ;;  %v14993_v63 = vld [vmem:[%s15138_s25 + $0x1ce0] sm:$0xff] }
 0x381   : > { %9913 = vmatpush.bf16.msrb.mxu1 %v14946_v0  ;;  %v14968_v0 = vld [vmem:[%s15138_s25 + $0x1c18] sm:$0xff] }
 0x382   : > { %9939 = vmatpush.bf16.msrb.mxu3 %v14962_v1  ;;  %v9675_v28 = vpop.f32.mrf.mxu2  ;;  %v14984_v1 = vld [vmem:[%s15138_s25 + $0x1c98] sm:$0xff] }
 0x383   : > { %9901 = vmatpush.bf16.msrb.mxu0 %v14937_v4  ;;  %v14976_v4 = vld [vmem:[%s15138_s25 + $0x1c58] sm:$0xff]  ;;  %v2436_v28 = vunpack.c.h.b16 %v321_v16 }
 0x384   : > { %9927 = vmatpush.bf16.msrb.mxu2 %v14953_v5  ;;  %v9688_v31 = vpop.f32.mrf.mxu3  ;;  %v14992_v5 = vld [vmem:[%s15138_s25 + $0x1cd8] sm:$0xff] }
 0x385   : > { %9914 = vmatpush.bf16.msrb.mxu1 %v14945_v8  ;;  %v14989_v31 = vld [vmem:[%s15138_s25 + $0x1cc0] sm:$0xff] }
 0x386   : > { %9940 = vmatpush.bf16.msrb.mxu3 %v14961_v9  ;;  %v14967_v9 = vld [vmem:[%s15138_s25 + $0x1c10] sm:$0xff] }
 0x387   : > { %9902 = vmatpush.bf16.msrb.mxu0 %v14936_v10  ;;  %v14983_v10 = vld [vmem:[%s15138_s25 + $0x1c90] sm:$0xff] }
 0x388   : > { %9928 = vmatpush.bf16.msrb.mxu2 %v14952_v11 }
 0x389   : > { %9915 = vmatpush.bf16.msrb.mxu1 %v14944_v14  ;;  %v14966_v14 = vld [vmem:[%s15138_s25 + $0x1c08] sm:$0xff] }
 0x38a   : > { %9941 = vmatpush.bf16.msrb.mxu3 %v14960_v15  ;;  %v14982_v15 = vld [vmem:[%s15138_s25 + $0x1c88] sm:$0xff] }
 0x38b   : > { %9903 = vmatpush.bf16.msrb.mxu0 %v14935_v19  ;;  %v14974_v19 = vld [vmem:[%s15138_s25 + $0x1c48] sm:$0xff] }
 0x38c   : > { %9929 = vmatpush.bf16.msrb.mxu2 %v14951_v20  ;;  %v14990_v20 = vld [vmem:[%s15138_s25 + $0x1cc8] sm:$0xff] }
 0x38d   : > { %9916 = vmatpush.bf16.msrb.mxu1 %v14943_v22  ;;  %v2435_v22 = vunpack.c.l.b16 %v321_v16  ;;  %v15036_v16 = vld [vmem:[%s15138_s25 + $0x1e38] sm:$0xff] }
 0x38e   : > { %9942 = vmatpush.bf16.msrb.mxu3 %v14959_v23  ;;  %v2437_v23 = vunpack.c.l.b16 %v322_v17 }
 0x38f   : > { %9904 = vmatpush.bf16.msrb.mxu0 %v14934_v24  ;;  %v14965_v24 = vld [vmem:[%s15138_s25 + $0x1c00] sm:$0xff]  ;;  %v2556_v32 = vpack.c.b16 %v2435_v22, %v2435_v22 }
 0x390   : > { %9930 = vmatpush.bf16.msrb.mxu2 %v14950_v25  ;;  %v14981_v25 = vld [vmem:[%s15138_s25 + $0x1c80] sm:$0xff]  ;;  %v2558_v33 = vpack.c.b16 %v2437_v23, %v2437_v23 }
 0x391   : > { %9917 = vmatpush.bf16.msrb.mxu1 %v14942_v29  ;;  %v2438_v29 = vunpack.c.h.b16 %v322_v17 }
 0x392   : > { %9943 = vmatpush.bf16.msrb.mxu3 %v14958_v30  ;;  %v14973_v30 = vld [vmem:[%s15138_s25 + $0x1c40] sm:$0xff] }
 0x393   : > { %9905 = vmatpush.bf16.msrb.mxu0 %v14933_v34  ;;  %v9699_v56 = vpop.f32.mrf.mxu0  ;;  %v15012_v34 = vld [vmem:[%s15138_s25 + $0x1d78] sm:$0xff] }
 0x394   : > { %9931 = vmatpush.bf16.msrb.mxu2 %v14949_v35  ;;  %v9700_v57 = vadd.f32 %v9699_v56, %v16145_v18  ;;  %v15028_v35 = vld [vmem:[%s15138_s25 + $0x1df8] sm:$0xff] }
 0x395   : > { %9918 = vmatpush.bf16.msrb.mxu1 %v14941_v40  ;;  %v9712_v60 = vpop.f32.mrf.mxu1  ;;  %v15011_v40 = vld [vmem:[%s15138_s25 + $0x1d70] sm:$0xff] }
 0x396   : > { %9944 = vmatpush.bf16.msrb.mxu3 %v14957_v41  ;;  %9906 = vmatmul.bf16.vlgmr.msrb.gmra.mxu0 %v2552_v42  ;;  %v9713_v61 = vadd.f32 %v9712_v60, %v9700_v57  ;;  %v15027_v41 = vld [vmem:[%s15138_s25 + $0x1df0] sm:$0xff]  ;;  %v15002_v42 = vld [vmem:[%s15138_s25 + $0x1d28] sm:$0xff] }
 0x397   : > { %9950 = vmatpush.bf16.msra.mxu0 %v14972_v36  ;;  %9932 = vmatmul.bf16.vlgmr.msrb.gmra.mxu2 %v2554_v43  ;;  %v2557_v36 = vpack.c.b16 %v2436_v28, %v2436_v28  ;;  %v15018_v43 = vld [vmem:[%s15138_s25 + $0x1da8] sm:$0xff] }
 0x398   : > { %9976 = vmatpush.bf16.msra.mxu2 %v14988_v37  ;;  %9919 = vmatmul.bf16.vlgmr.msrb.gmra.mxu1 %v2553_v46  ;;  %v2559_v37 = vpack.c.b16 %v2438_v29, %v2438_v29  ;;  %v15033_v29 = vld [vmem:[%s15138_s25 + $0x1e20] sm:$0xff] }
 0x399   : > { %9963 = vmatpush.bf16.msra.mxu1 %v14980_v44  ;;  %9945 = vmatmul.bf16.vlgmr.msrb.gmra.mxu3 %v2555_v47  ;;  %v15010_v44 = vld [vmem:[%s15138_s25 + $0x1d68] sm:$0xff] }
 0x39a   : > { %9989 = vmatpush.bf16.msra.mxu3 %v14996_v45  ;;  %v9725_v2 = vpop.f32.mrf.mxu2  ;;  %v15026_v45 = vld [vmem:[%s15138_s25 + $0x1de8] sm:$0xff] }
 0x39b   : > { %9951 = vmatpush.bf16.msra.mxu0 %v14971_v48  ;;  %v9726_v3 = vadd.f32 %v9725_v2, %v9713_v61  ;;  %v9701_v7 = vpop.f32.mrf.mxu0  ;;  %v15001_v48 = vld [vmem:[%s15138_s25 + $0x1d20] sm:$0xff]  ;;  %v15007_v2 = vld [vmem:[%s15138_s25 + $0x1d50] sm:$0xff] }
 0x39c   : > { %9977 = vmatpush.bf16.msra.mxu2 %v14987_v49  ;;  %v9738_v6 = vpop.f32.mrf.mxu3  ;;  %v15017_v49 = vld [vmem:[%s15138_s25 + $0x1da0] sm:$0xff]  ;;  %v324_v7 = vld [vmem:[%s15133_s21 + $0x1d8] sm:$0xff] }
 0x39d   : > { %9964 = vmatpush.bf16.msra.mxu1 %v14979_v50  ;;  %v16182_v8 = vadd.f32 %v9738_v6, %v9726_v3  ;;  %v9714_v11 = vpop.f32.mrf.mxu1  ;;  %v15023_v3 = vld [vmem:[%s15138_s25 + $0x1dd0] sm:$0xff] }
 0x39e   : > { %9990 = vmatpush.bf16.msra.mxu3 %v14995_v51  ;;  %v323_v6 = vld [vmem:[%s15133_s21 + $0x1d0] sm:$0xff] }
 0x39f   : > { %9952 = vmatpush.bf16.msra.mxu0 %v14970_v52  ;;  %v15009_v52 = vld [vmem:[%s15138_s25 + $0x1d60] sm:$0xff]  ;;  %v2440_v17 = vunpack.c.h.b16 %v323_v6 }
 0x3a0   : > { %9978 = vmatpush.bf16.msra.mxu2 %v14986_v53  ;;  %v15025_v53 = vld [vmem:[%s15138_s25 + $0x1de0] sm:$0xff] }
 0x3a1   : > { %9965 = vmatpush.bf16.msra.mxu1 %v14978_v54  ;;  %v15000_v54 = vld [vmem:[%s15138_s25 + $0x1d18] sm:$0xff]  ;;  %v2561_v23 = vpack.c.b16 %v2440_v17, %v2440_v17 }
 0x3a2   : > { %9991 = vmatpush.bf16.msra.mxu3 %v14994_v55  ;;  %v9727_v18 = vpop.f32.mrf.mxu2  ;;  %v15016_v55 = vld [vmem:[%s15138_s25 + $0x1d98] sm:$0xff] }
 0x3a3   : > { %9953 = vmatpush.bf16.msra.mxu0 %v14969_v58  ;;  %v15008_v58 = vld [vmem:[%s15138_s25 + $0x1d58] sm:$0xff]  ;;  %v2442_v18 = vunpack.c.h.b16 %v324_v7 }
 0x3a4   : > { %9979 = vmatpush.bf16.msra.mxu2 %v14985_v59  ;;  %v9740_v21 = vpop.f32.mrf.mxu3  ;;  %v15024_v59 = vld [vmem:[%s15138_s25 + $0x1dd8] sm:$0xff] }
 0x3a5   : > { %9966 = vmatpush.bf16.msra.mxu1 %v14977_v62 }
 0x3a6   : > { %9992 = vmatpush.bf16.msra.mxu3 %v14993_v63  ;;  %v14999_v63 = vld [vmem:[%s15138_s25 + $0x1d10] sm:$0xff] }
 0x3a7   : > { %9954 = vmatpush.bf16.msra.mxu0 %v14968_v0  ;;  %v15015_v0 = vld [vmem:[%s15138_s25 + $0x1d90] sm:$0xff] }
 0x3a8   : > { %9980 = vmatpush.bf16.msra.mxu2 %v14984_v1 }
 0x3a9   : > { %9967 = vmatpush.bf16.msra.mxu1 %v14976_v4  ;;  %v14998_v4 = vld [vmem:[%s15138_s25 + $0x1d08] sm:$0xff] }
 0x3aa   : > { %9993 = vmatpush.bf16.msra.mxu3 %v14992_v5  ;;  %v15014_v5 = vld [vmem:[%s15138_s25 + $0x1d88] sm:$0xff] }
 0x3ab   : > { %9955 = vmatpush.bf16.msra.mxu0 %v14967_v9  ;;  %v15006_v9 = vld [vmem:[%s15138_s25 + $0x1d48] sm:$0xff] }
 0x3ac   : > { %9981 = vmatpush.bf16.msra.mxu2 %v14983_v10  ;;  %v15022_v10 = vld [vmem:[%s15138_s25 + $0x1dc8] sm:$0xff] }
 0x3ad   : > { %9968 = vmatpush.bf16.msra.mxu1 %v14975_v12  ;;  %v2439_v12 = vunpack.c.l.b16 %v323_v6 }
 0x3ae   : > { %9994 = vmatpush.bf16.msra.mxu3 %v14991_v13  ;;  %v2441_v13 = vunpack.c.l.b16 %v324_v7 }
 0x3af   : > { %9956 = vmatpush.bf16.msra.mxu0 %v14966_v14  ;;  %v14997_v14 = vld [vmem:[%s15138_s25 + $0x1d00] sm:$0xff]  ;;  %v2560_v21 = vpack.c.b16 %v2439_v12, %v2439_v12 }
 0x3b0   : > { %9982 = vmatpush.bf16.msra.mxu2 %v14982_v15  ;;  %v15013_v15 = vld [vmem:[%s15138_s25 + $0x1d80] sm:$0xff]  ;;  %v2562_v22 = vpack.c.b16 %v2441_v13, %v2441_v13 }
 0x3b1   : > { %9969 = vmatpush.bf16.msra.mxu1 %v14974_v19  ;;  %v15005_v19 = vld [vmem:[%s15138_s25 + $0x1d40] sm:$0xff] }
 0x3b2   : > { %9995 = vmatpush.bf16.msra.mxu3 %v14990_v20  ;;  %v15021_v20 = vld [vmem:[%s15138_s25 + $0x1dc0] sm:$0xff] }
 0x3b3   : > { %9957 = vmatpush.bf16.msra.mxu0 %v14965_v24  ;;  %v9751_v46 = vpop.f32.mrf.mxu0  ;;  %v2563_v24 = vpack.c.b16 %v2442_v18, %v2442_v18 }
 0x3b4   : > { %9983 = vmatpush.bf16.msra.mxu2 %v14981_v25  ;;  %v9752_v47 = vadd.f32 %v9751_v46, %v16182_v8  ;;  %v15035_v25 = vld [vmem:[%s15138_s25 + $0x1e30] sm:$0xff] }
 0x3b5   : > { %9970 = vmatpush.bf16.msra.mxu1 %v14973_v30  ;;  %v9764_v50 = vpop.f32.mrf.mxu1 }
 0x3b6   : > { %9996 = vmatpush.bf16.msra.mxu3 %v14989_v31  ;;  %9958 = vmatmul.bf16.vlgmr.msra.gmra.mxu0 %v2556_v32  ;;  %v9765_v51 = vadd.f32 %v9764_v50, %v9752_v47  ;;  %v15032_v32 = vld [vmem:[%s15138_s25 + $0x1e18] sm:$0xff] }
 0x3b7   : > { %10002 = vmatpush.bf16.msrb.mxu0 %v15004_v26  ;;  %9984 = vmatmul.bf16.vlgmr.msra.gmra.mxu2 %v2558_v33  ;;  %v15034_v26 = vld [vmem:[%s15138_s25 + $0x1e28] sm:$0xff] }
 0x3b8   : > { %10028 = vmatpush.bf16.msrb.mxu2 %v15020_v27  ;;  %9971 = vmatmul.bf16.vlgmr.msra.gmra.mxu1 %v2557_v36 }
 0x3b9   : > { %10015 = vmatpush.bf16.msrb.mxu1 %v15012_v34  ;;  %9997 = vmatmul.bf16.vlgmr.msra.gmra.mxu3 %v2559_v37 }
 0x3ba   : > { %10041 = vmatpush.bf16.msrb.mxu3 %v15028_v35  ;;  %v9777_v56 = vpop.f32.mrf.mxu2 }
 0x3bb   : > { %10003 = vmatpush.bf16.msrb.mxu0 %v15003_v38  ;;  %v9778_v57 = vadd.f32 %v9777_v56, %v9765_v51  ;;  %v9753_v61 = vpop.f32.mrf.mxu0  ;;  %v15031_v38 = vld [vmem:[%s15138_s25 + $0x1e10] sm:$0xff] }
 0x3bc   : > { %10029 = vmatpush.bf16.msrb.mxu2 %v15019_v39  ;;  %v9790_v60 = vpop.f32.mrf.mxu3 }
 0x3bd   : > { %10016 = vmatpush.bf16.msrb.mxu1 %v15011_v40  ;;  %v9791_v62 = vadd.f32 %v9790_v60, %v9778_v57  ;;  %v9766_v1 = vpop.f32.mrf.mxu1  ;;  %v15030_v40 = vld [vmem:[%s15138_s25 + $0x1e08] sm:$0xff] }
 0x3be   : > { %10042 = vmatpush.bf16.msrb.mxu3 %v15027_v41  ;;  %v325_v41 = vld [vmem:[%s15133_s21 + $0x1e0] sm:$0xf] }
 0x3bf   : > { %10004 = vmatpush.bf16.msrb.mxu0 %v15002_v42 }
 0x3c0   : > { %10030 = vmatpush.bf16.msrb.mxu2 %v15018_v43 }
 0x3c1   : > { %10017 = vmatpush.bf16.msrb.mxu1 %v15010_v44  ;;  %v2443_v44 = vunpack.c.l.b16 %v325_v41 }
 0x3c2   : > { %10043 = vmatpush.bf16.msrb.mxu3 %v15026_v45  ;;  %v9779_v8 = vpop.f32.mrf.mxu2  ;;  %v15029_v45 = vld [vmem:[%s15138_s25 + $0x1e00] sm:$0xff] }
 0x3c3   : > { %10005 = vmatpush.bf16.msrb.mxu0 %v15001_v48  ;;  %v2564_v46 = vpack.c.b16 %v2443_v44, %v2443_v44 }
 0x3c4   : > { %10031 = vmatpush.bf16.msrb.mxu2 %v15017_v49  ;;  %v9792_v11 = vpop.f32.mrf.mxu3 }
 0x3c5   : > { %10018 = vmatpush.bf16.msrb.mxu1 %v15009_v52 }
 0x3c6   : > { %10044 = vmatpush.bf16.msrb.mxu3 %v15025_v53 }
 0x3c7   : > { %10006 = vmatpush.bf16.msrb.mxu0 %v15000_v54 }
 0x3c8   : > { %10032 = vmatpush.bf16.msrb.mxu2 %v15016_v55 }
 0x3c9   : > { %10019 = vmatpush.bf16.msrb.mxu1 %v15008_v58 }
 0x3ca   : > { %10045 = vmatpush.bf16.msrb.mxu3 %v15024_v59 }
 0x3cb   : > { %10007 = vmatpush.bf16.msrb.mxu0 %v14999_v63 }
 0x3cc   : > { %10033 = vmatpush.bf16.msrb.mxu2 %v15015_v0 }
 0x3cd   : > { %10020 = vmatpush.bf16.msrb.mxu1 %v15007_v2 }
 0x3ce   : > { %10046 = vmatpush.bf16.msrb.mxu3 %v15023_v3 }
 0x3cf   : > { %10008 = vmatpush.bf16.msrb.mxu0 %v14998_v4 }
 0x3d0   : > { %10034 = vmatpush.bf16.msrb.mxu2 %v15014_v5 }
 0x3d1   : > { %10021 = vmatpush.bf16.msrb.mxu1 %v15006_v9 }
 0x3d2   : > { %10047 = vmatpush.bf16.msrb.mxu3 %v15022_v10 }
 0x3d3   : > { %10009 = vmatpush.bf16.msrb.mxu0 %v14997_v14  ;;  %v9803_v27 = vpop.f32.mrf.mxu0 }
 0x3d4   : > { %10035 = vmatpush.bf16.msrb.mxu2 %v15013_v15  ;;  %v9804_v28 = vadd.f32 %v9803_v27, %v9791_v62 }
 0x3d5   : > { %10022 = vmatpush.bf16.msrb.mxu1 %v15005_v19  ;;  %v9816_v30 = vpop.f32.mrf.mxu1 }
 0x3d6   : > { %10048 = vmatpush.bf16.msrb.mxu3 %v15021_v20  ;;  %10010 = vmatmul.bf16.vlgmr.msrb.gmra.mxu0 %v2560_v21  ;;  %v9817_v31 = vadd.f32 %v9816_v30, %v9804_v28 }
 0x3d7   : > { %10054 = vmatpush.bf16.msra.mxu0 %v15036_v16  ;;  %10036 = vmatmul.bf16.vlgmr.msrb.gmra.mxu2 %v2562_v22 }
 0x3d8   : > { %10023 = vmatmul.bf16.vlgmr.msrb.gmra.mxu1 %v2561_v23 }
 0x3d9   : > { %10049 = vmatmul.bf16.vlgmr.msrb.gmra.mxu3 %v2563_v24 }
 0x3da   : > { %v9829_v33 = vpop.f32.mrf.mxu2 }
 0x3db   : > { %10055 = vmatpush.bf16.msra.mxu0 %v15035_v25  ;;  %v9830_v34 = vadd.f32 %v9829_v33, %v9817_v31  ;;  %v9805_v36 = vpop.f32.mrf.mxu0  ;;  %v264_v31 = vld [vmem:[#allocation2] sm:$0xff] }
 0x3dc   : > { %v9842_v35 = vpop.f32.mrf.mxu3 }
 0x3dd   : > { %v9843_v37 = vadd.f32 %v9842_v35, %v9830_v34  ;;  %v9818_v39 = vpop.f32.mrf.mxu1 }
 0x3df   : > { %10056 = vmatpush.bf16.msra.mxu0 %v15034_v26 }
 0x3e2   : > { %v9831_v42 = vpop.f32.mrf.mxu2 }
 0x3e3   : > { %10057 = vmatpush.bf16.msra.mxu0 %v15033_v29 }
 0x3e4   : > { %v9844_v43 = vpop.f32.mrf.mxu3 }
 0x3e7   : > { %10058 = vmatpush.bf16.msra.mxu0 %v15032_v32 }
 0x3eb   : > { %10059 = vmatpush.bf16.msra.mxu0 %v15031_v38 }
 0x3ef   : > { %10060 = vmatpush.bf16.msra.mxu0 %v15030_v40 }
 0x3f3   : > { %10061 = vmatpush.bf16.msra.mxu0 %v15029_v45  ;;  %v9855_v47 = vpop.f32.mrf.mxu0 }
 0x3f4   : > { %v9856_v48 = vadd.f32 %v9855_v47, %v9843_v37 }
 0x3f5   : > { %v9868_v49 = vpop.f32.mrf.mxu1 }
 0x3f6   : > { %10062 = vmatmul.bf16.vlgmr.msra.gmra.mxu0 %v2564_v46  ;;  %v9869_v50 = vadd.f32 %v9868_v49, %v9856_v48 }
 0x3fa   : > { %v9881_v51 = vpop.f32.mrf.mxu2 }
 0x3fb   : > { %v9882_v52 = vadd.f32 %v9881_v51, %v9869_v50  ;;  %v9857_v54 = vpop.f32.mrf.mxu0 }
 0x3fc   : > { %v9894_v53 = vpop.f32.mrf.mxu3 }
 0x3fd   : > { %v9895_v55 = vadd.f32 %v9894_v53, %v9882_v52  ;;  %v9870_v56 = vpop.f32.mrf.mxu1 }
 0x402   : > { %v9883_v57 = vpop.f32.mrf.mxu2 }
 0x404   : > { %v9896_v58 = vpop.f32.mrf.mxu3 }
 0x413   : > { %v9907_v59 = vpop.f32.mrf.mxu0 }
 0x414   : > { %v9908_v60 = vadd.f32 %v9907_v59, %v9895_v55 }
 0x415   : > { %v9920_v61 = vpop.f32.mrf.mxu1 }
 0x416   : > { %v9921_v62 = vadd.f32 %v9920_v61, %v9908_v60 }
 0x41a   : > { %v9933_v63 = vpop.f32.mrf.mxu2 }
 0x41b   : > { %v9934_v0 = vadd.f32 %v9933_v63, %v9921_v62  ;;  %v9909_v2 = vpop.f32.mrf.mxu0 }
 0x41c   : > { %v9946_v1 = vpop.f32.mrf.mxu3 }
 0x41d   : > { %v9947_v3 = vadd.f32 %v9946_v1, %v9934_v0  ;;  %v9922_v4 = vpop.f32.mrf.mxu1 }
 0x422   : > { %v9935_v5 = vpop.f32.mrf.mxu2 }
 0x424   : > { %v9948_v6 = vpop.f32.mrf.mxu3 }
 0x433   : > { %v9959_v7 = vpop.f32.mrf.mxu0 }
 0x434   : > { %v9960_v18 = vadd.f32 %v9959_v7, %v9947_v3 }
 0x435   : > { %v9972_v8 = vpop.f32.mrf.mxu1 }
 0x436   : > { %v9973_v22 = vadd.f32 %v9972_v8, %v9960_v18 }
 0x43a   : > { %v9985_v9 = vpop.f32.mrf.mxu2 }
 0x43b   : > { %v9961_v11 = vpop.f32.mrf.mxu0  ;;  %v9986_v23 = vadd.f32 %v9985_v9, %v9973_v22 }
 0x43c   : > { %v9998_v10 = vpop.f32.mrf.mxu3 }
 0x43d   : > { %v9974_v12 = vpop.f32.mrf.mxu1  ;;  %v9999_v26 = vadd.f32 %v9998_v10, %v9986_v23 }
 0x442   : > { %v9987_v13 = vpop.f32.mrf.mxu2 }
 0x444   : > { %v10000_v14 = vpop.f32.mrf.mxu3 }
 0x453   : > { %v10011_v15 = vpop.f32.mrf.mxu0 }
 0x454   : > { %v10012_v27 = vadd.f32 %v10011_v15, %v9999_v26 }
 0x455   : > { %v10024_v16 = vpop.f32.mrf.mxu1 }
 0x456   : > { %v10025_v28 = vadd.f32 %v10024_v16, %v10012_v27 }
 0x45a   : > { %v10037_v17 = vpop.f32.mrf.mxu2 }
 0x45b   : > { %v10013_v20 = vpop.f32.mrf.mxu0  ;;  %v10038_v29 = vadd.f32 %v10037_v17, %v10025_v28 }
 0x45c   : > { %v10050_v19 = vpop.f32.mrf.mxu3 }
 0x45d   : > { %v10026_v21 = vpop.f32.mrf.mxu1  ;;  %v10051_v30 = vadd.f32 %v10050_v19, %v10038_v29 }
 0x462   : > { %v10039_v24 = vpop.f32.mrf.mxu2 }
 0x464   : > { %v10052_v25 = vpop.f32.mrf.mxu3 }
 0x473   : > { %v10063_v32 = vpop.f32.mrf.mxu0 }
 0x474   : > { %v10064_v33 = vadd.f32 %v10063_v32, %v10051_v30 }
 0x476   : > { %v10067_v34 = vadd.f32 %v10064_v33, %v264_v31 }
 0x477   : > { %10072 = sbr.rel (%p14065_p7) target bundleno = 1155 (0x483), region = 40 }
 0x478   : > { %10068 = vst [vmem:[#allocation2] sm:$0xff] %v10067_v34 }
 0x47b   : > { %v10065_v35 = vpop.f32.mrf.mxu0 }
 0x47c   : > { %v15062_v37 = vld [vmem:[%s16260_s2] ss:$0 sm:$0xff] }
 0x47f   : > { %v10073_v36 = vld [vmem:[#allocation2] sm:$0xff] }
 0x480   : > { %v10078_v38 = vadd.f32 %v15062_v37, %v10073_v36 }
 0x482   : > { %10079 = vst [vmem:[%s16261_s3] sm:$0xff] %v10078_v38 }
 0x483 PF: > { %s13_s14 = sadd.s32 1, %s15085_s14   ;;  %s16262_s12 = smov %s15081_s13 }
 0x484   : > { %p10_p8 = scmp.ge.s32.totalorder %s13_s14, 4   ;;  %s16263_s13 = smov %s16265_s15 }
 0x486   :  { %12 = sbr.rel (!%p10_p8) target bundleno = 2 (0x2), region = 76 }

</bundles_post_ra>
